<compile_context>
chip_gen: v5e
topology: v5e:2x2
jax: 0.10.0
libtpu: 0.0.40
codegen_flags: <defaults>
</compile_context>

<pallas_src>
import jax
import jax.numpy as jnp
from jax.experimental import pallas as pl
from jax.experimental.pallas import tpu as pltpu

# Config mirroring TransformerPairWiseClassifier.__init__:
#   bert_hidden_size=32, with_head_attention=True      -> 3*32 = 96
#   with_mention_width=True, embedding_dimension=32    -> +32  = 128
#   with_type_embedding=False, num_encoder_layers=1
D_MODEL = 128
D_FF    = 2048       # torch.nn.Transformer default dim_feedforward
LN_EPS  = 1e-5       # torch default layer_norm_eps

# Indices into the stacked D-length vectors (19, D):
(BA_E, B2_E, LN1E_G, LN1E_B, LN2E_G, LN2E_B, LNFE_G, LNFE_B,
 BA_D1, BA_D2, B2_D, LN1D_G, LN1D_B, LN2D_G, LN2D_B,
 LN3D_G, LN3D_B, LNFD_G, LNFD_B) = range(19)
N_VD = 19
# Indices into the stacked F-length vectors (2, F):
B1_E, B1_D = range(2)

# Resolved on the first call: True if this jax build accepts pl.Buffered(1) for
# single-buffered resident weights, False otherwise.
_WEIGHT_SINGLE_BUFFER = None


def _round_up(x, m):
    return (x + m - 1) // m * m


def _choose_tile(n, max_tile):
    """Pick the activation tile size.

    Single step (tile == padded N) if everything fits in one tile; otherwise tiles
    are multiples of 128 so the lane-dense (1, tile) score row needs no masked
    stores, preferring (a) an even step count (v7x megacore splits the 'parallel'
    grid across 2 TensorCores), then (b) least padded work, then (c) fewer steps.
    """
    n8 = _round_up(n, 8)
    if n8 <= max_tile:
        return n8
    best_key, best_tile = None, 128
    tile = 128
    while tile <= max_tile:
        steps = -(-n8 // tile)
        key = (steps % 2, steps * tile, steps)
        if best_key is None or key < best_key:
            best_key, best_tile = key, tile
        tile += 128
    return best_tile


def pairwise_kernel(first_ref, second_ref, wax_ref, wac_ref, w1_ref, w2_ref,
                    vd_ref, vf_ref, out_ref):
    # Layout: (TILE_N, D) activation tile; all weights VMEM-resident across the grid.
    x     = second_ref[...]        # (T, D) f32  — src == tgt == `second`
    first = first_ref[...]         # (T, D) f32
    vd    = vd_ref[...]            # (19, D) f32 biases / LayerNorm params
    vf    = vf_ref[...]            # (2,  F) f32 FFN hidden biases

    def drow(i):                   # (1, D) broadcastable row
        return vd[i:i + 1, :]

    def frow(i):                   # (1, F)
        return vf[i:i + 1, :]

    def layer_norm(v, gi, bi):
        mu  = jnp.mean(v, axis=-1, keepdims=True)
        c   = v - mu
        var = jnp.mean(c * c, axis=-1, keepdims=True)
        return c * jax.lax.rsqrt(var + LN_EPS) * drow(gi) + drow(bi)

    def bdot(v, w):
        # bf16 activation tile x resident bf16 weight -> native MXU bf16 path,
        # f32 accumulation.  Only the small activation tile is cast.
        return jnp.dot(v.astype(jnp.bfloat16), w,
                       preferred_element_type=jnp.float32)

    def ffn(v, li, b1_i, b2_i):
        h = jnp.maximum(bdot(v, w1_ref[li]) + frow(b1_i), 0.0)
        return bdot(h, w2_ref[li]) + drow(b2_i)

    # seq_len == 1 => softmax over a single key == 1.0 exactly => attention reduces
    # to out_proj(v_proj(.)), pre-folded host-side.  Encoder self-attn and decoder
    # self-attn both act on x, so their folded matrices are fused into one (D, 2D)
    # weight: one lane-dense 256-wide MXU matmul, then slice.
    proj = bdot(x, wax_ref[...])                     # (T, 2D) f32
    sa_e = proj[:, :D_MODEL] + drow(BA_E)
    sa_d = proj[:, D_MODEL:] + drow(BA_D1)

    # ---- Encoder layer (post-norm), dropout = identity (eval mode) ----
    e1     = layer_norm(x + sa_e, LN1E_G, LN1E_B)
    e2     = layer_norm(e1 + ffn(e1, 0, B1_E, B2_E), LN2E_G, LN2E_B)
    memory = layer_norm(e2, LNFE_G, LNFE_B)          # encoder final LayerNorm

    # ---- Decoder layer (post-norm) ----
    t1      = layer_norm(x + sa_d, LN1D_G, LN1D_B)   # self-attn on tgt
    ca      = bdot(memory, wac_ref[...]) + drow(BA_D2)   # cross-attn (memory len 1)
    t2      = layer_norm(t1 + ca, LN2D_G, LN2D_B)
    t3      = layer_norm(t2 + ffn(t2, 1, B1_D, B2_D), LN3D_G, LN3D_B)
    first_c = layer_norm(t3, LNFD_G, LNFD_B)         # decoder final LayerNorm

    # scores = sum(first * first_c, dim=-1) — written lane-dense as a (1, T) row.
    scores = jnp.sum(first * first_c, axis=-1)       # (T,)
    out_ref[...] = scores[None, :]


def _resident_spec(arr, single_buffer):
    # Whole array as one block with a constant index_map -> fetched once, stays
    # resident in VMEM across all grid steps.  Single-buffered when supported
    # (constant blocks gain nothing from double-buffering).
    nd = arr.ndim
    if single_buffer:
        return pl.BlockSpec(arr.shape, lambda i: (0,) * nd,
                            pipeline_mode=pl.Buffered(1))
    return pl.BlockSpec(arr.shape, lambda i: (0,) * nd)


def transformer_pairwise_classifier(first, second, params, tile_n=256):
    global _WEIGHT_SINGLE_BUFFER
    n, d = first.shape
    assert d == D_MODEL, f"expected d_model={D_MODEL}, got {d}"
    tile = _choose_tile(n, tile_n)
    n_pad = _round_up(n, tile)
    if n_pad != n:
        # Pad rows are zeros: LayerNorm stays finite (eps) and first==0 => score 0;
        # padded scores are sliced off below and never used.
        first = jnp.pad(first, ((0, n_pad - n), (0, 0)))
        second = jnp.pad(second, ((0, n_pad - n), (0, 0)))

    act_spec = pl.BlockSpec((tile, D_MODEL), lambda i: (i, 0))
    weights = (params["wa_x"], params["wa_c"], params["w1"], params["w2"],
               params["vd"], params["vf"])

    def run(single_buffer):
        in_specs = [act_spec, act_spec] + [_resident_spec(w, single_buffer)
                                           for w in weights]
        return pl.pallas_call(
            pairwise_kernel,
            out_shape=jax.ShapeDtypeStruct((1, n_pad), jnp.float32),
            grid=(n_pad // tile,),
            in_specs=in_specs,
            out_specs=pl.BlockSpec((1, tile), lambda i: (0, i)),
            compiler_params=pltpu.CompilerParams(
                dimension_semantics=("parallel",),      # 2x on v7x's two TCs
                vmem_limit_bytes=32 * 1024 * 1024),
        )(first, second, *weights)

    if _WEIGHT_SINGLE_BUFFER is None:
        try:
            out = run(True)
            _WEIGHT_SINGLE_BUFFER = True
        except Exception:
            # Fallback if this jax build rejects pl.Buffered(1); default buffering
            # is still correct (constant index_map => fetched once anyway).
            out = run(False)
            _WEIGHT_SINGLE_BUFFER = False
    else:
        out = run(_WEIGHT_SINGLE_BUFFER)
    return out[0, :n].reshape(n, 1)


def init_raw_params(key):
    """Deterministic synthetic torch.nn.Transformer parameters (f32).

    Linear weights are already pre-transposed to (in, out) layout.
    """
    D, F = D_MODEL, D_FF
    ks = iter(list(jax.random.split(key, 32)))

    def u(k, shape, fan_in):
        bound = 1.0 / float(fan_in) ** 0.5
        return jax.random.uniform(k, shape, jnp.float32, -bound, bound)

    def linear(din, dout):
        return u(next(ks), (din, dout), din), u(next(ks), (dout,), din)

    def attn_block():
        wv, bv = linear(D, D)
        wo, bo = linear(D, D)
        return dict(wv=wv, bv=bv, wo=wo, bo=bo)

    def ffn_block():
        w1, b1 = linear(D, F)
        w2, b2 = linear(F, D)
        return dict(w1=w1, b1=b1, w2=w2, b2=b2)

    def ln():
        return dict(g=jnp.ones((D,), jnp.float32), b=jnp.zeros((D,), jnp.float32))

    enc = dict(sa=attn_block(), ffn=ffn_block(), ln1=ln(), ln2=ln(), norm=ln())
    dec = dict(sa=attn_block(), ca=attn_block(), ffn=ffn_block(),
               ln1=ln(), ln2=ln(), ln3=ln(), norm=ln())
    return dict(enc=enc, dec=dec)


def prepare_params(raw):
    """Fold attention projections, fuse the two x-projections, cast weights to bf16."""
    hi = jax.lax.Precision.HIGHEST

    def fold(a):   # out_proj(v_proj(x)) == x @ (wv@wo) + (bv@wo + bo)
        w = jnp.dot(a["wv"], a["wo"], precision=hi)
        b = jnp.dot(a["bv"], a["wo"], precision=hi) + a["bo"]
        return w, b

    enc, dec = raw["enc"], raw["dec"]
    wa_e, ba_e = fold(enc["sa"])
    wa_d1, ba_d1 = fold(dec["sa"])
    wa_d2, ba_d2 = fold(dec["ca"])

    # Encoder-self and decoder-self attention both act on x: fuse into one (D, 2D)
    # lane-dense matrix for a single 256-wide MXU matmul per tile.
    wa_x = jnp.concatenate([wa_e, wa_d1], axis=1).astype(jnp.bfloat16)   # (D, 2D)
    wa_c = wa_d2.astype(jnp.bfloat16)                                    # (D, D)

    w1 = jnp.stack([enc["ffn"]["w1"], dec["ffn"]["w1"]]).astype(jnp.bfloat16)  # (2,D,F)
    w2 = jnp.stack([enc["ffn"]["w2"], dec["ffn"]["w2"]]).astype(jnp.bfloat16)  # (2,F,D)
    vf = jnp.stack([enc["ffn"]["b1"], dec["ffn"]["b1"]])                 # (2,F) f32

    vd = jnp.zeros((N_VD, D_MODEL), jnp.float32)
    sets = {BA_E: ba_e, B2_E: enc["ffn"]["b2"],
            LN1E_G: enc["ln1"]["g"], LN1E_B: enc["ln1"]["b"],
            LN2E_G: enc["ln2"]["g"], LN2E_B: enc["ln2"]["b"],
            LNFE_G: enc["norm"]["g"], LNFE_B: enc["norm"]["b"],
            BA_D1: ba_d1, BA_D2: ba_d2, B2_D: dec["ffn"]["b2"],
            LN1D_G: dec["ln1"]["g"], LN1D_B: dec["ln1"]["b"],
            LN2D_G: dec["ln2"]["g"], LN2D_B: dec["ln2"]["b"],
            LN3D_G: dec["ln3"]["g"], LN3D_B: dec["ln3"]["b"],
            LNFD_G: dec["norm"]["g"], LNFD_B: dec["norm"]["b"]}
    for i, v in sets.items():
        vd = vd.at[i].set(v)
    return dict(wa_x=wa_x, wa_c=wa_c, w1=w1, w2=w2, vd=vd, vf=vf)


def reference(first, second, params):
    """Plain-JAX mirror of the kernel math (same bf16 weights / bf16 activation casts,
    f32 accumulation and f32 LayerNorm), for correctness checking."""
    wa_x, wa_c = params["wa_x"], params["wa_c"]
    w1, w2 = params["w1"], params["w2"]
    vd, vf = params["vd"], params["vf"]

    def ln(v, gi, bi):
        mu = jnp.mean(v, -1, keepdims=True)
        c = v - mu
        var = jnp.mean(c * c, -1, keepdims=True)
        return c * jax.lax.rsqrt(var + LN_EPS) * vd[gi] + vd[bi]

    def bdot(v, w):
        return jnp.dot(v.astype(jnp.bfloat16), w,
                       preferred_element_type=jnp.float32)

    def ffn(v, li, b1i, b2i):
        h = jnp.maximum(bdot(v, w1[li]) + vf[b1i], 0.0)
        return bdot(h, w2[li]) + vd[b2i]

    x = second
    proj = bdot(x, wa_x)
    sa_e = proj[:, :D_MODEL] + vd[BA_E]
    sa_d = proj[:, D_MODEL:] + vd[BA_D1]

    e1 = ln(x + sa_e, LN1E_G, LN1E_B)
    e2 = ln(e1 + ffn(e1, 0, B1_E, B2_E), LN2E_G, LN2E_B)
    memory = ln(e2, LNFE_G, LNFE_B)
    t1 = ln(x + sa_d, LN1D_G, LN1D_B)
    t2 = ln(t1 + bdot(memory, wa_c) + vd[BA_D2], LN2D_G, LN2D_B)
    t3 = ln(t2 + ffn(t2, 1, B1_D, B2_D), LN3D_G, LN3D_B)
    first_c = ln(t3, LNFD_G, LNFD_B)
    return jnp.sum(first * first_c, axis=-1, keepdims=True)


# TODO(synk): predict_cluster's numpy DFS connected-components is host-side control
# flow with data-dependent recursion; it has no Pallas equivalent and is out of scope
# for the forward-pass kernel.

if __name__ == "__main__":
    key = jax.random.PRNGKey(0)
    kp, k1, k2, k3, k4 = jax.random.split(key, 5)
    raw = init_raw_params(kp)
    params = prepare_params(raw)

    # Small case mirroring per-call module usage (8 span pairs, d_model=128).
    n_small = 8
    first = jax.random.normal(k1, (n_small, D_MODEL), jnp.float32)
    second = jax.random.normal(k2, (n_small, D_MODEL), jnp.float32)
    scores = jax.block_until_ready(
        transformer_pairwise_classifier(first, second, params))
    assert scores.shape == (n_small, 1) and scores.dtype == jnp.float32
    ref = reference(first, second, params)
    assert jnp.allclose(scores, ref, rtol=1e-2, atol=1e-2), (scores, ref)

    # Batched case exercising the grid (multiple tiles + padding, even step count),
    # i.e. the predict_cluster-style span_num**2 pair batch.
    n_big = 300
    first_b = jax.random.normal(k3, (n_big, D_MODEL), jnp.float32)
    second_b = jax.random.normal(k4, (n_big, D_MODEL), jnp.float32)
    scores_b = jax.block_until_ready(
        transformer_pairwise_classifier(first_b, second_b, params))
    assert scores_b.shape == (n_big, 1)
    ref_b = reference(first_b, second_b, params)
    assert jnp.allclose(scores_b, ref_b, rtol=1e-2, atol=1e-2)

    print("KERNEL_OK")
</pallas_src>

<mosaic_0001>
module attributes {stable_mosaic.version = 11 : i64} {
  func.func @pairwise_kernel(%arg0: i32, %arg1: memref<8x128xf32, #tpu.memory_space<vmem>>, %arg2: memref<8x128xf32, #tpu.memory_space<vmem>>, %arg3: memref<128x256xbf16, #tpu.memory_space<vmem>>, %arg4: memref<128x128xbf16, #tpu.memory_space<vmem>>, %arg5: memref<2x128x2048xbf16, #tpu.memory_space<vmem>>, %arg6: memref<2x2048x128xbf16, #tpu.memory_space<vmem>>, %arg7: memref<19x128xf32, #tpu.memory_space<vmem>>, %arg8: memref<2x2048xf32, #tpu.memory_space<vmem>>, %arg9: memref<1x8xf32, #tpu.memory_space<vmem>>) attributes {dimension_semantics = [#tpu.dimension_semantics<parallel>], iteration_bounds = array<i64: 1>, scalar_prefetch = 0 : i64, scratch_operands = 0 : i64, tpu.core_type = #tpu.core_type<tc>, window_params = [{transform_indices = @transform_0, window_bounds = array<i64: 8, 128>}, {transform_indices = @transform_1, window_bounds = array<i64: 8, 128>}, {pipeline_mode = #tpu.pipeline_mode<synchronous>, transform_indices = @transform_2, window_bounds = array<i64: 128, 256>}, {pipeline_mode = #tpu.pipeline_mode<synchronous>, transform_indices = @transform_3, window_bounds = array<i64: 128, 128>}, {pipeline_mode = #tpu.pipeline_mode<synchronous>, transform_indices = @transform_4, window_bounds = array<i64: 2, 128, 2048>}, {pipeline_mode = #tpu.pipeline_mode<synchronous>, transform_indices = @transform_5, window_bounds = array<i64: 2, 2048, 128>}, {pipeline_mode = #tpu.pipeline_mode<synchronous>, transform_indices = @transform_6, window_bounds = array<i64: 19, 128>}, {pipeline_mode = #tpu.pipeline_mode<synchronous>, transform_indices = @transform_7, window_bounds = array<i64: 2, 2048>}, {transform_indices = @transform_8, window_bounds = array<i64: 1, 8>}]} {
    %c0 = arith.constant 0 : index
    %c0_0 = arith.constant 0 : index
    %0 = vector.load %arg2[%c0, %c0_0] : memref<8x128xf32, #tpu.memory_space<vmem>>, vector<8x128xf32>
    %c0_1 = arith.constant 0 : index
    %c0_2 = arith.constant 0 : index
    %1 = vector.load %arg1[%c0_1, %c0_2] : memref<8x128xf32, #tpu.memory_space<vmem>>, vector<8x128xf32>
    %c0_3 = arith.constant 0 : index
    %c0_4 = arith.constant 0 : index
    %2 = vector.load %arg7[%c0_3, %c0_4] : memref<19x128xf32, #tpu.memory_space<vmem>>, vector<19x128xf32>
    %c0_5 = arith.constant 0 : index
    %c0_6 = arith.constant 0 : index
    %3 = vector.load %arg8[%c0_5, %c0_6] : memref<2x2048xf32, #tpu.memory_space<vmem>>, vector<2x2048xf32>
    %c0_7 = arith.constant 0 : index
    %c0_8 = arith.constant 0 : index
    %4 = vector.load %arg3[%c0_7, %c0_8] : memref<128x256xbf16, #tpu.memory_space<vmem>>, vector<128x256xbf16>
    %5 = arith.truncf %0 : vector<8x128xf32> to vector<8x128xbf16>
    %cst = arith.constant dense<0.000000e+00> : vector<8x256xf32>
    %6 = tpu.matmul %5, %4, %cst {dimension_numbers = #tpu.dot_dimension_numbers<[1], [0], [0], [1], [0, 0, 1, 1], [], []>} : vector<8x128xbf16>, vector<128x256xbf16>, vector<8x256xf32> -> vector<8x256xf32>
    %7 = vector.extract_strided_slice %6 {offsets = [0, 0], sizes = [8, 128], strides = [1, 1]} : vector<8x256xf32> to vector<8x128xf32>
    %8 = vector.extract_strided_slice %2 {offsets = [0, 0], sizes = [1, 128], strides = [1, 1]} : vector<19x128xf32> to vector<1x128xf32>
    %9 = vector.broadcast %8 : vector<1x128xf32> to vector<8x128xf32>
    %10 = arith.addf %7, %9 : vector<8x128xf32>
    %11 = vector.extract_strided_slice %6 {offsets = [0, 128], sizes = [8, 128], strides = [1, 1]} : vector<8x256xf32> to vector<8x128xf32>
    %12 = vector.extract_strided_slice %2 {offsets = [8, 0], sizes = [1, 128], strides = [1, 1]} : vector<19x128xf32> to vector<1x128xf32>
    %13 = vector.broadcast %12 : vector<1x128xf32> to vector<8x128xf32>
    %14 = arith.addf %11, %13 : vector<8x128xf32>
    %15 = arith.addf %0, %10 : vector<8x128xf32>
    %cst_9 = arith.constant dense<0.000000e+00> : vector<8xf32>
    %16 = vector.multi_reduction <add>, %15, %cst_9 [1] : vector<8x128xf32> to vector<8xf32>
    %17 = vector.shape_cast %16 : vector<8xf32> to vector<8x1xf32>
    %cst_10 = arith.constant 1.280000e+02 : f32
    %18 = vector.broadcast %cst_10 : f32 to vector<8x1xf32>
    %19 = arith.divf %17, %18 : vector<8x1xf32>
    %20 = vector.broadcast %19 : vector<8x1xf32> to vector<8x128xf32>
    %21 = arith.subf %15, %20 : vector<8x128xf32>
    %22 = arith.mulf %21, %21 : vector<8x128xf32>
    %cst_11 = arith.constant dense<0.000000e+00> : vector<8xf32>
    %23 = vector.multi_reduction <add>, %22, %cst_11 [1] : vector<8x128xf32> to vector<8xf32>
    %24 = vector.shape_cast %23 : vector<8xf32> to vector<8x1xf32>
    %cst_12 = arith.constant 1.280000e+02 : f32
    %25 = vector.broadcast %cst_12 : f32 to vector<8x1xf32>
    %26 = arith.divf %24, %25 : vector<8x1xf32>
    %cst_13 = arith.constant 9.99999974E-6 : f32
    %27 = vector.broadcast %cst_13 : f32 to vector<8x1xf32>
    %28 = arith.addf %26, %27 : vector<8x1xf32>
    %29 = math.rsqrt %28 : vector<8x1xf32>
    %30 = vector.broadcast %29 : vector<8x1xf32> to vector<8x128xf32>
    %31 = arith.mulf %21, %30 : vector<8x128xf32>
    %32 = vector.extract_strided_slice %2 {offsets = [2, 0], sizes = [1, 128], strides = [1, 1]} : vector<19x128xf32> to vector<1x128xf32>
    %33 = vector.broadcast %32 : vector<1x128xf32> to vector<8x128xf32>
    %34 = arith.mulf %31, %33 : vector<8x128xf32>
    %35 = vector.extract_strided_slice %2 {offsets = [3, 0], sizes = [1, 128], strides = [1, 1]} : vector<19x128xf32> to vector<1x128xf32>
    %36 = vector.broadcast %35 : vector<1x128xf32> to vector<8x128xf32>
    %37 = arith.addf %34, %36 : vector<8x128xf32>
    %c0_14 = arith.constant 0 : index
    %c0_15 = arith.constant 0 : index
    %c0_16 = arith.constant 0 : index
    %38 = vector.load %arg5[%c0_14, %c0_15, %c0_16] : memref<2x128x2048xbf16, #tpu.memory_space<vmem>>, vector<1x128x2048xbf16>
    %39 = vector.shape_cast %38 : vector<1x128x2048xbf16> to vector<128x2048xbf16>
    %40 = arith.truncf %37 : vector<8x128xf32> to vector<8x128xbf16>
    %cst_17 = arith.constant dense<0.000000e+00> : vector<8x2048xf32>
    %41 = tpu.matmul %40, %39, %cst_17 {dimension_numbers = #tpu.dot_dimension_numbers<[1], [0], [0], [1], [0, 0, 1, 1], [], []>} : vector<8x128xbf16>, vector<128x2048xbf16>, vector<8x2048xf32> -> vector<8x2048xf32>
    %42 = vector.extract_strided_slice %3 {offsets = [0, 0], sizes = [1, 2048], strides = [1, 1]} : vector<2x2048xf32> to vector<1x2048xf32>
    %43 = vector.broadcast %42 : vector<1x2048xf32> to vector<8x2048xf32>
    %44 = arith.addf %41, %43 : vector<8x2048xf32>
    %cst_18 = arith.constant 0.000000e+00 : f32
    %45 = vector.broadcast %cst_18 : f32 to vector<8x2048xf32>
    %46 = arith.maximumf %44, %45 : vector<8x2048xf32>
    %c0_19 = arith.constant 0 : index
    %c0_20 = arith.constant 0 : index
    %c0_21 = arith.constant 0 : index
    %47 = vector.load %arg6[%c0_19, %c0_20, %c0_21] : memref<2x2048x128xbf16, #tpu.memory_space<vmem>>, vector<1x2048x128xbf16>
    %48 = vector.shape_cast %47 : vector<1x2048x128xbf16> to vector<2048x128xbf16>
    %49 = arith.truncf %46 : vector<8x2048xf32> to vector<8x2048xbf16>
    %cst_22 = arith.constant dense<0.000000e+00> : vector<8x128xf32>
    %50 = tpu.matmul %49, %48, %cst_22 {dimension_numbers = #tpu.dot_dimension_numbers<[1], [0], [0], [1], [0, 0, 1, 1], [], []>} : vector<8x2048xbf16>, vector<2048x128xbf16>, vector<8x128xf32> -> vector<8x128xf32>
    %51 = vector.extract_strided_slice %2 {offsets = [1, 0], sizes = [1, 128], strides = [1, 1]} : vector<19x128xf32> to vector<1x128xf32>
    %52 = vector.broadcast %51 : vector<1x128xf32> to vector<8x128xf32>
    %53 = arith.addf %50, %52 : vector<8x128xf32>
    %54 = arith.addf %37, %53 : vector<8x128xf32>
    %cst_23 = arith.constant dense<0.000000e+00> : vector<8xf32>
    %55 = vector.multi_reduction <add>, %54, %cst_23 [1] : vector<8x128xf32> to vector<8xf32>
    %56 = vector.shape_cast %55 : vector<8xf32> to vector<8x1xf32>
    %cst_24 = arith.constant 1.280000e+02 : f32
    %57 = vector.broadcast %cst_24 : f32 to vector<8x1xf32>
    %58 = arith.divf %56, %57 : vector<8x1xf32>
    %59 = vector.broadcast %58 : vector<8x1xf32> to vector<8x128xf32>
    %60 = arith.subf %54, %59 : vector<8x128xf32>
    %61 = arith.mulf %60, %60 : vector<8x128xf32>
    %cst_25 = arith.constant dense<0.000000e+00> : vector<8xf32>
    %62 = vector.multi_reduction <add>, %61, %cst_25 [1] : vector<8x128xf32> to vector<8xf32>
    %63 = vector.shape_cast %62 : vector<8xf32> to vector<8x1xf32>
    %cst_26 = arith.constant 1.280000e+02 : f32
    %64 = vector.broadcast %cst_26 : f32 to vector<8x1xf32>
    %65 = arith.divf %63, %64 : vector<8x1xf32>
    %cst_27 = arith.constant 9.99999974E-6 : f32
    %66 = vector.broadcast %cst_27 : f32 to vector<8x1xf32>
    %67 = arith.addf %65, %66 : vector<8x1xf32>
    %68 = math.rsqrt %67 : vector<8x1xf32>
    %69 = vector.broadcast %68 : vector<8x1xf32> to vector<8x128xf32>
    %70 = arith.mulf %60, %69 : vector<8x128xf32>
    %71 = vector.extract_strided_slice %2 {offsets = [4, 0], sizes = [1, 128], strides = [1, 1]} : vector<19x128xf32> to vector<1x128xf32>
    %72 = vector.broadcast %71 : vector<1x128xf32> to vector<8x128xf32>
    %73 = arith.mulf %70, %72 : vector<8x128xf32>
    %74 = vector.extract_strided_slice %2 {offsets = [5, 0], sizes = [1, 128], strides = [1, 1]} : vector<19x128xf32> to vector<1x128xf32>
    %75 = vector.broadcast %74 : vector<1x128xf32> to vector<8x128xf32>
    %76 = arith.addf %73, %75 : vector<8x128xf32>
    %cst_28 = arith.constant dense<0.000000e+00> : vector<8xf32>
    %77 = vector.multi_reduction <add>, %76, %cst_28 [1] : vector<8x128xf32> to vector<8xf32>
    %78 = vector.shape_cast %77 : vector<8xf32> to vector<8x1xf32>
    %cst_29 = arith.constant 1.280000e+02 : f32
    %79 = vector.broadcast %cst_29 : f32 to vector<8x1xf32>
    %80 = arith.divf %78, %79 : vector<8x1xf32>
    %81 = vector.broadcast %80 : vector<8x1xf32> to vector<8x128xf32>
    %82 = arith.subf %76, %81 : vector<8x128xf32>
    %83 = arith.mulf %82, %82 : vector<8x128xf32>
    %cst_30 = arith.constant dense<0.000000e+00> : vector<8xf32>
    %84 = vector.multi_reduction <add>, %83, %cst_30 [1] : vector<8x128xf32> to vector<8xf32>
    %85 = vector.shape_cast %84 : vector<8xf32> to vector<8x1xf32>
    %cst_31 = arith.constant 1.280000e+02 : f32
    %86 = vector.broadcast %cst_31 : f32 to vector<8x1xf32>
    %87 = arith.divf %85, %86 : vector<8x1xf32>
    %cst_32 = arith.constant 9.99999974E-6 : f32
    %88 = vector.broadcast %cst_32 : f32 to vector<8x1xf32>
    %89 = arith.addf %87, %88 : vector<8x1xf32>
    %90 = math.rsqrt %89 : vector<8x1xf32>
    %91 = vector.broadcast %90 : vector<8x1xf32> to vector<8x128xf32>
    %92 = arith.mulf %82, %91 : vector<8x128xf32>
    %93 = vector.extract_strided_slice %2 {offsets = [6, 0], sizes = [1, 128], strides = [1, 1]} : vector<19x128xf32> to vector<1x128xf32>
    %94 = vector.broadcast %93 : vector<1x128xf32> to vector<8x128xf32>
    %95 = arith.mulf %92, %94 : vector<8x128xf32>
    %96 = vector.extract_strided_slice %2 {offsets = [7, 0], sizes = [1, 128], strides = [1, 1]} : vector<19x128xf32> to vector<1x128xf32>
    %97 = vector.broadcast %96 : vector<1x128xf32> to vector<8x128xf32>
    %98 = arith.addf %95, %97 : vector<8x128xf32>
    %99 = arith.addf %0, %14 : vector<8x128xf32>
    %cst_33 = arith.constant dense<0.000000e+00> : vector<8xf32>
    %100 = vector.multi_reduction <add>, %99, %cst_33 [1] : vector<8x128xf32> to vector<8xf32>
    %101 = vector.shape_cast %100 : vector<8xf32> to vector<8x1xf32>
    %cst_34 = arith.constant 1.280000e+02 : f32
    %102 = vector.broadcast %cst_34 : f32 to vector<8x1xf32>
    %103 = arith.divf %101, %102 : vector<8x1xf32>
    %104 = vector.broadcast %103 : vector<8x1xf32> to vector<8x128xf32>
    %105 = arith.subf %99, %104 : vector<8x128xf32>
    %106 = arith.mulf %105, %105 : vector<8x128xf32>
    %cst_35 = arith.constant dense<0.000000e+00> : vector<8xf32>
    %107 = vector.multi_reduction <add>, %106, %cst_35 [1] : vector<8x128xf32> to vector<8xf32>
    %108 = vector.shape_cast %107 : vector<8xf32> to vector<8x1xf32>
    %cst_36 = arith.constant 1.280000e+02 : f32
    %109 = vector.broadcast %cst_36 : f32 to vector<8x1xf32>
    %110 = arith.divf %108, %109 : vector<8x1xf32>
    %cst_37 = arith.constant 9.99999974E-6 : f32
    %111 = vector.broadcast %cst_37 : f32 to vector<8x1xf32>
    %112 = arith.addf %110, %111 : vector<8x1xf32>
    %113 = math.rsqrt %112 : vector<8x1xf32>
    %114 = vector.broadcast %113 : vector<8x1xf32> to vector<8x128xf32>
    %115 = arith.mulf %105, %114 : vector<8x128xf32>
    %116 = vector.extract_strided_slice %2 {offsets = [11, 0], sizes = [1, 128], strides = [1, 1]} : vector<19x128xf32> to vector<1x128xf32>
    %117 = vector.broadcast %116 : vector<1x128xf32> to vector<8x128xf32>
    %118 = arith.mulf %115, %117 : vector<8x128xf32>
    %119 = vector.extract_strided_slice %2 {offsets = [12, 0], sizes = [1, 128], strides = [1, 1]} : vector<19x128xf32> to vector<1x128xf32>
    %120 = vector.broadcast %119 : vector<1x128xf32> to vector<8x128xf32>
    %121 = arith.addf %118, %120 : vector<8x128xf32>
    %c0_38 = arith.constant 0 : index
    %c0_39 = arith.constant 0 : index
    %122 = vector.load %arg4[%c0_38, %c0_39] : memref<128x128xbf16, #tpu.memory_space<vmem>>, vector<128x128xbf16>
    %123 = arith.truncf %98 : vector<8x128xf32> to vector<8x128xbf16>
    %cst_40 = arith.constant dense<0.000000e+00> : vector<8x128xf32>
    %124 = tpu.matmul %123, %122, %cst_40 {dimension_numbers = #tpu.dot_dimension_numbers<[1], [0], [0], [1], [0, 0, 1, 1], [], []>} : vector<8x128xbf16>, vector<128x128xbf16>, vector<8x128xf32> -> vector<8x128xf32>
    %125 = vector.extract_strided_slice %2 {offsets = [9, 0], sizes = [1, 128], strides = [1, 1]} : vector<19x128xf32> to vector<1x128xf32>
    %126 = vector.broadcast %125 : vector<1x128xf32> to vector<8x128xf32>
    %127 = arith.addf %124, %126 : vector<8x128xf32>
    %128 = arith.addf %121, %127 : vector<8x128xf32>
    %cst_41 = arith.constant dense<0.000000e+00> : vector<8xf32>
    %129 = vector.multi_reduction <add>, %128, %cst_41 [1] : vector<8x128xf32> to vector<8xf32>
    %130 = vector.shape_cast %129 : vector<8xf32> to vector<8x1xf32>
    %cst_42 = arith.constant 1.280000e+02 : f32
    %131 = vector.broadcast %cst_42 : f32 to vector<8x1xf32>
    %132 = arith.divf %130, %131 : vector<8x1xf32>
    %133 = vector.broadcast %132 : vector<8x1xf32> to vector<8x128xf32>
    %134 = arith.subf %128, %133 : vector<8x128xf32>
    %135 = arith.mulf %134, %134 : vector<8x128xf32>
    %cst_43 = arith.constant dense<0.000000e+00> : vector<8xf32>
    %136 = vector.multi_reduction <add>, %135, %cst_43 [1] : vector<8x128xf32> to vector<8xf32>
    %137 = vector.shape_cast %136 : vector<8xf32> to vector<8x1xf32>
    %cst_44 = arith.constant 1.280000e+02 : f32
    %138 = vector.broadcast %cst_44 : f32 to vector<8x1xf32>
    %139 = arith.divf %137, %138 : vector<8x1xf32>
    %cst_45 = arith.constant 9.99999974E-6 : f32
    %140 = vector.broadcast %cst_45 : f32 to vector<8x1xf32>
    %141 = arith.addf %139, %140 : vector<8x1xf32>
    %142 = math.rsqrt %141 : vector<8x1xf32>
    %143 = vector.broadcast %142 : vector<8x1xf32> to vector<8x128xf32>
    %144 = arith.mulf %134, %143 : vector<8x128xf32>
    %145 = vector.extract_strided_slice %2 {offsets = [13, 0], sizes = [1, 128], strides = [1, 1]} : vector<19x128xf32> to vector<1x128xf32>
    %146 = vector.broadcast %145 : vector<1x128xf32> to vector<8x128xf32>
    %147 = arith.mulf %144, %146 : vector<8x128xf32>
    %148 = vector.extract_strided_slice %2 {offsets = [14, 0], sizes = [1, 128], strides = [1, 1]} : vector<19x128xf32> to vector<1x128xf32>
    %149 = vector.broadcast %148 : vector<1x128xf32> to vector<8x128xf32>
    %150 = arith.addf %147, %149 : vector<8x128xf32>
    %c1 = arith.constant 1 : index
    %c0_46 = arith.constant 0 : index
    %c0_47 = arith.constant 0 : index
    %151 = vector.load %arg5[%c1, %c0_46, %c0_47] : memref<2x128x2048xbf16, #tpu.memory_space<vmem>>, vector<1x128x2048xbf16>
    %152 = vector.shape_cast %151 : vector<1x128x2048xbf16> to vector<128x2048xbf16>
    %153 = arith.truncf %150 : vector<8x128xf32> to vector<8x128xbf16>
    %cst_48 = arith.constant dense<0.000000e+00> : vector<8x2048xf32>
    %154 = tpu.matmul %153, %152, %cst_48 {dimension_numbers = #tpu.dot_dimension_numbers<[1], [0], [0], [1], [0, 0, 1, 1], [], []>} : vector<8x128xbf16>, vector<128x2048xbf16>, vector<8x2048xf32> -> vector<8x2048xf32>
    %155 = vector.extract_strided_slice %3 {offsets = [1, 0], sizes = [1, 2048], strides = [1, 1]} : vector<2x2048xf32> to vector<1x2048xf32>
    %156 = vector.broadcast %155 : vector<1x2048xf32> to vector<8x2048xf32>
    %157 = arith.addf %154, %156 : vector<8x2048xf32>
    %cst_49 = arith.constant 0.000000e+00 : f32
    %158 = vector.broadcast %cst_49 : f32 to vector<8x2048xf32>
    %159 = arith.maximumf %157, %158 : vector<8x2048xf32>
    %c1_50 = arith.constant 1 : index
    %c0_51 = arith.constant 0 : index
    %c0_52 = arith.constant 0 : index
    %160 = vector.load %arg6[%c1_50, %c0_51, %c0_52] : memref<2x2048x128xbf16, #tpu.memory_space<vmem>>, vector<1x2048x128xbf16>
    %161 = vector.shape_cast %160 : vector<1x2048x128xbf16> to vector<2048x128xbf16>
    %162 = arith.truncf %159 : vector<8x2048xf32> to vector<8x2048xbf16>
    %cst_53 = arith.constant dense<0.000000e+00> : vector<8x128xf32>
    %163 = tpu.matmul %162, %161, %cst_53 {dimension_numbers = #tpu.dot_dimension_numbers<[1], [0], [0], [1], [0, 0, 1, 1], [], []>} : vector<8x2048xbf16>, vector<2048x128xbf16>, vector<8x128xf32> -> vector<8x128xf32>
    %164 = vector.extract_strided_slice %2 {offsets = [10, 0], sizes = [1, 128], strides = [1, 1]} : vector<19x128xf32> to vector<1x128xf32>
    %165 = vector.broadcast %164 : vector<1x128xf32> to vector<8x128xf32>
    %166 = arith.addf %163, %165 : vector<8x128xf32>
    %167 = arith.addf %150, %166 : vector<8x128xf32>
    %cst_54 = arith.constant dense<0.000000e+00> : vector<8xf32>
    %168 = vector.multi_reduction <add>, %167, %cst_54 [1] : vector<8x128xf32> to vector<8xf32>
    %169 = vector.shape_cast %168 : vector<8xf32> to vector<8x1xf32>
    %cst_55 = arith.constant 1.280000e+02 : f32
    %170 = vector.broadcast %cst_55 : f32 to vector<8x1xf32>
    %171 = arith.divf %169, %170 : vector<8x1xf32>
    %172 = vector.broadcast %171 : vector<8x1xf32> to vector<8x128xf32>
    %173 = arith.subf %167, %172 : vector<8x128xf32>
    %174 = arith.mulf %173, %173 : vector<8x128xf32>
    %cst_56 = arith.constant dense<0.000000e+00> : vector<8xf32>
    %175 = vector.multi_reduction <add>, %174, %cst_56 [1] : vector<8x128xf32> to vector<8xf32>
    %176 = vector.shape_cast %175 : vector<8xf32> to vector<8x1xf32>
    %cst_57 = arith.constant 1.280000e+02 : f32
    %177 = vector.broadcast %cst_57 : f32 to vector<8x1xf32>
    %178 = arith.divf %176, %177 : vector<8x1xf32>
    %cst_58 = arith.constant 9.99999974E-6 : f32
    %179 = vector.broadcast %cst_58 : f32 to vector<8x1xf32>
    %180 = arith.addf %178, %179 : vector<8x1xf32>
    %181 = math.rsqrt %180 : vector<8x1xf32>
    %182 = vector.broadcast %181 : vector<8x1xf32> to vector<8x128xf32>
    %183 = arith.mulf %173, %182 : vector<8x128xf32>
    %184 = vector.extract_strided_slice %2 {offsets = [15, 0], sizes = [1, 128], strides = [1, 1]} : vector<19x128xf32> to vector<1x128xf32>
    %185 = vector.broadcast %184 : vector<1x128xf32> to vector<8x128xf32>
    %186 = arith.mulf %183, %185 : vector<8x128xf32>
    %187 = vector.extract_strided_slice %2 {offsets = [16, 0], sizes = [1, 128], strides = [1, 1]} : vector<19x128xf32> to vector<1x128xf32>
    %188 = vector.broadcast %187 : vector<1x128xf32> to vector<8x128xf32>
    %189 = arith.addf %186, %188 : vector<8x128xf32>
    %cst_59 = arith.constant dense<0.000000e+00> : vector<8xf32>
    %190 = vector.multi_reduction <add>, %189, %cst_59 [1] : vector<8x128xf32> to vector<8xf32>
    %191 = vector.shape_cast %190 : vector<8xf32> to vector<8x1xf32>
    %cst_60 = arith.constant 1.280000e+02 : f32
    %192 = vector.broadcast %cst_60 : f32 to vector<8x1xf32>
    %193 = arith.divf %191, %192 : vector<8x1xf32>
    %194 = vector.broadcast %193 : vector<8x1xf32> to vector<8x128xf32>
    %195 = arith.subf %189, %194 : vector<8x128xf32>
    %196 = arith.mulf %195, %195 : vector<8x128xf32>
    %cst_61 = arith.constant dense<0.000000e+00> : vector<8xf32>
    %197 = vector.multi_reduction <add>, %196, %cst_61 [1] : vector<8x128xf32> to vector<8xf32>
    %198 = vector.shape_cast %197 : vector<8xf32> to vector<8x1xf32>
    %cst_62 = arith.constant 1.280000e+02 : f32
    %199 = vector.broadcast %cst_62 : f32 to vector<8x1xf32>
    %200 = arith.divf %198, %199 : vector<8x1xf32>
    %cst_63 = arith.constant 9.99999974E-6 : f32
    %201 = vector.broadcast %cst_63 : f32 to vector<8x1xf32>
    %202 = arith.addf %200, %201 : vector<8x1xf32>
    %203 = math.rsqrt %202 : vector<8x1xf32>
    %204 = vector.broadcast %203 : vector<8x1xf32> to vector<8x128xf32>
    %205 = arith.mulf %195, %204 : vector<8x128xf32>
    %206 = vector.extract_strided_slice %2 {offsets = [17, 0], sizes = [1, 128], strides = [1, 1]} : vector<19x128xf32> to vector<1x128xf32>
    %207 = vector.broadcast %206 : vector<1x128xf32> to vector<8x128xf32>
    %208 = arith.mulf %205, %207 : vector<8x128xf32>
    %209 = vector.extract_strided_slice %2 {offsets = [18, 0], sizes = [1, 128], strides = [1, 1]} : vector<19x128xf32> to vector<1x128xf32>
    %210 = vector.broadcast %209 : vector<1x128xf32> to vector<8x128xf32>
    %211 = arith.addf %208, %210 : vector<8x128xf32>
    %212 = arith.mulf %1, %211 : vector<8x128xf32>
    %cst_64 = arith.constant dense<0.000000e+00> : vector<8xf32>
    %213 = vector.multi_reduction <add>, %212, %cst_64 [1] : vector<8x128xf32> to vector<8xf32>
    %214 = vector.shape_cast %213 : vector<8xf32> to vector<1x8xf32>
    %c0_65 = arith.constant 0 : index
    %c0_66 = arith.constant 0 : index
    %215 = vector.load %arg9[%c0_65, %c0_66] : memref<1x8xf32, #tpu.memory_space<vmem>>, vector<1x8xf32>
    tpu.vector_store %arg9[%c0_65, %c0_66], %214 {strides = array<i32>} : memref<1x8xf32, #tpu.memory_space<vmem>>, vector<1x8xf32>,
    return
  }
  func.func @transform_0(%arg0: i32) -> (i32, i32) {
    %c0_i32 = arith.constant 0 : i32
    %c0_i32_0 = arith.constant 0 : i32
    return %arg0, %c0_i32 : i32, i32
  }
  func.func @transform_1(%arg0: i32) -> (i32, i32) {
    %c0_i32 = arith.constant 0 : i32
    %c0_i32_0 = arith.constant 0 : i32
    return %arg0, %c0_i32 : i32, i32
  }
  func.func @transform_2(%arg0: i32) -> (i32, i32) {
    %c0_i32 = arith.constant 0 : i32
    %c0_i32_0 = arith.constant 0 : i32
    %c0_i32_1 = arith.constant 0 : i32
    return %c0_i32, %c0_i32_0 : i32, i32
  }
  func.func @transform_3(%arg0: i32) -> (i32, i32) {
    %c0_i32 = arith.constant 0 : i32
    %c0_i32_0 = arith.constant 0 : i32
    %c0_i32_1 = arith.constant 0 : i32
    return %c0_i32, %c0_i32_0 : i32, i32
  }
  func.func @transform_4(%arg0: i32) -> (i32, i32, i32) {
    %c0_i32 = arith.constant 0 : i32
    %c0_i32_0 = arith.constant 0 : i32
    %c0_i32_1 = arith.constant 0 : i32
    %c0_i32_2 = arith.constant 0 : i32
    return %c0_i32, %c0_i32_0, %c0_i32_1 : i32, i32, i32
  }
  func.func @transform_5(%arg0: i32) -> (i32, i32, i32) {
    %c0_i32 = arith.constant 0 : i32
    %c0_i32_0 = arith.constant 0 : i32
    %c0_i32_1 = arith.constant 0 : i32
    %c0_i32_2 = arith.constant 0 : i32
    return %c0_i32, %c0_i32_0, %c0_i32_1 : i32, i32, i32
  }
  func.func @transform_6(%arg0: i32) -> (i32, i32) {
    %c0_i32 = arith.constant 0 : i32
    %c0_i32_0 = arith.constant 0 : i32
    %c0_i32_1 = arith.constant 0 : i32
    return %c0_i32, %c0_i32_0 : i32, i32
  }
  func.func @transform_7(%arg0: i32) -> (i32, i32) {
    %c0_i32 = arith.constant 0 : i32
    %c0_i32_0 = arith.constant 0 : i32
    %c0_i32_1 = arith.constant 0 : i32
    return %c0_i32, %c0_i32_0 : i32, i32
  }
  func.func @transform_8(%arg0: i32) -> (i32, i32) {
    %c0_i32 = arith.constant 0 : i32
    %c0_i32_0 = arith.constant 0 : i32
    return %c0_i32, %arg0 : i32, i32
  }
}

module attributes {stable_mosaic.version = 11 : i64} {
  func.func @pairwise_kernel(%arg0: i32, %arg1: memref<8x128xf32, #tpu.memory_space<vmem>>, %arg2: memref<8x128xf32, #tpu.memory_space<vmem>>, %arg3: memref<128x256xbf16, #tpu.memory_space<vmem>>, %arg4: memref<128x128xbf16, #tpu.memory_space<vmem>>, %arg5: memref<2x128x2048xbf16, #tpu.memory_space<vmem>>, %arg6: memref<2x2048x128xbf16, #tpu.memory_space<vmem>>, %arg7: memref<19x128xf32, #tpu.memory_space<vmem>>, %arg8: memref<2x2048xf32, #tpu.memory_space<vmem>>, %arg9: memref<1x8xf32, #tpu.memory_space<vmem>>) attributes {dimension_semantics = [#tpu.dimension_semantics<parallel>], iteration_bounds = array<i64: 1>, scalar_prefetch = 0 : i64, scratch_operands = 0 : i64, tpu.core_type = #tpu.core_type<tc>, window_params = [{transform_indices = @transform_0, window_bounds = array<i64: 8, 128>}, {transform_indices = @transform_1, window_bounds = array<i64: 8, 128>}, {pipeline_mode = #tpu.pipeline_mode<synchronous>, transform_indices = @transform_2, window_bounds = array<i64: 128, 256>}, {pipeline_mode = #tpu.pipeline_mode<synchronous>, transform_indices = @transform_3, window_bounds = array<i64: 128, 128>}, {pipeline_mode = #tpu.pipeline_mode<synchronous>, transform_indices = @transform_4, window_bounds = array<i64: 2, 128, 2048>}, {pipeline_mode = #tpu.pipeline_mode<synchronous>, transform_indices = @transform_5, window_bounds = array<i64: 2, 2048, 128>}, {pipeline_mode = #tpu.pipeline_mode<synchronous>, transform_indices = @transform_6, window_bounds = array<i64: 19, 128>}, {pipeline_mode = #tpu.pipeline_mode<synchronous>, transform_indices = @transform_7, window_bounds = array<i64: 2, 2048>}, {transform_indices = @transform_8, window_bounds = array<i64: 1, 8>}]} {
    %c0 = arith.constant 0 : index
    %c0_0 = arith.constant 0 : index
    %0 = vector.load %arg2[%c0, %c0_0] : memref<8x128xf32, #tpu.memory_space<vmem>>, vector<8x128xf32>
    %c0_1 = arith.constant 0 : index
    %c0_2 = arith.constant 0 : index
    %1 = vector.load %arg1[%c0_1, %c0_2] : memref<8x128xf32, #tpu.memory_space<vmem>>, vector<8x128xf32>
    %c0_3 = arith.constant 0 : index
    %c0_4 = arith.constant 0 : index
    %2 = vector.load %arg7[%c0_3, %c0_4] : memref<19x128xf32, #tpu.memory_space<vmem>>, vector<19x128xf32>
    %c0_5 = arith.constant 0 : index
    %c0_6 = arith.constant 0 : index
    %3 = vector.load %arg8[%c0_5, %c0_6] : memref<2x2048xf32, #tpu.memory_space<vmem>>, vector<2x2048xf32>
    %c0_7 = arith.constant 0 : index
    %c0_8 = arith.constant 0 : index
    %4 = vector.load %arg3[%c0_7, %c0_8] : memref<128x256xbf16, #tpu.memory_space<vmem>>, vector<128x256xbf16>
    %5 = arith.truncf %0 : vector<8x128xf32> to vector<8x128xbf16>
    %cst = arith.constant dense<0.000000e+00> : vector<8x256xf32>
    %6 = tpu.matmul %5, %4, %cst {dimension_numbers = #tpu.dot_dimension_numbers<[1], [0], [0], [1], [0, 0, 1, 1], [], []>} : vector<8x128xbf16>, vector<128x256xbf16>, vector<8x256xf32> -> vector<8x256xf32>
    %7 = vector.extract_strided_slice %6 {offsets = [0, 0], sizes = [8, 128], strides = [1, 1]} : vector<8x256xf32> to vector<8x128xf32>
    %8 = vector.extract_strided_slice %2 {offsets = [0, 0], sizes = [1, 128], strides = [1, 1]} : vector<19x128xf32> to vector<1x128xf32>
    %9 = vector.broadcast %8 : vector<1x128xf32> to vector<8x128xf32>
    %10 = arith.addf %7, %9 : vector<8x128xf32>
    %11 = vector.extract_strided_slice %6 {offsets = [0, 128], sizes = [8, 128], strides = [1, 1]} : vector<8x256xf32> to vector<8x128xf32>
    %12 = vector.extract_strided_slice %2 {offsets = [8, 0], sizes = [1, 128], strides = [1, 1]} : vector<19x128xf32> to vector<1x128xf32>
    %13 = vector.broadcast %12 : vector<1x128xf32> to vector<8x128xf32>
    %14 = arith.addf %11, %13 : vector<8x128xf32>
    %15 = arith.addf %0, %10 : vector<8x128xf32>
    %cst_9 = arith.constant dense<0.000000e+00> : vector<8xf32>
    %16 = vector.multi_reduction <add>, %15, %cst_9 [1] : vector<8x128xf32> to vector<8xf32>
    %17 = vector.shape_cast %16 : vector<8xf32> to vector<8x1xf32>
    %cst_10 = arith.constant 1.280000e+02 : f32
    %18 = vector.broadcast %cst_10 : f32 to vector<8x1xf32>
    %19 = arith.divf %17, %18 : vector<8x1xf32>
    %20 = vector.broadcast %19 : vector<8x1xf32> to vector<8x128xf32>
    %21 = arith.subf %15, %20 : vector<8x128xf32>
    %22 = arith.mulf %21, %21 : vector<8x128xf32>
    %cst_11 = arith.constant dense<0.000000e+00> : vector<8xf32>
    %23 = vector.multi_reduction <add>, %22, %cst_11 [1] : vector<8x128xf32> to vector<8xf32>
    %24 = vector.shape_cast %23 : vector<8xf32> to vector<8x1xf32>
    %cst_12 = arith.constant 1.280000e+02 : f32
    %25 = vector.broadcast %cst_12 : f32 to vector<8x1xf32>
    %26 = arith.divf %24, %25 : vector<8x1xf32>
    %cst_13 = arith.constant 9.99999974E-6 : f32
    %27 = vector.broadcast %cst_13 : f32 to vector<8x1xf32>
    %28 = arith.addf %26, %27 : vector<8x1xf32>
    %29 = math.rsqrt %28 : vector<8x1xf32>
    %30 = vector.broadcast %29 : vector<8x1xf32> to vector<8x128xf32>
    %31 = arith.mulf %21, %30 : vector<8x128xf32>
    %32 = vector.extract_strided_slice %2 {offsets = [2, 0], sizes = [1, 128], strides = [1, 1]} : vector<19x128xf32> to vector<1x128xf32>
    %33 = vector.broadcast %32 : vector<1x128xf32> to vector<8x128xf32>
    %34 = arith.mulf %31, %33 : vector<8x128xf32>
    %35 = vector.extract_strided_slice %2 {offsets = [3, 0], sizes = [1, 128], strides = [1, 1]} : vector<19x128xf32> to vector<1x128xf32>
    %36 = vector.broadcast %35 : vector<1x128xf32> to vector<8x128xf32>
    %37 = arith.addf %34, %36 : vector<8x128xf32>
    %c0_14 = arith.constant 0 : index
    %c0_15 = arith.constant 0 : index
    %c0_16 = arith.constant 0 : index
    %38 = vector.load %arg5[%c0_14, %c0_15, %c0_16] : memref<2x128x2048xbf16, #tpu.memory_space<vmem>>, vector<1x128x2048xbf16>
    %39 = vector.shape_cast %38 : vector<1x128x2048xbf16> to vector<128x2048xbf16>
    %40 = arith.truncf %37 : vector<8x128xf32> to vector<8x128xbf16>
    %cst_17 = arith.constant dense<0.000000e+00> : vector<8x2048xf32>
    %41 = tpu.matmul %40, %39, %cst_17 {dimension_numbers = #tpu.dot_dimension_numbers<[1], [0], [0], [1], [0, 0, 1, 1], [], []>} : vector<8x128xbf16>, vector<128x2048xbf16>, vector<8x2048xf32> -> vector<8x2048xf32>
    %42 = vector.extract_strided_slice %3 {offsets = [0, 0], sizes = [1, 2048], strides = [1, 1]} : vector<2x2048xf32> to vector<1x2048xf32>
    %43 = vector.broadcast %42 : vector<1x2048xf32> to vector<8x2048xf32>
    %44 = arith.addf %41, %43 : vector<8x2048xf32>
    %cst_18 = arith.constant 0.000000e+00 : f32
    %45 = vector.broadcast %cst_18 : f32 to vector<8x2048xf32>
    %46 = arith.maximumf %44, %45 : vector<8x2048xf32>
    %c0_19 = arith.constant 0 : index
    %c0_20 = arith.constant 0 : index
    %c0_21 = arith.constant 0 : index
    %47 = vector.load %arg6[%c0_19, %c0_20, %c0_21] : memref<2x2048x128xbf16, #tpu.memory_space<vmem>>, vector<1x2048x128xbf16>
    %48 = vector.shape_cast %47 : vector<1x2048x128xbf16> to vector<2048x128xbf16>
    %49 = arith.truncf %46 : vector<8x2048xf32> to vector<8x2048xbf16>
    %cst_22 = arith.constant dense<0.000000e+00> : vector<8x128xf32>
    %50 = tpu.matmul %49, %48, %cst_22 {dimension_numbers = #tpu.dot_dimension_numbers<[1], [0], [0], [1], [0, 0, 1, 1], [], []>} : vector<8x2048xbf16>, vector<2048x128xbf16>, vector<8x128xf32> -> vector<8x128xf32>
    %51 = vector.extract_strided_slice %2 {offsets = [1, 0], sizes = [1, 128], strides = [1, 1]} : vector<19x128xf32> to vector<1x128xf32>
    %52 = vector.broadcast %51 : vector<1x128xf32> to vector<8x128xf32>
    %53 = arith.addf %50, %52 : vector<8x128xf32>
    %54 = arith.addf %37, %53 : vector<8x128xf32>
    %cst_23 = arith.constant dense<0.000000e+00> : vector<8xf32>
    %55 = vector.multi_reduction <add>, %54, %cst_23 [1] : vector<8x128xf32> to vector<8xf32>
    %56 = vector.shape_cast %55 : vector<8xf32> to vector<8x1xf32>
    %cst_24 = arith.constant 1.280000e+02 : f32
    %57 = vector.broadcast %cst_24 : f32 to vector<8x1xf32>
    %58 = arith.divf %56, %57 : vector<8x1xf32>
    %59 = vector.broadcast %58 : vector<8x1xf32> to vector<8x128xf32>
    %60 = arith.subf %54, %59 : vector<8x128xf32>
    %61 = arith.mulf %60, %60 : vector<8x128xf32>
    %cst_25 = arith.constant dense<0.000000e+00> : vector<8xf32>
    %62 = vector.multi_reduction <add>, %61, %cst_25 [1] : vector<8x128xf32> to vector<8xf32>
    %63 = vector.shape_cast %62 : vector<8xf32> to vector<8x1xf32>
    %cst_26 = arith.constant 1.280000e+02 : f32
    %64 = vector.broadcast %cst_26 : f32 to vector<8x1xf32>
    %65 = arith.divf %63, %64 : vector<8x1xf32>
    %cst_27 = arith.constant 9.99999974E-6 : f32
    %66 = vector.broadcast %cst_27 : f32 to vector<8x1xf32>
    %67 = arith.addf %65, %66 : vector<8x1xf32>
    %68 = math.rsqrt %67 : vector<8x1xf32>
    %69 = vector.broadcast %68 : vector<8x1xf32> to vector<8x128xf32>
    %70 = arith.mulf %60, %69 : vector<8x128xf32>
    %71 = vector.extract_strided_slice %2 {offsets = [4, 0], sizes = [1, 128], strides = [1, 1]} : vector<19x128xf32> to vector<1x128xf32>
    %72 = vector.broadcast %71 : vector<1x128xf32> to vector<8x128xf32>
    %73 = arith.mulf %70, %72 : vector<8x128xf32>
    %74 = vector.extract_strided_slice %2 {offsets = [5, 0], sizes = [1, 128], strides = [1, 1]} : vector<19x128xf32> to vector<1x128xf32>
    %75 = vector.broadcast %74 : vector<1x128xf32> to vector<8x128xf32>
    %76 = arith.addf %73, %75 : vector<8x128xf32>
    %cst_28 = arith.constant dense<0.000000e+00> : vector<8xf32>
    %77 = vector.multi_reduction <add>, %76, %cst_28 [1] : vector<8x128xf32> to vector<8xf32>
    %78 = vector.shape_cast %77 : vector<8xf32> to vector<8x1xf32>
    %cst_29 = arith.constant 1.280000e+02 : f32
    %79 = vector.broadcast %cst_29 : f32 to vector<8x1xf32>
    %80 = arith.divf %78, %79 : vector<8x1xf32>
    %81 = vector.broadcast %80 : vector<8x1xf32> to vector<8x128xf32>
    %82 = arith.subf %76, %81 : vector<8x128xf32>
    %83 = arith.mulf %82, %82 : vector<8x128xf32>
    %cst_30 = arith.constant dense<0.000000e+00> : vector<8xf32>
    %84 = vector.multi_reduction <add>, %83, %cst_30 [1] : vector<8x128xf32> to vector<8xf32>
    %85 = vector.shape_cast %84 : vector<8xf32> to vector<8x1xf32>
    %cst_31 = arith.constant 1.280000e+02 : f32
    %86 = vector.broadcast %cst_31 : f32 to vector<8x1xf32>
    %87 = arith.divf %85, %86 : vector<8x1xf32>
    %cst_32 = arith.constant 9.99999974E-6 : f32
    %88 = vector.broadcast %cst_32 : f32 to vector<8x1xf32>
    %89 = arith.addf %87, %88 : vector<8x1xf32>
    %90 = math.rsqrt %89 : vector<8x1xf32>
    %91 = vector.broadcast %90 : vector<8x1xf32> to vector<8x128xf32>
    %92 = arith.mulf %82, %91 : vector<8x128xf32>
    %93 = vector.extract_strided_slice %2 {offsets = [6, 0], sizes = [1, 128], strides = [1, 1]} : vector<19x128xf32> to vector<1x128xf32>
    %94 = vector.broadcast %93 : vector<1x128xf32> to vector<8x128xf32>
    %95 = arith.mulf %92, %94 : vector<8x128xf32>
    %96 = vector.extract_strided_slice %2 {offsets = [7, 0], sizes = [1, 128], strides = [1, 1]} : vector<19x128xf32> to vector<1x128xf32>
    %97 = vector.broadcast %96 : vector<1x128xf32> to vector<8x128xf32>
    %98 = arith.addf %95, %97 : vector<8x128xf32>
    %99 = arith.addf %0, %14 : vector<8x128xf32>
    %cst_33 = arith.constant dense<0.000000e+00> : vector<8xf32>
    %100 = vector.multi_reduction <add>, %99, %cst_33 [1] : vector<8x128xf32> to vector<8xf32>
    %101 = vector.shape_cast %100 : vector<8xf32> to vector<8x1xf32>
    %cst_34 = arith.constant 1.280000e+02 : f32
    %102 = vector.broadcast %cst_34 : f32 to vector<8x1xf32>
    %103 = arith.divf %101, %102 : vector<8x1xf32>
    %104 = vector.broadcast %103 : vector<8x1xf32> to vector<8x128xf32>
    %105 = arith.subf %99, %104 : vector<8x128xf32>
    %106 = arith.mulf %105, %105 : vector<8x128xf32>
    %cst_35 = arith.constant dense<0.000000e+00> : vector<8xf32>
    %107 = vector.multi_reduction <add>, %106, %cst_35 [1] : vector<8x128xf32> to vector<8xf32>
    %108 = vector.shape_cast %107 : vector<8xf32> to vector<8x1xf32>
    %cst_36 = arith.constant 1.280000e+02 : f32
    %109 = vector.broadcast %cst_36 : f32 to vector<8x1xf32>
    %110 = arith.divf %108, %109 : vector<8x1xf32>
    %cst_37 = arith.constant 9.99999974E-6 : f32
    %111 = vector.broadcast %cst_37 : f32 to vector<8x1xf32>
    %112 = arith.addf %110, %111 : vector<8x1xf32>
    %113 = math.rsqrt %112 : vector<8x1xf32>
    %114 = vector.broadcast %113 : vector<8x1xf32> to vector<8x128xf32>
    %115 = arith.mulf %105, %114 : vector<8x128xf32>
    %116 = vector.extract_strided_slice %2 {offsets = [11, 0], sizes = [1, 128], strides = [1, 1]} : vector<19x128xf32> to vector<1x128xf32>
    %117 = vector.broadcast %116 : vector<1x128xf32> to vector<8x128xf32>
    %118 = arith.mulf %115, %117 : vector<8x128xf32>
    %119 = vector.extract_strided_slice %2 {offsets = [12, 0], sizes = [1, 128], strides = [1, 1]} : vector<19x128xf32> to vector<1x128xf32>
    %120 = vector.broadcast %119 : vector<1x128xf32> to vector<8x128xf32>
    %121 = arith.addf %118, %120 : vector<8x128xf32>
    %c0_38 = arith.constant 0 : index
    %c0_39 = arith.constant 0 : index
    %122 = vector.load %arg4[%c0_38, %c0_39] : memref<128x128xbf16, #tpu.memory_space<vmem>>, vector<128x128xbf16>
    %123 = arith.truncf %98 : vector<8x128xf32> to vector<8x128xbf16>
    %cst_40 = arith.constant dense<0.000000e+00> : vector<8x128xf32>
    %124 = tpu.matmul %123, %122, %cst_40 {dimension_numbers = #tpu.dot_dimension_numbers<[1], [0], [0], [1], [0, 0, 1, 1], [], []>} : vector<8x128xbf16>, vector<128x128xbf16>, vector<8x128xf32> -> vector<8x128xf32>
    %125 = vector.extract_strided_slice %2 {offsets = [9, 0], sizes = [1, 128], strides = [1, 1]} : vector<19x128xf32> to vector<1x128xf32>
    %126 = vector.broadcast %125 : vector<1x128xf32> to vector<8x128xf32>
    %127 = arith.addf %124, %126 : vector<8x128xf32>
    %128 = arith.addf %121, %127 : vector<8x128xf32>
    %cst_41 = arith.constant dense<0.000000e+00> : vector<8xf32>
    %129 = vector.multi_reduction <add>, %128, %cst_41 [1] : vector<8x128xf32> to vector<8xf32>
    %130 = vector.shape_cast %129 : vector<8xf32> to vector<8x1xf32>
    %cst_42 = arith.constant 1.280000e+02 : f32
    %131 = vector.broadcast %cst_42 : f32 to vector<8x1xf32>
    %132 = arith.divf %130, %131 : vector<8x1xf32>
    %133 = vector.broadcast %132 : vector<8x1xf32> to vector<8x128xf32>
    %134 = arith.subf %128, %133 : vector<8x128xf32>
    %135 = arith.mulf %134, %134 : vector<8x128xf32>
    %cst_43 = arith.constant dense<0.000000e+00> : vector<8xf32>
    %136 = vector.multi_reduction <add>, %135, %cst_43 [1] : vector<8x128xf32> to vector<8xf32>
    %137 = vector.shape_cast %136 : vector<8xf32> to vector<8x1xf32>
    %cst_44 = arith.constant 1.280000e+02 : f32
    %138 = vector.broadcast %cst_44 : f32 to vector<8x1xf32>
    %139 = arith.divf %137, %138 : vector<8x1xf32>
    %cst_45 = arith.constant 9.99999974E-6 : f32
    %140 = vector.broadcast %cst_45 : f32 to vector<8x1xf32>
    %141 = arith.addf %139, %140 : vector<8x1xf32>
    %142 = math.rsqrt %141 : vector<8x1xf32>
    %143 = vector.broadcast %142 : vector<8x1xf32> to vector<8x128xf32>
    %144 = arith.mulf %134, %143 : vector<8x128xf32>
    %145 = vector.extract_strided_slice %2 {offsets = [13, 0], sizes = [1, 128], strides = [1, 1]} : vector<19x128xf32> to vector<1x128xf32>
    %146 = vector.broadcast %145 : vector<1x128xf32> to vector<8x128xf32>
    %147 = arith.mulf %144, %146 : vector<8x128xf32>
    %148 = vector.extract_strided_slice %2 {offsets = [14, 0], sizes = [1, 128], strides = [1, 1]} : vector<19x128xf32> to vector<1x128xf32>
    %149 = vector.broadcast %148 : vector<1x128xf32> to vector<8x128xf32>
    %150 = arith.addf %147, %149 : vector<8x128xf32>
    %c1 = arith.constant 1 : index
    %c0_46 = arith.constant 0 : index
    %c0_47 = arith.constant 0 : index
    %151 = vector.load %arg5[%c1, %c0_46, %c0_47] : memref<2x128x2048xbf16, #tpu.memory_space<vmem>>, vector<1x128x2048xbf16>
    %152 = vector.shape_cast %151 : vector<1x128x2048xbf16> to vector<128x2048xbf16>
    %153 = arith.truncf %150 : vector<8x128xf32> to vector<8x128xbf16>
    %cst_48 = arith.constant dense<0.000000e+00> : vector<8x2048xf32>
    %154 = tpu.matmul %153, %152, %cst_48 {dimension_numbers = #tpu.dot_dimension_numbers<[1], [0], [0], [1], [0, 0, 1, 1], [], []>} : vector<8x128xbf16>, vector<128x2048xbf16>, vector<8x2048xf32> -> vector<8x2048xf32>
    %155 = vector.extract_strided_slice %3 {offsets = [1, 0], sizes = [1, 2048], strides = [1, 1]} : vector<2x2048xf32> to vector<1x2048xf32>
    %156 = vector.broadcast %155 : vector<1x2048xf32> to vector<8x2048xf32>
    %157 = arith.addf %154, %156 : vector<8x2048xf32>
    %cst_49 = arith.constant 0.000000e+00 : f32
    %158 = vector.broadcast %cst_49 : f32 to vector<8x2048xf32>
    %159 = arith.maximumf %157, %158 : vector<8x2048xf32>
    %c1_50 = arith.constant 1 : index
    %c0_51 = arith.constant 0 : index
    %c0_52 = arith.constant 0 : index
    %160 = vector.load %arg6[%c1_50, %c0_51, %c0_52] : memref<2x2048x128xbf16, #tpu.memory_space<vmem>>, vector<1x2048x128xbf16>
    %161 = vector.shape_cast %160 : vector<1x2048x128xbf16> to vector<2048x128xbf16>
    %162 = arith.truncf %159 : vector<8x2048xf32> to vector<8x2048xbf16>
    %cst_53 = arith.constant dense<0.000000e+00> : vector<8x128xf32>
    %163 = tpu.matmul %162, %161, %cst_53 {dimension_numbers = #tpu.dot_dimension_numbers<[1], [0], [0], [1], [0, 0, 1, 1], [], []>} : vector<8x2048xbf16>, vector<2048x128xbf16>, vector<8x128xf32> -> vector<8x128xf32>
    %164 = vector.extract_strided_slice %2 {offsets = [10, 0], sizes = [1, 128], strides = [1, 1]} : vector<19x128xf32> to vector<1x128xf32>
    %165 = vector.broadcast %164 : vector<1x128xf32> to vector<8x128xf32>
    %166 = arith.addf %163, %165 : vector<8x128xf32>
    %167 = arith.addf %150, %166 : vector<8x128xf32>
    %cst_54 = arith.constant dense<0.000000e+00> : vector<8xf32>
    %168 = vector.multi_reduction <add>, %167, %cst_54 [1] : vector<8x128xf32> to vector<8xf32>
    %169 = vector.shape_cast %168 : vector<8xf32> to vector<8x1xf32>
    %cst_55 = arith.constant 1.280000e+02 : f32
    %170 = vector.broadcast %cst_55 : f32 to vector<8x1xf32>
    %171 = arith.divf %169, %170 : vector<8x1xf32>
    %172 = vector.broadcast %171 : vector<8x1xf32> to vector<8x128xf32>
    %173 = arith.subf %167, %172 : vector<8x128xf32>
    %174 = arith.mulf %173, %173 : vector<8x128xf32>
    %cst_56 = arith.constant dense<0.000000e+00> : vector<8xf32>
    %175 = vector.multi_reduction <add>, %174, %cst_56 [1] : vector<8x128xf32> to vector<8xf32>
    %176 = vector.shape_cast %175 : vector<8xf32> to vector<8x1xf32>
    %cst_57 = arith.constant 1.280000e+02 : f32
    %177 = vector.broadcast %cst_57 : f32 to vector<8x1xf32>
    %178 = arith.divf %176, %177 : vector<8x1xf32>
    %cst_58 = arith.constant 9.99999974E-6 : f32
    %179 = vector.broadcast %cst_58 : f32 to vector<8x1xf32>
    %180 = arith.addf %178, %179 : vector<8x1xf32>
    %181 = math.rsqrt %180 : vector<8x1xf32>
    %182 = vector.broadcast %181 : vector<8x1xf32> to vector<8x128xf32>
    %183 = arith.mulf %173, %182 : vector<8x128xf32>
    %184 = vector.extract_strided_slice %2 {offsets = [15, 0], sizes = [1, 128], strides = [1, 1]} : vector<19x128xf32> to vector<1x128xf32>
    %185 = vector.broadcast %184 : vector<1x128xf32> to vector<8x128xf32>
    %186 = arith.mulf %183, %185 : vector<8x128xf32>
    %187 = vector.extract_strided_slice %2 {offsets = [16, 0], sizes = [1, 128], strides = [1, 1]} : vector<19x128xf32> to vector<1x128xf32>
    %188 = vector.broadcast %187 : vector<1x128xf32> to vector<8x128xf32>
    %189 = arith.addf %186, %188 : vector<8x128xf32>
    %cst_59 = arith.constant dense<0.000000e+00> : vector<8xf32>
    %190 = vector.multi_reduction <add>, %189, %cst_59 [1] : vector<8x128xf32> to vector<8xf32>
    %191 = vector.shape_cast %190 : vector<8xf32> to vector<8x1xf32>
    %cst_60 = arith.constant 1.280000e+02 : f32
    %192 = vector.broadcast %cst_60 : f32 to vector<8x1xf32>
    %193 = arith.divf %191, %192 : vector<8x1xf32>
    %194 = vector.broadcast %193 : vector<8x1xf32> to vector<8x128xf32>
    %195 = arith.subf %189, %194 : vector<8x128xf32>
    %196 = arith.mulf %195, %195 : vector<8x128xf32>
    %cst_61 = arith.constant dense<0.000000e+00> : vector<8xf32>
    %197 = vector.multi_reduction <add>, %196, %cst_61 [1] : vector<8x128xf32> to vector<8xf32>
    %198 = vector.shape_cast %197 : vector<8xf32> to vector<8x1xf32>
    %cst_62 = arith.constant 1.280000e+02 : f32
    %199 = vector.broadcast %cst_62 : f32 to vector<8x1xf32>
    %200 = arith.divf %198, %199 : vector<8x1xf32>
    %cst_63 = arith.constant 9.99999974E-6 : f32
    %201 = vector.broadcast %cst_63 : f32 to vector<8x1xf32>
    %202 = arith.addf %200, %201 : vector<8x1xf32>
    %203 = math.rsqrt %202 : vector<8x1xf32>
    %204 = vector.broadcast %203 : vector<8x1xf32> to vector<8x128xf32>
    %205 = arith.mulf %195, %204 : vector<8x128xf32>
    %206 = vector.extract_strided_slice %2 {offsets = [17, 0], sizes = [1, 128], strides = [1, 1]} : vector<19x128xf32> to vector<1x128xf32>
    %207 = vector.broadcast %206 : vector<1x128xf32> to vector<8x128xf32>
    %208 = arith.mulf %205, %207 : vector<8x128xf32>
    %209 = vector.extract_strided_slice %2 {offsets = [18, 0], sizes = [1, 128], strides = [1, 1]} : vector<19x128xf32> to vector<1x128xf32>
    %210 = vector.broadcast %209 : vector<1x128xf32> to vector<8x128xf32>
    %211 = arith.addf %208, %210 : vector<8x128xf32>
    %212 = arith.mulf %1, %211 : vector<8x128xf32>
    %cst_64 = arith.constant dense<0.000000e+00> : vector<8xf32>
    %213 = vector.multi_reduction <add>, %212, %cst_64 [1] : vector<8x128xf32> to vector<8xf32>
    %214 = vector.shape_cast %213 : vector<8xf32> to vector<1x8xf32>
    %c0_65 = arith.constant 0 : index
    %c0_66 = arith.constant 0 : index
    %215 = vector.load %arg9[%c0_65, %c0_66] : memref<1x8xf32, #tpu.memory_space<vmem>>, vector<1x8xf32>
    tpu.vector_store %arg9[%c0_65, %c0_66], %214 {strides = array<i32>} : memref<1x8xf32, #tpu.memory_space<vmem>>, vector<1x8xf32>,
    return
  }
  func.func @transform_0(%arg0: i32) -> (i32, i32) {
    %c0_i32 = arith.constant 0 : i32
    %c0_i32_0 = arith.constant 0 : i32
    return %arg0, %c0_i32 : i32, i32
  }
  func.func @transform_1(%arg0: i32) -> (i32, i32) {
    %c0_i32 = arith.constant 0 : i32
    %c0_i32_0 = arith.constant 0 : i32
    return %arg0, %c0_i32 : i32, i32
  }
  func.func @transform_2(%arg0: i32) -> (i32, i32) {
    %c0_i32 = arith.constant 0 : i32
    %c0_i32_0 = arith.constant 0 : i32
    %c0_i32_1 = arith.constant 0 : i32
    return %c0_i32, %c0_i32_0 : i32, i32
  }
  func.func @transform_3(%arg0: i32) -> (i32, i32) {
    %c0_i32 = arith.constant 0 : i32
    %c0_i32_0 = arith.constant 0 : i32
    %c0_i32_1 = arith.constant 0 : i32
    return %c0_i32, %c0_i32_0 : i32, i32
  }
  func.func @transform_4(%arg0: i32) -> (i32, i32, i32) {
    %c0_i32 = arith.constant 0 : i32
    %c0_i32_0 = arith.constant 0 : i32
    %c0_i32_1 = arith.constant 0 : i32
    %c0_i32_2 = arith.constant 0 : i32
    return %c0_i32, %c0_i32_0, %c0_i32_1 : i32, i32, i32
  }
  func.func @transform_5(%arg0: i32) -> (i32, i32, i32) {
    %c0_i32 = arith.constant 0 : i32
    %c0_i32_0 = arith.constant 0 : i32
    %c0_i32_1 = arith.constant 0 : i32
    %c0_i32_2 = arith.constant 0 : i32
    return %c0_i32, %c0_i32_0, %c0_i32_1 : i32, i32, i32
  }
  func.func @transform_6(%arg0: i32) -> (i32, i32) {
    %c0_i32 = arith.constant 0 : i32
    %c0_i32_0 = arith.constant 0 : i32
    %c0_i32_1 = arith.constant 0 : i32
    return %c0_i32, %c0_i32_0 : i32, i32
  }
  func.func @transform_7(%arg0: i32) -> (i32, i32) {
    %c0_i32 = arith.constant 0 : i32
    %c0_i32_0 = arith.constant 0 : i32
    %c0_i32_1 = arith.constant 0 : i32
    return %c0_i32, %c0_i32_0 : i32, i32
  }
  func.func @transform_8(%arg0: i32) -> (i32, i32) {
    %c0_i32 = arith.constant 0 : i32
    %c0_i32_0 = arith.constant 0 : i32
    return %c0_i32, %arg0 : i32, i32
  }
}

</mosaic_0001>

<bundles_post_ra>
// kernel: tpu_custom_call.1
= control target key start
LH: loop header
LB: loop body
LE: loop exit
PB: predicated region body
PF: predicated region fallthrough
CT: control target
= control target key end

     0   :  { %13 = vsyncpa [#allocation3], 0  ;;  %s8324_s0 = inlined_call_operand.hbm [shape: f32[8,128], index: 0, kind: input, shape index: {}]   ;;  %s8325_s1 = inlined_call_operand.hbm [shape: f32[8,128], index: 1, kind: input, shape index: {}]   ;;  %s8326_s2 = inlined_call_operand.hbm [shape: bf16[128,256], index: 2, kind: input, shape index: {}]   ;;  %s8327_s3 = inlined_call_operand.hbm [shape: bf16[128,128], index: 3, kind: input, shape index: {}]   ;;  %s8328_s4 = inlined_call_operand.hbm [shape: bf16[2,128,2048], index: 4, kind: input, shape index: {}]   ;;  %s8329_s5 = inlined_call_operand.hbm [shape: bf16[2,2048,128], index: 5, kind: input, shape index: {}]   ;;  %s8330_s6 = inlined_call_operand.hbm [shape: f32[19,128], index: 6, kind: input, shape index: {}]   ;;  %s8331_s7 = inlined_call_operand.hbm [shape: f32[2,2048], index: 7, kind: input, shape index: {}]   ;;  %s8332_s8 = inlined_call_operand.hbm [shape: f32[1,8], index: 8, kind: output, shape index: {}]  }
   0x1   :  { %14 = vsyncpa [#allocation6], 0 }
   0x2   :  { %15 = vsyncpa [#allocation9], 0 }
   0x3   :  { %16 = vsyncpa [#allocation12], 0 }
   0x4   :  { %17 = vsyncpa [#allocation15], 0  ;;  %s35_s29 = sshll.u32 %s8325_s1, 4  ;;  %s36_s29 = int_to_ptr.hbm [resolvable:$true] %s35_s29 }
   0x5   :  { %18 = vsyncpa [#allocation4], 0  ;;  %s8107_s30 = smov [#allocation5]   ;;  %s58_s12 = sshll.u32 %s8327_s3, 4  ;;  %s59_s12 = int_to_ptr.hbm [resolvable:$true] %s58_s12 }
   0x6   :  { %s37_s9 = sshll.u32 %s8107_s30, 4  ;;  %s8108_s13 = smov [#allocation8]   ;;  %s38_s9 = int_to_ptr.vmem [resolvable:$true] %s37_s9 }
   0x7   :  { %40 = dma.hbm_to_vmem [thread:$0]  %s36_s29, 128, %s38_s9, [#allocation6]  }
   0x8   :  { %s60_s14 = sshll.u32 %s8108_s13, 4  ;;  %s8109_s15 = smov 64   ;;  %s61_s14 = int_to_ptr.vmem [resolvable:$true] %s60_s14 }
   0x9   :  { %s8110_s16 = smov 4   ;;  %s84_s18 = sshll.u32 %s8329_s5, 4  ;;  %s85_s18 = int_to_ptr.hbm [resolvable:$true] %s84_s18 }
   0xa   :  { %66 = dma.hbm_to_vmem [thread:$0]  %s59_s12, 1024, %s61_s14, [#allocation9], %s8109_s15, %s8109_s15, %s8110_s16  }
   0xb   :  { %s8111_s19 = smov [#allocation11]   ;;  %s24_s22 = sshll.u32 %s8324_s0, 4  ;;  %s25_s22 = int_to_ptr.hbm [resolvable:$true] %s24_s22 }
   0xc   :  { %s86_s20 = sshll.u32 %s8111_s19, 4  ;;  %s8112_s23 = smov [#allocation2]   ;;  %s87_s20 = int_to_ptr.vmem [resolvable:$true] %s86_s20 }
   0xd   :  { %92 = dma.hbm_to_vmem [thread:$0]  %s85_s18, 32768, %s87_s20, [#allocation12], %s8109_s15, %s8109_s15, %s8110_s16  }
   0xe   :  { %s26_s24 = sshll.u32 %s8112_s23, 4  ;;  %s45_s27 = sshll.u32 %s8326_s2, 4  ;;  %s27_s24 = int_to_ptr.vmem [resolvable:$true] %s26_s24  ;;  %s46_s27 = int_to_ptr.hbm [resolvable:$true] %s45_s27 }
   0xf   :  { %29 = dma.hbm_to_vmem [thread:$0]  %s25_s22, 128, %s27_s24, [#allocation3]  }
  0x10   :  { %s8113_s5 = smov [#allocation7]   ;;  %s71_s0 = sshll.u32 %s8328_s4, 4  ;;  %s72_s0 = int_to_ptr.hbm [resolvable:$true] %s71_s0 }
  0x11   :  { %s47_s28 = sshll.u32 %s8113_s5, 4  ;;  %s8114_s9 = smov 128   ;;  %s48_s28 = int_to_ptr.vmem [resolvable:$true] %s47_s28 }
  0x12   :  { %s8115_s10 = smov 8   ;;  %s8116_s11 = smov [#allocation10]  }
  0x13   :  { %53 = dma.hbm_to_vmem [thread:$0]  %s46_s27, 2048, %s48_s28, [#allocation6], %s8114_s9, %s8114_s9, %s8115_s10  }
  0x14   :  { %s73_s12 = sshll.u32 %s8116_s11, 4  ;;  %s97_s2 = sshll.u32 %s8330_s6, 4  ;;  %s74_s12 = int_to_ptr.vmem [resolvable:$true] %s73_s12  ;;  %s98_s2 = int_to_ptr.hbm [resolvable:$true] %s97_s2 }
  0x15   :  { %s8117_s16 = smov 1024   ;;  %s8118_s1 = smov [#allocation13]  }
  0x16   :  { %79 = dma.hbm_to_vmem [thread:$0]  %s72_s0, 32768, %s74_s12, [#allocation9], %s8117_s16, %s8117_s16, %s8109_s15  }
  0x17   :  { %s99_s17 = sshll.u32 %s8118_s1, 4  ;;  %s111_s4 = sshll.u32 %s8331_s7, 4  ;;  %s100_s17 = int_to_ptr.vmem [resolvable:$true] %s99_s17  ;;  %s112_s4 = int_to_ptr.hbm [resolvable:$true] %s111_s4 }
  0x18   :  { %105 = dma.hbm_to_vmem [thread:$0]  %s98_s2, 384, %s100_s17, [#allocation12], %s8114_s9, %s8114_s9, %s8115_s10  }
  0x19   :  { %s8119_s20 = smov [#allocation14]  }
  0x1a   :  { %s113_s21 = sshll.u32 %s8119_s20, 4  ;;  %s114_s21 = int_to_ptr.vmem [resolvable:$true] %s113_s21 }
  0x1b   :  { %116 = dma.hbm_to_vmem [thread:$0]  %s112_s4, 512, %s114_s21, [#allocation15]  }
  0x1c   :  { %8095 = dma.done.wait [#allocation3], 128  }
  0x1d   :  { %8096 = vsyncadd [#allocation3], 4294967168 }
  0x1e   :  { %8097 = dma.done.wait [#allocation6], 2176  }
  0x1f   :  { %8098 = vsyncadd [#allocation6], 4294965120 }
  0x20   :  { %8099 = dma.done.wait [#allocation9], 33792  }
  0x21   :  { %8100 = vsyncadd [#allocation9], 4294933504 }
  0x22   :  { %8101 = dma.done.wait [#allocation12], 33152  }
  0x23   :  { %8102 = vsyncadd [#allocation12], 4294934144 }
  0x24   :  { %8103 = dma.done.wait [#allocation15], 512  }
  0x25   :  { %8104 = vsyncadd [#allocation15], 4294966784  ;;  %v5219_v0 = vld [vmem:[#allocation7 + $0x70] sm:$0xf]  ;;  %v7320_v1 = vld [vmem:[#allocation7 + $0x74] sm:$0xf0] }
  0x26   :  { %v5211_v2 = vld [vmem:[#allocation7 + $0x60] sm:$0xf]  ;;  %v5220_v3 = vor.u32 %v7320_v1, %v5219_v0  ;;  %v7318_v4 = vld [vmem:[#allocation7 + $0x64] sm:$0xf0]  ;;  %v5203_v6 = vld [vmem:[#allocation7 + $0x50] sm:$0xf] }
  0x27   :  { %v5212_v5 = vor.u32 %v7318_v4, %v5211_v2  ;;  %v7316_v7 = vld [vmem:[#allocation7 + $0x54] sm:$0xf0]  ;;  %v5195_v9 = vld [vmem:[#allocation7 + $0x40] sm:$0xf]  ;;  %v7314_v10 = vld [vmem:[#allocation7 + $0x44] sm:$0xf0] }
  0x28   :  { %255 = vmatpush.bf16.msra.mxu0 %v5220_v3  ;;  %v5204_v8 = vor.u32 %v7316_v7, %v5203_v6  ;;  %v5196_v11 = vor.u32 %v7314_v10, %v5195_v9  ;;  %v5187_v12 = vld [vmem:[#allocation7 + $0x30] sm:$0xf]  ;;  %v7312_v13 = vld [vmem:[#allocation7 + $0x34] sm:$0xf0]  ;;  %v5179_v15 = vld [vmem:[#allocation7 + $0x20] sm:$0xf] }
  0x29   :  { %v5188_v14 = vor.u32 %v7312_v13, %v5187_v12  ;;  %v7310_v16 = vld [vmem:[#allocation7 + $0x24] sm:$0xf0]  ;;  %v5171_v18 = vld [vmem:[#allocation7 + $0x10] sm:$0xf]  ;;  %v7308_v19 = vld [vmem:[#allocation7 + $0x14] sm:$0xf0] }
  0x2a   :  { %v5180_v17 = vor.u32 %v7310_v16, %v5179_v15  ;;  %v5172_v20 = vor.u32 %v7308_v19, %v5171_v18  ;;  %v5163_v21 = vld [vmem:[#allocation7] sm:$0xf]  ;;  %v7306_v22 = vld [vmem:[#allocation7 + $0x4] sm:$0xf0]  ;;  %v8196_v24 = vld [vmem:[#allocation5] sm:$0xff]  ;;  %v8120_v41 = vmov 128.0  }
  0x2b   :  { %v5164_v23 = vor.u32 %v7306_v22, %v5163_v21  ;;  %v8200_v25 = vpack.c.bf16 %v8196_v24, %v8196_v24  ;;  %v7319_v26 = vld [vmem:[#allocation7 + $0x74] sm:$0xf]  ;;  %v5221_v27 = vld [vmem:[#allocation7 + $0x78] sm:$0xf0]  ;;  %v7317_v28 = vld [vmem:[#allocation7 + $0x64] sm:$0xf]  ;;  %7856 = vrcp.f32 %v8120_v41 }
  0x2c   :  { %256 = vmatpush.bf16.msra.mxu0 %v5212_v5  ;;  %v5224_v29 = vor.u32 %v7319_v26, %v5221_v27  ;;  %v5213_v30 = vld [vmem:[#allocation7 + $0x68] sm:$0xf0]  ;;  %v8203_v32 = vld [vmem:[#allocation13] sm:$0xff]  ;;  %v7315_v38 = vld [vmem:[#allocation7 + $0x54] sm:$0xf]  ;;  %s8121_s6 = smov [#allocation16]  }
  0x2d   :  { %v5216_v31 = vor.u32 %v7317_v28, %v5213_v30  ;;  %v281_v33 = vperm.slane %v8203_v32, 0  ;;  %v5205_v39 = vld [vmem:[#allocation7 + $0x58] sm:$0xf0]  ;;  %v7313_v42 = vld [vmem:[#allocation7 + $0x44] sm:$0xf]  ;;  %s5145_s7 = sshll.u32 %s8121_s6, 4  ;;  %s5146_s7 = int_to_ptr.vmem [resolvable:$true] %s5145_s7 }
  0x2e   :  { %268 = vmatpush.bf16.msra.mxu1 %v5224_v29  ;;  %v5208_v40 = vor.u32 %v7315_v38, %v5205_v39  ;;  %v5197_v43 = vld [vmem:[#allocation7 + $0x48] sm:$0xf0]  ;;  %v7311_v45 = vld [vmem:[#allocation7 + $0x34] sm:$0xf]  ;;  %v5189_v46 = vld [vmem:[#allocation7 + $0x38] sm:$0xf0] }
  0x2f   :  { %v5200_v44 = vor.u32 %v7313_v42, %v5197_v43  ;;  %v5192_v47 = vor.u32 %v7311_v45, %v5189_v46  ;;  %v7309_v48 = vld [vmem:[#allocation7 + $0x24] sm:$0xf]  ;;  %v5181_v49 = vld [vmem:[#allocation7 + $0x28] sm:$0xf0]  ;;  %v7307_v51 = vld [vmem:[#allocation7 + $0x14] sm:$0xf] }
  0x30   :  { %257 = vmatpush.bf16.msra.mxu0 %v5204_v8  ;;  %v5173_v52 = vld [vmem:[#allocation7 + $0x18] sm:$0xf0]  ;;  %v5184_v53 = vor.u32 %v7309_v48, %v5181_v49  ;;  %v5675_v54 = vld [vmem:[#allocation10 + $0x380] sm:$0xf]  ;;  %v7433_v56 = vld [vmem:[#allocation10 + $0x384] sm:$0xf] }
  0x31   :  { %v8210_v50 = vpop.eup %7856  ;;  %v7441_v55 = vld [vmem:[#allocation10 + $0x3bc] sm:$0xf0]  ;;  %v5677_v58 = vld [vmem:[#allocation10 + $0x3c0] sm:$0xf0]  ;;  %v5683_v59 = vld [vmem:[#allocation10 + $0x388] sm:$0xf]  ;;  %v5176_v6 = vor.u32 %v7307_v51, %v5173_v52 }
  0x32   :  { %269 = vmatpush.bf16.msra.mxu1 %v5216_v31  ;;  %v5676_v57 = vor.u32 %v7441_v55, %v5675_v54  ;;  %v7442_v60 = vld [vmem:[#allocation10 + $0x3c4] sm:$0xf0]  ;;  %v289_v61 = vmul.f32 128.0, %v8210_v50  ;;  %v5680_v62 = vor.u32 %v7433_v56, %v5677_v58  ;;  %v5611_v0 = vld [vmem:[#allocation10 + $0x300] sm:$0xf]  ;;  %vm293_vm0 = vweird.f32 %v8210_v50  ;;  %s5147_s22 = sshll.u32 %s8332_s8, 4  ;;  %s5148_s22 = int_to_ptr.hbm [resolvable:$true] %s5147_s22 }
  0x33   :  { %v5684_v63 = vor.u32 %v7442_v60, %v5683_v59  ;;  %v7305_v1 = vld [vmem:[#allocation7 + $0x4] sm:$0xf]  ;;  %v5165_v2 = vld [vmem:[#allocation7 + $0x8] sm:$0xf0]  ;;  %v7425_v3 = vld [vmem:[#allocation10 + $0x33c] sm:$0xf0] }
  0x34   :  { %258 = vmatpush.bf16.msra.mxu0 %v5196_v11  ;;  %1138 = vmatpush.bf16.msra.mxu2 %v5676_v57  ;;  %v7417_v4 = vld [vmem:[#allocation10 + $0x304] sm:$0xf]  ;;  %v7434_v7 = vld [vmem:[#allocation10 + $0x38c] sm:$0xf]  ;;  %v5612_v8 = vor.u32 %v7425_v3, %v5611_v0  ;;  %v5619_v10 = vld [vmem:[#allocation10 + $0x308] sm:$0xf]  ;;  %v5168_v22 = vor.u32 %v7305_v1, %v5165_v2 }
  0x35   :  { %v5613_v5 = vld [vmem:[#allocation10 + $0x340] sm:$0xf0]  ;;  %1151 = vmatpush.bf16.msra.mxu3 %v5680_v62  ;;  %v7426_v11 = vld [vmem:[#allocation10 + $0x344] sm:$0xf0]  ;;  %v5685_v12 = vld [vmem:[#allocation10 + $0x3c8] sm:$0xf0] }
  0x36   :  { %270 = vmatpush.bf16.msra.mxu1 %v5208_v40  ;;  %v5616_v9 = vor.u32 %v7417_v4, %v5613_v5  ;;  %v5620_v13 = vor.u32 %v7426_v11, %v5619_v10  ;;  %v7409_v15 = vld [vmem:[#allocation10 + $0x2bc] sm:$0xf0]  ;;  %v7401_v16 = vld [vmem:[#allocation10 + $0x284] sm:$0xf]  ;;  %v5555_v18 = vld [vmem:[#allocation10 + $0x288] sm:$0xf]  ;;  %v5688_v28 = vor.u32 %v7434_v7, %v5685_v12 }
  0x37   :  { %v290_v21 = vsub.f32 1.0, %v289_v61  ;;  %v5483_v26 = vld [vmem:[#allocation10 + $0x200] sm:$0xf]  ;;  %v7418_v29 = vld [vmem:[#allocation10 + $0x30c] sm:$0xf] }
  0x38   :  { %259 = vmatpush.bf16.msra.mxu0 %v5188_v14  ;;  %v5547_v14 = vld [vmem:[#allocation10 + $0x280] sm:$0xf]  ;;  %1139 = vmatpush.bf16.msra.mxu2 %v5612_v8  ;;  %v7385_v31 = vld [vmem:[#allocation10 + $0x204] sm:$0xf]  ;;  %v5557_v48 = vld [vmem:[#allocation10 + $0x2c8] sm:$0xf0] }
  0x39   :  { %v5548_v19 = vor.u32 %v7409_v15, %v5547_v14  ;;  %1152 = vmatpush.bf16.msra.mxu3 %v5616_v9  ;;  %v7393_v27 = vld [vmem:[#allocation10 + $0x23c] sm:$0xf0]  ;;  %v291_v42 = vmul.f32 %v8210_v50, %v290_v21  ;;  %v7369_v46 = vld [vmem:[#allocation10 + $0x184] sm:$0xf]  ;;  %v5427_v49 = vld [vmem:[#allocation10 + $0x188] sm:$0xf] }
  0x3a   :  { %271 = vmatpush.bf16.msra.mxu1 %v5200_v44  ;;  %v5484_v38 = vor.u32 %v7393_v27, %v5483_v26  ;;  %v5419_v40 = vld [vmem:[#allocation10 + $0x180] sm:$0xf]  ;;  %v7402_v44 = vld [vmem:[#allocation10 + $0x28c] sm:$0xf]  ;;  %v7378_v51 = vld [vmem:[#allocation10 + $0x1c4] sm:$0xf0] }
  0x3b   :  { %v7377_v41 = vld [vmem:[#allocation10 + $0x1bc] sm:$0xf0]  ;;  %v292_v56 = vadd.f32 %v8210_v50, %v291_v42  ;;  %v5560_v57 = vor.u32 %v7402_v44, %v5557_v48  ;;  %v7386_v58 = vld [vmem:[#allocation10 + $0x20c] sm:$0xf]  ;;  %v5428_v59 = vor.u32 %v7378_v51, %v5427_v49  ;;  %v7353_v60 = vld [vmem:[#allocation10 + $0x104] sm:$0xf] }
  0x3c   :  { %260 = vmatpush.bf16.msra.mxu0 %v5180_v17  ;;  %v5549_v17 = vld [vmem:[#allocation10 + $0x2c0] sm:$0xf0]  ;;  %1140 = vmatpush.bf16.msra.mxu2 %v5548_v19  ;;  %v5420_v52 = vor.u32 %v7377_v41, %v5419_v40  ;;  %v5355_v54 = vld [vmem:[#allocation10 + $0x100] sm:$0xf]  ;;  %v5493_v62 = vld [vmem:[#allocation10 + $0x248] sm:$0xf0] }
  0x3d   :  { %v7361_v55 = vld [vmem:[#allocation10 + $0x13c] sm:$0xf0]  ;;  %v5357_v61 = vld [vmem:[#allocation10 + $0x140] sm:$0xf0]  ;;  %v8218_v4 = vsel %vm293_vm0, %v8210_v50, %v292_v56  ;;  %v5496_v5 = vor.u32 %v7386_v58, %v5493_v62  ;;  %v5429_v10 = vld [vmem:[#allocation10 + $0x1c8] sm:$0xf0] }
  0x3e   :  { %272 = vmatpush.bf16.msra.mxu1 %v5192_v47  ;;  %v5421_v47 = vld [vmem:[#allocation10 + $0x1c0] sm:$0xf0]  ;;  %v5356_v0 = vor.u32 %v7361_v55, %v5355_v54  ;;  %v5360_v1 = vor.u32 %v7353_v60, %v5357_v61  ;;  %v5291_v2 = vld [vmem:[#allocation10 + $0x80] sm:$0xf]  ;;  %v5299_v11 = vld [vmem:[#allocation10 + $0x88] sm:$0xf] }
  0x3f   :  { %v7345_v3 = vld [vmem:[#allocation10 + $0xbc] sm:$0xf0]  ;;  %v7337_v8 = vld [vmem:[#allocation10 + $0x84] sm:$0xf]  ;;  %v7346_v12 = vld [vmem:[#allocation10 + $0xc4] sm:$0xf0] }
  0x40   :  { %261 = vmatpush.bf16.msra.mxu0 %v5172_v20  ;;  %v7410_v20 = vld [vmem:[#allocation10 + $0x2c4] sm:$0xf0]  ;;  %1141 = vmatpush.bf16.msra.mxu2 %v5484_v38  ;;  %v5293_v9 = vld [vmem:[#allocation10 + $0xc0] sm:$0xf0]  ;;  %v5292_v14 = vor.u32 %v7345_v3, %v5291_v2  ;;  %v7354_v19 = vld [vmem:[#allocation10 + $0x10c] sm:$0xf] }
  0x41   :  { %v5556_v30 = vor.u32 %v7410_v20, %v5555_v18  ;;  %v5365_v20 = vld [vmem:[#allocation10 + $0x148] sm:$0xf0]  ;;  %v5691_v40 = vld [vmem:[#allocation10 + $0x390] sm:$0xf]  ;;  %v5693_v44 = vld [vmem:[#allocation10 + $0x3d0] sm:$0xf0] }
  0x42   :  { %273 = vmatpush.bf16.msra.mxu1 %v5184_v53  ;;  %v5424_v53 = vor.u32 %v7369_v46, %v5421_v47  ;;  %v5301_v26 = vld [vmem:[#allocation10 + $0xc8] sm:$0xf0]  ;;  %v7443_v42 = vld [vmem:[#allocation10 + $0x3cc] sm:$0xf0]  ;;  %v5699_v47 = vld [vmem:[#allocation10 + $0x398] sm:$0xf] }
  0x43   :  { %v7322_v38 = vld [vmem:[#allocation10 + $0xc] sm:$0xf]  ;;  %v7444_v48 = vld [vmem:[#allocation10 + $0x3d4] sm:$0xf0]  ;;  %v7436_v49 = vld [vmem:[#allocation10 + $0x39c] sm:$0xf] }
  0x44   :  { %262 = vmatpush.bf16.msra.mxu0 %v5164_v23  ;;  %v5552_v23 = vor.u32 %v7401_v16, %v5549_v17  ;;  %1142 = vmatpush.bf16.msra.mxu2 %v5420_v52  ;;  %v5296_v16 = vor.u32 %v7337_v8, %v5293_v9  ;;  %v5300_v17 = vor.u32 %v7346_v12, %v5299_v11  ;;  %v5701_v52 = vld [vmem:[#allocation10 + $0x3d8] sm:$0xf0]  ;;  %v7427_v54 = vld [vmem:[#allocation10 + $0x34c] sm:$0xf0]  ;;  %v5629_v58 = vld [vmem:[#allocation10 + $0x350] sm:$0xf0] }
  0x45   :  { %v5700_v51 = vor.u32 %v7444_v48, %v5699_v47  ;;  %v5704_v55 = vor.u32 %v7436_v49, %v5701_v52  ;;  %v7428_v61 = vld [vmem:[#allocation10 + $0x354] sm:$0xf0]  ;;  %v7420_v62 = vld [vmem:[#allocation10 + $0x31c] sm:$0xf]  ;;  %v7411_v2 = vld [vmem:[#allocation10 + $0x2cc] sm:$0xf0] }
  0x46   :  { %274 = vmatpush.bf16.msra.mxu1 %v5176_v6  ;;  %1153 = vmatpush.bf16.msra.mxu3 %v5552_v23  ;;  %v7370_v6 = vld [vmem:[#allocation10 + $0x18c] sm:$0xf]  ;;  %v7403_v3 = vld [vmem:[#allocation10 + $0x294] sm:$0xf]  ;;  %v7412_v8 = vld [vmem:[#allocation10 + $0x2d4] sm:$0xf0] }
  0x47   :  { %263 = vmatmul.bf16.vlgmr.msra.gmra.mxu0 %v8200_v25  ;;  %v5432_v50 = vor.u32 %v7370_v6, %v5429_v10  ;;  %v7338_v23 = vld [vmem:[#allocation10 + $0x8c] sm:$0xf]  ;;  %v5565_v6 = vld [vmem:[#allocation10 + $0x2d0] sm:$0xf0]  ;;  %v7404_v11 = vld [vmem:[#allocation10 + $0x29c] sm:$0xf] }
  0x48   :  { %1164 = vmatpush.bf16.msrb.mxu0 %v5684_v63  ;;  %v5363_v63 = vld [vmem:[#allocation10 + $0x108] sm:$0xf]  ;;  %1143 = vmatpush.bf16.msra.mxu2 %v5356_v0  ;;  %v5304_v27 = vor.u32 %v7338_v23, %v5301_v26  ;;  %v5568_v9 = vor.u32 %v7403_v3, %v5565_v6  ;;  %v5573_v12 = vld [vmem:[#allocation10 + $0x2d8] sm:$0xf0]  ;;  %v7364_v47 = vld [vmem:[#allocation10 + $0x154] sm:$0xf0] }
  0x49   :  { %v7388_v23 = vld [vmem:[#allocation10 + $0x21c] sm:$0xf]  ;;  %v7331_v6 = vld [vmem:[#allocation10 + $0x4c] sm:$0xf0] }
  0x4a   :  { %275 = vmatpush.bf16.msra.mxu1 %v5168_v22  ;;  %v5368_v22 = vor.u32 %v7354_v19, %v5365_v20  ;;  %v5507_v19 = vld [vmem:[#allocation10 + $0x218] sm:$0xf]  ;;  %v5509_v26 = vld [vmem:[#allocation10 + $0x258] sm:$0xf0] }
  0x4b   :  { %v7396_v20 = vld [vmem:[#allocation10 + $0x254] sm:$0xf0]  ;;  %v5381_v52 = vld [vmem:[#allocation10 + $0x158] sm:$0xf0] }
  0x4c   :  { %1165 = vmatpush.bf16.msrb.mxu0 %v5620_v13  ;;  %1144 = vmatpush.bf16.msra.mxu2 %v5292_v14  ;;  %v5499_v14 = vld [vmem:[#allocation10 + $0x210] sm:$0xf] }
  0x4d   :  { %276 = vmatmul.bf16.vlgmr.msra.gmra.mxu1 %v8200_v25  ;;  %v7362_v25 = vld [vmem:[#allocation10 + $0x144] sm:$0xf0] }
  0x4e   :  { %1177 = vmatpush.bf16.msrb.mxu1 %v5688_v28  ;;  %v5364_v7 = vor.u32 %v7362_v25, %v5363_v63  ;;  %v5227_v28 = vld [vmem:[#allocation10] sm:$0xf]  ;;  %v5637_v63 = vld [vmem:[#allocation10 + $0x358] sm:$0xf0] }
  0x4f   :  { %v5640_v0 = vor.u32 %v7420_v62, %v5637_v63  ;;  %v7340_v63 = vld [vmem:[#allocation10 + $0x9c] sm:$0xf] }
  0x50   :  { %1166 = vmatpush.bf16.msrb.mxu0 %v5556_v30 }
  0xc4   :  { %v264_v34 = vpop.f32.mrf.mxu0 }
  0xc5   :  { %v282_v35 = vadd.f32 %v281_v33, %v264_v34  ;;  %v5485_v33 = vld [vmem:[#allocation10 + $0x240] sm:$0xf0]  ;;  %v5621_v34 = vld [vmem:[#allocation10 + $0x348] sm:$0xf0] }
  0xc6   :  { %v5488_v39 = vor.u32 %v7385_v31, %v5485_v33  ;;  %v5624_v43 = vor.u32 %v7418_v29, %v5621_v34  ;;  %v7329_v29 = vld [vmem:[#allocation10 + $0x3c] sm:$0xf0]  ;;  %v5229_v31 = vld [vmem:[#allocation10 + $0x40] sm:$0xf0]  ;;  %v5235_v33 = vld [vmem:[#allocation10 + $0x8] sm:$0xf] }
  0xc7   :  { %v8207_v36 = vadd.f32 %v282_v35, %v8196_v24  ;;  %v5491_v35 = vld [vmem:[#allocation10 + $0x208] sm:$0xf]  ;;  %v5228_v30 = vor.u32 %v7329_v29, %v5227_v28  ;;  %v5435_v28 = vld [vmem:[#allocation10 + $0x190] sm:$0xf] }
  0xc8   :  { %1154 = vmatpush.bf16.msra.mxu3 %v5488_v39  ;;  %1178 = vmatpush.bf16.msrb.mxu1 %v5624_v43  ;;  %v7330_v34 = vld [vmem:[#allocation10 + $0x44] sm:$0xf0]  ;;  %v5237_v39 = vld [vmem:[#allocation10 + $0x48] sm:$0xf0]  ;;  %v7435_v43 = vld [vmem:[#allocation10 + $0x394] sm:$0xf] }
  0xc9   :  { %286 = vadd.xlane.f32.xlu0 %v8207_v36  ;;  %1145 = vmatpush.bf16.msra.mxu2 %v5228_v30  ;;  %v5240_v41 = vor.u32 %v7322_v38, %v5237_v39  ;;  %v5696_v46 = vor.u32 %v7435_v43, %v5693_v44  ;;  %v7379_v29 = vld [vmem:[#allocation10 + $0x1cc] sm:$0xf0]  ;;  %v7372_v38 = vld [vmem:[#allocation10 + $0x19c] sm:$0xf]  ;;  %v7355_v43 = vld [vmem:[#allocation10 + $0x114] sm:$0xf] }
  0xca   :  { %v5436_v30 = vor.u32 %v7379_v29, %v5435_v28  ;;  %v5445_v39 = vld [vmem:[#allocation10 + $0x1d8] sm:$0xf0]  ;;  %v277_v3 = vpop.f32.mrf.mxu1 }
  0xcc   :  { %v266_v37 = vpop.f32.mrf.mxu0  ;;  %1155 = vmatpush.bf16.msra.mxu3 %v5424_v53  ;;  %1179 = vmatpush.bf16.msrb.mxu1 %v5560_v57  ;;  %v5627_v53 = vld [vmem:[#allocation10 + $0x310] sm:$0xf]  ;;  %v7419_v57 = vld [vmem:[#allocation10 + $0x314] sm:$0xf] }
  0xcd   :  { %v7394_v37 = vld [vmem:[#allocation10 + $0x244] sm:$0xf0]  ;;  %v5628_v56 = vor.u32 %v7427_v54, %v5627_v53  ;;  %v5632_v60 = vor.u32 %v7419_v57, %v5629_v58  ;;  %v5307_v54 = vld [vmem:[#allocation10 + $0x90] sm:$0xf]  ;;  %v5309_v58 = vld [vmem:[#allocation10 + $0xd0] sm:$0xf0] }
  0xce   :  { %v5492_v45 = vor.u32 %v7394_v37, %v5491_v35  ;;  %v5236_v37 = vor.u32 %v7330_v34, %v5235_v33  ;;  %v5443_v33 = vld [vmem:[#allocation10 + $0x198] sm:$0xf] }
  0xcf   :  { %v7380_v34 = vld [vmem:[#allocation10 + $0x1d4] sm:$0xf0] }
  0xd0   :  { %1167 = vmatpush.bf16.msrb.mxu0 %v5492_v45  ;;  %1156 = vmatpush.bf16.msra.mxu3 %v5360_v1  ;;  %v5692_v45 = vor.u32 %v7443_v42, %v5691_v40  ;;  %v5563_v1 = vld [vmem:[#allocation10 + $0x290] sm:$0xf]  ;;  %v5448_v40 = vor.u32 %v7372_v38, %v5445_v39  ;;  %v7437_v38 = vld [vmem:[#allocation10 + $0x3a4] sm:$0xf] }
  0xd1   :  { %1180 = vmatpush.bf16.msrb.mxu1 %v5496_v5  ;;  %v5564_v5 = vor.u32 %v7411_v2, %v5563_v1  ;;  %v7363_v42 = vld [vmem:[#allocation10 + $0x14c] sm:$0xf0]  ;;  %v5709_v39 = vld [vmem:[#allocation10 + $0x3e0] sm:$0xf0] }
  0xd2   :  { %1190 = vmatpush.bf16.msrb.mxu2 %v5692_v45  ;;  %v5373_v45 = vld [vmem:[#allocation10 + $0x150] sm:$0xf0] }
  0xd3   :  { %v5376_v48 = vor.u32 %v7355_v43, %v5373_v45  ;;  %v7438_v43 = vld [vmem:[#allocation10 + $0x3ac] sm:$0xf] }
  0xd4   :  { %1168 = vmatpush.bf16.msrb.mxu0 %v5428_v59  ;;  %1157 = vmatpush.bf16.msra.mxu3 %v5296_v16  ;;  %v5635_v59 = vld [vmem:[#allocation10 + $0x318] sm:$0xf]  ;;  %v7387_v16 = vld [vmem:[#allocation10 + $0x214] sm:$0xf] }
  0xd5   :  { %1181 = vmatpush.bf16.msrb.mxu1 %v5432_v50  ;;  %v5636_v25 = vor.u32 %v7428_v61, %v5635_v59  ;;  %v5315_v59 = vld [vmem:[#allocation10 + $0x98] sm:$0xf] }
  0xd6   :  { %1191 = vmatpush.bf16.msrb.mxu2 %v5628_v56  ;;  %v7339_v56 = vld [vmem:[#allocation10 + $0x94] sm:$0xf] }
  0xd7   :  { %v5312_v61 = vor.u32 %v7339_v56, %v5309_v58  ;;  %v5653_v56 = vld [vmem:[#allocation10 + $0x368] sm:$0xf0] }
  0xd8   :  { %1169 = vmatpush.bf16.msrb.mxu0 %v5364_v7  ;;  %v5571_v7 = vld [vmem:[#allocation10 + $0x298] sm:$0xf] }
  0xd9   :  { %1182 = vmatpush.bf16.msrb.mxu1 %v5368_v22  ;;  %v5572_v10 = vor.u32 %v7412_v8, %v5571_v7  ;;  %v5508_v22 = vor.u32 %v7396_v20, %v5507_v19  ;;  %v7323_v7 = vld [vmem:[#allocation10 + $0x14] sm:$0xf] }
  0xda   :  { %1192 = vmatpush.bf16.msrb.mxu2 %v5564_v5  ;;  %v5243_v5 = vld [vmem:[#allocation10 + $0x10] sm:$0xf] }
  0xdb   :  { %v5244_v8 = vor.u32 %v7331_v6, %v5243_v5 }
  0xdc   :  { %1170 = vmatpush.bf16.msrb.mxu0 %v5300_v17  ;;  %v5501_v17 = vld [vmem:[#allocation10 + $0x250] sm:$0xf0] }
  0xdd   :  { %1183 = vmatpush.bf16.msrb.mxu1 %v5304_v27  ;;  %v5512_v27 = vor.u32 %v7388_v23, %v5509_v26 }
  0xe0   :  { %1171 = vmatpush.bf16.msrb.mxu0 %v5236_v37  ;;  %v5444_v37 = vor.u32 %v7380_v34, %v5443_v33 }
  0xe1   :  { %1184 = vmatpush.bf16.msrb.mxu1 %v5240_v41  ;;  %v5371_v41 = vld [vmem:[#allocation10 + $0x110] sm:$0xf] }
  0xe2   :  { %v5372_v44 = vor.u32 %v7363_v42, %v5371_v41  ;;  %v7446_v42 = vld [vmem:[#allocation10 + $0x3e4] sm:$0xf0] }
  0xe4   :  { %1216 = vmatpush.bf16.msra.mxu0 %v5700_v51  ;;  %v7356_v51 = vld [vmem:[#allocation10 + $0x11c] sm:$0xf] }
  0xe5   :  { %1229 = vmatpush.bf16.msra.mxu1 %v5704_v55  ;;  %v5384_v53 = vor.u32 %v7356_v51, %v5381_v52  ;;  %v7347_v55 = vld [vmem:[#allocation10 + $0xcc] sm:$0xf0]  ;;  %v7421_v51 = vld [vmem:[#allocation10 + $0x324] sm:$0xf] }
  0xe6   :  { %v5308_v57 = vor.u32 %v7347_v55, %v5307_v54  ;;  %v5645_v52 = vld [vmem:[#allocation10 + $0x360] sm:$0xf0]  ;;  %v7430_v54 = vld [vmem:[#allocation10 + $0x364] sm:$0xf0]  ;;  %v7422_v55 = vld [vmem:[#allocation10 + $0x32c] sm:$0xf] }
  0xe7   :  { %v5648_v58 = vor.u32 %v7421_v51, %v5645_v52  ;;  %v7341_v51 = vld [vmem:[#allocation10 + $0xa4] sm:$0xf] }
  0xe8   :  { %1217 = vmatpush.bf16.msra.mxu0 %v5636_v25  ;;  %v5317_v25 = vld [vmem:[#allocation10 + $0xd8] sm:$0xf0]  ;;  %v5325_v52 = vld [vmem:[#allocation10 + $0xe0] sm:$0xf0] }
  0xe9   :  { %1230 = vmatpush.bf16.msra.mxu1 %v5640_v0  ;;  %v152_v0 = vld [vmem:[#allocation13 + $0x8] sm:$0xff]  ;;  %v5320_v1 = vor.u32 %v7340_v63, %v5317_v25  ;;  %v7405_v63 = vld [vmem:[#allocation10 + $0x2a4] sm:$0xf] }
  0xea   :  { %v283_v2 = vperm.slane %v152_v0, 0  ;;  %v5581_v25 = vld [vmem:[#allocation10 + $0x2e0] sm:$0xf0]  ;;  %v5587_v0 = vld [vmem:[#allocation10 + $0x2a8] sm:$0xf] }
  0xeb   :  { %v5584_v6 = vor.u32 %v7405_v63, %v5581_v25 }
  0xec   :  { %1218 = vmatpush.bf16.msra.mxu0 %v5572_v10  ;;  %v5251_v10 = vld [vmem:[#allocation10 + $0x18] sm:$0xf] }
  0xf0   :  { %1219 = vmatpush.bf16.msra.mxu0 %v5508_v22  ;;  %v279_v22 = vpop.f32.mrf.mxu1 }
  0xf4   :  { %1220 = vmatpush.bf16.msra.mxu0 %v5444_v37  ;;  %v7445_v37 = vld [vmem:[#allocation10 + $0x3dc] sm:$0xf0] }
 0x13c   :  { %v287_v13 = vpop.xlane.xlu0 %286 }
 0x13d   :  { %v295_v15 = vmul.f32 %v8218_v4, %v287_v13  ;;  %v5576_v13 = vor.u32 %v7404_v11, %v5573_v12  ;;  %v7332_v11 = vld [vmem:[#allocation10 + $0x54] sm:$0xf0]  ;;  %v284_v12 = vadd.f32 %v283_v2, %v277_v3  ;;  %v7406_v2 = vld [vmem:[#allocation10 + $0x2ac] sm:$0xf] }
 0x13e   :  { %v5589_v3 = vld [vmem:[#allocation10 + $0x2e8] sm:$0xf0] }
 0x13f   :  { %v8222_v18 = vsub.f32 %v8207_v36, %v295_v15  ;;  %v7321_v36 = vld [vmem:[#allocation10 + $0x4] sm:$0xf]  ;;  %v7395_v15 = vld [vmem:[#allocation10 + $0x24c] sm:$0xf0]  ;;  %1231 = vmatpush.bf16.msra.mxu1 %v5576_v13  ;;  %v8228_v20 = vadd.f32 %v284_v12, %v8196_v24  ;;  %v315_v24 = vperm.slane %v8203_v32, 3 }
 0x140   :  { %v5232_v35 = vor.u32 %v7321_v36, %v5229_v31  ;;  %v5500_v50 = vor.u32 %v7395_v15, %v5499_v14  ;;  %v7371_v36 = vld [vmem:[#allocation10 + $0x194] sm:$0xf]  ;;  %v5252_v14 = vor.u32 %v7332_v11, %v5251_v10  ;;  %v7324_v15 = vld [vmem:[#allocation10 + $0x1c] sm:$0xf]  ;;  %v5592_v10 = vor.u32 %v7406_v2, %v5589_v3  ;;  %v7389_v11 = vld [vmem:[#allocation10 + $0x224] sm:$0xf] }
 0x141   :  { %v297_v21 = vmul.f32 %v8222_v18, %v8222_v18  ;;  %v5437_v31 = vld [vmem:[#allocation10 + $0x1d0] sm:$0xf0]  ;;  %v5517_v12 = vld [vmem:[#allocation10 + $0x260] sm:$0xf0]  ;;  %v7326_v2 = vld [vmem:[#allocation10 + $0x2c] sm:$0xf] }
 0x142   :  { %1158 = vmatpush.bf16.msra.mxu3 %v5232_v35  ;;  %1193 = vmatpush.bf16.msrb.mxu2 %v5500_v50  ;;  %v5440_v35 = vor.u32 %v7371_v36, %v5437_v31  ;;  %v5269_v3 = vld [vmem:[#allocation10 + $0x68] sm:$0xf0] }
 0x143   :  { %298 = vadd.xlane.f32.xlu0 %v297_v21  ;;  %v5504_v21 = vor.u32 %v7387_v16, %v5501_v17  ;;  %1232 = vmatpush.bf16.msra.mxu1 %v5512_v27  ;;  %v5253_v16 = vld [vmem:[#allocation10 + $0x58] sm:$0xf0] }
 0x144   :  { %v5256_v50 = vor.u32 %v7324_v15, %v5253_v16  ;;  %v7390_v15 = vld [vmem:[#allocation10 + $0x22c] sm:$0xf] }
 0x145   :  { %v5525_v16 = vld [vmem:[#allocation10 + $0x268] sm:$0xf0] }
 0x146   :  { %1203 = vmatpush.bf16.msrb.mxu3 %v5696_v46  ;;  %1194 = vmatpush.bf16.msrb.mxu2 %v5436_v30  ;;  %v5379_v46 = vld [vmem:[#allocation10 + $0x118] sm:$0xf]  ;;  %v313_v30 = vperm.slane %v8203_v32, 2  ;;  %v5643_v32 = vld [vmem:[#allocation10 + $0x320] sm:$0xf] }
 0x147   :  { %v5380_v49 = vor.u32 %v7364_v47, %v5379_v46  ;;  %1233 = vmatpush.bf16.msra.mxu1 %v5448_v40  ;;  %v5715_v40 = vld [vmem:[#allocation10 + $0x3a8] sm:$0xf]  ;;  %v5712_v47 = vor.u32 %v7437_v38, %v5709_v39  ;;  %v7357_v38 = vld [vmem:[#allocation10 + $0x124] sm:$0xf] }
 0x148   :  { %v5389_v39 = vld [vmem:[#allocation10 + $0x160] sm:$0xf0] }
 0x149   :  { %1221 = vmatpush.bf16.msra.mxu0 %v5380_v49 }
 0x14a   :  { %1204 = vmatpush.bf16.msrb.mxu3 %v5632_v60  ;;  %1195 = vmatpush.bf16.msrb.mxu2 %v5372_v44  ;;  %v7348_v60 = vld [vmem:[#allocation10 + $0xd4] sm:$0xf0]  ;;  %v5717_v44 = vld [vmem:[#allocation10 + $0x3e8] sm:$0xf0] }
 0x14b   :  { %v5316_v62 = vor.u32 %v7348_v60, %v5315_v59  ;;  %1234 = vmatpush.bf16.msra.mxu1 %v5384_v53  ;;  %2661 = vadd.xlane.f32.xlu0 %v8228_v20  ;;  %v5720_v49 = vor.u32 %v7438_v43, %v5717_v44  ;;  %v5651_v53 = vld [vmem:[#allocation10 + $0x328] sm:$0xf]  ;;  %v5579_v59 = vld [vmem:[#allocation10 + $0x2a0] sm:$0xf]  ;;  %v7358_v43 = vld [vmem:[#allocation10 + $0x12c] sm:$0xf] }
 0x14c   :  { %v7413_v60 = vld [vmem:[#allocation10 + $0x2dc] sm:$0xf0]  ;;  %v5397_v44 = vld [vmem:[#allocation10 + $0x168] sm:$0xf0] }
 0x14d   :  { %1222 = vmatpush.bf16.msra.mxu0 %v5316_v62  ;;  %v5656_v62 = vor.u32 %v7422_v55, %v5653_v56  ;;  %v5580_v5 = vor.u32 %v7413_v60, %v5579_v59  ;;  %v7342_v55 = vld [vmem:[#allocation10 + $0xac] sm:$0xf]  ;;  %v5328_v59 = vor.u32 %v7341_v51, %v5325_v52  ;;  %v7333_v60 = vld [vmem:[#allocation10 + $0x5c] sm:$0xf0]  ;;  %v7391_v51 = vld [vmem:[#allocation10 + $0x234] sm:$0xf] }
 0x14e   :  { %1205 = vmatpush.bf16.msrb.mxu3 %v5568_v9  ;;  %1196 = vmatpush.bf16.msrb.mxu2 %v5308_v57  ;;  %v5245_v9 = vld [vmem:[#allocation10 + $0x50] sm:$0xf0]  ;;  %v5333_v56 = vld [vmem:[#allocation10 + $0xe8] sm:$0xf0] }
 0x14f   :  { %v5248_v13 = vor.u32 %v7323_v7, %v5245_v9  ;;  %1235 = vmatpush.bf16.msra.mxu1 %v5320_v1  ;;  %v7414_v1 = vld [vmem:[#allocation10 + $0x2e4] sm:$0xf0]  ;;  %v5515_v7 = vld [vmem:[#allocation10 + $0x220] sm:$0xf]  ;;  %v5336_v25 = vor.u32 %v7342_v55, %v5333_v56  ;;  %v5533_v52 = vld [vmem:[#allocation10 + $0x270] sm:$0xf0] }
 0x150   :  { %v5588_v9 = vor.u32 %v7414_v1, %v5587_v0  ;;  %v5267_v0 = vld [vmem:[#allocation10 + $0x28] sm:$0xf]  ;;  %v7392_v55 = vld [vmem:[#allocation10 + $0x23c] sm:$0xf] }
 0x151   :  { %1223 = vmatpush.bf16.msra.mxu0 %v5252_v14  ;;  %v7398_v14 = vld [vmem:[#allocation10 + $0x264] sm:$0xf0]  ;;  %v5541_v56 = vld [vmem:[#allocation10 + $0x278] sm:$0xf0] }
 0x152   :  { %1206 = vmatpush.bf16.msrb.mxu3 %v5504_v21  ;;  %1197 = vmatpush.bf16.msrb.mxu2 %v5244_v8  ;;  %v7397_v8 = vld [vmem:[#allocation10 + $0x25c] sm:$0xf0]  ;;  %v7334_v1 = vld [vmem:[#allocation10 + $0x64] sm:$0xf0] }
 0x153   :  { %1236 = vmatpush.bf16.msra.mxu1 %v5256_v50  ;;  %v5516_v50 = vor.u32 %v7397_v8, %v5515_v7  ;;  %v7439_v7 = vld [vmem:[#allocation10 + $0x3b4] sm:$0xf] }
 0x154   :  { %v5725_v8 = vld [vmem:[#allocation10 + $0x3f0] sm:$0xf0] }
 0x156   :  { %1207 = vmatpush.bf16.msrb.mxu3 %v5440_v35  ;;  %v5707_v35 = vld [vmem:[#allocation10 + $0x3a0] sm:$0xf] }
 0x157   :  { %v5708_v46 = vor.u32 %v7445_v37, %v5707_v35 }
 0x15a   :  { %1208 = vmatpush.bf16.msrb.mxu3 %v5376_v48  ;;  %v7429_v48 = vld [vmem:[#allocation10 + $0x35c] sm:$0xf0] }
 0x15b   :  { %v5644_v57 = vor.u32 %v7429_v48, %v5643_v32  ;;  %v5323_v32 = vld [vmem:[#allocation10 + $0xa0] sm:$0xf] }
 0x15c   :  { %v7349_v48 = vld [vmem:[#allocation10 + $0xdc] sm:$0xf0] }
 0x15e   :  { %1209 = vmatpush.bf16.msrb.mxu3 %v5312_v61  ;;  %v5652_v61 = vor.u32 %v7430_v54, %v5651_v53  ;;  %v5331_v53 = vld [vmem:[#allocation10 + $0xa8] sm:$0xf] }
 0x15f   :  { %v7350_v54 = vld [vmem:[#allocation10 + $0xe4] sm:$0xf0] }
 0x160   :  { %v5332_v63 = vor.u32 %v7350_v54, %v5331_v53  ;;  %v5539_v53 = vld [vmem:[#allocation10 + $0x238] sm:$0xf] }
 0x161   :  { %v7400_v54 = vld [vmem:[#allocation10 + $0x274] sm:$0xf0] }
 0x162   :  { %1210 = vmatpush.bf16.msrb.mxu3 %v5248_v13  ;;  %v5523_v13 = vld [vmem:[#allocation10 + $0x228] sm:$0xf] }
 0x163   :  { %v5524_v22 = vor.u32 %v7398_v14, %v5523_v13  ;;  %v7440_v13 = vld [vmem:[#allocation10 + $0x3bc] sm:$0xf] }
 0x164   :  { %v5733_v14 = vld [vmem:[#allocation10 + $0x3f8] sm:$0xf0] }
 0x1b6   :  { %v299_v17 = vpop.xlane.xlu0 %298 }
 0x1b7   :  { %v300_v19 = vmul.f32 %v299_v17, %v8218_v4  ;;  %v5520_v17 = vor.u32 %v7389_v11, %v5517_v12  ;;  %v7448_v12 = vld [vmem:[#allocation10 + $0x3f4] sm:$0xf0] }
 0x1b9   :  { %v301_v21 = vadd.f32 1e-05, %v300_v19  ;;  %v5451_v19 = vld [vmem:[#allocation10 + $0x1a0] sm:$0xf] }
 0x1bb   :  { %7858 = vrsqrt.f32 %v301_v21  ;;  %vm308_vm2 = vweird.f32 %v301_v21 }
 0x1c1   :  { %v7859_v23 = vpop.eup %7858 }
 0x1c2   :  { %v303_v26 = vmul.f32 %v7859_v23, %v301_v21  ;;  %vm309_vm1 = vweird.f32 %v7859_v23  ;;  %v7381_v21 = vld [vmem:[#allocation10 + $0x1dc] sm:$0xf0] }
 0x1c3   :  { %vm310_vm3 = vmor %vm308_vm2, %vm309_vm1 }
 0x1c4   :  { %v304_v27 = vmul.f32 %v7859_v23, %v303_v26  ;;  %v7373_v26 = vld [vmem:[#allocation10 + $0x1a4] sm:$0xf] }
 0x1c6   :  { %v305_v28 = vmul.f32 0.5, %v304_v27  ;;  %v5453_v27 = vld [vmem:[#allocation10 + $0x1e0] sm:$0xf0] }
 0x1c8   :  { %v306_v29 = vsub.f32 1.5, %v305_v28  ;;  %v5459_v28 = vld [vmem:[#allocation10 + $0x1a8] sm:$0xf] }
 0x1ca   :  { %v307_v36 = vmul.f32 %v7859_v23, %v306_v29  ;;  %v7382_v29 = vld [vmem:[#allocation10 + $0x1e4] sm:$0xf0] }
 0x1cb   :  { %v5460_v35 = vor.u32 %v7382_v29, %v5459_v28  ;;  %v5667_v28 = vld [vmem:[#allocation10 + $0x338] sm:$0xf] }
 0x1cc   :  { %v311_v31 = vsel %vm310_vm3, %v7859_v23, %v307_v36  ;;  %v5528_v23 = vor.u32 %v7390_v15, %v5525_v16  ;;  %v7374_v36 = vld [vmem:[#allocation10 + $0x1ac] sm:$0xf]  ;;  %v5268_v15 = vor.u32 %v7334_v1, %v5267_v0  ;;  %v5272_v16 = vor.u32 %v7326_v2, %v5269_v3  ;;  %v7432_v29 = vld [vmem:[#allocation10 + $0x374] sm:$0xf0]  ;;  %v7376_v2 = vld [vmem:[#allocation10 + $0x1bc] sm:$0xf] }
 0x1cd   :  { %v312_v33 = vmul.f32 %v311_v31, %v8222_v18  ;;  %v5716_v18 = vor.u32 %v7446_v42, %v5715_v40  ;;  %v5452_v31 = vor.u32 %v7381_v21, %v5451_v19  ;;  %v5395_v40 = vld [vmem:[#allocation10 + $0x128] sm:$0xf]  ;;  %v5659_v19 = vld [vmem:[#allocation10 + $0x330] sm:$0xf]  ;;  %v5475_v0 = vld [vmem:[#allocation10 + $0x1b8] sm:$0xf] }
 0x1ce   :  { %v7366_v42 = vld [vmem:[#allocation10 + $0x164] sm:$0xf0]  ;;  %v7431_v21 = vld [vmem:[#allocation10 + $0x36c] sm:$0xf0]  ;;  %v7384_v1 = vld [vmem:[#allocation10 + $0x1f4] sm:$0xf0] }
 0x1cf   :  { %v314_v34 = vmul.f32 %v313_v30, %v312_v33  ;;  %v5461_v30 = vld [vmem:[#allocation10 + $0x1e8] sm:$0xf0]  ;;  %v5387_v33 = vld [vmem:[#allocation10 + $0x120] sm:$0xf]  ;;  %v5477_v3 = vld [vmem:[#allocation10 + $0x1f8] sm:$0xf0] }
 0x1d0   :  { %v5464_v37 = vor.u32 %v7374_v36, %v5461_v30  ;;  %v7424_v36 = vld [vmem:[#allocation10 + $0x33c] sm:$0xf] }
 0x1d1   :  { %v8234_v41 = vadd.f32 %v315_v24, %v314_v34  ;;  %v5456_v24 = vor.u32 %v7373_v26, %v5453_v27  ;;  %v7365_v34 = vld [vmem:[#allocation10 + $0x15c] sm:$0xf0]  ;;  %v7423_v26 = vld [vmem:[#allocation10 + $0x334] sm:$0xf]  ;;  %v5669_v30 = vld [vmem:[#allocation10 + $0x378] sm:$0xf0] }
 0x1d2   :  { %v5661_v27 = vld [vmem:[#allocation10 + $0x370] sm:$0xf0] }
 0x1d3   :  { %v8238_v45 = vpack.c.bf16 %v8234_v41, %v8234_v41 }
 0x1d5   :  { %1146 = vmatmul.bf16.vlgmr.msra.gmra.mxu2 %v8238_v45  ;;  %1159 = vmatmul.bf16.vlgmr.msra.gmra.mxu3 %v8238_v45 }
 0x1d6   :  { %1172 = vmatmul.bf16.vlgmr.msrb.gmra.mxu0 %v8238_v45  ;;  %1185 = vmatmul.bf16.vlgmr.msrb.gmra.mxu1 %v8238_v45 }
 0x1d7   :  { %1242 = vmatpush.bf16.msra.mxu2 %v5708_v46  ;;  %1255 = vmatpush.bf16.msra.mxu3 %v5712_v47  ;;  %v5388_v46 = vor.u32 %v7365_v34, %v5387_v33  ;;  %v5392_v47 = vor.u32 %v7357_v38, %v5389_v39  ;;  %v5595_v33 = vld [vmem:[#allocation10 + $0x2b0] sm:$0xf]  ;;  %v7407_v38 = vld [vmem:[#allocation10 + $0x2b4] sm:$0xf] }
 0x1d8   :  { %1268 = vmatpush.bf16.msrb.mxu0 %v5716_v18  ;;  %1281 = vmatpush.bf16.msrb.mxu1 %v5720_v49  ;;  %v5396_v18 = vor.u32 %v7366_v42, %v5395_v40  ;;  %v5400_v49 = vor.u32 %v7358_v43, %v5397_v44  ;;  %v7415_v34 = vld [vmem:[#allocation10 + $0x2ec] sm:$0xf0]  ;;  %v5597_v39 = vld [vmem:[#allocation10 + $0x2f0] sm:$0xf0]  ;;  %v5603_v40 = vld [vmem:[#allocation10 + $0x2b8] sm:$0xf] }
 0x1d9   :  { %v7416_v42 = vld [vmem:[#allocation10 + $0x2f4] sm:$0xf0]  ;;  %v7408_v43 = vld [vmem:[#allocation10 + $0x2bc] sm:$0xf] }
 0x1da   :  { %v5605_v44 = vld [vmem:[#allocation10 + $0x2f8] sm:$0xf0] }
 0x1db   :  { %1243 = vmatpush.bf16.msra.mxu2 %v5644_v57  ;;  %1256 = vmatpush.bf16.msra.mxu3 %v5648_v58  ;;  %v5259_v57 = vld [vmem:[#allocation10 + $0x20] sm:$0xf]  ;;  %v5324_v58 = vor.u32 %v7349_v48, %v5323_v32  ;;  %v5531_v32 = vld [vmem:[#allocation10 + $0x230] sm:$0xf] }
 0x1dc   :  { %1269 = vmatpush.bf16.msrb.mxu0 %v5652_v61  ;;  %1282 = vmatpush.bf16.msrb.mxu1 %v5656_v62  ;;  %v7325_v61 = vld [vmem:[#allocation10 + $0x24] sm:$0xf]  ;;  %v7399_v48 = vld [vmem:[#allocation10 + $0x26c] sm:$0xf0] }
 0x1dd   :  { %v5261_v62 = vld [vmem:[#allocation10 + $0x60] sm:$0xf0] }
 0x1de   :  { %v5264_v11 = vor.u32 %v7325_v61, %v5261_v62  ;;  %v5540_v61 = vor.u32 %v7400_v54, %v5539_v53  ;;  %v5544_v62 = vor.u32 %v7392_v55, %v5541_v56  ;;  %v7471_v53 = vld [vmem:[#allocation11 + $0xb0] sm:$0xff] }
 0x1df   :  { %1244 = vmatpush.bf16.msra.mxu2 %v5580_v5  ;;  %1257 = vmatpush.bf16.msra.mxu3 %v5584_v6  ;;  %v5723_v5 = vld [vmem:[#allocation10 + $0x3b0] sm:$0xf] }
 0x1e0   :  { %1270 = vmatpush.bf16.msrb.mxu0 %v5588_v9  ;;  %1283 = vmatpush.bf16.msrb.mxu1 %v5592_v10  ;;  %v7447_v6 = vld [vmem:[#allocation10 + $0x3ec] sm:$0xf0]  ;;  %v5731_v9 = vld [vmem:[#allocation10 + $0x3b8] sm:$0xf]  ;;  %v5260_v10 = vor.u32 %v7333_v60, %v5259_v57  ;;  %v5532_v57 = vor.u32 %v7399_v48, %v5531_v32 }
 0x1e1   :  { %v7383_v60 = vld [vmem:[#allocation10 + $0x1ec] sm:$0xf0] }
 0x1e2   :  { %v7479_v54 = vld [vmem:[#allocation11 + $0xf0] sm:$0xff] }
 0x1e3   :  { %1245 = vmatpush.bf16.msra.mxu2 %v5516_v50  ;;  %1258 = vmatpush.bf16.msra.mxu3 %v5520_v17  ;;  %v5724_v50 = vor.u32 %v7447_v6, %v5723_v5  ;;  %v5728_v17 = vor.u32 %v7439_v7, %v5725_v8  ;;  %v5403_v7 = vld [vmem:[#allocation10 + $0x130] sm:$0xf] }
 0x1e4   :  { %1271 = vmatpush.bf16.msrb.mxu0 %v5524_v22  ;;  %1284 = vmatpush.bf16.msrb.mxu1 %v5528_v23  ;;  %v5732_v22 = vor.u32 %v7448_v12, %v5731_v9  ;;  %v5736_v23 = vor.u32 %v7440_v13, %v5733_v14  ;;  %v7367_v8 = vld [vmem:[#allocation10 + $0x16c] sm:$0xf0]  ;;  %v5476_v9 = vor.u32 %v7384_v1, %v5475_v0  ;;  %v5405_v12 = vld [vmem:[#allocation10 + $0x170] sm:$0xf0]  ;;  %v5411_v13 = vld [vmem:[#allocation10 + $0x138] sm:$0xf] }
 0x1e5   :  { %1198 = vmatmul.bf16.vlgmr.msrb.gmra.mxu2 %v8238_v45  ;;  %1211 = vmatmul.bf16.vlgmr.msrb.gmra.mxu3 %v8238_v45  ;;  %v7368_v14 = vld [vmem:[#allocation10 + $0x174] sm:$0xf0]  ;;  %v7455_v55 = vld [vmem:[#allocation11 + $0x30] sm:$0xff] }
 0x1e6   :  { %1224 = vmatmul.bf16.vlgmr.msra.gmra.mxu0 %v8238_v45  ;;  %1237 = vmatmul.bf16.vlgmr.msra.gmra.mxu1 %v8238_v45  ;;  %v7463_v56 = vld [vmem:[#allocation11 + $0x70] sm:$0xff]  ;;  %v7476_v0 = vld [vmem:[#allocation11 + $0xd8] sm:$0xff] }
 0x1e7   :  { %1246 = vmatpush.bf16.msra.mxu2 %v5452_v31  ;;  %1259 = vmatpush.bf16.msra.mxu3 %v5456_v24  ;;  %v5660_v31 = vor.u32 %v7431_v21, %v5659_v19  ;;  %v5664_v24 = vor.u32 %v7423_v26, %v5661_v27  ;;  %v5339_v19 = vld [vmem:[#allocation10 + $0xb0] sm:$0xf]  ;;  %v7343_v26 = vld [vmem:[#allocation10 + $0xb4] sm:$0xf]  ;;  %v7452_v1 = vld [vmem:[#allocation11 + $0x18] sm:$0xff] }
 0x1e8   :  { %1272 = vmatpush.bf16.msrb.mxu0 %v5460_v35  ;;  %1285 = vmatpush.bf16.msrb.mxu1 %v5464_v37  ;;  %v5668_v35 = vor.u32 %v7432_v29, %v5667_v28  ;;  %v5672_v37 = vor.u32 %v7424_v36, %v5669_v30  ;;  %v7351_v21 = vld [vmem:[#allocation10 + $0xec] sm:$0xf0]  ;;  %v5341_v27 = vld [vmem:[#allocation10 + $0xf0] sm:$0xf0]  ;;  %v5347_v28 = vld [vmem:[#allocation10 + $0xb8] sm:$0xf] }
 0x1e9   :  { %v7352_v29 = vld [vmem:[#allocation10 + $0xf4] sm:$0xf0]  ;;  %v7344_v36 = vld [vmem:[#allocation10 + $0xbc] sm:$0xf] }
 0x1ea   :  { %v5349_v30 = vld [vmem:[#allocation10 + $0xf8] sm:$0xf0] }
 0x1eb   :  { %1247 = vmatpush.bf16.msra.mxu2 %v5388_v46  ;;  %1260 = vmatpush.bf16.msra.mxu3 %v5392_v47  ;;  %v5596_v46 = vor.u32 %v7415_v34, %v5595_v33  ;;  %v5600_v47 = vor.u32 %v7407_v38, %v5597_v39  ;;  %v5275_v33 = vld [vmem:[#allocation10 + $0x30] sm:$0xf]  ;;  %v7327_v38 = vld [vmem:[#allocation10 + $0x34] sm:$0xf] }
 0x1ec   :  { %1273 = vmatpush.bf16.msrb.mxu0 %v5396_v18  ;;  %1286 = vmatpush.bf16.msrb.mxu1 %v5400_v49  ;;  %v5604_v18 = vor.u32 %v7416_v42, %v5603_v40  ;;  %v5608_v49 = vor.u32 %v7408_v43, %v5605_v44  ;;  %v7335_v34 = vld [vmem:[#allocation10 + $0x6c] sm:$0xf0]  ;;  %v5277_v39 = vld [vmem:[#allocation10 + $0x70] sm:$0xf0]  ;;  %v5283_v40 = vld [vmem:[#allocation10 + $0x38] sm:$0xf] }
 0x1ed   :  { %v7336_v42 = vld [vmem:[#allocation10 + $0x74] sm:$0xf0]  ;;  %v7328_v43 = vld [vmem:[#allocation10 + $0x3c] sm:$0xf] }
 0x1ee   :  { %v5285_v44 = vld [vmem:[#allocation10 + $0x78] sm:$0xf0]  ;;  %v5284_v32 = vor.u32 %v7336_v42, %v5283_v40  ;;  %v7507_v40 = vld [vmem:[#allocation11 + $0x1d0] sm:$0xff] }
 0x1ef   :  { %1248 = vmatpush.bf16.msra.mxu2 %v5324_v58  ;;  %1261 = vmatpush.bf16.msra.mxu3 %v5328_v59  ;;  %v5536_v58 = vor.u32 %v7391_v51, %v5533_v52  ;;  %v5467_v59 = vld [vmem:[#allocation10 + $0x1b0] sm:$0xf]  ;;  %v5288_v48 = vor.u32 %v7328_v43, %v5285_v44  ;;  %v7456_v51 = vld [vmem:[#allocation11 + $0x38] sm:$0xff]  ;;  %v7498_v44 = vld [vmem:[#allocation11 + $0x188] sm:$0xff] }
 0x1f0   :  { %1274 = vmatpush.bf16.msrb.mxu0 %v5332_v63  ;;  %1287 = vmatpush.bf16.msrb.mxu1 %v5336_v25  ;;  %v7375_v63 = vld [vmem:[#allocation10 + $0x1b4] sm:$0xf]  ;;  %v5468_v5 = vor.u32 %v7383_v60, %v5467_v59  ;;  %v7464_v52 = vld [vmem:[#allocation11 + $0x78] sm:$0xff]  ;;  %v7454_v59 = vld [vmem:[#allocation11 + $0x28] sm:$0xff] }
 0x1f1   :  { %v5469_v25 = vld [vmem:[#allocation10 + $0x1f0] sm:$0xf0]  ;;  %v7462_v60 = vld [vmem:[#allocation11 + $0x68] sm:$0xff] }
 0x1f2   :  { %v5472_v6 = vor.u32 %v7375_v63, %v5469_v25  ;;  %v7453_v63 = vld [vmem:[#allocation11 + $0x20] sm:$0xff]  ;;  %v7468_v25 = vld [vmem:[#allocation11 + $0x98] sm:$0xff]  ;;  %v7483_v42 = vld [vmem:[#allocation11 + $0x110] sm:$0xff] }
 0x1f3   :  { %1249 = vmatpush.bf16.msra.mxu2 %v5260_v10  ;;  %1262 = vmatpush.bf16.msra.mxu3 %v5264_v11  ;;  %v5480_v10 = vor.u32 %v7376_v2, %v5477_v3  ;;  %v7359_v11 = vld [vmem:[#allocation10 + $0x134] sm:$0xf]  ;;  %v7460_v2 = vld [vmem:[#allocation11 + $0x58] sm:$0xff] }
 0x1f4   :  { %1275 = vmatpush.bf16.msrb.mxu0 %v5268_v15  ;;  %1288 = vmatpush.bf16.msrb.mxu1 %v5272_v16  ;;  %v7360_v15 = vld [vmem:[#allocation10 + $0x13c] sm:$0xf]  ;;  %v7467_v3 = vld [vmem:[#allocation11 + $0x90] sm:$0xff] }
 0x1f5   :  { %v5413_v16 = vld [vmem:[#allocation10 + $0x178] sm:$0xf0]  ;;  %v7491_v43 = vld [vmem:[#allocation11 + $0x150] sm:$0xff] }
 0x1f6   :  { %1250 = vmatmul.bf16.vlgmr.msra.gmra.mxu2 %v8238_v45  ;;  %1263 = vmatmul.bf16.vlgmr.msra.gmra.mxu3 %v8238_v45 }
 0x1f7   :  { %1294 = vmatpush.bf16.msrb.mxu2 %v5724_v50  ;;  %1307 = vmatpush.bf16.msrb.mxu3 %v5728_v17  ;;  %v5404_v50 = vor.u32 %v7367_v8, %v5403_v7  ;;  %v5408_v17 = vor.u32 %v7359_v11, %v5405_v12  ;;  %v7459_v7 = vld [vmem:[#allocation11 + $0x50] sm:$0xff]  ;;  %v7466_v8 = vld [vmem:[#allocation11 + $0x88] sm:$0xff]  ;;  %v7465_v12 = vld [vmem:[#allocation11 + $0x80] sm:$0xff] }
 0x1f8   :  { %1320 = vmatpush.bf16.msra.mxu0 %v5732_v22  ;;  %1333 = vmatpush.bf16.msra.mxu1 %v5736_v23  ;;  %v5412_v22 = vor.u32 %v7368_v14, %v5411_v13  ;;  %v5416_v23 = vor.u32 %v7360_v15, %v5413_v16  ;;  %v7458_v11 = vld [vmem:[#allocation11 + $0x48] sm:$0xff]  ;;  %v7473_v13 = vld [vmem:[#allocation11 + $0xc0] sm:$0xff]  ;;  %v7504_v14 = vld [vmem:[#allocation11 + $0x1b8] sm:$0xff] }
 0x1f9   :  { %1276 = vmatmul.bf16.vlgmr.msrb.gmra.mxu0 %v8238_v45  ;;  %1289 = vmatmul.bf16.vlgmr.msrb.gmra.mxu1 %v8238_v45  ;;  %v7512_v15 = vld [vmem:[#allocation11 + $0x1f8] sm:$0xff]  ;;  %v7449_v16 = vld [vmem:[#allocation11] sm:$0xff] }
 0x1fb   :  { %1295 = vmatpush.bf16.msrb.mxu2 %v5660_v31  ;;  %1308 = vmatpush.bf16.msrb.mxu3 %v5664_v24  ;;  %v5340_v31 = vor.u32 %v7351_v21, %v5339_v19  ;;  %v5344_v24 = vor.u32 %v7343_v26, %v5341_v27  ;;  %v7496_v19 = vld [vmem:[#allocation11 + $0x178] sm:$0xff]  ;;  %v7503_v21 = vld [vmem:[#allocation11 + $0x1b0] sm:$0xff]  ;;  %v7502_v27 = vld [vmem:[#allocation11 + $0x1a8] sm:$0xff] }
 0x1fc   :  { %1321 = vmatpush.bf16.msra.mxu0 %v5668_v35  ;;  %1334 = vmatpush.bf16.msra.mxu1 %v5672_v37  ;;  %v5348_v35 = vor.u32 %v7352_v29, %v5347_v28  ;;  %v5352_v37 = vor.u32 %v7344_v36, %v5349_v30  ;;  %v7495_v26 = vld [vmem:[#allocation11 + $0x170] sm:$0xff]  ;;  %v7510_v28 = vld [vmem:[#allocation11 + $0x1e8] sm:$0xff]  ;;  %v7501_v30 = vld [vmem:[#allocation11 + $0x1a0] sm:$0xff] }
 0x1fd   :  { %v7486_v29 = vld [vmem:[#allocation11 + $0x128] sm:$0xff] }
 0x1fe   :  { %v7494_v36 = vld [vmem:[#allocation11 + $0x168] sm:$0xff] }
 0x1ff   :  { %1296 = vmatpush.bf16.msrb.mxu2 %v5596_v46  ;;  %1309 = vmatpush.bf16.msrb.mxu3 %v5600_v47  ;;  %v5276_v46 = vor.u32 %v7335_v34, %v5275_v33  ;;  %v5280_v47 = vor.u32 %v7327_v38, %v5277_v39  ;;  %v7493_v33 = vld [vmem:[#allocation11 + $0x160] sm:$0xff]  ;;  %v7500_v34 = vld [vmem:[#allocation11 + $0x198] sm:$0xff]  ;;  %v7499_v39 = vld [vmem:[#allocation11 + $0x190] sm:$0xff] }
 0x200   :  { %1322 = vmatpush.bf16.msra.mxu0 %v5604_v18  ;;  %1335 = vmatpush.bf16.msra.mxu1 %v5608_v49  ;;  %v7472_v18 = vld [vmem:[#allocation11 + $0xb8] sm:$0xff] }
 0x201   :  { %v7480_v49 = vld [vmem:[#allocation11 + $0xf8] sm:$0xff] }
 0x202   :  { %v7492_v38 = vld [vmem:[#allocation11 + $0x158] sm:$0xff] }
 0x203   :  { %1297 = vmatpush.bf16.msrb.mxu2 %v5532_v57  ;;  %1310 = vmatpush.bf16.msrb.mxu3 %v5536_v58  ;;  %v7470_v57 = vld [vmem:[#allocation11 + $0xa8] sm:$0xff] }
 0x204   :  { %1323 = vmatpush.bf16.msra.mxu0 %v5540_v61  ;;  %1336 = vmatpush.bf16.msra.mxu1 %v5544_v62  ;;  %v7478_v58 = vld [vmem:[#allocation11 + $0xe8] sm:$0xff]  ;;  %v7469_v61 = vld [vmem:[#allocation11 + $0xa0] sm:$0xff] }
 0x205   :  { %v7477_v62 = vld [vmem:[#allocation11 + $0xe0] sm:$0xff] }
 0x207   :  { %1298 = vmatpush.bf16.msrb.mxu2 %v5468_v5  ;;  %1311 = vmatpush.bf16.msrb.mxu3 %v5472_v6  ;;  %v7475_v5 = vld [vmem:[#allocation11 + $0xd0] sm:$0xff] }
 0x208   :  { %1324 = vmatpush.bf16.msra.mxu0 %v5476_v9  ;;  %1337 = vmatpush.bf16.msra.mxu1 %v5480_v10  ;;  %v7451_v6 = vld [vmem:[#allocation11 + $0x10] sm:$0xff]  ;;  %v7474_v9 = vld [vmem:[#allocation11 + $0xc8] sm:$0xff] }
 0x209   :  { %v7450_v10 = vld [vmem:[#allocation11 + $0x8] sm:$0xff] }
 0x20b   :  { %1299 = vmatpush.bf16.msrb.mxu2 %v5404_v50  ;;  %1312 = vmatpush.bf16.msrb.mxu3 %v5408_v17  ;;  %v7457_v50 = vld [vmem:[#allocation11 + $0x40] sm:$0xff]  ;;  %v7488_v17 = vld [vmem:[#allocation11 + $0x138] sm:$0xff] }
 0x20c   :  { %1325 = vmatpush.bf16.msra.mxu0 %v5412_v22  ;;  %1338 = vmatpush.bf16.msra.mxu1 %v5416_v23  ;;  %v7511_v22 = vld [vmem:[#allocation11 + $0x1f0] sm:$0xff] }
 0x20d   :  { %v7487_v23 = vld [vmem:[#allocation11 + $0x130] sm:$0xff] }
 0x20f   :  { %1300 = vmatpush.bf16.msrb.mxu2 %v5340_v31  ;;  %1313 = vmatpush.bf16.msrb.mxu3 %v5344_v24  ;;  %v7509_v31 = vld [vmem:[#allocation11 + $0x1e0] sm:$0xff] }
 0x210   :  { %1326 = vmatpush.bf16.msra.mxu0 %v5348_v35  ;;  %1339 = vmatpush.bf16.msra.mxu1 %v5352_v37  ;;  %v7485_v24 = vld [vmem:[#allocation11 + $0x120] sm:$0xff]  ;;  %v7508_v35 = vld [vmem:[#allocation11 + $0x1d8] sm:$0xff] }
 0x211   :  { %v7484_v37 = vld [vmem:[#allocation11 + $0x118] sm:$0xff] }
 0x213   :  { %1301 = vmatpush.bf16.msrb.mxu2 %v5276_v46  ;;  %1314 = vmatpush.bf16.msrb.mxu3 %v5280_v47  ;;  %v7506_v46 = vld [vmem:[#allocation11 + $0x1c8] sm:$0xff] }
 0x214   :  { %1327 = vmatpush.bf16.msra.mxu0 %v5284_v32  ;;  %1340 = vmatpush.bf16.msra.mxu1 %v5288_v48  ;;  %v7482_v47 = vld [vmem:[#allocation11 + $0x108] sm:$0xff]  ;;  %v7497_v48 = vld [vmem:[#allocation11 + $0x180] sm:$0xff] }
 0x215   :  { %v7490_v32 = vld [vmem:[#allocation11 + $0x148] sm:$0xff] }
 0x216   :  { %1302 = vmatmul.bf16.vlgmr.msrb.gmra.mxu2 %v8238_v45  ;;  %1315 = vmatmul.bf16.vlgmr.msrb.gmra.mxu3 %v8238_v45 }
 0x217   :  { %1328 = vmatmul.bf16.vlgmr.msra.gmra.mxu0 %v8238_v45  ;;  %1341 = vmatmul.bf16.vlgmr.msra.gmra.mxu1 %v8238_v45  ;;  %v7461_v45 = vld [vmem:[#allocation11 + $0x60] sm:$0xff] }
 0x218   :  { %2429 = vmatpush.bf16.msrb.mxu0 %v7472_v18  ;;  %2442 = vmatpush.bf16.msrb.mxu1 %v7480_v49  ;;  %v7505_v18 = vld [vmem:[#allocation11 + $0x1c0] sm:$0xff]  ;;  %v154_v49 = vld [vmem:[#allocation14] sm:$0xff] }
 0x219   :  { %2403 = vmatpush.bf16.msra.mxu2 %v7456_v51  ;;  %2416 = vmatpush.bf16.msra.mxu3 %v7464_v52  ;;  %v7481_v51 = vld [vmem:[#allocation11 + $0x100] sm:$0xff] }
 0x21a   :  { %v7489_v52 = vld [vmem:[#allocation11 + $0x140] sm:$0xff] }
 0x21c   :  { %2430 = vmatpush.bf16.msrb.mxu0 %v7471_v53  ;;  %2443 = vmatpush.bf16.msrb.mxu1 %v7479_v54  ;;  %v452_v53 = vperm.slane %v154_v49, 4  ;;  %v453_v54 = vperm.slane %v154_v49, 6 }
 0x21d   :  { %2404 = vmatpush.bf16.msra.mxu2 %v7455_v55  ;;  %2417 = vmatpush.bf16.msra.mxu3 %v7463_v56 }
 0x21e   :  { %v484_v55 = vperm.slane %v452_v53, 0  ;;  %v485_v56 = vperm.slane %v453_v54, 0 }
 0x220   :  { %2431 = vmatpush.bf16.msrb.mxu0 %v7470_v57  ;;  %2444 = vmatpush.bf16.msrb.mxu1 %v7478_v58  ;;  %v450_v57 = vperm.slane %v154_v49, 0  ;;  %v451_v58 = vperm.slane %v154_v49, 2  ;;  %v7540_v49 = vld [vmem:[#allocation11 + $0x2d8] sm:$0xff] }
 0x221   :  { %2405 = vmatpush.bf16.msra.mxu2 %v7454_v59  ;;  %2418 = vmatpush.bf16.msra.mxu3 %v7462_v60 }
 0x224   :  { %2432 = vmatpush.bf16.msrb.mxu0 %v7469_v61  ;;  %2445 = vmatpush.bf16.msrb.mxu1 %v7477_v62 }
 0x225   :  { %2406 = vmatpush.bf16.msra.mxu2 %v7453_v63  ;;  %2419 = vmatpush.bf16.msra.mxu3 %v7461_v45  ;;  %v482_v63 = vperm.slane %v450_v57, 0  ;;  %v483_v45 = vperm.slane %v451_v58, 0  ;;  %v7517_v57 = vld [vmem:[#allocation11 + $0x220] sm:$0xff] }
 0x226   :  { %v7525_v58 = vld [vmem:[#allocation11 + $0x260] sm:$0xff] }
 0x228   :  { %2433 = vmatpush.bf16.msrb.mxu0 %v7468_v25  ;;  %2446 = vmatpush.bf16.msrb.mxu1 %v7476_v0 }
 0x229   :  { %2407 = vmatpush.bf16.msra.mxu2 %v7452_v1  ;;  %2420 = vmatpush.bf16.msra.mxu3 %v7460_v2  ;;  %v7536_v1 = vld [vmem:[#allocation11 + $0x2b8] sm:$0xff] }
 0x22a   :  { %v7544_v2 = vld [vmem:[#allocation11 + $0x2f8] sm:$0xff] }
 0x22c   :  { %2434 = vmatpush.bf16.msrb.mxu0 %v7467_v3  ;;  %2447 = vmatpush.bf16.msrb.mxu1 %v7475_v5 }
 0x22d   :  { %2408 = vmatpush.bf16.msra.mxu2 %v7451_v6  ;;  %2421 = vmatpush.bf16.msra.mxu3 %v7459_v7 }
 0x230   :  { %2435 = vmatpush.bf16.msrb.mxu0 %v7466_v8  ;;  %2448 = vmatpush.bf16.msrb.mxu1 %v7474_v9 }
 0x231   :  { %2409 = vmatpush.bf16.msra.mxu2 %v7450_v10  ;;  %2422 = vmatpush.bf16.msra.mxu3 %v7458_v11  ;;  %v155_v10 = vld [vmem:[#allocation14 + $0x8] sm:$0xff] }
 0x234   :  { %2436 = vmatpush.bf16.msrb.mxu0 %v7465_v12  ;;  %2449 = vmatpush.bf16.msrb.mxu1 %v7473_v13 }
 0x235   :  { %2410 = vmatpush.bf16.msra.mxu2 %v7449_v16  ;;  %2423 = vmatpush.bf16.msra.mxu3 %v7457_v50  ;;  %v7543_v16 = vld [vmem:[#allocation11 + $0x2f0] sm:$0xff]  ;;  %v456_v50 = vperm.slane %v155_v10, 4 }
 0x238   :  { %2481 = vmatpush.bf16.msra.mxu0 %v7504_v14  ;;  %2494 = vmatpush.bf16.msra.mxu1 %v7512_v15  ;;  %v7535_v15 = vld [vmem:[#allocation11 + $0x2b0] sm:$0xff] }
 0x239   :  { %2455 = vmatpush.bf16.msrb.mxu2 %v7488_v17  ;;  %2468 = vmatpush.bf16.msrb.mxu3 %v7496_v19  ;;  %v457_v17 = vperm.slane %v155_v10, 6 }
 0x23c   :  { %2482 = vmatpush.bf16.msra.mxu0 %v7503_v21  ;;  %2495 = vmatpush.bf16.msra.mxu1 %v7511_v22  ;;  %v7520_v22 = vld [vmem:[#allocation11 + $0x238] sm:$0xff] }
 0x23d   :  { %2456 = vmatpush.bf16.msrb.mxu2 %v7487_v23  ;;  %2469 = vmatpush.bf16.msrb.mxu3 %v7495_v26  ;;  %v7528_v23 = vld [vmem:[#allocation11 + $0x278] sm:$0xff]  ;;  %v7534_v26 = vld [vmem:[#allocation11 + $0x2a8] sm:$0xff] }
 0x240   :  { %2483 = vmatpush.bf16.msra.mxu0 %v7502_v27  ;;  %2496 = vmatpush.bf16.msra.mxu1 %v7510_v28  ;;  %v7542_v27 = vld [vmem:[#allocation11 + $0x2e8] sm:$0xff] }
 0x241   :  { %2457 = vmatpush.bf16.msrb.mxu2 %v7486_v29  ;;  %2470 = vmatpush.bf16.msrb.mxu3 %v7494_v36  ;;  %v488_v36 = vperm.slane %v456_v50, 0 }
 0x244   :  { %2484 = vmatpush.bf16.msra.mxu0 %v7501_v30  ;;  %2497 = vmatpush.bf16.msra.mxu1 %v7509_v31  ;;  %v489_v30 = vperm.slane %v457_v17, 0  ;;  %v7519_v31 = vld [vmem:[#allocation11 + $0x230] sm:$0xff] }
 0x245   :  { %2458 = vmatpush.bf16.msrb.mxu2 %v7485_v24  ;;  %2471 = vmatpush.bf16.msrb.mxu3 %v7493_v33  ;;  %v7527_v24 = vld [vmem:[#allocation11 + $0x270] sm:$0xff]  ;;  %v454_v33 = vperm.slane %v155_v10, 0 }
 0x248   :  { %2485 = vmatpush.bf16.msra.mxu0 %v7500_v34  ;;  %2498 = vmatpush.bf16.msra.mxu1 %v7508_v35  ;;  %v455_v34 = vperm.slane %v155_v10, 2 }
 0x249   :  { %2459 = vmatpush.bf16.msrb.mxu2 %v7484_v37  ;;  %2472 = vmatpush.bf16.msrb.mxu3 %v7492_v38  ;;  %v7533_v38 = vld [vmem:[#allocation11 + $0x2a0] sm:$0xff] }
 0x24c   :  { %2486 = vmatpush.bf16.msra.mxu0 %v7499_v39  ;;  %2499 = vmatpush.bf16.msra.mxu1 %v7507_v40  ;;  %v7541_v39 = vld [vmem:[#allocation11 + $0x2e0] sm:$0xff] }
 0x24d   :  { %2460 = vmatpush.bf16.msrb.mxu2 %v7483_v42  ;;  %2473 = vmatpush.bf16.msrb.mxu3 %v7491_v43  ;;  %v7518_v43 = vld [vmem:[#allocation11 + $0x228] sm:$0xff] }
 0x250   :  { %2487 = vmatpush.bf16.msra.mxu0 %v7498_v44  ;;  %2500 = vmatpush.bf16.msra.mxu1 %v7506_v46  ;;  %v7526_v44 = vld [vmem:[#allocation11 + $0x268] sm:$0xff]  ;;  %v486_v46 = vperm.slane %v454_v33, 0  ;;  %v7567_v33 = vld [vmem:[#allocation11 + $0x3b0] sm:$0xff] }
 0x251   :  { %2461 = vmatpush.bf16.msrb.mxu2 %v7482_v47  ;;  %2474 = vmatpush.bf16.msrb.mxu3 %v7490_v32  ;;  %v487_v47 = vperm.slane %v455_v34, 0  ;;  %v7575_v34 = vld [vmem:[#allocation11 + $0x3f0] sm:$0xff] }
 0x253   :  { %v1173_v59 = vpop.f32.mrf.mxu0  ;;  %v1186_v60 = vpop.f32.mrf.mxu1 }
 0x254   :  { %2488 = vmatpush.bf16.msra.mxu0 %v7497_v48  ;;  %2501 = vmatpush.bf16.msra.mxu1 %v7505_v18  ;;  %v1174_v61 = vadd.f32 %v1173_v59, %v484_v55  ;;  %v1187_v62 = vadd.f32 %v1186_v60, %v485_v56  ;;  %v7532_v18 = vld [vmem:[#allocation11 + $0x298] sm:$0xff] }
 0x255   :  { %2462 = vmatpush.bf16.msrb.mxu2 %v7481_v51  ;;  %2475 = vmatpush.bf16.msrb.mxu3 %v7489_v52 }
 0x256   :  { %v1348_v25 = vmax.f32 %v1174_v61, 0.0  ;;  %v1349_v0 = vmax.f32 %v1187_v62, 0.0 }
 0x258   :  { %v1620_v3 = vpack.c.bf16 %v1348_v25, %v1348_v25  ;;  %v1621_v5 = vpack.c.bf16 %v1349_v0, %v1349_v0  ;;  %v1147_v6 = vpop.f32.mrf.mxu2  ;;  %v1160_v7 = vpop.f32.mrf.mxu3  ;;  %v156_v25 = vld [vmem:[#allocation14 + $0x10] sm:$0xff] }
 0x259   :  { %v1148_v8 = vadd.f32 %v1147_v6, %v482_v63  ;;  %v1161_v9 = vadd.f32 %v1160_v7, %v483_v45  ;;  %v7531_v63 = vld [vmem:[#allocation11 + $0x290] sm:$0xff]  ;;  %v461_v6 = vperm.slane %v156_v25, 6  ;;  %v7530_v7 = vld [vmem:[#allocation11 + $0x288] sm:$0xff]  ;;  %v458_v50 = vperm.slane %v156_v25, 0 }
 0x25a   :  { %2437 = vmatmul.bf16.vlgmr.msrb.gmra.mxu0 %v1620_v3  ;;  %2450 = vmatmul.bf16.vlgmr.msrb.gmra.mxu1 %v1621_v5  ;;  %v7539_v45 = vld [vmem:[#allocation11 + $0x2d0] sm:$0xff]  ;;  %v7524_v3 = vld [vmem:[#allocation11 + $0x258] sm:$0xff]  ;;  %v460_v5 = vperm.slane %v156_v25, 4  ;;  %v459_v17 = vperm.slane %v156_v25, 2  ;;  %v7549_v25 = vld [vmem:[#allocation11 + $0x320] sm:$0xff] }
 0x25b   :  { %v1346_v11 = vmax.f32 %v1148_v8, 0.0  ;;  %v1347_v12 = vmax.f32 %v1161_v9, 0.0  ;;  %2533 = vmatpush.bf16.msrb.mxu0 %v7536_v1  ;;  %2546 = vmatpush.bf16.msrb.mxu1 %v7544_v2  ;;  %v1175_v13 = vpop.f32.mrf.mxu0  ;;  %v1188_v14 = vpop.f32.mrf.mxu1  ;;  %v7516_v2 = vld [vmem:[#allocation11 + $0x218] sm:$0xff]  ;;  %v7538_v8 = vld [vmem:[#allocation11 + $0x2c8] sm:$0xff] }
 0x25c   :  { %v492_v13 = vperm.slane %v460_v5, 0  ;;  %v493_v14 = vperm.slane %v461_v6, 0  ;;  %v7548_v5 = vld [vmem:[#allocation11 + $0x318] sm:$0xff] }
 0x25d   :  { %v1618_v19 = vpack.c.bf16 %v1346_v11, %v1346_v11  ;;  %v1619_v21 = vpack.c.bf16 %v1347_v12, %v1347_v12  ;;  %v7515_v11 = vld [vmem:[#allocation11 + $0x210] sm:$0xff]  ;;  %v7556_v6 = vld [vmem:[#allocation11 + $0x358] sm:$0xff] }
 0x25e   :  { %v7523_v12 = vld [vmem:[#allocation11 + $0x250] sm:$0xff] }
 0x25f   :  { %2534 = vmatpush.bf16.msrb.mxu0 %v7535_v15  ;;  %2547 = vmatpush.bf16.msrb.mxu1 %v7543_v16  ;;  %v7529_v15 = vld [vmem:[#allocation11 + $0x280] sm:$0xff] }
 0x260   :  { %2411 = vmatmul.bf16.vlgmr.msra.gmra.mxu2 %v1618_v19  ;;  %2424 = vmatmul.bf16.vlgmr.msra.gmra.mxu3 %v1619_v21  ;;  %v1149_v28 = vpop.f32.mrf.mxu2  ;;  %v1162_v29 = vpop.f32.mrf.mxu3  ;;  %v7537_v16 = vld [vmem:[#allocation11 + $0x2c0] sm:$0xff]  ;;  %v7568_v19 = vld [vmem:[#allocation11 + $0x3b8] sm:$0xff] }
 0x261   :  { %2507 = vmatpush.bf16.msra.mxu2 %v7520_v22  ;;  %2520 = vmatpush.bf16.msra.mxu3 %v7528_v23  ;;  %v7576_v21 = vld [vmem:[#allocation11 + $0x3f8] sm:$0xff] }
 0x263   :  { %2535 = vmatpush.bf16.msrb.mxu0 %v7534_v26  ;;  %2548 = vmatpush.bf16.msrb.mxu1 %v7542_v27  ;;  %v1225_v35 = vpop.f32.mrf.mxu0  ;;  %v1238_v37 = vpop.f32.mrf.mxu1  ;;  %v7514_v26 = vld [vmem:[#allocation11 + $0x208] sm:$0xff] }
 0x264   :  { %v1226_v40 = vadd.f32 %v1225_v35, %v488_v36  ;;  %v1239_v42 = vadd.f32 %v1238_v37, %v489_v30  ;;  %v7522_v27 = vld [vmem:[#allocation11 + $0x248] sm:$0xff]  ;;  %v490_v36 = vperm.slane %v458_v50, 0  ;;  %v491_v30 = vperm.slane %v459_v17, 0  ;;  %v7561_v50 = vld [vmem:[#allocation11 + $0x380] sm:$0xff] }
 0x265   :  { %2508 = vmatpush.bf16.msra.mxu2 %v7519_v31  ;;  %2521 = vmatpush.bf16.msra.mxu3 %v7527_v24  ;;  %v7569_v17 = vld [vmem:[#allocation11 + $0x3c0] sm:$0xff] }
 0x266   :  { %v1352_v32 = vmax.f32 %v1226_v40, 0.0  ;;  %v1353_v48 = vmax.f32 %v1239_v42, 0.0  ;;  %v7513_v40 = vld [vmem:[#allocation11 + $0x200] sm:$0xff] }
 0x267   :  { %2536 = vmatpush.bf16.msrb.mxu0 %v7533_v38  ;;  %2549 = vmatpush.bf16.msrb.mxu1 %v7541_v39  ;;  %v7521_v42 = vld [vmem:[#allocation11 + $0x240] sm:$0xff] }
 0x268   :  { %v1624_v51 = vpack.c.bf16 %v1352_v32, %v1352_v32  ;;  %v1625_v52 = vpack.c.bf16 %v1353_v48, %v1353_v48  ;;  %v1199_v53 = vpop.f32.mrf.mxu2  ;;  %v1212_v54 = vpop.f32.mrf.mxu3 }
 0x269   :  { %2509 = vmatpush.bf16.msra.mxu2 %v7518_v43  ;;  %2522 = vmatpush.bf16.msra.mxu3 %v7526_v44  ;;  %v1200_v55 = vadd.f32 %v1199_v53, %v486_v46  ;;  %v1213_v56 = vadd.f32 %v1212_v54, %v487_v47  ;;  %v7552_v46 = vld [vmem:[#allocation11 + $0x338] sm:$0xff] }
 0x26a   :  { %2489 = vmatmul.bf16.vlgmr.msra.gmra.mxu0 %v1624_v51  ;;  %2502 = vmatmul.bf16.vlgmr.msra.gmra.mxu1 %v1625_v52  ;;  %v7560_v47 = vld [vmem:[#allocation11 + $0x378] sm:$0xff]  ;;  %v7566_v51 = vld [vmem:[#allocation11 + $0x3a8] sm:$0xff] }
 0x26b   :  { %v1350_v59 = vmax.f32 %v1200_v55, 0.0  ;;  %v1351_v60 = vmax.f32 %v1213_v56, 0.0  ;;  %2537 = vmatpush.bf16.msrb.mxu0 %v7532_v18  ;;  %2550 = vmatpush.bf16.msrb.mxu1 %v7540_v49  ;;  %v1227_v61 = vpop.f32.mrf.mxu0  ;;  %v1240_v62 = vpop.f32.mrf.mxu1  ;;  %v7574_v52 = vld [vmem:[#allocation11 + $0x3e8] sm:$0xff]  ;;  %v7551_v55 = vld [vmem:[#allocation11 + $0x330] sm:$0xff] }
 0x26c   :  { %v7559_v56 = vld [vmem:[#allocation11 + $0x370] sm:$0xff]  ;;  %v7550_v61 = vld [vmem:[#allocation11 + $0x328] sm:$0xff] }
 0x26d   :  { %v1622_v0 = vpack.c.bf16 %v1350_v59, %v1350_v59  ;;  %v1623_v1 = vpack.c.bf16 %v1351_v60, %v1351_v60  ;;  %2510 = vmatpush.bf16.msra.mxu2 %v7517_v57  ;;  %2523 = vmatpush.bf16.msra.mxu3 %v7525_v58  ;;  %v7565_v57 = vld [vmem:[#allocation11 + $0x3a0] sm:$0xff]  ;;  %v7558_v62 = vld [vmem:[#allocation11 + $0x368] sm:$0xff] }
 0x26e   :  { %v7573_v58 = vld [vmem:[#allocation11 + $0x3e0] sm:$0xff] }
 0x26f   :  { %2538 = vmatpush.bf16.msrb.mxu0 %v7531_v63  ;;  %2551 = vmatpush.bf16.msrb.mxu1 %v7539_v45  ;;  %v7564_v63 = vld [vmem:[#allocation11 + $0x398] sm:$0xff] }
 0x270   :  { %2463 = vmatmul.bf16.vlgmr.msrb.gmra.mxu2 %v1622_v0  ;;  %2476 = vmatmul.bf16.vlgmr.msrb.gmra.mxu3 %v1623_v1  ;;  %v1201_v9 = vpop.f32.mrf.mxu2  ;;  %v1214_v10 = vpop.f32.mrf.mxu3  ;;  %v7572_v45 = vld [vmem:[#allocation11 + $0x3d8] sm:$0xff]  ;;  %v7557_v0 = vld [vmem:[#allocation11 + $0x360] sm:$0xff]  ;;  %v157_v1 = vld [vmem:[#allocation14 + $0x18] sm:$0xff] }
 0x271   :  { %2511 = vmatpush.bf16.msra.mxu2 %v7516_v2  ;;  %2524 = vmatpush.bf16.msra.mxu3 %v7524_v3  ;;  %v7563_v2 = vld [vmem:[#allocation11 + $0x390] sm:$0xff]  ;;  %v7562_v9 = vld [vmem:[#allocation11 + $0x388] sm:$0xff] }
 0x272   :  { %v7571_v3 = vld [vmem:[#allocation11 + $0x3d0] sm:$0xff]  ;;  %v7570_v10 = vld [vmem:[#allocation11 + $0x3c8] sm:$0xff] }
 0x273   :  { %2539 = vmatpush.bf16.msrb.mxu0 %v7530_v7  ;;  %2552 = vmatpush.bf16.msrb.mxu1 %v7538_v8  ;;  %v464_v7 = vperm.slane %v157_v1, 4  ;;  %v465_v8 = vperm.slane %v157_v1, 6 }
 0x275   :  { %2512 = vmatpush.bf16.msra.mxu2 %v7515_v11  ;;  %2525 = vmatpush.bf16.msra.mxu3 %v7523_v12  ;;  %v496_v11 = vperm.slane %v464_v7, 0  ;;  %v497_v12 = vperm.slane %v465_v8, 0 }
 0x276   :  { %v1277_v22 = vpop.f32.mrf.mxu0  ;;  %v1290_v23 = vpop.f32.mrf.mxu1 }
 0x277   :  { %v1278_v28 = vadd.f32 %v1277_v22, %v492_v13  ;;  %v1291_v29 = vadd.f32 %v1290_v23, %v493_v14  ;;  %2540 = vmatpush.bf16.msrb.mxu0 %v7529_v15  ;;  %2553 = vmatpush.bf16.msrb.mxu1 %v7537_v16  ;;  %v7547_v13 = vld [vmem:[#allocation11 + $0x310] sm:$0xff]  ;;  %v462_v15 = vperm.slane %v157_v1, 0  ;;  %v463_v16 = vperm.slane %v157_v1, 2 }
 0x278   :  { %v7555_v14 = vld [vmem:[#allocation11 + $0x350] sm:$0xff] }
 0x279   :  { %v1356_v31 = vmax.f32 %v1278_v28, 0.0  ;;  %v1357_v24 = vmax.f32 %v1291_v29, 0.0  ;;  %2513 = vmatpush.bf16.msra.mxu2 %v7514_v26  ;;  %2526 = vmatpush.bf16.msra.mxu3 %v7522_v27  ;;  %v1251_v38 = vpop.f32.mrf.mxu2  ;;  %v1264_v39 = vpop.f32.mrf.mxu3  ;;  %v7546_v26 = vld [vmem:[#allocation11 + $0x308] sm:$0xff]  ;;  %v494_v28 = vperm.slane %v462_v15, 0  ;;  %v495_v29 = vperm.slane %v463_v16, 0 }
 0x27a   :  { %v1252_v43 = vadd.f32 %v1251_v38, %v490_v36  ;;  %v1265_v44 = vadd.f32 %v1264_v39, %v491_v30  ;;  %v7554_v27 = vld [vmem:[#allocation11 + $0x348] sm:$0xff] }
 0x27b   :  { %2585 = vmatpush.bf16.msra.mxu0 %v7568_v19  ;;  %2598 = vmatpush.bf16.msra.mxu1 %v7576_v21  ;;  %v1628_v35 = vpack.c.bf16 %v1356_v31, %v1356_v31  ;;  %v1629_v37 = vpack.c.bf16 %v1357_v24, %v1357_v24 }
 0x27c   :  { %v1354_v32 = vmax.f32 %v1252_v43, 0.0  ;;  %v1355_v48 = vmax.f32 %v1265_v44, 0.0 }
 0x27d   :  { %2541 = vmatmul.bf16.vlgmr.msrb.gmra.mxu0 %v1628_v35  ;;  %2554 = vmatmul.bf16.vlgmr.msrb.gmra.mxu1 %v1629_v37  ;;  %v7545_v35 = vld [vmem:[#allocation11 + $0x300] sm:$0xff] }
 0x27e   :  { %v1279_v18 = vpop.f32.mrf.mxu0  ;;  %v1292_v49 = vpop.f32.mrf.mxu1  ;;  %2514 = vmatpush.bf16.msra.mxu2 %v7513_v40  ;;  %2527 = vmatpush.bf16.msra.mxu3 %v7521_v42  ;;  %v1626_v53 = vpack.c.bf16 %v1354_v32, %v1354_v32  ;;  %v1627_v54 = vpack.c.bf16 %v1355_v48, %v1355_v48  ;;  %v7553_v37 = vld [vmem:[#allocation11 + $0x340] sm:$0xff] }
 0x27f   :  { %2586 = vmatpush.bf16.msra.mxu0 %v7567_v33  ;;  %2599 = vmatpush.bf16.msra.mxu1 %v7575_v34 }
 0x281   :  { %2515 = vmatmul.bf16.vlgmr.msra.gmra.mxu2 %v1626_v53  ;;  %2528 = vmatmul.bf16.vlgmr.msra.gmra.mxu3 %v1627_v54  ;;  %v1253_v59 = vpop.f32.mrf.mxu2  ;;  %v1266_v60 = vpop.f32.mrf.mxu3 }
 0x282   :  { %2559 = vmatpush.bf16.msrb.mxu2 %v7552_v46  ;;  %2572 = vmatpush.bf16.msrb.mxu3 %v7560_v47 }
 0x283   :  { %2587 = vmatpush.bf16.msra.mxu0 %v7566_v51  ;;  %2600 = vmatpush.bf16.msra.mxu1 %v7574_v52 }
 0x286   :  { %2560 = vmatpush.bf16.msrb.mxu2 %v7551_v55  ;;  %2573 = vmatpush.bf16.msrb.mxu3 %v7559_v56 }
 0x287   :  { %2588 = vmatpush.bf16.msra.mxu0 %v7565_v57  ;;  %2601 = vmatpush.bf16.msra.mxu1 %v7573_v58 }
 0x28a   :  { %2561 = vmatpush.bf16.msrb.mxu2 %v7550_v61  ;;  %2574 = vmatpush.bf16.msrb.mxu3 %v7558_v62 }
 0x28b   :  { %2589 = vmatpush.bf16.msra.mxu0 %v7564_v63  ;;  %2602 = vmatpush.bf16.msra.mxu1 %v7572_v45  ;;  %v8256_v63 = vld [vmem:[#allocation13] sm:$0xff] }
 0x28c   :  { %v1634_v45 = vperm.slane %v8256_v63, 1 }
 0x28e   :  { %2562 = vmatpush.bf16.msrb.mxu2 %v7549_v25  ;;  %2575 = vmatpush.bf16.msrb.mxu3 %v7557_v0 }
 0x28f   :  { %2590 = vmatpush.bf16.msra.mxu0 %v7563_v2  ;;  %2603 = vmatpush.bf16.msra.mxu1 %v7571_v3 }
 0x292   :  { %2563 = vmatpush.bf16.msrb.mxu2 %v7548_v5  ;;  %2576 = vmatpush.bf16.msrb.mxu3 %v7556_v6 }
 0x293   :  { %2591 = vmatpush.bf16.msra.mxu0 %v7562_v9  ;;  %2604 = vmatpush.bf16.msra.mxu1 %v7570_v10 }
 0x294   :  { %v1329_v19 = vpop.f32.mrf.mxu0  ;;  %v1342_v21 = vpop.f32.mrf.mxu1 }
 0x295   :  { %v1330_v22 = vadd.f32 %v1329_v19, %v496_v11  ;;  %v1343_v23 = vadd.f32 %v1342_v21, %v497_v12 }
 0x296   :  { %2564 = vmatpush.bf16.msrb.mxu2 %v7547_v13  ;;  %2577 = vmatpush.bf16.msrb.mxu3 %v7555_v14 }
 0x297   :  { %v1360_v36 = vmax.f32 %v1330_v22, 0.0  ;;  %v1361_v30 = vmax.f32 %v1343_v23, 0.0  ;;  %2592 = vmatpush.bf16.msra.mxu0 %v7561_v50  ;;  %2605 = vmatpush.bf16.msra.mxu1 %v7569_v17 }
 0x299   :  { %v1632_v31 = vpack.c.bf16 %v1360_v36, %v1360_v36  ;;  %v1633_v24 = vpack.c.bf16 %v1361_v30, %v1361_v30  ;;  %v1303_v33 = vpop.f32.mrf.mxu2  ;;  %v1316_v34 = vpop.f32.mrf.mxu3 }
 0x29a   :  { %2565 = vmatpush.bf16.msrb.mxu2 %v7546_v26  ;;  %2578 = vmatpush.bf16.msrb.mxu3 %v7554_v27  ;;  %v1304_v38 = vadd.f32 %v1303_v33, %v494_v28  ;;  %v1317_v39 = vadd.f32 %v1316_v34, %v495_v29 }
 0x29b   :  { %2593 = vmatmul.bf16.vlgmr.msra.gmra.mxu0 %v1632_v31  ;;  %2606 = vmatmul.bf16.vlgmr.msra.gmra.mxu1 %v1633_v24 }
 0x29c   :  { %v1358_v40 = vmax.f32 %v1304_v38, 0.0  ;;  %v1359_v42 = vmax.f32 %v1317_v39, 0.0  ;;  %v1331_v43 = vpop.f32.mrf.mxu0  ;;  %v1344_v44 = vpop.f32.mrf.mxu1 }
 0x29e   :  { %2566 = vmatpush.bf16.msrb.mxu2 %v7545_v35  ;;  %2579 = vmatpush.bf16.msrb.mxu3 %v7553_v37  ;;  %v1630_v46 = vpack.c.bf16 %v1358_v40, %v1358_v40  ;;  %v1631_v47 = vpack.c.bf16 %v1359_v42, %v1359_v42  ;;  %v2662_v40 = vpop.xlane.xlu0 %2661 }
 0x29f   :  { %v2663_v43 = vmul.f32 %v2662_v40, %v8218_v4 }
 0x2a1   :  { %2567 = vmatmul.bf16.vlgmr.msrb.gmra.mxu2 %v1630_v46  ;;  %2580 = vmatmul.bf16.vlgmr.msrb.gmra.mxu3 %v1631_v47  ;;  %v1305_v32 = vpop.f32.mrf.mxu2  ;;  %v1318_v48 = vpop.f32.mrf.mxu3  ;;  %v8263_v46 = vsub.f32 %v8228_v20, %v2663_v43  ;;  %v2632_v20 = vperm.slane %v8256_v63, 4 }
 0x2a3   :  { %v2665_v47 = vmul.f32 %v8263_v46, %v8263_v46 }
 0x2d7   :  { %v2438_v18 = vpop.f32.mrf.mxu0  ;;  %v2451_v49 = vpop.f32.mrf.mxu1 }
 0x2df   :  { %v2440_v51 = vpop.f32.mrf.mxu0  ;;  %v2453_v52 = vpop.f32.mrf.mxu1 }
 0x2e3   :  { %v2412_v53 = vpop.f32.mrf.mxu2  ;;  %v2425_v54 = vpop.f32.mrf.mxu3 }
 0x2e4   :  { %v2413_v25 = vadd.f32 %v2412_v53, %v1634_v45 }
 0x2e6   :  { %v2426_v5 = vadd.f32 %v2425_v54, %v2413_v25 }
 0x2e7   :  { %v2490_v55 = vpop.f32.mrf.mxu0  ;;  %v2503_v56 = vpop.f32.mrf.mxu1 }
 0x2e8   :  { %v2439_v6 = vadd.f32 %v2438_v18, %v2426_v5  ;;  %v7579_v5 = vld [vmem:[#allocation8 + $0x10] sm:$0xff] }
 0x2ea   :  { %v2452_v9 = vadd.f32 %v2451_v49, %v2439_v6  ;;  %v7578_v6 = vld [vmem:[#allocation8 + $0x8] sm:$0xff] }
 0x2eb   :  { %v2414_v57 = vpop.f32.mrf.mxu2  ;;  %v2427_v58 = vpop.f32.mrf.mxu3 }
 0x2ec   :  { %v2634_v57 = vperm.slane %v8256_v63, 5 }
 0x2ef   :  { %v2492_v59 = vpop.f32.mrf.mxu0  ;;  %v2505_v60 = vpop.f32.mrf.mxu1 }
 0x2f0   :  { %v7584_v60 = vld [vmem:[#allocation8 + $0x38] sm:$0xff] }
 0x2f1   :  { %2751 = vmatpush.bf16.msra.mxu2 %v7584_v60  ;;  %v7681_v60 = vld [vmem:[#allocation10 + $0x704] sm:$0xf] }
 0x2f3   :  { %v2464_v61 = vpop.f32.mrf.mxu2  ;;  %v2477_v62 = vpop.f32.mrf.mxu3 }
 0x2f4   :  { %v2465_v12 = vadd.f32 %v2464_v61, %v2452_v9 }
 0x2f6   :  { %v2478_v13 = vadd.f32 %v2477_v62, %v2465_v12 }
 0x2f8   :  { %v2491_v16 = vadd.f32 %v2490_v55, %v2478_v13 }
 0x2fa   :  { %v2542_v0 = vpop.f32.mrf.mxu0  ;;  %v2555_v1 = vpop.f32.mrf.mxu1  ;;  %v2504_v50 = vadd.f32 %v2503_v56, %v2491_v16 }
 0x2fb   :  { %v2466_v2 = vpop.f32.mrf.mxu2  ;;  %v2479_v3 = vpop.f32.mrf.mxu3 }
 0x2fc   :  { %v7581_v2 = vld [vmem:[#allocation8 + $0x20] sm:$0xff]  ;;  %v7580_v3 = vld [vmem:[#allocation8 + $0x18] sm:$0xff] }
 0x302   :  { %v2544_v7 = vpop.f32.mrf.mxu0  ;;  %v2557_v8 = vpop.f32.mrf.mxu1 }
 0x303   :  { %v7577_v7 = vld [vmem:[#allocation8] sm:$0xff] }
 0x304   :  { %v2516_v10 = vpop.f32.mrf.mxu2  ;;  %v2529_v11 = vpop.f32.mrf.mxu3 }
 0x305   :  { %v2517_v17 = vadd.f32 %v2516_v10, %v2504_v50  ;;  %v2656_v50 = vperm.slane %v8256_v63, 6 }
 0x307   :  { %v2530_v22 = vadd.f32 %v2529_v11, %v2517_v17 }
 0x309   :  { %v2543_v23 = vadd.f32 %v2542_v0, %v2530_v22  ;;  %v7583_v0 = vld [vmem:[#allocation8 + $0x30] sm:$0xff] }
 0x30a   :  { %2752 = vmatpush.bf16.msra.mxu2 %v7583_v0  ;;  %v7690_v0 = vld [vmem:[#allocation10 + $0x744] sm:$0xf0] }
 0x30b   :  { %v2556_v28 = vadd.f32 %v2555_v1, %v2543_v23  ;;  %v7582_v1 = vld [vmem:[#allocation8 + $0x28] sm:$0xff] }
 0x30c   :  { %v2518_v14 = vpop.f32.mrf.mxu2  ;;  %v2531_v15 = vpop.f32.mrf.mxu3 }
 0x30e   :  { %2753 = vmatpush.bf16.msra.mxu2 %v7582_v1  ;;  %v7682_v1 = vld [vmem:[#allocation10 + $0x70c] sm:$0xf] }
 0x312   :  { %2754 = vmatpush.bf16.msra.mxu2 %v7581_v2 }
 0x316   :  { %2755 = vmatpush.bf16.msra.mxu2 %v7580_v3  ;;  %v6677_v3 = vld [vmem:[#allocation10 + $0x748] sm:$0xf0] }
 0x318   :  { %v2594_v19 = vpop.f32.mrf.mxu0  ;;  %v2607_v21 = vpop.f32.mrf.mxu1 }
 0x31a   :  { %2756 = vmatpush.bf16.msra.mxu2 %v7579_v5  ;;  %v6603_v5 = vld [vmem:[#allocation10 + $0x680] sm:$0xf] }
 0x31e   :  { %2757 = vmatpush.bf16.msra.mxu2 %v7578_v6  ;;  %v7673_v6 = vld [vmem:[#allocation10 + $0x6bc] sm:$0xf0] }
 0x320   :  { %v2596_v26 = vpop.f32.mrf.mxu0  ;;  %v2609_v27 = vpop.f32.mrf.mxu1 }
 0x322   :  { %2758 = vmatpush.bf16.msra.mxu2 %v7577_v7  ;;  %v6680_v7 = vor.u32 %v7682_v1, %v6677_v3 }
 0x324   :  { %v2568_v29 = vpop.f32.mrf.mxu2  ;;  %v2581_v36 = vpop.f32.mrf.mxu3 }
 0x325   :  { %v2569_v30 = vadd.f32 %v2568_v29, %v2556_v28 }
 0x327   :  { %v2582_v31 = vadd.f32 %v2581_v36, %v2569_v30 }
 0x329   :  { %v2595_v24 = vadd.f32 %v2594_v19, %v2582_v31 }
 0x32b   :  { %v2608_v33 = vadd.f32 %v2607_v21, %v2595_v24  ;;  %v2658_v21 = vperm.slane %v8256_v63, 7 }
 0x32c   :  { %v2570_v34 = vpop.f32.mrf.mxu2  ;;  %v2583_v35 = vpop.f32.mrf.mxu3 }
 0x32d   :  { %v2611_v37 = vadd.f32 %v2608_v33, %v8234_v41 }
 0x32f   :  { %2612 = vadd.xlane.f32.xlu1 %v2611_v37 }
 0x3a2   :  { %v2613_v38 = vpop.xlane.xlu1 %2612 }
 0x3a3   :  { %v2614_v39 = vmul.f32 %v2613_v38, %v8218_v4 }
 0x3a5   :  { %v2615_v42 = vsub.f32 %v2611_v37, %v2614_v39  ;;  %v8276_v37 = vld [vmem:[#allocation13 + $0x8] sm:$0xff] }
 0x3a6   :  { %v2681_v38 = vperm.slane %v8276_v37, 3  ;;  %v2702_v39 = vperm.slane %v8276_v37, 1 }
 0x3a7   :  { %v2616_v44 = vmul.f32 %v2615_v42, %v2615_v42 }
 0x3a9   :  { %2617 = vadd.xlane.f32.xlu1 %v2616_v44 }
 0x3b1   :  { %2666 = vadd.xlane.f32.xlu1 %v2665_v47 }
 0x41c   :  { %v2618_v32 = vpop.xlane.xlu1 %2617 }
 0x41d   :  { %v2619_v41 = vmul.f32 %v2618_v32, %v8218_v4 }
 0x41f   :  { %v2620_v48 = vadd.f32 1e-05, %v2619_v41 }
 0x421   :  { %7860 = vrsqrt.f32 %v2620_v48  ;;  %vm2627_vm5 = vweird.f32 %v2620_v48 }
 0x424   :  { %v2667_v27 = vpop.xlane.xlu1 %2666 }
 0x425   :  { %v2668_v28 = vmul.f32 %v2667_v27, %v8218_v4  ;;  %v7650_v27 = vld [vmem:[#allocation10 + $0x60c] sm:$0xf] }
 0x427   :  { %v7861_v18 = vpop.eup %7860  ;;  %v2669_v29 = vadd.f32 1e-05, %v2668_v28  ;;  %v6549_v28 = vld [vmem:[#allocation10 + $0x648] sm:$0xf0] }
 0x428   :  { %v2622_v49 = vmul.f32 %v7861_v18, %v2620_v48  ;;  %vm2628_vm4 = vweird.f32 %v7861_v18  ;;  %v6731_v48 = vld [vmem:[#allocation10 + $0x780] sm:$0xf] }
 0x429   :  { %vm2629_vm6 = vmor %vm2627_vm5, %vm2628_vm4  ;;  %vm2676_vm11 = vweird.f32 %v2669_v29 }
 0x42a   :  { %v2623_v51 = vmul.f32 %v7861_v18, %v2622_v49 }
 0x42c   :  { %v2624_v52 = vmul.f32 0.5, %v2623_v51  ;;  %v6733_v51 = vld [vmem:[#allocation10 + $0x7c0] sm:$0xf0] }
 0x42e   :  { %v2625_v53 = vsub.f32 1.5, %v2624_v52  ;;  %v6739_v52 = vld [vmem:[#allocation10 + $0x788] sm:$0xf] }
 0x430   :  { %v2626_v54 = vmul.f32 %v7861_v18, %v2625_v53  ;;  %v7706_v53 = vld [vmem:[#allocation10 + $0x7c4] sm:$0xf0] }
 0x432   :  { %v2630_v55 = vsel %vm2629_vm6, %v7861_v18, %v2626_v54  ;;  %v7705_v18 = vld [vmem:[#allocation10 + $0x7bc] sm:$0xf0]  ;;  %vm5138_vm6 = vcmask 57344  }
 0x433   :  { %v2631_v56 = vmul.f32 %v2630_v55, %v2615_v42  ;;  %v2683_v42 = vperm.slane %v8276_v37, 4  ;;  %v6732_v49 = vor.u32 %v7705_v18, %v6731_v48  ;;  %v7698_v55 = vld [vmem:[#allocation10 + $0x78c] sm:$0xf]  ;;  %v7617_v48 = vld [vmem:[#allocation10 + $0x504] sm:$0xf] }
 0x435   :  { %v2633_v58 = vmul.f32 %v2632_v20, %v2631_v56  ;;  %v6740_v20 = vor.u32 %v7706_v53, %v6739_v52  ;;  %v6741_v56 = vld [vmem:[#allocation10 + $0x7c8] sm:$0xf0]  ;;  %3607 = vmatpush.bf16.msra.mxu3 %v6732_v49  ;;  %v6419_v49 = vld [vmem:[#allocation10 + $0x508] sm:$0xf] }
 0x436   :  { %v7618_v52 = vld [vmem:[#allocation10 + $0x50c] sm:$0xf] }
 0x437   :  { %v2635_v59 = vadd.f32 %v2634_v57, %v2633_v58  ;;  %v6667_v57 = vld [vmem:[#allocation10 + $0x700] sm:$0xf]  ;;  %v6744_v58 = vor.u32 %v7698_v55, %v6741_v56  ;;  %3633 = vmatpush.bf16.msrb.mxu1 %v6740_v20  ;;  %v6421_v53 = vld [vmem:[#allocation10 + $0x548] sm:$0xf0] }
 0x438   :  { %v6347_v56 = vld [vmem:[#allocation10 + $0x480] sm:$0xf] }
 0x439   :  { %2636 = vadd.xlane.f32.xlu2 %v2635_v59  ;;  %3646 = vmatpush.bf16.msrb.mxu2 %v6744_v58  ;;  %v7601_v58 = vld [vmem:[#allocation10 + $0x484] sm:$0xf] }
 0x43d   :  { %3647 = vmatpush.bf16.msrb.mxu2 %v6680_v7 }
 0x4ac   :  { %v2637_v61 = vpop.xlane.xlu2 %2636 }
 0x4ad   :  { %v2638_v62 = vmul.f32 %v2637_v61, %v8218_v4  ;;  %v6669_v61 = vld [vmem:[#allocation10 + $0x740] sm:$0xf0] }
 0x4af   :  { %v2639_v45 = vsub.f32 %v2635_v59, %v2638_v62  ;;  %v7689_v59 = vld [vmem:[#allocation10 + $0x73c] sm:$0xf0] }
 0x4b0   :  { %v6668_v62 = vor.u32 %v7689_v59, %v6667_v57  ;;  %v7609_v57 = vld [vmem:[#allocation10 + $0x4bc] sm:$0xf0]  ;;  %v6424_v59 = vor.u32 %v7618_v52, %v6421_v53  ;;  %v6621_v52 = vld [vmem:[#allocation10 + $0x6d0] sm:$0xf0]  ;;  %v6627_v53 = vld [vmem:[#allocation10 + $0x698] sm:$0xf] }
 0x4b1   :  { %v2640_v25 = vmul.f32 %v2639_v45, %v2639_v45 }
 0x4b2   :  { %3608 = vmatpush.bf16.msra.mxu3 %v6668_v62  ;;  %v7610_v62 = vld [vmem:[#allocation10 + $0x4c4] sm:$0xf0] }
 0x4b3   :  { %2641 = vadd.xlane.f32.xlu2 %v2640_v25  ;;  %v6675_v25 = vld [vmem:[#allocation10 + $0x708] sm:$0xf] }
 0x4b4   :  { %v6676_v2 = vor.u32 %v7690_v0, %v6675_v25  ;;  %v6357_v25 = vld [vmem:[#allocation10 + $0x4c8] sm:$0xf0]  ;;  %v6348_v0 = vor.u32 %v7609_v57, %v6347_v56  ;;  %v7668_v56 = vld [vmem:[#allocation10 + $0x69c] sm:$0xf] }
 0x4b5   :  { %v6629_v57 = vld [vmem:[#allocation10 + $0x6d8] sm:$0xf0] }
 0x4b6   :  { %3634 = vmatpush.bf16.msrb.mxu1 %v6676_v2 }
 0x526   :  { %v2642_v8 = vpop.xlane.xlu2 %2641 }
 0x527   :  { %v2643_v9 = vmul.f32 %v2642_v8, %v8218_v4  ;;  %v7665_v8 = vld [vmem:[#allocation10 + $0x684] sm:$0xf] }
 0x529   :  { %v2644_v10 = vadd.f32 1e-05, %v2643_v9  ;;  %v6605_v9 = vld [vmem:[#allocation10 + $0x6c0] sm:$0xf0] }
 0x52b   :  { %7862 = vrsqrt.f32 %v2644_v10  ;;  %vm2651_vm8 = vweird.f32 %v2644_v10 }
 0x52c   :  { %7864 = vrsqrt.f32 %v2669_v29 }
 0x531   :  { %v7863_v11 = vpop.eup %7862 }
 0x532   :  { %v2646_v12 = vmul.f32 %v7863_v11, %v2644_v10  ;;  %vm2652_vm7 = vweird.f32 %v7863_v11  ;;  %v7865_v36 = vpop.eup %7864  ;;  %v6611_v10 = vld [vmem:[#allocation10 + $0x688] sm:$0xf] }
 0x533   :  { %vm2653_vm9 = vmor %vm2651_vm8, %vm2652_vm7  ;;  %v2671_v30 = vmul.f32 %v7865_v36, %v2669_v29  ;;  %vm2677_vm10 = vweird.f32 %v7865_v36 }
 0x534   :  { %v2647_v13 = vmul.f32 %v7863_v11, %v2646_v12  ;;  %vm2678_vm12 = vmor %vm2676_vm11, %vm2677_vm10  ;;  %v7674_v12 = vld [vmem:[#allocation10 + $0x6c4] sm:$0xf0] }
 0x535   :  { %v2672_v31 = vmul.f32 %v7865_v36, %v2671_v30 }
 0x536   :  { %v2648_v14 = vmul.f32 0.5, %v2647_v13  ;;  %v7666_v13 = vld [vmem:[#allocation10 + $0x68c] sm:$0xf] }
 0x537   :  { %v2673_v24 = vmul.f32 0.5, %v2672_v31  ;;  %v6475_v31 = vld [vmem:[#allocation10 + $0x580] sm:$0xf] }
 0x538   :  { %v2649_v15 = vsub.f32 1.5, %v2648_v14  ;;  %v6613_v14 = vld [vmem:[#allocation10 + $0x6c8] sm:$0xf0] }
 0x539   :  { %v2674_v33 = vsub.f32 1.5, %v2673_v24  ;;  %v7641_v24 = vld [vmem:[#allocation10 + $0x5bc] sm:$0xf0] }
 0x53a   :  { %v2650_v16 = vmul.f32 %v7863_v11, %v2649_v15  ;;  %v6608_v15 = vor.u32 %v7665_v8, %v6605_v9  ;;  %v6283_v9 = vld [vmem:[#allocation10 + $0x400] sm:$0xf] }
 0x53b   :  { %v2675_v34 = vmul.f32 %v7865_v36, %v2674_v33  ;;  %v7633_v33 = vld [vmem:[#allocation10 + $0x584] sm:$0xf] }
 0x53c   :  { %v2654_v17 = vsel %vm2653_vm9, %v7863_v11, %v2650_v16  ;;  %v6604_v11 = vor.u32 %v7673_v6, %v6603_v5  ;;  %v6612_v16 = vor.u32 %v7674_v12, %v6611_v10  ;;  %v7593_v10 = vld [vmem:[#allocation10 + $0x43c] sm:$0xf0] }
 0x53d   :  { %v2655_v19 = vmul.f32 %v2654_v17, %v2639_v45  ;;  %v2679_v35 = vsel %vm2678_vm12, %v7865_v36, %v2675_v34  ;;  %v6672_v45 = vor.u32 %v7681_v60, %v6669_v61  ;;  %v7657_v17 = vld [vmem:[#allocation10 + $0x63c] sm:$0xf0]  ;;  %v6552_v34 = vor.u32 %v7650_v27, %v6549_v28  ;;  %v6349_v60 = vld [vmem:[#allocation10 + $0x4c0] sm:$0xf0]  ;;  %v6355_v61 = vld [vmem:[#allocation10 + $0x488] sm:$0xf] }
 0x53e   :  { %v2680_v63 = vmul.f32 %v2679_v35, %v8263_v46  ;;  %v7697_v46 = vld [vmem:[#allocation10 + $0x784] sm:$0xf]  ;;  %3609 = vmatpush.bf16.msra.mxu3 %v6604_v11  ;;  %3635 = vmatpush.bf16.msrb.mxu1 %v6612_v16  ;;  %v6352_v1 = vor.u32 %v7601_v58, %v6349_v60  ;;  %v6356_v2 = vor.u32 %v7610_v62, %v6355_v61  ;;  %v7659_v60 = vld [vmem:[#allocation10 + $0x64c] sm:$0xf0]  ;;  %v7651_v61 = vld [vmem:[#allocation10 + $0x614] sm:$0xf] }
 0x53f   :  { %v2657_v22 = vmul.f32 %v2656_v50, %v2655_v19  ;;  %v6736_v54 = vor.u32 %v7697_v46, %v6733_v51  ;;  %v6539_v50 = vld [vmem:[#allocation10 + $0x600] sm:$0xf]  ;;  %v7649_v19 = vld [vmem:[#allocation10 + $0x604] sm:$0xf]  ;;  %v7626_v51 = vld [vmem:[#allocation10 + $0x544] sm:$0xf0]  ;;  %v6284_v12 = vor.u32 %v7593_v10, %v6283_v9  ;;  %v6632_v58 = vor.u32 %v7668_v56, %v6629_v57 }
 0x540   :  { %v2682_v40 = vmul.f32 %v2681_v38, %v2680_v63  ;;  %v6540_v29 = vor.u32 %v7657_v17, %v6539_v50  ;;  %v6477_v35 = vld [vmem:[#allocation10 + $0x5c0] sm:$0xf0]  ;;  %v6483_v63 = vld [vmem:[#allocation10 + $0x588] sm:$0xf]  ;;  %v6420_v55 = vor.u32 %v7626_v51, %v6419_v49  ;;  %v7586_v17 = vld [vmem:[#allocation10 + $0x40c] sm:$0xf] }
 0x541   :  { %v2659_v23 = vadd.f32 %v2658_v21, %v2657_v22  ;;  %3620 = vmatpush.bf16.msrb.mxu0 %v6736_v54  ;;  %v6616_v21 = vor.u32 %v7666_v13, %v6613_v14  ;;  %v6541_v22 = vld [vmem:[#allocation10 + $0x640] sm:$0xf0]  ;;  %v7642_v38 = vld [vmem:[#allocation10 + $0x5c4] sm:$0xf0]  ;;  %v7667_v49 = vld [vmem:[#allocation10 + $0x694] sm:$0xf] }
 0x542   :  { %v2684_v47 = vadd.f32 %v2683_v42, %v2682_v40  ;;  %v6544_v36 = vor.u32 %v7649_v19, %v6541_v22  ;;  %v6485_v40 = vld [vmem:[#allocation10 + $0x5c8] sm:$0xf0]  ;;  %3610 = vmatpush.bf16.msra.mxu3 %v6540_v29  ;;  %v6476_v42 = vor.u32 %v7641_v24, %v6475_v31  ;;  %v6413_v46 = vld [vmem:[#allocation10 + $0x540] sm:$0xf0]  ;;  %v6291_v14 = vld [vmem:[#allocation10 + $0x408] sm:$0xf] }
 0x543   :  { %v2701_v26 = vpack.c.bf16 %v2659_v23, %v2659_v23  ;;  %v6547_v23 = vld [vmem:[#allocation10 + $0x608] sm:$0xf]  ;;  %3648 = vmatpush.bf16.msrb.mxu2 %v6616_v21  ;;  %v6416_v20 = vor.u32 %v7617_v48, %v6413_v46  ;;  %v7585_v11 = vld [vmem:[#allocation10 + $0x404] sm:$0xf]  ;;  %v6293_v19 = vld [vmem:[#allocation10 + $0x448] sm:$0xf0] }
 0x544   :  { %v6285_v13 = vld [vmem:[#allocation10 + $0x440] sm:$0xf0]  ;;  %v6296_v21 = vor.u32 %v7586_v17, %v6293_v19  ;;  %v7707_v22 = vld [vmem:[#allocation10 + $0x7cc] sm:$0xf0]  ;;  %v6755_v29 = vld [vmem:[#allocation10 + $0x798] sm:$0xf] }
 0x545   :  { %2759 = vmatmul.bf16.vlgmr.msra.gmra.mxu2 %v2701_v26  ;;  %3621 = vmatpush.bf16.msrb.mxu0 %v6672_v45  ;;  %v7658_v26 = vld [vmem:[#allocation10 + $0x644] sm:$0xf0]  ;;  %v7602_v45 = vld [vmem:[#allocation10 + $0x48c] sm:$0xf]  ;;  %v6288_v16 = vor.u32 %v7585_v11, %v6285_v13  ;;  %v6757_v24 = vld [vmem:[#allocation10 + $0x7d8] sm:$0xf0] }
 0x546   :  { %v6548_v30 = vor.u32 %v7658_v26, %v6547_v23  ;;  %3611 = vmatpush.bf16.msra.mxu3 %v6476_v42  ;;  %v6360_v5 = vor.u32 %v7602_v45, %v6357_v25  ;;  %v7699_v23 = vld [vmem:[#allocation10 + $0x794] sm:$0xf]  ;;  %v7675_v46 = vld [vmem:[#allocation10 + $0x6cc] sm:$0xf0]  ;;  %v6563_v25 = vld [vmem:[#allocation10 + $0x618] sm:$0xf] }
 0x547   :  { %3649 = vmatpush.bf16.msrb.mxu2 %v6552_v34  ;;  %v6749_v26 = vld [vmem:[#allocation10 + $0x7d0] sm:$0xf0]  ;;  %v7691_v34 = vld [vmem:[#allocation10 + $0x74c] sm:$0xf0]  ;;  %v6499_v13 = vld [vmem:[#allocation10 + $0x598] sm:$0xf] }
 0x548   :  { %3636 = vmatpush.bf16.msrb.mxu1 %v6548_v30  ;;  %v6752_v28 = vor.u32 %v7699_v23, %v6749_v26  ;;  %v7700_v30 = vld [vmem:[#allocation10 + $0x79c] sm:$0xf]  ;;  %v6557_v45 = vld [vmem:[#allocation10 + $0x650] sm:$0xf0]  ;;  %v7643_v9 = vld [vmem:[#allocation10 + $0x5cc] sm:$0xf0] }
 0x549   :  { %3622 = vmatpush.bf16.msrb.mxu0 %v6608_v15  ;;  %v7594_v15 = vld [vmem:[#allocation10 + $0x444] sm:$0xf0]  ;;  %v7635_v10 = vld [vmem:[#allocation10 + $0x594] sm:$0xf]  ;;  %v6501_v17 = vld [vmem:[#allocation10 + $0x5d8] sm:$0xf0] }
 0x54a   :  { %v6292_v50 = vor.u32 %v7594_v15, %v6291_v14  ;;  %v7644_v14 = vld [vmem:[#allocation10 + $0x5d4] sm:$0xf0]  ;;  %v6429_v26 = vld [vmem:[#allocation10 + $0x550] sm:$0xf0]  ;;  %v6309_v56 = vld [vmem:[#allocation10 + $0x458] sm:$0xf0] }
 0x54d   :  { %3623 = vmatpush.bf16.msrb.mxu0 %v6544_v36  ;;  %v7708_v36 = vld [vmem:[#allocation10 + $0x7d4] sm:$0xf0] }
 0x54e   :  { %v6756_v31 = vor.u32 %v7708_v36, %v6755_v29 }
 0x5c8   :  { %v2760_v43 = vpop.f32.mrf.mxu2 }
 0x5c9   :  { %v2761_v44 = vadd.f32 %v2760_v43, %v2702_v39  ;;  %v7634_v39 = vld [vmem:[#allocation10 + $0x58c] sm:$0xf]  ;;  %v6480_v43 = vor.u32 %v7633_v33, %v6477_v35  ;;  %v6683_v33 = vld [vmem:[#allocation10 + $0x710] sm:$0xf]  ;;  %v6760_v35 = vor.u32 %v7700_v30, %v6757_v24  ;;  %v7620_v30 = vld [vmem:[#allocation10 + $0x51c] sm:$0xf] }
 0x5ca   :  { %v6488_v18 = vor.u32 %v7634_v39, %v6485_v40  ;;  %v6685_v39 = vld [vmem:[#allocation10 + $0x750] sm:$0xf0]  ;;  %v6691_v40 = vld [vmem:[#allocation10 + $0x718] sm:$0xf] }
 0x5cb   :  { %v8281_v32 = vadd.f32 %v2761_v44, %v2684_v47  ;;  %v6484_v44 = vor.u32 %v7642_v38, %v6483_v63  ;;  %v6411_v47 = vld [vmem:[#allocation10 + $0x500] sm:$0xf]  ;;  %3624 = vmatpush.bf16.msrb.mxu0 %v6480_v43  ;;  %v6684_v63 = vor.u32 %v7691_v34, %v6683_v33  ;;  %v7683_v38 = vld [vmem:[#allocation10 + $0x714] sm:$0xf]  ;;  %v7692_v43 = vld [vmem:[#allocation10 + $0x754] sm:$0xf0] }
 0x5cc   :  { %3650 = vmatpush.bf16.msrb.mxu2 %v6488_v18  ;;  %v6688_v42 = vor.u32 %v7683_v38, %v6685_v39  ;;  %v6619_v18 = vld [vmem:[#allocation10 + $0x690] sm:$0xf]  ;;  %v6365_v38 = vld [vmem:[#allocation10 + $0x4d0] sm:$0xf0]  ;;  %v6371_v39 = vld [vmem:[#allocation10 + $0x498] sm:$0xf] }
 0x5cd   :  { %2765 = vadd.xlane.f32.xlu2 %v8281_v32  ;;  %3637 = vmatpush.bf16.msrb.mxu1 %v6484_v44  ;;  %v7684_v44 = vld [vmem:[#allocation10 + $0x71c] sm:$0xf]  ;;  %v6620_v51 = vor.u32 %v7675_v46, %v6619_v18  ;;  %v6363_v33 = vld [vmem:[#allocation10 + $0x490] sm:$0xf]  ;;  %v7587_v46 = vld [vmem:[#allocation10 + $0x414] sm:$0xf] }
 0x5ce   :  { %v7611_v34 = vld [vmem:[#allocation10 + $0x4cc] sm:$0xf0] }
 0x5cf   :  { %3625 = vmatpush.bf16.msrb.mxu0 %v6416_v20  ;;  %v6624_v20 = vor.u32 %v7667_v49, %v6621_v52  ;;  %v7595_v18 = vld [vmem:[#allocation10 + $0x44c] sm:$0xf0]  ;;  %v6307_v52 = vld [vmem:[#allocation10 + $0x418] sm:$0xf] }
 0x5d0   :  { %v2762_v41 = vpop.f32.mrf.mxu2  ;;  %3651 = vmatpush.bf16.msrb.mxu2 %v6424_v59  ;;  %v6555_v59 = vld [vmem:[#allocation10 + $0x610] sm:$0xf] }
 0x5d1   :  { %v7625_v41 = vld [vmem:[#allocation10 + $0x53c] sm:$0xf0]  ;;  %3638 = vmatpush.bf16.msrb.mxu1 %v6420_v55  ;;  %v6556_v62 = vor.u32 %v7659_v60, %v6555_v59 }
 0x5d2   :  { %v6412_v54 = vor.u32 %v7625_v41, %v6411_v47  ;;  %v6693_v47 = vld [vmem:[#allocation10 + $0x758] sm:$0xf0]  ;;  %v6692_v41 = vor.u32 %v7692_v43, %v6691_v40  ;;  %v7612_v40 = vld [vmem:[#allocation10 + $0x4d4] sm:$0xf0] }
 0x5d3   :  { %3626 = vmatpush.bf16.msrb.mxu0 %v6352_v1  ;;  %v6696_v48 = vor.u32 %v7684_v44, %v6693_v47  ;;  %v6560_v1 = vor.u32 %v7651_v61, %v6557_v45  ;;  %v6372_v43 = vor.u32 %v7612_v40, %v6371_v39  ;;  %v7604_v44 = vld [vmem:[#allocation10 + $0x49c] sm:$0xf]  ;;  %v6643_v39 = vld [vmem:[#allocation10 + $0x6a8] sm:$0xf] }
 0x5d4   :  { %3612 = vmatpush.bf16.msra.mxu3 %v6412_v54  ;;  %3652 = vmatpush.bf16.msrb.mxu2 %v6360_v5  ;;  %v7676_v54 = vld [vmem:[#allocation10 + $0x6d4] sm:$0xf0]  ;;  %v6565_v5 = vld [vmem:[#allocation10 + $0x658] sm:$0xf0]  ;;  %v7678_v40 = vld [vmem:[#allocation10 + $0x6e4] sm:$0xf0] }
 0x5d5   :  { %3639 = vmatpush.bf16.msrb.mxu1 %v6356_v2  ;;  %v6628_v55 = vor.u32 %v7676_v54, %v6627_v53  ;;  %v6373_v47 = vld [vmem:[#allocation10 + $0x4d8] sm:$0xf0]  ;;  %v7596_v53 = vld [vmem:[#allocation10 + $0x454] sm:$0xf0] }
 0x5d7   :  { %3627 = vmatpush.bf16.msrb.mxu0 %v6288_v16  ;;  %v6500_v16 = vor.u32 %v7644_v14, %v6499_v13  ;;  %v6771_v13 = vld [vmem:[#allocation10 + $0x7a8] sm:$0xf] }
 0x5d8   :  { %3613 = vmatpush.bf16.msra.mxu3 %v6348_v0  ;;  %3653 = vmatpush.bf16.msrb.mxu2 %v6296_v21  ;;  %v7660_v0 = vld [vmem:[#allocation10 + $0x654] sm:$0xf0]  ;;  %v7627_v21 = vld [vmem:[#allocation10 + $0x54c] sm:$0xf0] }
 0x5d9   :  { %3640 = vmatpush.bf16.msrb.mxu1 %v6292_v50  ;;  %v6564_v2 = vor.u32 %v7660_v0, %v6563_v25  ;;  %v7636_v50 = vld [vmem:[#allocation10 + $0x59c] sm:$0xf] }
 0x5da   :  { %v6504_v19 = vor.u32 %v7636_v50, %v6501_v17  ;;  %v6773_v50 = vld [vmem:[#allocation10 + $0x7e8] sm:$0xf0] }
 0x5db   :  { %3672 = vmatpush.bf16.msra.mxu0 %v6752_v28  ;;  %v7628_v28 = vld [vmem:[#allocation10 + $0x554] sm:$0xf0] }
 0x5dc   :  { %3614 = vmatpush.bf16.msra.mxu3 %v6284_v12  ;;  %3698 = vmatpush.bf16.msra.mxu2 %v6760_v35  ;;  %v6493_v12 = vld [vmem:[#allocation10 + $0x5d0] sm:$0xf0] }
 0x5dd   :  { %3685 = vmatpush.bf16.msra.mxu1 %v6756_v31  ;;  %v6496_v15 = vor.u32 %v7635_v10, %v6493_v12  ;;  %v6437_v31 = vld [vmem:[#allocation10 + $0x558] sm:$0xf0]  ;;  %v7603_v35 = vld [vmem:[#allocation10 + $0x494] sm:$0xf]  ;;  %v7709_v10 = vld [vmem:[#allocation10 + $0x7dc] sm:$0xf0] }
 0x5de   :  { %v6440_v24 = vor.u32 %v7620_v30, %v6437_v31  ;;  %v6765_v12 = vld [vmem:[#allocation10 + $0x7e0] sm:$0xf0] }
 0x5df   :  { %3673 = vmatpush.bf16.msra.mxu0 %v6688_v42  ;;  %v6368_v42 = vor.u32 %v7603_v35, %v6365_v38  ;;  %v6637_v38 = vld [vmem:[#allocation10 + $0x6e0] sm:$0xf0] }
 0x5e0   :  { %3699 = vmatpush.bf16.msra.mxu2 %v6696_v48  ;;  %v6299_v48 = vld [vmem:[#allocation10 + $0x410] sm:$0xf] }
 0x5e1   :  { %3686 = vmatpush.bf16.msra.mxu1 %v6692_v41  ;;  %v6376_v41 = vor.u32 %v7604_v44, %v6373_v47  ;;  %v6300_v49 = vor.u32 %v7595_v18, %v6299_v48  ;;  %v7661_v48 = vld [vmem:[#allocation10 + $0x65c] sm:$0xf0]  ;;  %v6644_v18 = vor.u32 %v7678_v40, %v6643_v39  ;;  %v7598_v39 = vld [vmem:[#allocation10 + $0x464] sm:$0xf0]  ;;  %v7590_v40 = vld [vmem:[#allocation10 + $0x42c] sm:$0xf] }
 0x5e3   :  { %3674 = vmatpush.bf16.msra.mxu0 %v6624_v20  ;;  %v6308_v20 = vor.u32 %v7596_v53, %v6307_v52  ;;  %v6579_v52 = vld [vmem:[#allocation10 + $0x628] sm:$0xf] }
 0x5e4   :  { %3700 = vmatpush.bf16.msra.mxu2 %v6632_v58  ;;  %v7662_v53 = vld [vmem:[#allocation10 + $0x664] sm:$0xf0] }
 0x5e5   :  { %3687 = vmatpush.bf16.msra.mxu1 %v6628_v55  ;;  %v7588_v55 = vld [vmem:[#allocation10 + $0x41c] sm:$0xf] }
 0x5e6   :  { %v6312_v57 = vor.u32 %v7588_v55, %v6309_v56 }
 0x5e7   :  { %3675 = vmatpush.bf16.msra.mxu0 %v6560_v1 }
 0x5e9   :  { %3688 = vmatpush.bf16.msra.mxu1 %v6564_v2  ;;  %v2785_v2 = vperm.slane %v8276_v37, 5 }
 0x5eb   :  { %3676 = vmatpush.bf16.msra.mxu0 %v6496_v15  ;;  %v7710_v15 = vld [vmem:[#allocation10 + $0x7e4] sm:$0xf0] }
 0x5ed   :  { %3689 = vmatpush.bf16.msra.mxu1 %v6500_v16  ;;  %v7702_v16 = vld [vmem:[#allocation10 + $0x7ac] sm:$0xf] }
 0x640   :  { %v2766_v3 = vpop.xlane.xlu2 %2765 }
 0x641   :  { %v2767_v6 = vmul.f32 %v2766_v3, %v8218_v4  ;;  %v7652_v3 = vld [vmem:[#allocation10 + $0x61c] sm:$0xf] }
 0x643   :  { %v8286_v7 = vsub.f32 %v8281_v32, %v2767_v6  ;;  %v6747_v32 = vld [vmem:[#allocation10 + $0x790] sm:$0xf]  ;;  %v6568_v6 = vor.u32 %v7652_v3, %v6565_v5  ;;  %v2787_v5 = vperm.slane %v8276_v37, 6  ;;  %v6699_v37 = vld [vmem:[#allocation10 + $0x720] sm:$0xf] }
 0x644   :  { %v6748_v27 = vor.u32 %v7707_v22, %v6747_v32  ;;  %v6427_v32 = vld [vmem:[#allocation10 + $0x510] sm:$0xf]  ;;  %v7619_v22 = vld [vmem:[#allocation10 + $0x514] sm:$0xf] }
 0x645   :  { %v2769_v8 = vmul.f32 %v8286_v7, %v8286_v7  ;;  %3701 = vmatpush.bf16.msra.mxu2 %v6568_v6  ;;  %v6428_v23 = vor.u32 %v7627_v21, %v6427_v32  ;;  %v6432_v29 = vor.u32 %v7619_v22, %v6429_v26  ;;  %v7693_v21 = vld [vmem:[#allocation10 + $0x75c] sm:$0xf0]  ;;  %v6776_v22 = vor.u32 %v7702_v16, %v6773_v50  ;;  %v6701_v26 = vld [vmem:[#allocation10 + $0x760] sm:$0xf0]  ;;  %v6453_v16 = vld [vmem:[#allocation10 + $0x568] sm:$0xf0] }
 0x646   :  { %3659 = vmatpush.bf16.msrb.mxu3 %v6748_v27  ;;  %v6435_v27 = vld [vmem:[#allocation10 + $0x518] sm:$0xf]  ;;  %v6700_v30 = vor.u32 %v7693_v21, %v6699_v37  ;;  %v7613_v37 = vld [vmem:[#allocation10 + $0x4dc] sm:$0xf0] }
 0x647   :  { %2770 = vadd.xlane.f32.xlu0 %v2769_v8  ;;  %v6491_v8 = vld [vmem:[#allocation10 + $0x590] sm:$0xf]  ;;  %v6436_v36 = vor.u32 %v7628_v28, %v6435_v27  ;;  %3677 = vmatpush.bf16.msra.mxu0 %v6432_v29  ;;  %v6707_v27 = vld [vmem:[#allocation10 + $0x728] sm:$0xf]  ;;  %v7686_v29 = vld [vmem:[#allocation10 + $0x72c] sm:$0xf] }
 0x648   :  { %v6492_v11 = vor.u32 %v7643_v9, %v6491_v8  ;;  %v6763_v9 = vld [vmem:[#allocation10 + $0x7a0] sm:$0xf]  ;;  %v7694_v28 = vld [vmem:[#allocation10 + $0x764] sm:$0xf0] }
 0x649   :  { %3702 = vmatpush.bf16.msra.mxu2 %v6504_v19  ;;  %3690 = vmatpush.bf16.msra.mxu1 %v6436_v36  ;;  %v6764_v19 = vor.u32 %v7709_v10, %v6763_v9  ;;  %v6709_v36 = vld [vmem:[#allocation10 + $0x768] sm:$0xf0]  ;;  %v7621_v10 = vld [vmem:[#allocation10 + $0x524] sm:$0xf] }
 0x64a   :  { %3660 = vmatpush.bf16.msrb.mxu3 %v6684_v63  ;;  %v6364_v63 = vor.u32 %v7611_v34, %v6363_v33  ;;  %v7677_v33 = vld [vmem:[#allocation10 + $0x6dc] sm:$0xf0]  ;;  %v6708_v34 = vor.u32 %v7694_v28, %v6707_v27  ;;  %v6712_v35 = vor.u32 %v7686_v29, %v6709_v36  ;;  %v7614_v27 = vld [vmem:[#allocation10 + $0x4e4] sm:$0xf0]  ;;  %v7606_v28 = vld [vmem:[#allocation10 + $0x4ac] sm:$0xf] }
 0x64b   :  { %3678 = vmatpush.bf16.msra.mxu0 %v6368_v42  ;;  %v7670_v42 = vld [vmem:[#allocation10 + $0x6ac] sm:$0xf]  ;;  %v6315_v36 = vld [vmem:[#allocation10 + $0x420] sm:$0xf] }
 0x64c   :  { %v6389_v29 = vld [vmem:[#allocation10 + $0x4e8] sm:$0xf0] }
 0x64d   :  { %3703 = vmatpush.bf16.msra.mxu2 %v6440_v24  ;;  %3691 = vmatpush.bf16.msra.mxu1 %v6372_v43  ;;  %v6635_v24 = vld [vmem:[#allocation10 + $0x6a0] sm:$0xf]  ;;  %v6645_v43 = vld [vmem:[#allocation10 + $0x6e8] sm:$0xf0] }
 0x64e   :  { %3661 = vmatpush.bf16.msrb.mxu3 %v6620_v51  ;;  %v6301_v51 = vld [vmem:[#allocation10 + $0x450] sm:$0xf0]  ;;  %v6636_v44 = vor.u32 %v7677_v33, %v6635_v24  ;;  %v7597_v24 = vld [vmem:[#allocation10 + $0x45c] sm:$0xf0]  ;;  %v7589_v33 = vld [vmem:[#allocation10 + $0x424] sm:$0xf] }
 0x64f   :  { %v6304_v54 = vor.u32 %v7587_v46, %v6301_v51  ;;  %v6648_v46 = vor.u32 %v7670_v42, %v6645_v43  ;;  %v6573_v51 = vld [vmem:[#allocation10 + $0x660] sm:$0xf0]  ;;  %v6325_v42 = vld [vmem:[#allocation10 + $0x468] sm:$0xf0]  ;;  %v6779_v43 = vld [vmem:[#allocation10 + $0x7b0] sm:$0xf] }
 0x651   :  { %3704 = vmatpush.bf16.msra.mxu2 %v6376_v41  ;;  %3679 = vmatpush.bf16.msra.mxu0 %v6304_v54  ;;  %v6571_v41 = vld [vmem:[#allocation10 + $0x620] sm:$0xf]  ;;  %v7654_v54 = vld [vmem:[#allocation10 + $0x62c] sm:$0xf] }
 0x652   :  { %3662 = vmatpush.bf16.msrb.mxu3 %v6556_v62  ;;  %3692 = vmatpush.bf16.msra.mxu1 %v6308_v20  ;;  %v6581_v20 = vld [vmem:[#allocation10 + $0x668] sm:$0xf0]  ;;  %v6572_v55 = vor.u32 %v7661_v48, %v6571_v41  ;;  %v6781_v41 = vld [vmem:[#allocation10 + $0x7f0] sm:$0xf0]  ;;  %v6787_v48 = vld [vmem:[#allocation10 + $0x7b8] sm:$0xf] }
 0x655   :  { %3705 = vmatpush.bf16.msra.mxu2 %v6312_v57  ;;  %v6507_v57 = vld [vmem:[#allocation10 + $0x5a0] sm:$0xf] }
 0x656   :  { %3663 = vmatpush.bf16.msrb.mxu3 %v6492_v11  ;;  %v7701_v11 = vld [vmem:[#allocation10 + $0x7a4] sm:$0xf] }
 0x657   :  { %v6768_v32 = vor.u32 %v7701_v11, %v6765_v12  ;;  %v6445_v11 = vld [vmem:[#allocation10 + $0x560] sm:$0xf0]  ;;  %v6451_v12 = vld [vmem:[#allocation10 + $0x528] sm:$0xf] }
 0x65a   :  { %3664 = vmatpush.bf16.msrb.mxu3 %v6428_v23  ;;  %v7685_v23 = vld [vmem:[#allocation10 + $0x724] sm:$0xf] }
 0x65b   :  { %v6704_v31 = vor.u32 %v7685_v23, %v6701_v26  ;;  %v6381_v23 = vld [vmem:[#allocation10 + $0x4e0] sm:$0xf0]  ;;  %v6387_v26 = vld [vmem:[#allocation10 + $0x4a8] sm:$0xf] }
 0x65e   :  { %3665 = vmatpush.bf16.msrb.mxu3 %v6364_v63  ;;  %v7669_v63 = vld [vmem:[#allocation10 + $0x6a4] sm:$0xf] }
 0x65f   :  { %v6640_v47 = vor.u32 %v7669_v63, %v6637_v38  ;;  %v6392_v63 = vor.u32 %v7606_v28, %v6389_v29  ;;  %v6323_v38 = vld [vmem:[#allocation10 + $0x428] sm:$0xf]  ;;  %v6597_v28 = vld [vmem:[#allocation10 + $0x678] sm:$0xf0] }
 0x662   :  { %3666 = vmatpush.bf16.msrb.mxu3 %v6300_v49  ;;  %v7653_v49 = vld [vmem:[#allocation10 + $0x624] sm:$0xf] }
 0x663   :  { %v6576_v56 = vor.u32 %v7653_v49, %v6573_v51  ;;  %v7712_v49 = vld [vmem:[#allocation10 + $0x7f4] sm:$0xf0]  ;;  %v7704_v51 = vld [vmem:[#allocation10 + $0x7bc] sm:$0xf] }
 0x6ba   :  { %v2771_v58 = vpop.xlane.xlu0 %2770 }
 0x6bb   :  { %v2772_v59 = vmul.f32 %v2771_v58, %v8218_v4  ;;  %v7645_v58 = vld [vmem:[#allocation10 + $0x5dc] sm:$0xf0] }
 0x6bd   :  { %v2773_v60 = vadd.f32 1e-05, %v2772_v59  ;;  %v6580_v59 = vor.u32 %v7662_v53, %v6579_v52  ;;  %v6789_v52 = vld [vmem:[#allocation10 + $0x7f8] sm:$0xf0]  ;;  %v6324_v53 = vor.u32 %v7598_v39, %v6323_v38  ;;  %v7648_v38 = vld [vmem:[#allocation10 + $0x5f4] sm:$0xf0] }
 0x6be   :  { %v7640_v39 = vld [vmem:[#allocation10 + $0x5bc] sm:$0xf] }
 0x6bf   :  { %7866 = vrsqrt.f32 %v2773_v60  ;;  %vm2780_vm14 = vweird.f32 %v2773_v60 }
 0x6c5   :  { %v7867_v61 = vpop.eup %7866 }
 0x6c6   :  { %v2775_v62 = vmul.f32 %v7867_v61, %v2773_v60  ;;  %vm2781_vm13 = vweird.f32 %v7867_v61  ;;  %v6584_v60 = vor.u32 %v7654_v54, %v6581_v20  ;;  %v6328_v54 = vor.u32 %v7590_v40, %v6325_v42  ;;  %v6533_v40 = vld [vmem:[#allocation10 + $0x5f8] sm:$0xf0] }
 0x6c7   :  { %vm2782_vm15 = vmor %vm2780_vm14, %vm2781_vm13 }
 0x6c8   :  { %v2776_v45 = vmul.f32 %v7867_v61, %v2775_v62  ;;  %v6509_v62 = vld [vmem:[#allocation10 + $0x5e0] sm:$0xf0] }
 0x6ca   :  { %v2777_v25 = vmul.f32 0.5, %v2776_v45  ;;  %v6515_v45 = vld [vmem:[#allocation10 + $0x5a8] sm:$0xf] }
 0x6cc   :  { %v2778_v0 = vsub.f32 1.5, %v2777_v25  ;;  %v7646_v25 = vld [vmem:[#allocation10 + $0x5e4] sm:$0xf0] }
 0x6ce   :  { %v2779_v1 = vmul.f32 %v7867_v61, %v2778_v0  ;;  %v7638_v0 = vld [vmem:[#allocation10 + $0x5ac] sm:$0xf] }
 0x6d0   :  { %v2783_v3 = vsel %vm2782_vm15, %v7867_v61, %v2779_v1  ;;  %v7637_v61 = vld [vmem:[#allocation10 + $0x5a4] sm:$0xf]  ;;  %v6517_v1 = vld [vmem:[#allocation10 + $0x5e8] sm:$0xf0] }
 0x6d1   :  { %v2784_v6 = vmul.f32 %v2783_v3, %v8286_v7  ;;  %v6772_v7 = vor.u32 %v7710_v15, %v6771_v13  ;;  %v6512_v3 = vor.u32 %v7637_v61, %v6509_v62  ;;  %v6520_v9 = vor.u32 %v7638_v0, %v6517_v1  ;;  %v7630_v13 = vld [vmem:[#allocation10 + $0x564] sm:$0xf0]  ;;  %v7622_v15 = vld [vmem:[#allocation10 + $0x52c] sm:$0xf]  ;;  %v6717_v61 = vld [vmem:[#allocation10 + $0x770] sm:$0xf0] }
 0x6d2   :  { %v6452_v21 = vor.u32 %v7630_v13, %v6451_v12  ;;  %v6723_v62 = vld [vmem:[#allocation10 + $0x738] sm:$0xf]  ;;  %v6725_v0 = vld [vmem:[#allocation10 + $0x778] sm:$0xf0] }
 0x6d3   :  { %v2786_v8 = vmul.f32 %v2785_v2, %v2784_v6  ;;  %v6508_v2 = vor.u32 %v7645_v58, %v6507_v57  ;;  %v7629_v6 = vld [vmem:[#allocation10 + $0x55c] sm:$0xf0]  ;;  %v7695_v57 = vld [vmem:[#allocation10 + $0x76c] sm:$0xf0]  ;;  %v6788_v58 = vor.u32 %v7712_v49, %v6787_v48  ;;  %v7680_v12 = vld [vmem:[#allocation10 + $0x6f4] sm:$0xf0]  ;;  %v6536_v48 = vor.u32 %v7640_v39, %v6533_v40 }
 0x6d4   :  { %v7672_v13 = vld [vmem:[#allocation10 + $0x6bc] sm:$0xf]  ;;  %v6467_v49 = vld [vmem:[#allocation10 + $0x538] sm:$0xf]  ;;  %v7723_v39 = vld [vmem:[#allocation11 + $0x450] sm:$0xff] }
 0x6d5   :  { %v8294_v14 = vadd.f32 %v2787_v5, %v2786_v8  ;;  %v6443_v5 = vld [vmem:[#allocation10 + $0x520] sm:$0xf]  ;;  %v6516_v8 = vor.u32 %v7646_v25, %v6515_v45  ;;  %v7696_v45 = vld [vmem:[#allocation10 + $0x774] sm:$0xf0]  ;;  %v7688_v25 = vld [vmem:[#allocation10 + $0x73c] sm:$0xf] }
 0x6d6   :  { %v6444_v50 = vor.u32 %v7629_v6, %v6443_v5  ;;  %v7679_v5 = vld [vmem:[#allocation10 + $0x6ec] sm:$0xf0]  ;;  %v6724_v6 = vor.u32 %v7696_v45, %v6723_v62  ;;  %v7616_v62 = vld [vmem:[#allocation10 + $0x4f4] sm:$0xf0]  ;;  %v7608_v45 = vld [vmem:[#allocation10 + $0x4bc] sm:$0xf] }
 0x6d7   :  { %v8298_v17 = vpack.c.bf16 %v8294_v14, %v8294_v14  ;;  %v7731_v40 = vld [vmem:[#allocation11 + $0x490] sm:$0xff] }
 0x6d9   :  { %3615 = vmatmul.bf16.vlgmr.msra.gmra.mxu3 %v8298_v17  ;;  %3628 = vmatmul.bf16.vlgmr.msrb.gmra.mxu0 %v8298_v17 }
 0x6da   :  { %3641 = vmatmul.bf16.vlgmr.msrb.gmra.mxu1 %v8298_v17  ;;  %3654 = vmatmul.bf16.vlgmr.msrb.gmra.mxu2 %v8298_v17 }
 0x6db   :  { %3711 = vmatpush.bf16.msra.mxu3 %v6764_v19  ;;  %3724 = vmatpush.bf16.msrb.mxu0 %v6768_v32  ;;  %v6448_v19 = vor.u32 %v7621_v10, %v6445_v11  ;;  %v6379_v32 = vld [vmem:[#allocation10 + $0x4a0] sm:$0xf]  ;;  %v6653_v10 = vld [vmem:[#allocation10 + $0x6f0] sm:$0xf0]  ;;  %v6659_v11 = vld [vmem:[#allocation10 + $0x6b8] sm:$0xf] }
 0x6dc   :  { %3737 = vmatpush.bf16.msrb.mxu1 %v6772_v7  ;;  %3750 = vmatpush.bf16.msrb.mxu2 %v6776_v22  ;;  %v6456_v7 = vor.u32 %v7622_v15, %v6453_v16  ;;  %v7605_v22 = vld [vmem:[#allocation10 + $0x4a4] sm:$0xf]  ;;  %v6661_v15 = vld [vmem:[#allocation10 + $0x6f8] sm:$0xf0] }
 0x6df   :  { %3712 = vmatpush.bf16.msra.mxu3 %v6700_v30  ;;  %3725 = vmatpush.bf16.msrb.mxu0 %v6704_v31  ;;  %v6380_v30 = vor.u32 %v7613_v37, %v6379_v32  ;;  %v6384_v31 = vor.u32 %v7605_v22, %v6381_v23  ;;  %v7663_v32 = vld [vmem:[#allocation10 + $0x66c] sm:$0xf0]  ;;  %v6660_v37 = vor.u32 %v7680_v12, %v6659_v11  ;;  %v6589_v22 = vld [vmem:[#allocation10 + $0x670] sm:$0xf0]  ;;  %v6595_v23 = vld [vmem:[#allocation10 + $0x638] sm:$0xf] }
 0x6e0   :  { %3738 = vmatpush.bf16.msrb.mxu1 %v6708_v34  ;;  %3751 = vmatpush.bf16.msrb.mxu2 %v6712_v35  ;;  %v6317_v34 = vld [vmem:[#allocation10 + $0x460] sm:$0xf0]  ;;  %v6388_v35 = vor.u32 %v7614_v27, %v6387_v26  ;;  %v7664_v26 = vld [vmem:[#allocation10 + $0x674] sm:$0xf0]  ;;  %v7656_v27 = vld [vmem:[#allocation10 + $0x63c] sm:$0xf] }
 0x6e1   :  { %v7600_v11 = vld [vmem:[#allocation10 + $0x474] sm:$0xf0]  ;;  %v7592_v12 = vld [vmem:[#allocation10 + $0x43c] sm:$0xf] }
 0x6e3   :  { %3713 = vmatpush.bf16.msra.mxu3 %v6636_v44  ;;  %3726 = vmatpush.bf16.msrb.mxu0 %v6640_v47  ;;  %v7711_v44 = vld [vmem:[#allocation10 + $0x7ec] sm:$0xf0]  ;;  %v7703_v47 = vld [vmem:[#allocation10 + $0x7b4] sm:$0xf] }
 0x6e4   :  { %3739 = vmatpush.bf16.msrb.mxu1 %v6644_v18  ;;  %3752 = vmatpush.bf16.msrb.mxu2 %v6648_v46  ;;  %v6316_v18 = vor.u32 %v7597_v24, %v6315_v36  ;;  %v6320_v46 = vor.u32 %v7589_v33, %v6317_v34  ;;  %v6780_v20 = vor.u32 %v7711_v44, %v6779_v43  ;;  %v7639_v34 = vld [vmem:[#allocation10 + $0x5b4] sm:$0xf]  ;;  %v6459_v44 = vld [vmem:[#allocation10 + $0x530] sm:$0xf] }
 0x6e5   :  { %v6596_v24 = vor.u32 %v7664_v26, %v6595_v23  ;;  %v6600_v33 = vor.u32 %v7656_v27, %v6597_v28  ;;  %v7735_v23 = vld [vmem:[#allocation11 + $0x4b0] sm:$0xff]  ;;  %v7726_v28 = vld [vmem:[#allocation11 + $0x468] sm:$0xff] }
 0x6e6   :  { %v7719_v26 = vld [vmem:[#allocation11 + $0x430] sm:$0xff] }
 0x6e7   :  { %3714 = vmatpush.bf16.msra.mxu3 %v6572_v55  ;;  %3727 = vmatpush.bf16.msrb.mxu0 %v6576_v56  ;;  %v6784_v55 = vor.u32 %v7703_v47, %v6781_v41  ;;  %v6715_v56 = vld [vmem:[#allocation10 + $0x730] sm:$0xf] }
 0x6e8   :  { %3740 = vmatpush.bf16.msrb.mxu1 %v6580_v59  ;;  %3753 = vmatpush.bf16.msrb.mxu2 %v6584_v60  ;;  %v6792_v59 = vor.u32 %v7704_v51, %v6789_v52  ;;  %v7687_v60 = vld [vmem:[#allocation10 + $0x734] sm:$0xf]  ;;  %v6716_v1 = vor.u32 %v7695_v57, %v6715_v56  ;;  %v7631_v47 = vld [vmem:[#allocation10 + $0x56c] sm:$0xf0]  ;;  %v7632_v51 = vld [vmem:[#allocation10 + $0x574] sm:$0xf0] }
 0x6e9   :  { %3667 = vmatmul.bf16.vlgmr.msrb.gmra.mxu3 %v8298_v17  ;;  %3680 = vmatmul.bf16.vlgmr.msra.gmra.mxu0 %v8298_v17  ;;  %v7624_v52 = vld [vmem:[#allocation10 + $0x53c] sm:$0xf]  ;;  %v7615_v56 = vld [vmem:[#allocation10 + $0x4ec] sm:$0xf0]  ;;  %v6468_v57 = vor.u32 %v7632_v51, %v6467_v49 }
 0x6ea   :  { %3693 = vmatmul.bf16.vlgmr.msra.gmra.mxu1 %v8298_v17  ;;  %3706 = vmatmul.bf16.vlgmr.msra.gmra.mxu2 %v8298_v17  ;;  %v7743_v27 = vld [vmem:[#allocation11 + $0x4f0] sm:$0xff]  ;;  %v7760_v49 = vld [vmem:[#allocation11 + $0x578] sm:$0xff] }
 0x6eb   :  { %3715 = vmatpush.bf16.msra.mxu3 %v6508_v2  ;;  %3728 = vmatpush.bf16.msrb.mxu0 %v6512_v3  ;;  %v6720_v2 = vor.u32 %v7687_v60, %v6717_v61  ;;  %v6651_v3 = vld [vmem:[#allocation10 + $0x6b0] sm:$0xf]  ;;  %v6397_v60 = vld [vmem:[#allocation10 + $0x4f0] sm:$0xf0]  ;;  %v6403_v61 = vld [vmem:[#allocation10 + $0x4b8] sm:$0xf] }
 0x6ec   :  { %3741 = vmatpush.bf16.msrb.mxu1 %v6516_v8  ;;  %3754 = vmatpush.bf16.msrb.mxu2 %v6520_v9  ;;  %v6728_v8 = vor.u32 %v7688_v25, %v6725_v0  ;;  %v7671_v9 = vld [vmem:[#allocation10 + $0x6b4] sm:$0xf]  ;;  %v6652_v16 = vor.u32 %v7679_v5, %v6651_v3  ;;  %v6405_v25 = vld [vmem:[#allocation10 + $0x4f8] sm:$0xf0]  ;;  %v7599_v3 = vld [vmem:[#allocation10 + $0x46c] sm:$0xf0]  ;;  %v6404_v5 = vor.u32 %v7616_v62, %v6403_v61 }
 0x6ed   :  { %v7768_v51 = vld [vmem:[#allocation11 + $0x5b8] sm:$0xff]  ;;  %v7750_v61 = vld [vmem:[#allocation11 + $0x528] sm:$0xff] }
 0x6ee   :  { %v7774_v62 = vld [vmem:[#allocation11 + $0x5e8] sm:$0xff] }
 0x6ef   :  { %3716 = vmatpush.bf16.msra.mxu3 %v6444_v50  ;;  %3729 = vmatpush.bf16.msrb.mxu0 %v6448_v19  ;;  %v6656_v50 = vor.u32 %v7671_v9, %v6653_v10  ;;  %v6587_v19 = vld [vmem:[#allocation10 + $0x630] sm:$0xf]  ;;  %v6333_v9 = vld [vmem:[#allocation10 + $0x470] sm:$0xf0]  ;;  %v6339_v10 = vld [vmem:[#allocation10 + $0x438] sm:$0xf] }
 0x6f0   :  { %3742 = vmatpush.bf16.msrb.mxu1 %v6452_v21  ;;  %3755 = vmatpush.bf16.msrb.mxu2 %v6456_v7  ;;  %v6664_v21 = vor.u32 %v7672_v13, %v6661_v15  ;;  %v7655_v7 = vld [vmem:[#allocation10 + $0x634] sm:$0xf]  ;;  %v6588_v29 = vor.u32 %v7663_v32, %v6587_v19  ;;  %v6341_v13 = vld [vmem:[#allocation10 + $0x478] sm:$0xf0] }
 0x6f1   :  { %v6592_v36 = vor.u32 %v7655_v7, %v6589_v22  ;;  %v6344_v19 = vor.u32 %v7592_v12, %v6341_v13  ;;  %v7728_v32 = vld [vmem:[#allocation11 + $0x478] sm:$0xff]  ;;  %v7727_v22 = vld [vmem:[#allocation11 + $0x470] sm:$0xff]  ;;  %v7754_v12 = vld [vmem:[#allocation11 + $0x548] sm:$0xff] }
 0x6f2   :  { %v7744_v7 = vld [vmem:[#allocation11 + $0x4f8] sm:$0xff]  ;;  %v7762_v13 = vld [vmem:[#allocation11 + $0x588] sm:$0xff] }
 0x6f3   :  { %3717 = vmatpush.bf16.msra.mxu3 %v6380_v30  ;;  %3730 = vmatpush.bf16.msrb.mxu0 %v6384_v31  ;;  %v6523_v30 = vld [vmem:[#allocation10 + $0x5b0] sm:$0xf] }
 0x6f4   :  { %3743 = vmatpush.bf16.msrb.mxu1 %v6388_v35  ;;  %3756 = vmatpush.bf16.msrb.mxu2 %v6392_v63  ;;  %v7647_v31 = vld [vmem:[#allocation10 + $0x5ec] sm:$0xf0]  ;;  %v6525_v35 = vld [vmem:[#allocation10 + $0x5f0] sm:$0xf0]  ;;  %v6531_v63 = vld [vmem:[#allocation10 + $0x5b8] sm:$0xf] }
 0x6f5   :  { %v6524_v42 = vor.u32 %v7647_v31, %v6523_v30  ;;  %v6528_v43 = vor.u32 %v7639_v34, %v6525_v35  ;;  %v6532_v41 = vor.u32 %v7648_v38, %v6531_v63  ;;  %v7742_v30 = vld [vmem:[#allocation11 + $0x4e8] sm:$0xff]  ;;  %v7725_v31 = vld [vmem:[#allocation11 + $0x460] sm:$0xff]  ;;  %v7724_v34 = vld [vmem:[#allocation11 + $0x458] sm:$0xff] }
 0x6f6   :  { %v7732_v35 = vld [vmem:[#allocation11 + $0x498] sm:$0xff] }
 0x6f7   :  { %3718 = vmatpush.bf16.msra.mxu3 %v6316_v18  ;;  %3731 = vmatpush.bf16.msrb.mxu0 %v6320_v46  ;;  %v7623_v18 = vld [vmem:[#allocation10 + $0x534] sm:$0xf]  ;;  %v7716_v63 = vld [vmem:[#allocation11 + $0x418] sm:$0xff] }
 0x6f8   :  { %3744 = vmatpush.bf16.msrb.mxu1 %v6324_v53  ;;  %3757 = vmatpush.bf16.msrb.mxu2 %v6328_v54  ;;  %v6461_v46 = vld [vmem:[#allocation10 + $0x570] sm:$0xf0]  ;;  %v6469_v53 = vld [vmem:[#allocation10 + $0x578] sm:$0xf0]  ;;  %v6460_v54 = vor.u32 %v7631_v47, %v6459_v44  ;;  %v7722_v44 = vld [vmem:[#allocation11 + $0x448] sm:$0xff] }
 0x6f9   :  { %v7740_v38 = vld [vmem:[#allocation11 + $0x4d8] sm:$0xff]  ;;  %v7730_v47 = vld [vmem:[#allocation11 + $0x488] sm:$0xff] }
 0x6fa   :  { %3719 = vmatmul.bf16.vlgmr.msra.gmra.mxu3 %v8298_v17  ;;  %3732 = vmatmul.bf16.vlgmr.msrb.gmra.mxu0 %v8298_v17 }
 0x6fb   :  { %3763 = vmatpush.bf16.msrb.mxu3 %v6780_v20  ;;  %3776 = vmatpush.bf16.msra.mxu0 %v6784_v55  ;;  %v6464_v20 = vor.u32 %v7623_v18, %v6461_v46  ;;  %v6395_v55 = vld [vmem:[#allocation10 + $0x4b0] sm:$0xf]  ;;  %v7721_v18 = vld [vmem:[#allocation11 + $0x440] sm:$0xff] }
 0x6fc   :  { %3789 = vmatpush.bf16.msra.mxu1 %v6788_v58  ;;  %3802 = vmatpush.bf16.msra.mxu2 %v6792_v59  ;;  %v6472_v58 = vor.u32 %v7624_v52, %v6469_v53  ;;  %v7607_v59 = vld [vmem:[#allocation10 + $0x4b4] sm:$0xf]  ;;  %v6396_v0 = vor.u32 %v7615_v56, %v6395_v55  ;;  %v7729_v46 = vld [vmem:[#allocation11 + $0x480] sm:$0xff] }
 0x6fd   :  { %3745 = vmatmul.bf16.vlgmr.msrb.gmra.mxu1 %v8298_v17  ;;  %3758 = vmatmul.bf16.vlgmr.msrb.gmra.mxu2 %v8298_v17  ;;  %v7713_v52 = vld [vmem:[#allocation11 + $0x400] sm:$0xff]  ;;  %v7759_v55 = vld [vmem:[#allocation11 + $0x570] sm:$0xff] }
 0x6fe   :  { %v7737_v53 = vld [vmem:[#allocation11 + $0x4c0] sm:$0xff]  ;;  %v7767_v56 = vld [vmem:[#allocation11 + $0x5b0] sm:$0xff] }
 0x6ff   :  { %3764 = vmatpush.bf16.msrb.mxu3 %v6716_v1  ;;  %3777 = vmatpush.bf16.msra.mxu0 %v6720_v2  ;;  %v6400_v1 = vor.u32 %v7607_v59, %v6397_v60  ;;  %v6331_v2 = vld [vmem:[#allocation10 + $0x430] sm:$0xf]  ;;  %v7758_v59 = vld [vmem:[#allocation11 + $0x568] sm:$0xff] }
 0x700   :  { %3790 = vmatpush.bf16.msra.mxu1 %v6724_v6  ;;  %3803 = vmatpush.bf16.msra.mxu2 %v6728_v8  ;;  %v6408_v6 = vor.u32 %v7608_v45, %v6405_v25  ;;  %v7591_v8 = vld [vmem:[#allocation10 + $0x434] sm:$0xf]  ;;  %v6332_v15 = vor.u32 %v7599_v3, %v6331_v2  ;;  %v7766_v60 = vld [vmem:[#allocation11 + $0x5a8] sm:$0xff]  ;;  %v7757_v45 = vld [vmem:[#allocation11 + $0x560] sm:$0xff] }
 0x701   :  { %v7765_v25 = vld [vmem:[#allocation11 + $0x5a0] sm:$0xff]  ;;  %v7756_v2 = vld [vmem:[#allocation11 + $0x558] sm:$0xff] }
 0x702   :  { %v7764_v3 = vld [vmem:[#allocation11 + $0x598] sm:$0xff] }
 0x703   :  { %3765 = vmatpush.bf16.msrb.mxu3 %v6652_v16  ;;  %3778 = vmatpush.bf16.msra.mxu0 %v6656_v50  ;;  %v6336_v16 = vor.u32 %v7591_v8, %v6333_v9  ;;  %v6340_v50 = vor.u32 %v7600_v11, %v6339_v10  ;;  %v7755_v8 = vld [vmem:[#allocation11 + $0x550] sm:$0xff] }
 0x704   :  { %3791 = vmatpush.bf16.msra.mxu1 %v6660_v37  ;;  %3804 = vmatpush.bf16.msra.mxu2 %v6664_v21  ;;  %v7736_v37 = vld [vmem:[#allocation11 + $0x4b8] sm:$0xff]  ;;  %v7763_v9 = vld [vmem:[#allocation11 + $0x590] sm:$0xff] }
 0x705   :  { %v7720_v21 = vld [vmem:[#allocation11 + $0x438] sm:$0xff]  ;;  %v7747_v10 = vld [vmem:[#allocation11 + $0x510] sm:$0xff] }
 0x706   :  { %v7771_v11 = vld [vmem:[#allocation11 + $0x5d0] sm:$0xff] }
 0x707   :  { %3766 = vmatpush.bf16.msrb.mxu3 %v6588_v29  ;;  %3779 = vmatpush.bf16.msra.mxu0 %v6592_v36  ;;  %v7734_v29 = vld [vmem:[#allocation11 + $0x4a8] sm:$0xff] }
 0x708   :  { %3792 = vmatpush.bf16.msra.mxu1 %v6596_v24  ;;  %3805 = vmatpush.bf16.msra.mxu2 %v6600_v33  ;;  %v7718_v36 = vld [vmem:[#allocation11 + $0x428] sm:$0xff]  ;;  %v7733_v24 = vld [vmem:[#allocation11 + $0x4a0] sm:$0xff] }
 0x709   :  { %v7717_v33 = vld [vmem:[#allocation11 + $0x420] sm:$0xff] }
 0x70b   :  { %3767 = vmatpush.bf16.msrb.mxu3 %v6524_v42  ;;  %3780 = vmatpush.bf16.msra.mxu0 %v6528_v43  ;;  %v7715_v42 = vld [vmem:[#allocation11 + $0x410] sm:$0xff] }
 0x70c   :  { %3793 = vmatpush.bf16.msra.mxu1 %v6532_v41  ;;  %3806 = vmatpush.bf16.msra.mxu2 %v6536_v48  ;;  %v7739_v43 = vld [vmem:[#allocation11 + $0x4d0] sm:$0xff]  ;;  %v7714_v41 = vld [vmem:[#allocation11 + $0x408] sm:$0xff] }
 0x70d   :  { %v7738_v48 = vld [vmem:[#allocation11 + $0x4c8] sm:$0xff] }
 0x70f   :  { %3768 = vmatpush.bf16.msrb.mxu3 %v6460_v54  ;;  %3781 = vmatpush.bf16.msra.mxu0 %v6464_v20  ;;  %v7752_v54 = vld [vmem:[#allocation11 + $0x538] sm:$0xff] }
 0x710   :  { %3794 = vmatpush.bf16.msra.mxu1 %v6468_v57  ;;  %3807 = vmatpush.bf16.msra.mxu2 %v6472_v58  ;;  %v7776_v20 = vld [vmem:[#allocation11 + $0x5f8] sm:$0xff]  ;;  %v7751_v57 = vld [vmem:[#allocation11 + $0x530] sm:$0xff] }
 0x711   :  { %v7775_v58 = vld [vmem:[#allocation11 + $0x5f0] sm:$0xff] }
 0x713   :  { %3769 = vmatpush.bf16.msrb.mxu3 %v6396_v0  ;;  %3782 = vmatpush.bf16.msra.mxu0 %v6400_v1  ;;  %v7749_v0 = vld [vmem:[#allocation11 + $0x520] sm:$0xff] }
 0x714   :  { %3795 = vmatpush.bf16.msra.mxu1 %v6404_v5  ;;  %3808 = vmatpush.bf16.msra.mxu2 %v6408_v6  ;;  %v7773_v1 = vld [vmem:[#allocation11 + $0x5e0] sm:$0xff]  ;;  %v7748_v5 = vld [vmem:[#allocation11 + $0x518] sm:$0xff] }
 0x715   :  { %v7772_v6 = vld [vmem:[#allocation11 + $0x5d8] sm:$0xff] }
 0x717   :  { %3770 = vmatpush.bf16.msrb.mxu3 %v6332_v15  ;;  %3783 = vmatpush.bf16.msra.mxu0 %v6336_v16  ;;  %v7746_v15 = vld [vmem:[#allocation11 + $0x508] sm:$0xff] }
 0x718   :  { %3796 = vmatpush.bf16.msra.mxu1 %v6340_v50  ;;  %3809 = vmatpush.bf16.msra.mxu2 %v6344_v19  ;;  %v7770_v16 = vld [vmem:[#allocation11 + $0x5c8] sm:$0xff]  ;;  %v7753_v50 = vld [vmem:[#allocation11 + $0x540] sm:$0xff] }
 0x719   :  { %v7761_v19 = vld [vmem:[#allocation11 + $0x580] sm:$0xff] }
 0x71a   :  { %3771 = vmatmul.bf16.vlgmr.msrb.gmra.mxu3 %v8298_v17  ;;  %3784 = vmatmul.bf16.vlgmr.msra.gmra.mxu0 %v8298_v17 }
 0x71b   :  { %4886 = vmatpush.bf16.msrb.mxu0 %v7728_v32  ;;  %3797 = vmatmul.bf16.vlgmr.msra.gmra.mxu1 %v8298_v17  ;;  %v7874_v32 = vld [vmem:[#allocation14] sm:$0xff] }
 0x71c   :  { %4899 = vmatpush.bf16.msrb.mxu1 %v7736_v37  ;;  %3810 = vmatmul.bf16.vlgmr.msra.gmra.mxu2 %v8298_v17  ;;  %v7741_v17 = vld [vmem:[#allocation11 + $0x4e0] sm:$0xff]  ;;  %v2920_v37 = vperm.slane %v7874_v32, 3 }
 0x71d   :  { %4873 = vmatpush.bf16.msra.mxu3 %v7720_v21  ;;  %4912 = vmatpush.bf16.msrb.mxu2 %v7744_v7  ;;  %v7745_v21 = vld [vmem:[#allocation11 + $0x500] sm:$0xff] }
 0x71e   :  { %v7769_v7 = vld [vmem:[#allocation11 + $0x5c0] sm:$0xff] }
 0x71f   :  { %4887 = vmatpush.bf16.msrb.mxu0 %v7727_v22  ;;  %v2921_v22 = vperm.slane %v7874_v32, 5 }
 0x720   :  { %4900 = vmatpush.bf16.msrb.mxu1 %v7735_v23  ;;  %v2952_v23 = vperm.slane %v2920_v37, 1 }
 0x721   :  { %4874 = vmatpush.bf16.msra.mxu3 %v7719_v26  ;;  %4913 = vmatpush.bf16.msrb.mxu2 %v7743_v27  ;;  %v2953_v26 = vperm.slane %v2921_v22, 1  ;;  %v2919_v27 = vperm.slane %v7874_v32, 1 }
 0x723   :  { %4888 = vmatpush.bf16.msrb.mxu0 %v7726_v28 }
 0x724   :  { %4901 = vmatpush.bf16.msrb.mxu1 %v7734_v29  ;;  %v2922_v29 = vperm.slane %v7874_v32, 7  ;;  %v7796_v32 = vld [vmem:[#allocation11 + $0x698] sm:$0xff] }
 0x725   :  { %4875 = vmatpush.bf16.msra.mxu3 %v7718_v36  ;;  %4914 = vmatpush.bf16.msrb.mxu2 %v7742_v30 }
 0x727   :  { %4889 = vmatpush.bf16.msrb.mxu0 %v7725_v31 }
 0x728   :  { %4902 = vmatpush.bf16.msrb.mxu1 %v7733_v24 }
 0x729   :  { %4876 = vmatpush.bf16.msra.mxu3 %v7717_v33  ;;  %4915 = vmatpush.bf16.msrb.mxu2 %v7741_v17  ;;  %v2951_v33 = vperm.slane %v2919_v27, 1 }
 0x72b   :  { %4890 = vmatpush.bf16.msrb.mxu0 %v7724_v34  ;;  %v2954_v34 = vperm.slane %v2922_v29, 1  ;;  %v7787_v29 = vld [vmem:[#allocation11 + $0x650] sm:$0xff] }
 0x72c   :  { %4903 = vmatpush.bf16.msrb.mxu1 %v7732_v35  ;;  %v7792_v35 = vld [vmem:[#allocation11 + $0x678] sm:$0xff] }
 0x72d   :  { %4877 = vmatpush.bf16.msra.mxu3 %v7716_v63  ;;  %4916 = vmatpush.bf16.msrb.mxu2 %v7740_v38  ;;  %v7800_v38 = vld [vmem:[#allocation11 + $0x6b8] sm:$0xff] }
 0x72f   :  { %4891 = vmatpush.bf16.msrb.mxu0 %v7723_v39 }
 0x730   :  { %4904 = vmatpush.bf16.msrb.mxu1 %v7731_v40 }
 0x731   :  { %4878 = vmatpush.bf16.msra.mxu3 %v7715_v42  ;;  %4917 = vmatpush.bf16.msrb.mxu2 %v7739_v43 }
 0x733   :  { %4892 = vmatpush.bf16.msrb.mxu0 %v7722_v44 }
 0x734   :  { %4905 = vmatpush.bf16.msrb.mxu1 %v7730_v47 }
 0x735   :  { %4879 = vmatpush.bf16.msra.mxu3 %v7714_v41  ;;  %4918 = vmatpush.bf16.msrb.mxu2 %v7738_v48  ;;  %v7791_v41 = vld [vmem:[#allocation11 + $0x670] sm:$0xff] }
 0x737   :  { %4893 = vmatpush.bf16.msrb.mxu0 %v7721_v18 }
 0x738   :  { %4906 = vmatpush.bf16.msrb.mxu1 %v7729_v46  ;;  %v7799_v46 = vld [vmem:[#allocation11 + $0x6b0] sm:$0xff] }
 0x739   :  { %4880 = vmatpush.bf16.msra.mxu3 %v7713_v52  ;;  %4919 = vmatpush.bf16.msrb.mxu2 %v7737_v53  ;;  %v7784_v53 = vld [vmem:[#allocation11 + $0x638] sm:$0xff] }
 0x73b   :  { %4938 = vmatpush.bf16.msra.mxu0 %v7760_v49  ;;  %v7875_v49 = vld [vmem:[#allocation14 + $0x8] sm:$0xff] }
 0x73c   :  { %4951 = vmatpush.bf16.msra.mxu1 %v7768_v51  ;;  %v2924_v51 = vperm.slane %v7875_v49, 3 }
 0x73d   :  { %4925 = vmatpush.bf16.msrb.mxu3 %v7752_v54  ;;  %4964 = vmatpush.bf16.msra.mxu2 %v7776_v20  ;;  %v2925_v54 = vperm.slane %v7875_v49, 5 }
 0x73f   :  { %4939 = vmatpush.bf16.msra.mxu0 %v7759_v55  ;;  %v7808_v55 = vld [vmem:[#allocation11 + $0x6f8] sm:$0xff] }
 0x740   :  { %4952 = vmatpush.bf16.msra.mxu1 %v7767_v56 }
 0x741   :  { %4926 = vmatpush.bf16.msrb.mxu3 %v7751_v57  ;;  %4965 = vmatpush.bf16.msra.mxu2 %v7775_v58  ;;  %v7790_v57 = vld [vmem:[#allocation11 + $0x668] sm:$0xff] }
 0x742   :  { %v7798_v58 = vld [vmem:[#allocation11 + $0x6a8] sm:$0xff] }
 0x743   :  { %4940 = vmatpush.bf16.msra.mxu0 %v7758_v59  ;;  %v2956_v59 = vperm.slane %v2924_v51, 1  ;;  %v7824_v51 = vld [vmem:[#allocation11 + $0x778] sm:$0xff] }
 0x744   :  { %4953 = vmatpush.bf16.msra.mxu1 %v7766_v60 }
 0x745   :  { %4927 = vmatpush.bf16.msrb.mxu3 %v7750_v61  ;;  %4966 = vmatpush.bf16.msra.mxu2 %v7774_v62  ;;  %v2957_v61 = vperm.slane %v2925_v54, 1  ;;  %v7783_v62 = vld [vmem:[#allocation11 + $0x630] sm:$0xff]  ;;  %v7832_v54 = vld [vmem:[#allocation11 + $0x7b8] sm:$0xff] }
 0x747   :  { %4941 = vmatpush.bf16.msra.mxu0 %v7757_v45 }
 0x748   :  { %4954 = vmatpush.bf16.msra.mxu1 %v7765_v25  ;;  %v7807_v25 = vld [vmem:[#allocation11 + $0x6f0] sm:$0xff] }
 0x749   :  { %4928 = vmatpush.bf16.msrb.mxu3 %v7749_v0  ;;  %4967 = vmatpush.bf16.msra.mxu2 %v7773_v1  ;;  %v2923_v0 = vperm.slane %v7875_v49, 1 }
 0x74b   :  { %4942 = vmatpush.bf16.msra.mxu0 %v7756_v2  ;;  %v7789_v2 = vld [vmem:[#allocation11 + $0x660] sm:$0xff] }
 0x74c   :  { %4955 = vmatpush.bf16.msra.mxu1 %v7764_v3  ;;  %v2926_v3 = vperm.slane %v7875_v49, 7  ;;  %v7793_v49 = vld [vmem:[#allocation11 + $0x680] sm:$0xff] }
 0x74d   :  { %4929 = vmatpush.bf16.msrb.mxu3 %v7748_v5  ;;  %4968 = vmatpush.bf16.msra.mxu2 %v7772_v6 }
 0x74f   :  { %4943 = vmatpush.bf16.msra.mxu0 %v7755_v8  ;;  %v7797_v8 = vld [vmem:[#allocation11 + $0x6a0] sm:$0xff] }
 0x750   :  { %4956 = vmatpush.bf16.msra.mxu1 %v7763_v9 }
 0x751   :  { %4930 = vmatpush.bf16.msrb.mxu3 %v7747_v10  ;;  %4969 = vmatpush.bf16.msra.mxu2 %v7771_v11  ;;  %v7782_v10 = vld [vmem:[#allocation11 + $0x628] sm:$0xff] }
 0x753   :  { %4944 = vmatpush.bf16.msra.mxu0 %v7754_v12  ;;  %v7806_v12 = vld [vmem:[#allocation11 + $0x6e8] sm:$0xff] }
 0x754   :  { %4957 = vmatpush.bf16.msra.mxu1 %v7762_v13  ;;  %v2955_v13 = vperm.slane %v2923_v0, 1 }
 0x755   :  { %4931 = vmatpush.bf16.msrb.mxu3 %v7746_v15  ;;  %4970 = vmatpush.bf16.msra.mxu2 %v7770_v16  ;;  %v2958_v16 = vperm.slane %v2926_v3, 1 }
 0x756   :  { %v3629_v28 = vpop.f32.mrf.mxu0 }
 0x757   :  { %4945 = vmatpush.bf16.msra.mxu0 %v7753_v50  ;;  %v3630_v36 = vadd.f32 %v3629_v28, %v2952_v23  ;;  %v3642_v30 = vpop.f32.mrf.mxu1  ;;  %v7788_v50 = vld [vmem:[#allocation11 + $0x658] sm:$0xff] }
 0x758   :  { %4958 = vmatpush.bf16.msra.mxu1 %v7761_v19  ;;  %v3643_v31 = vadd.f32 %v3642_v30, %v2953_v26  ;;  %v7805_v26 = vld [vmem:[#allocation11 + $0x6e0] sm:$0xff] }
 0x759   :  { %4932 = vmatpush.bf16.msrb.mxu3 %v7745_v21  ;;  %4971 = vmatpush.bf16.msra.mxu2 %v7769_v7  ;;  %v3816_v24 = vmax.f32 %v3630_v36, 0.0  ;;  %v7781_v7 = vld [vmem:[#allocation11 + $0x620] sm:$0xff] }
 0x75a   :  { %v3817_v17 = vmax.f32 %v3643_v31, 0.0  ;;  %v7795_v31 = vld [vmem:[#allocation11 + $0x690] sm:$0xff] }
 0x75b   :  { %v4089_v63 = vpack.c.bf16 %v3816_v24, %v3816_v24 }
 0x75c   :  { %v4090_v39 = vpack.c.bf16 %v3817_v17, %v3817_v17  ;;  %v3616_v40 = vpop.f32.mrf.mxu3 }
 0x75d   :  { %v3617_v42 = vadd.f32 %v3616_v40, %v2951_v33  ;;  %v3655_v43 = vpop.f32.mrf.mxu2  ;;  %4894 = vmatmul.bf16.vlgmr.msrb.gmra.mxu0 %v4089_v63  ;;  %v7780_v33 = vld [vmem:[#allocation11 + $0x618] sm:$0xff] }
 0x75e   :  { %v3656_v44 = vadd.f32 %v3655_v43, %v2954_v34  ;;  %4907 = vmatmul.bf16.vlgmr.msrb.gmra.mxu1 %v4090_v39  ;;  %4990 = vmatpush.bf16.msrb.mxu0 %v7792_v35  ;;  %v3631_v47 = vpop.f32.mrf.mxu0  ;;  %v7804_v34 = vld [vmem:[#allocation11 + $0x6d8] sm:$0xff]  ;;  %v7876_v35 = vld [vmem:[#allocation14 + $0x10] sm:$0xff] }
 0x75f   :  { %v3815_v48 = vmax.f32 %v3617_v42, 0.0  ;;  %5003 = vmatpush.bf16.msrb.mxu1 %v7800_v38  ;;  %v3644_v18 = vpop.f32.mrf.mxu1  ;;  %v2928_v63 = vperm.slane %v7876_v35, 3  ;;  %v7786_v39 = vld [vmem:[#allocation11 + $0x648] sm:$0xff]  ;;  %v2929_v40 = vperm.slane %v7876_v35, 5 }
 0x760   :  { %v3818_v52 = vmax.f32 %v3656_v44, 0.0  ;;  %v7794_v42 = vld [vmem:[#allocation11 + $0x688] sm:$0xff]  ;;  %v7779_v44 = vld [vmem:[#allocation11 + $0x610] sm:$0xff] }
 0x761   :  { %v4088_v20 = vpack.c.bf16 %v3815_v48, %v3815_v48  ;;  %v7803_v48 = vld [vmem:[#allocation11 + $0x6d0] sm:$0xff]  ;;  %v2961_v18 = vperm.slane %v2929_v40, 1 }
 0x762   :  { %v4091_v56 = vpack.c.bf16 %v3818_v52, %v3818_v52  ;;  %4991 = vmatpush.bf16.msrb.mxu0 %v7791_v41  ;;  %v2960_v41 = vperm.slane %v2928_v63, 1  ;;  %v2927_v52 = vperm.slane %v7876_v35, 1  ;;  %v7877_v63 = vld [vmem:[#allocation14 + $0x18] sm:$0xff] }
 0x763   :  { %5004 = vmatpush.bf16.msrb.mxu1 %v7799_v46  ;;  %4881 = vmatmul.bf16.vlgmr.msra.gmra.mxu3 %v4088_v20  ;;  %v7785_v46 = vld [vmem:[#allocation11 + $0x640] sm:$0xff]  ;;  %v7778_v20 = vld [vmem:[#allocation11 + $0x608] sm:$0xff]  ;;  %v2933_v40 = vperm.slane %v7877_v63, 5 }
 0x764   :  { %4920 = vmatmul.bf16.vlgmr.msrb.gmra.mxu2 %v4091_v56  ;;  %4977 = vmatpush.bf16.msra.mxu3 %v7784_v53  ;;  %v3618_v60 = vpop.f32.mrf.mxu3 }
 0x765   :  { %5016 = vmatpush.bf16.msrb.mxu2 %v7808_v55  ;;  %v3657_v45 = vpop.f32.mrf.mxu2  ;;  %v2930_v55 = vperm.slane %v7876_v35, 7  ;;  %v7812_v35 = vld [vmem:[#allocation11 + $0x718] sm:$0xff] }
 0x766   :  { %4992 = vmatpush.bf16.msrb.mxu0 %v7790_v57  ;;  %v3681_v1 = vpop.f32.mrf.mxu0 }
 0x767   :  { %5005 = vmatpush.bf16.msrb.mxu1 %v7798_v58  ;;  %v3682_v5 = vadd.f32 %v3681_v1, %v2956_v59  ;;  %v3694_v6 = vpop.f32.mrf.mxu1  ;;  %v7802_v58 = vld [vmem:[#allocation11 + $0x6c8] sm:$0xff]  ;;  %v2962_v45 = vperm.slane %v2930_v55, 1  ;;  %v7831_v1 = vld [vmem:[#allocation11 + $0x7b0] sm:$0xff] }
 0x768   :  { %v3695_v9 = vadd.f32 %v3694_v6, %v2957_v61  ;;  %4978 = vmatpush.bf16.msra.mxu3 %v7783_v62  ;;  %v2959_v61 = vperm.slane %v2927_v52, 1  ;;  %v7801_v6 = vld [vmem:[#allocation11 + $0x6c0] sm:$0xff]  ;;  %v2934_v52 = vperm.slane %v7877_v63, 7 }
 0x769   :  { %v3820_v11 = vmax.f32 %v3682_v5, 0.0  ;;  %5017 = vmatpush.bf16.msrb.mxu2 %v7807_v25  ;;  %v7823_v25 = vld [vmem:[#allocation11 + $0x770] sm:$0xff] }
 0x76a   :  { %v3821_v15 = vmax.f32 %v3695_v9, 0.0  ;;  %4993 = vmatpush.bf16.msrb.mxu0 %v7789_v2  ;;  %v7777_v2 = vld [vmem:[#allocation11 + $0x600] sm:$0xff] }
 0x76b   :  { %v4093_v19 = vpack.c.bf16 %v3820_v11, %v3820_v11  ;;  %5006 = vmatpush.bf16.msrb.mxu1 %v7797_v8  ;;  %v7816_v8 = vld [vmem:[#allocation11 + $0x738] sm:$0xff] }
 0x76c   :  { %v4094_v37 = vpack.c.bf16 %v3821_v15, %v3821_v15  ;;  %4979 = vmatpush.bf16.msra.mxu3 %v7782_v10  ;;  %v3668_v21 = vpop.f32.mrf.mxu3  ;;  %v7840_v11 = vld [vmem:[#allocation11 + $0x7f8] sm:$0xff]  ;;  %v7822_v15 = vld [vmem:[#allocation11 + $0x768] sm:$0xff] }
 0x76d   :  { %5018 = vmatpush.bf16.msrb.mxu2 %v7806_v12  ;;  %v3669_v22 = vadd.f32 %v3668_v21, %v2955_v13  ;;  %v3707_v23 = vpop.f32.mrf.mxu2  ;;  %4946 = vmatmul.bf16.vlgmr.msra.gmra.mxu0 %v4093_v19  ;;  %v7830_v19 = vld [vmem:[#allocation11 + $0x7a8] sm:$0xff] }
 0x76e   :  { %v3708_v27 = vadd.f32 %v3707_v23, %v2958_v16  ;;  %4959 = vmatmul.bf16.vlgmr.msra.gmra.mxu1 %v4094_v37  ;;  %4994 = vmatpush.bf16.msrb.mxu0 %v7788_v50  ;;  %v3683_v28 = vpop.f32.mrf.mxu0  ;;  %v7815_v37 = vld [vmem:[#allocation11 + $0x730] sm:$0xff]  ;;  %v7821_v23 = vld [vmem:[#allocation11 + $0x760] sm:$0xff] }
 0x76f   :  { %v3819_v36 = vmax.f32 %v3669_v22, 0.0  ;;  %5007 = vmatpush.bf16.msrb.mxu1 %v7796_v32  ;;  %v3696_v30 = vpop.f32.mrf.mxu1  ;;  %v7814_v28 = vld [vmem:[#allocation11 + $0x728] sm:$0xff] }
 0x770   :  { %v3822_v24 = vmax.f32 %v3708_v27, 0.0  ;;  %4980 = vmatpush.bf16.msra.mxu3 %v7781_v7  ;;  %v7839_v7 = vld [vmem:[#allocation11 + $0x7f0] sm:$0xff]  ;;  %v7820_v30 = vld [vmem:[#allocation11 + $0x758] sm:$0xff] }
 0x771   :  { %v4092_v17 = vpack.c.bf16 %v3819_v36, %v3819_v36  ;;  %5019 = vmatpush.bf16.msrb.mxu2 %v7805_v26  ;;  %v7829_v26 = vld [vmem:[#allocation11 + $0x7a0] sm:$0xff]  ;;  %v7838_v36 = vld [vmem:[#allocation11 + $0x7e8] sm:$0xff] }
 0x772   :  { %v4095_v38 = vpack.c.bf16 %v3822_v24, %v3822_v24  ;;  %4995 = vmatpush.bf16.msrb.mxu0 %v7787_v29  ;;  %v7813_v24 = vld [vmem:[#allocation11 + $0x720] sm:$0xff] }
 0x773   :  { %5008 = vmatpush.bf16.msrb.mxu1 %v7795_v31  ;;  %4933 = vmatmul.bf16.vlgmr.msrb.gmra.mxu3 %v4092_v17  ;;  %v7828_v31 = vld [vmem:[#allocation11 + $0x798] sm:$0xff]  ;;  %v7819_v17 = vld [vmem:[#allocation11 + $0x750] sm:$0xff] }
 0x774   :  { %4972 = vmatmul.bf16.vlgmr.msra.gmra.mxu2 %v4095_v38  ;;  %4981 = vmatpush.bf16.msra.mxu3 %v7780_v33  ;;  %v3670_v43 = vpop.f32.mrf.mxu3  ;;  %v7837_v33 = vld [vmem:[#allocation11 + $0x7e0] sm:$0xff]  ;;  %v2932_v38 = vperm.slane %v7877_v63, 3 }
 0x775   :  { %5020 = vmatpush.bf16.msrb.mxu2 %v7804_v34  ;;  %v3709_v47 = vpop.f32.mrf.mxu2  ;;  %v7827_v34 = vld [vmem:[#allocation11 + $0x790] sm:$0xff]  ;;  %v7826_v43 = vld [vmem:[#allocation11 + $0x788] sm:$0xff] }
 0x776   :  { %4996 = vmatpush.bf16.msrb.mxu0 %v7786_v39  ;;  %v7836_v39 = vld [vmem:[#allocation11 + $0x7d8] sm:$0xff]  ;;  %v7811_v47 = vld [vmem:[#allocation11 + $0x710] sm:$0xff] }
 0x777   :  { %5009 = vmatpush.bf16.msrb.mxu1 %v7794_v42  ;;  %v3733_v53 = vpop.f32.mrf.mxu0  ;;  %v7818_v42 = vld [vmem:[#allocation11 + $0x748] sm:$0xff] }
 0x778   :  { %4982 = vmatpush.bf16.msra.mxu3 %v7779_v44  ;;  %v3734_v56 = vadd.f32 %v3733_v53, %v2960_v41  ;;  %v2964_v44 = vperm.slane %v2932_v38, 1  ;;  %v2965_v41 = vperm.slane %v2933_v40, 1 }
 0x779   :  { %5021 = vmatpush.bf16.msrb.mxu2 %v7803_v48  ;;  %v7835_v48 = vld [vmem:[#allocation11 + $0x7d0] sm:$0xff] }
 0x77a   :  { %v3746_v57 = vpop.f32.mrf.mxu1  ;;  %4997 = vmatpush.bf16.msrb.mxu0 %v7785_v46  ;;  %v3824_v60 = vmax.f32 %v3734_v56, 0.0  ;;  %v2931_v46 = vperm.slane %v7877_v63, 1  ;;  %v7834_v56 = vld [vmem:[#allocation11 + $0x7c8] sm:$0xff] }
 0x77b   :  { %v3747_v59 = vadd.f32 %v3746_v57, %v2961_v18  ;;  %5010 = vmatpush.bf16.msrb.mxu1 %v7793_v49  ;;  %v7817_v18 = vld [vmem:[#allocation11 + $0x740] sm:$0xff] }
 0x77c   :  { %4983 = vmatpush.bf16.msra.mxu3 %v7778_v20  ;;  %v4097_v0 = vpack.c.bf16 %v3824_v60, %v3824_v60  ;;  %v7810_v20 = vld [vmem:[#allocation11 + $0x708] sm:$0xff]  ;;  %v2966_v60 = vperm.slane %v2934_v52, 1 }
 0x77d   :  { %v3825_v62 = vmax.f32 %v3747_v59, 0.0  ;;  %5022 = vmatpush.bf16.msrb.mxu2 %v7802_v58  ;;  %v3720_v5 = vpop.f32.mrf.mxu3  ;;  %v2963_v58 = vperm.slane %v2931_v46, 1 }
 0x77e   :  { %5042 = vmatpush.bf16.msra.mxu0 %v7824_v51  ;;  %v3721_v9 = vadd.f32 %v3720_v5, %v2959_v61  ;;  %v7825_v51 = vld [vmem:[#allocation11 + $0x780] sm:$0xff] }
 0x77f   :  { %5055 = vmatpush.bf16.msra.mxu1 %v7832_v54  ;;  %v4098_v3 = vpack.c.bf16 %v3825_v62, %v3825_v62  ;;  %4998 = vmatmul.bf16.vlgmr.msrb.gmra.mxu0 %v4097_v0  ;;  %v3735_v13 = vpop.f32.mrf.mxu0  ;;  %v7809_v62 = vld [vmem:[#allocation11 + $0x700] sm:$0xff] }
 0x780   :  { %v3759_v10 = vpop.f32.mrf.mxu2  ;;  %v3823_v16 = vmax.f32 %v3721_v9, 0.0  ;;  %4984 = vmatpush.bf16.msra.mxu3 %v7777_v2  ;;  %v7833_v0 = vld [vmem:[#allocation11 + $0x7c0] sm:$0xff] }
 0x781   :  { %v3760_v12 = vadd.f32 %v3759_v10, %v2962_v45  ;;  %5011 = vmatmul.bf16.vlgmr.msrb.gmra.mxu1 %v4098_v3  ;;  %5023 = vmatpush.bf16.msrb.mxu2 %v7801_v6 }
 0x782   :  { %5043 = vmatpush.bf16.msra.mxu0 %v7823_v25  ;;  %v3748_v50 = vpop.f32.mrf.mxu1  ;;  %v4096_v21 = vpack.c.bf16 %v3823_v16, %v3823_v16 }
 0x783   :  { %5056 = vmatpush.bf16.msra.mxu1 %v7831_v1  ;;  %v3826_v32 = vmax.f32 %v3760_v12, 0.0 }
 0x784   :  { %5029 = vmatpush.bf16.msrb.mxu3 %v7816_v8 }
 0x785   :  { %5068 = vmatpush.bf16.msra.mxu2 %v7840_v11  ;;  %v4099_v22 = vpack.c.bf16 %v3826_v32, %v3826_v32  ;;  %4985 = vmatmul.bf16.vlgmr.msra.gmra.mxu3 %v4096_v21  ;;  %v3722_v27 = vpop.f32.mrf.mxu3 }
 0x786   :  { %5044 = vmatpush.bf16.msra.mxu0 %v7822_v15 }
 0x787   :  { %5057 = vmatpush.bf16.msra.mxu1 %v7830_v19  ;;  %5024 = vmatmul.bf16.vlgmr.msrb.gmra.mxu2 %v4099_v22 }
 0x788   :  { %5030 = vmatpush.bf16.msrb.mxu3 %v7815_v37  ;;  %v3761_v29 = vpop.f32.mrf.mxu2 }
 0x789   :  { %5069 = vmatpush.bf16.msra.mxu2 %v7839_v7 }
 0x78a   :  { %5045 = vmatpush.bf16.msra.mxu0 %v7821_v23 }
 0x78b   :  { %5058 = vmatpush.bf16.msra.mxu1 %v7829_v26 }
 0x78c   :  { %5031 = vmatpush.bf16.msrb.mxu3 %v7814_v28 }
 0x78d   :  { %5070 = vmatpush.bf16.msra.mxu2 %v7838_v36  ;;  %v7878_v36 = vld [vmem:[#allocation13 + $0x8] sm:$0xff] }
 0x78e   :  { %5046 = vmatpush.bf16.msra.mxu0 %v7820_v30  ;;  %v4104_v30 = vperm.slane %v7878_v36, 2 }
 0x78f   :  { %5059 = vmatpush.bf16.msra.mxu1 %v7828_v31 }
 0x790   :  { %5032 = vmatpush.bf16.msrb.mxu3 %v7813_v24 }
 0x791   :  { %5071 = vmatpush.bf16.msra.mxu2 %v7837_v33 }
 0x792   :  { %5047 = vmatpush.bf16.msra.mxu0 %v7819_v17 }
 0x793   :  { %5060 = vmatpush.bf16.msra.mxu1 %v7827_v34 }
 0x794   :  { %5033 = vmatpush.bf16.msrb.mxu3 %v7812_v35 }
 0x795   :  { %5072 = vmatpush.bf16.msra.mxu2 %v7836_v39 }
 0x796   :  { %5048 = vmatpush.bf16.msra.mxu0 %v7818_v42 }
 0x797   :  { %v3785_v49 = vpop.f32.mrf.mxu0  ;;  %5061 = vmatpush.bf16.msra.mxu1 %v7826_v43 }
 0x798   :  { %v3786_v53 = vadd.f32 %v3785_v49, %v2964_v44  ;;  %v3798_v54 = vpop.f32.mrf.mxu1  ;;  %5034 = vmatpush.bf16.msrb.mxu3 %v7811_v47 }
 0x799   :  { %v3799_v55 = vadd.f32 %v3798_v54, %v2965_v41  ;;  %5073 = vmatpush.bf16.msra.mxu2 %v7835_v48 }
 0x79a   :  { %v3828_v57 = vmax.f32 %v3786_v53, 0.0  ;;  %5049 = vmatpush.bf16.msra.mxu0 %v7817_v18 }
 0x79b   :  { %v3829_v59 = vmax.f32 %v3799_v55, 0.0  ;;  %5062 = vmatpush.bf16.msra.mxu1 %v7825_v51 }
 0x79c   :  { %v4101_v61 = vpack.c.bf16 %v3828_v57, %v3828_v57  ;;  %5035 = vmatpush.bf16.msrb.mxu3 %v7810_v20 }
 0x79d   :  { %v4102_v45 = vpack.c.bf16 %v3829_v59, %v3829_v59  ;;  %v3772_v25 = vpop.f32.mrf.mxu3  ;;  %5074 = vmatpush.bf16.msra.mxu2 %v7834_v56 }
 0x79e   :  { %v3773_v1 = vadd.f32 %v3772_v25, %v2963_v58  ;;  %5050 = vmatmul.bf16.vlgmr.msra.gmra.mxu0 %v4101_v61 }
 0x79f   :  { %v3811_v2 = vpop.f32.mrf.mxu2  ;;  %5063 = vmatmul.bf16.vlgmr.msra.gmra.mxu1 %v4102_v45  ;;  %v3787_v5 = vpop.f32.mrf.mxu0 }
 0x7a0   :  { %v3812_v3 = vadd.f32 %v3811_v2, %v2966_v60  ;;  %v3827_v6 = vmax.f32 %v3773_v1, 0.0  ;;  %v3800_v8 = vpop.f32.mrf.mxu1  ;;  %5036 = vmatpush.bf16.msrb.mxu3 %v7809_v62 }
 0x7a1   :  { %5075 = vmatpush.bf16.msra.mxu2 %v7833_v0 }
 0x7a2   :  { %v3830_v9 = vmax.f32 %v3812_v3, 0.0  ;;  %v4100_v10 = vpack.c.bf16 %v3827_v6, %v3827_v6 }
 0x7a4   :  { %v4103_v11 = vpack.c.bf16 %v3830_v9, %v3830_v9  ;;  %5037 = vmatmul.bf16.vlgmr.msrb.gmra.mxu3 %v4100_v10 }
 0x7a5   :  { %v3774_v12 = vpop.f32.mrf.mxu3 }
 0x7a6   :  { %5076 = vmatmul.bf16.vlgmr.msra.gmra.mxu2 %v4103_v11 }
 0x7a7   :  { %v3813_v13 = vpop.f32.mrf.mxu2 }
 0x7da   :  { %v4895_v15 = vpop.f32.mrf.mxu0 }
 0x7db   :  { %v4908_v16 = vpop.f32.mrf.mxu1 }
 0x7e2   :  { %v4897_v50 = vpop.f32.mrf.mxu0 }
 0x7e3   :  { %v4910_v19 = vpop.f32.mrf.mxu1  ;;  %v5102_v50 = vperm.slane %v7878_v36, 7 }
 0x7e6   :  { %v4882_v32 = vpop.f32.mrf.mxu3 }
 0x7e7   :  { %v4921_v37 = vpop.f32.mrf.mxu2  ;;  %v4883_v31 = vadd.f32 %v4882_v32, %v4104_v30 }
 0x7e9   :  { %v4896_v35 = vadd.f32 %v4895_v15, %v4883_v31 }
 0x7ea   :  { %v4947_v21 = vpop.f32.mrf.mxu0 }
 0x7eb   :  { %v4960_v7 = vpop.f32.mrf.mxu1  ;;  %v4909_v63 = vadd.f32 %v4908_v16, %v4896_v35 }
 0x7ed   :  { %v4922_v40 = vadd.f32 %v4921_v37, %v4909_v63 }
 0x7ee   :  { %v4884_v22 = vpop.f32.mrf.mxu3 }
 0x7ef   :  { %v4923_v23 = vpop.f32.mrf.mxu2 }
 0x7f2   :  { %v4949_v26 = vpop.f32.mrf.mxu0 }
 0x7f3   :  { %v4962_v27 = vpop.f32.mrf.mxu1 }
 0x7f6   :  { %v4934_v28 = vpop.f32.mrf.mxu3 }
 0x7f7   :  { %v4973_v29 = vpop.f32.mrf.mxu2  ;;  %v4935_v44 = vadd.f32 %v4934_v28, %v4922_v40 }
 0x7f9   :  { %v4948_v47 = vadd.f32 %v4947_v21, %v4935_v44 }
 0x7fb   :  { %v4961_v18 = vadd.f32 %v4960_v7, %v4948_v47 }
 0x7fc   :  { %v4999_v24 = vpop.f32.mrf.mxu0 }
 0x7fd   :  { %v4974_v46 = vadd.f32 %v4973_v29, %v4961_v18 }
 0x7fe   :  { %v5012_v33 = vpop.f32.mrf.mxu1  ;;  %v4936_v17 = vpop.f32.mrf.mxu3 }
 0x7ff   :  { %v4975_v34 = vpop.f32.mrf.mxu2 }
 0x804   :  { %v5001_v38 = vpop.f32.mrf.mxu0 }
 0x806   :  { %v5014_v39 = vpop.f32.mrf.mxu1 }
 0x808   :  { %v4986_v42 = vpop.f32.mrf.mxu3 }
 0x809   :  { %v4987_v49 = vadd.f32 %v4986_v42, %v4974_v46  ;;  %v150_v42 = vld [vmem:[#allocation2] sm:$0xff] }
 0x80a   :  { %v5025_v43 = vpop.f32.mrf.mxu2 }
 0x80b   :  { %v5000_v53 = vadd.f32 %v4999_v24, %v4987_v49 }
 0x80d   :  { %v5013_v54 = vadd.f32 %v5012_v33, %v5000_v53 }
 0x80f   :  { %v5026_v56 = vadd.f32 %v5025_v43, %v5013_v54 }
 0x810   :  { %v4988_v41 = vpop.f32.mrf.mxu3 }
 0x812   :  { %v5027_v48 = vpop.f32.mrf.mxu2 }
 0x81b   :  { %v5051_v51 = vpop.f32.mrf.mxu0 }
 0x81c   :  { %v5064_v52 = vpop.f32.mrf.mxu1 }
 0x823   :  { %v5053_v20 = vpop.f32.mrf.mxu0 }
 0x824   :  { %v5066_v55 = vpop.f32.mrf.mxu1 }
 0x827   :  { %v5038_v57 = vpop.f32.mrf.mxu3 }
 0x828   :  { %v5039_v58 = vadd.f32 %v5038_v57, %v5026_v56 }
 0x829   :  { %v5077_v59 = vpop.f32.mrf.mxu2 }
 0x82a   :  { %v5052_v60 = vadd.f32 %v5051_v51, %v5039_v58 }
 0x82c   :  { %v5065_v61 = vadd.f32 %v5064_v52, %v5052_v60 }
 0x82e   :  { %v5078_v62 = vadd.f32 %v5077_v59, %v5065_v61 }
 0x82f   :  { %v5040_v45 = vpop.f32.mrf.mxu3 }
 0x830   :  { %v5081_v0 = vadd.f32 %v5078_v62, %v8294_v14  ;;  %v153_v14 = vld [vmem:[#allocation13 + $0x10] sm:$0x7] }
 0x831   :  { %v5079_v25 = vpop.f32.mrf.mxu2  ;;  %v5104_v37 = vperm.slane %v153_v14, 0  ;;  %v5126_v35 = vperm.slane %v153_v14, 1  ;;  %v5128_v39 = vperm.slane %v153_v14, 2 }
 0x832   :  { %5082 = vadd.xlane.f32.xlu1 %v5081_v0 }
 0x8a5   :  { %v5083_v1 = vpop.xlane.xlu1 %5082 }
 0x8a6   :  { %v5084_v2 = vmul.f32 %v5083_v1, %v8218_v4 }
 0x8a8   :  { %v5085_v3 = vsub.f32 %v5081_v0, %v5084_v2 }
 0x8aa   :  { %v5086_v5 = vmul.f32 %v5085_v3, %v5085_v3 }
 0x8ac   :  { %5087 = vadd.xlane.f32.xlu2 %v5086_v5 }
 0x91f   :  { %v5088_v6 = vpop.xlane.xlu2 %5087 }
 0x920   :  { %v5089_v8 = vmul.f32 %v5088_v6, %v8218_v4 }
 0x922   :  { %v5090_v9 = vadd.f32 1e-05, %v5089_v8 }
 0x924   :  { %7868 = vrsqrt.f32 %v5090_v9  ;;  %vm5097_vm1 = vweird.f32 %v5090_v9 }
 0x92a   :  { %v7869_v10 = vpop.eup %7868 }
 0x92b   :  { %v5092_v11 = vmul.f32 %v7869_v10, %v5090_v9  ;;  %vm5098_vm0 = vweird.f32 %v7869_v10 }
 0x92c   :  { %vm5099_vm2 = vmor %vm5097_vm1, %vm5098_vm0 }
 0x92d   :  { %v5093_v12 = vmul.f32 %v7869_v10, %v5092_v11 }
 0x92f   :  { %v5094_v13 = vmul.f32 0.5, %v5093_v12 }
 0x931   :  { %v5095_v15 = vsub.f32 1.5, %v5094_v13 }
 0x933   :  { %v5096_v16 = vmul.f32 %v7869_v10, %v5095_v15 }
 0x935   :  { %v5100_v19 = vsel %vm5099_vm2, %v7869_v10, %v5096_v16 }
 0x936   :  { %v5101_v32 = vmul.f32 %v5100_v19, %v5085_v3 }
 0x938   :  { %v5103_v21 = vmul.f32 %v5102_v50, %v5101_v32 }
 0x93a   :  { %v5105_v7 = vadd.f32 %v5104_v37, %v5103_v21 }
 0x93c   :  { %5106 = vadd.xlane.f32.xlu0 %v5105_v7 }
 0x9af   :  { %v5107_v22 = vpop.xlane.xlu0 %5106 }
 0x9b0   :  { %v5108_v23 = vmul.f32 %v5107_v22, %v8218_v4 }
 0x9b2   :  { %v5109_v26 = vsub.f32 %v5105_v7, %v5108_v23 }
 0x9b4   :  { %v5110_v27 = vmul.f32 %v5109_v26, %v5109_v26 }
 0x9b6   :  { %5111 = vadd.xlane.f32.xlu1 %v5110_v27 }
 0xa29   :  { %v5112_v28 = vpop.xlane.xlu1 %5111 }
 0xa2a   :  { %v5113_v29 = vmul.f32 %v5112_v28, %v8218_v4  ;;  %v5134_v4 = vlaneseq }
 0xa2c   :  { %v5114_v30 = vadd.f32 1e-05, %v5113_v29  ;;  %v5135_v47 = vand.u32 127, %v5134_v4 }
 0xa2e   :  { %7870 = vrsqrt.f32 %v5114_v30  ;;  %vm5121_vm4 = vweird.f32 %v5114_v30 }
 0xa34   :  { %v7871_v31 = vpop.eup %7870 }
 0xa35   :  { %v5116_v24 = vmul.f32 %v7871_v31, %v5114_v30  ;;  %vm5122_vm3 = vweird.f32 %v7871_v31 }
 0xa36   :  { %vm5123_vm5 = vmor %vm5121_vm4, %vm5122_vm3 }
 0xa37   :  { %v5117_v36 = vmul.f32 %v7871_v31, %v5116_v24 }
 0xa39   :  { %v5118_v33 = vmul.f32 0.5, %v5117_v36 }
 0xa3b   :  { %v5119_v17 = vsub.f32 1.5, %v5118_v33 }
 0xa3d   :  { %v5120_v34 = vmul.f32 %v7871_v31, %v5119_v17 }
 0xa3f   :  { %v5124_v63 = vsel %vm5123_vm5, %v7871_v31, %v5120_v34 }
 0xa40   :  { %v5125_v38 = vmul.f32 %v5124_v63, %v5109_v26 }
 0xa42   :  { %v5127_v40 = vmul.f32 %v5126_v35, %v5125_v38 }
 0xa44   :  { %v5129_v43 = vadd.f32 %v5128_v39, %v5127_v40 }
 0xa46   :  { %v5130_v44 = vmul.f32 %v5129_v43, %v150_v42 }
 0xa48   :  { %5131 = vadd.xlane.f32.xlu2 %v5130_v44 }
 0xabb   :  { %v5132_v41 = vpop.xlane.xlu2 %5131 }
 0xabc   :  { %v5136_v48 = vperm.slane %v5132_v41, %v5135_v47 }
 0xabe   :  { %5139 = vst.msk [vmem:[#allocation16] sm:$0x1] %vm5138_vm6, %v5136_v48 }
 0xabf   :  { %5150 = dma.vmem_to_hbm [thread:$0]  %s5146_s7, 16, %s5148_s22, [#allocation4]  }
 0xac0   :  { %8105 = dma.done.wait [#allocation4], 16  }
 0xac1   :  { %8106 = vsyncadd [#allocation4], 4294967280 }
 0xac2   :  { %5155 = vsyncpa [#allocation3], 1 }
 0xac3   :  { %5156 = vsyncpa [#allocation6], 1 }
 0xac4   :  { %5157 = vsyncpa [#allocation9], 1 }
 0xac5   :  { %5158 = vsyncpa [#allocation12], 1 }
 0xac6   :  { %5159 = vsyncpa [#allocation15], 1 }
 0xac7   :  { %5160 = vsyncpa [#allocation4], 1 }

// kernel: tpu_custom_call.1
= control target key start
LH: loop header
LB: loop body
LE: loop exit
PB: predicated region body
PF: predicated region fallthrough
CT: control target
= control target key end

     0   :  { %13 = vsyncpa [#allocation3], 0  ;;  %s8324_s0 = inlined_call_operand.hbm [shape: f32[8,128], index: 0, kind: input, shape index: {}]   ;;  %s8325_s1 = inlined_call_operand.hbm [shape: f32[8,128], index: 1, kind: input, shape index: {}]   ;;  %s8326_s2 = inlined_call_operand.hbm [shape: bf16[128,256], index: 2, kind: input, shape index: {}]   ;;  %s8327_s3 = inlined_call_operand.hbm [shape: bf16[128,128], index: 3, kind: input, shape index: {}]   ;;  %s8328_s4 = inlined_call_operand.hbm [shape: bf16[2,128,2048], index: 4, kind: input, shape index: {}]   ;;  %s8329_s5 = inlined_call_operand.hbm [shape: bf16[2,2048,128], index: 5, kind: input, shape index: {}]   ;;  %s8330_s6 = inlined_call_operand.hbm [shape: f32[19,128], index: 6, kind: input, shape index: {}]   ;;  %s8331_s7 = inlined_call_operand.hbm [shape: f32[2,2048], index: 7, kind: input, shape index: {}]   ;;  %s8332_s8 = inlined_call_operand.hbm [shape: f32[1,8], index: 8, kind: output, shape index: {}]  }
   0x1   :  { %14 = vsyncpa [#allocation6], 0 }
   0x2   :  { %15 = vsyncpa [#allocation9], 0 }
   0x3   :  { %16 = vsyncpa [#allocation12], 0 }
   0x4   :  { %17 = vsyncpa [#allocation15], 0  ;;  %s35_s29 = sshll.u32 %s8325_s1, 4  ;;  %s36_s29 = int_to_ptr.hbm [resolvable:$true] %s35_s29 }
   0x5   :  { %18 = vsyncpa [#allocation4], 0  ;;  %s8107_s30 = smov [#allocation5]   ;;  %s58_s12 = sshll.u32 %s8327_s3, 4  ;;  %s59_s12 = int_to_ptr.hbm [resolvable:$true] %s58_s12 }
   0x6   :  { %s37_s9 = sshll.u32 %s8107_s30, 4  ;;  %s8108_s13 = smov [#allocation8]   ;;  %s38_s9 = int_to_ptr.vmem [resolvable:$true] %s37_s9 }
   0x7   :  { %40 = dma.hbm_to_vmem [thread:$0]  %s36_s29, 128, %s38_s9, [#allocation6]  }
   0x8   :  { %s60_s14 = sshll.u32 %s8108_s13, 4  ;;  %s8109_s15 = smov 64   ;;  %s61_s14 = int_to_ptr.vmem [resolvable:$true] %s60_s14 }
   0x9   :  { %s8110_s16 = smov 4   ;;  %s84_s18 = sshll.u32 %s8329_s5, 4  ;;  %s85_s18 = int_to_ptr.hbm [resolvable:$true] %s84_s18 }
   0xa   :  { %66 = dma.hbm_to_vmem [thread:$0]  %s59_s12, 1024, %s61_s14, [#allocation9], %s8109_s15, %s8109_s15, %s8110_s16  }
   0xb   :  { %s8111_s19 = smov [#allocation11]   ;;  %s24_s22 = sshll.u32 %s8324_s0, 4  ;;  %s25_s22 = int_to_ptr.hbm [resolvable:$true] %s24_s22 }
   0xc   :  { %s86_s20 = sshll.u32 %s8111_s19, 4  ;;  %s8112_s23 = smov [#allocation2]   ;;  %s87_s20 = int_to_ptr.vmem [resolvable:$true] %s86_s20 }
   0xd   :  { %92 = dma.hbm_to_vmem [thread:$0]  %s85_s18, 32768, %s87_s20, [#allocation12], %s8109_s15, %s8109_s15, %s8110_s16  }
   0xe   :  { %s26_s24 = sshll.u32 %s8112_s23, 4  ;;  %s45_s27 = sshll.u32 %s8326_s2, 4  ;;  %s27_s24 = int_to_ptr.vmem [resolvable:$true] %s26_s24  ;;  %s46_s27 = int_to_ptr.hbm [resolvable:$true] %s45_s27 }
   0xf   :  { %29 = dma.hbm_to_vmem [thread:$0]  %s25_s22, 128, %s27_s24, [#allocation3]  }
  0x10   :  { %s8113_s5 = smov [#allocation7]   ;;  %s71_s0 = sshll.u32 %s8328_s4, 4  ;;  %s72_s0 = int_to_ptr.hbm [resolvable:$true] %s71_s0 }
  0x11   :  { %s47_s28 = sshll.u32 %s8113_s5, 4  ;;  %s8114_s9 = smov 128   ;;  %s48_s28 = int_to_ptr.vmem [resolvable:$true] %s47_s28 }
  0x12   :  { %s8115_s10 = smov 8   ;;  %s8116_s11 = smov [#allocation10]  }
  0x13   :  { %53 = dma.hbm_to_vmem [thread:$0]  %s46_s27, 2048, %s48_s28, [#allocation6], %s8114_s9, %s8114_s9, %s8115_s10  }
  0x14   :  { %s73_s12 = sshll.u32 %s8116_s11, 4  ;;  %s97_s2 = sshll.u32 %s8330_s6, 4  ;;  %s74_s12 = int_to_ptr.vmem [resolvable:$true] %s73_s12  ;;  %s98_s2 = int_to_ptr.hbm [resolvable:$true] %s97_s2 }
  0x15   :  { %s8117_s16 = smov 1024   ;;  %s8118_s1 = smov [#allocation13]  }
  0x16   :  { %79 = dma.hbm_to_vmem [thread:$0]  %s72_s0, 32768, %s74_s12, [#allocation9], %s8117_s16, %s8117_s16, %s8109_s15  }
  0x17   :  { %s99_s17 = sshll.u32 %s8118_s1, 4  ;;  %s111_s4 = sshll.u32 %s8331_s7, 4  ;;  %s100_s17 = int_to_ptr.vmem [resolvable:$true] %s99_s17  ;;  %s112_s4 = int_to_ptr.hbm [resolvable:$true] %s111_s4 }
  0x18   :  { %105 = dma.hbm_to_vmem [thread:$0]  %s98_s2, 384, %s100_s17, [#allocation12], %s8114_s9, %s8114_s9, %s8115_s10  }
  0x19   :  { %s8119_s20 = smov [#allocation14]  }
  0x1a   :  { %s113_s21 = sshll.u32 %s8119_s20, 4  ;;  %s114_s21 = int_to_ptr.vmem [resolvable:$true] %s113_s21 }
  0x1b   :  { %116 = dma.hbm_to_vmem [thread:$0]  %s112_s4, 512, %s114_s21, [#allocation15]  }
  0x1c   :  { %8095 = dma.done.wait [#allocation3], 128  }
  0x1d   :  { %8096 = vsyncadd [#allocation3], 4294967168 }
  0x1e   :  { %8097 = dma.done.wait [#allocation6], 2176  }
  0x1f   :  { %8098 = vsyncadd [#allocation6], 4294965120 }
  0x20   :  { %8099 = dma.done.wait [#allocation9], 33792  }
  0x21   :  { %8100 = vsyncadd [#allocation9], 4294933504 }
  0x22   :  { %8101 = dma.done.wait [#allocation12], 33152  }
  0x23   :  { %8102 = vsyncadd [#allocation12], 4294934144 }
  0x24   :  { %8103 = dma.done.wait [#allocation15], 512  }
  0x25   :  { %8104 = vsyncadd [#allocation15], 4294966784  ;;  %v5219_v0 = vld [vmem:[#allocation7 + $0x70] sm:$0xf]  ;;  %v7320_v1 = vld [vmem:[#allocation7 + $0x74] sm:$0xf0] }
  0x26   :  { %v5211_v2 = vld [vmem:[#allocation7 + $0x60] sm:$0xf]  ;;  %v5220_v3 = vor.u32 %v7320_v1, %v5219_v0  ;;  %v7318_v4 = vld [vmem:[#allocation7 + $0x64] sm:$0xf0]  ;;  %v5203_v6 = vld [vmem:[#allocation7 + $0x50] sm:$0xf] }
  0x27   :  { %v5212_v5 = vor.u32 %v7318_v4, %v5211_v2  ;;  %v7316_v7 = vld [vmem:[#allocation7 + $0x54] sm:$0xf0]  ;;  %v5195_v9 = vld [vmem:[#allocation7 + $0x40] sm:$0xf]  ;;  %v7314_v10 = vld [vmem:[#allocation7 + $0x44] sm:$0xf0] }
  0x28   :  { %255 = vmatpush.bf16.msra.mxu0 %v5220_v3  ;;  %v5204_v8 = vor.u32 %v7316_v7, %v5203_v6  ;;  %v5196_v11 = vor.u32 %v7314_v10, %v5195_v9  ;;  %v5187_v12 = vld [vmem:[#allocation7 + $0x30] sm:$0xf]  ;;  %v7312_v13 = vld [vmem:[#allocation7 + $0x34] sm:$0xf0]  ;;  %v5179_v15 = vld [vmem:[#allocation7 + $0x20] sm:$0xf] }
  0x29   :  { %v5188_v14 = vor.u32 %v7312_v13, %v5187_v12  ;;  %v7310_v16 = vld [vmem:[#allocation7 + $0x24] sm:$0xf0]  ;;  %v5171_v18 = vld [vmem:[#allocation7 + $0x10] sm:$0xf]  ;;  %v7308_v19 = vld [vmem:[#allocation7 + $0x14] sm:$0xf0] }
  0x2a   :  { %v5180_v17 = vor.u32 %v7310_v16, %v5179_v15  ;;  %v5172_v20 = vor.u32 %v7308_v19, %v5171_v18  ;;  %v5163_v21 = vld [vmem:[#allocation7] sm:$0xf]  ;;  %v7306_v22 = vld [vmem:[#allocation7 + $0x4] sm:$0xf0]  ;;  %v8196_v24 = vld [vmem:[#allocation5] sm:$0xff]  ;;  %v8120_v41 = vmov 128.0  }
  0x2b   :  { %v5164_v23 = vor.u32 %v7306_v22, %v5163_v21  ;;  %v8200_v25 = vpack.c.bf16 %v8196_v24, %v8196_v24  ;;  %v7319_v26 = vld [vmem:[#allocation7 + $0x74] sm:$0xf]  ;;  %v5221_v27 = vld [vmem:[#allocation7 + $0x78] sm:$0xf0]  ;;  %v7317_v28 = vld [vmem:[#allocation7 + $0x64] sm:$0xf]  ;;  %7856 = vrcp.f32 %v8120_v41 }
  0x2c   :  { %256 = vmatpush.bf16.msra.mxu0 %v5212_v5  ;;  %v5224_v29 = vor.u32 %v7319_v26, %v5221_v27  ;;  %v5213_v30 = vld [vmem:[#allocation7 + $0x68] sm:$0xf0]  ;;  %v8203_v32 = vld [vmem:[#allocation13] sm:$0xff]  ;;  %v7315_v38 = vld [vmem:[#allocation7 + $0x54] sm:$0xf]  ;;  %s8121_s6 = smov [#allocation16]  }
  0x2d   :  { %v5216_v31 = vor.u32 %v7317_v28, %v5213_v30  ;;  %v281_v33 = vperm.slane %v8203_v32, 0  ;;  %v5205_v39 = vld [vmem:[#allocation7 + $0x58] sm:$0xf0]  ;;  %v7313_v42 = vld [vmem:[#allocation7 + $0x44] sm:$0xf]  ;;  %s5145_s7 = sshll.u32 %s8121_s6, 4  ;;  %s5146_s7 = int_to_ptr.vmem [resolvable:$true] %s5145_s7 }
  0x2e   :  { %268 = vmatpush.bf16.msra.mxu1 %v5224_v29  ;;  %v5208_v40 = vor.u32 %v7315_v38, %v5205_v39  ;;  %v5197_v43 = vld [vmem:[#allocation7 + $0x48] sm:$0xf0]  ;;  %v7311_v45 = vld [vmem:[#allocation7 + $0x34] sm:$0xf]  ;;  %v5189_v46 = vld [vmem:[#allocation7 + $0x38] sm:$0xf0] }
  0x2f   :  { %v5200_v44 = vor.u32 %v7313_v42, %v5197_v43  ;;  %v5192_v47 = vor.u32 %v7311_v45, %v5189_v46  ;;  %v7309_v48 = vld [vmem:[#allocation7 + $0x24] sm:$0xf]  ;;  %v5181_v49 = vld [vmem:[#allocation7 + $0x28] sm:$0xf0]  ;;  %v7307_v51 = vld [vmem:[#allocation7 + $0x14] sm:$0xf] }
  0x30   :  { %257 = vmatpush.bf16.msra.mxu0 %v5204_v8  ;;  %v5173_v52 = vld [vmem:[#allocation7 + $0x18] sm:$0xf0]  ;;  %v5184_v53 = vor.u32 %v7309_v48, %v5181_v49  ;;  %v5675_v54 = vld [vmem:[#allocation10 + $0x380] sm:$0xf]  ;;  %v7433_v56 = vld [vmem:[#allocation10 + $0x384] sm:$0xf] }
  0x31   :  { %v8210_v50 = vpop.eup %7856  ;;  %v7441_v55 = vld [vmem:[#allocation10 + $0x3bc] sm:$0xf0]  ;;  %v5677_v58 = vld [vmem:[#allocation10 + $0x3c0] sm:$0xf0]  ;;  %v5683_v59 = vld [vmem:[#allocation10 + $0x388] sm:$0xf]  ;;  %v5176_v6 = vor.u32 %v7307_v51, %v5173_v52 }
  0x32   :  { %269 = vmatpush.bf16.msra.mxu1 %v5216_v31  ;;  %v5676_v57 = vor.u32 %v7441_v55, %v5675_v54  ;;  %v7442_v60 = vld [vmem:[#allocation10 + $0x3c4] sm:$0xf0]  ;;  %v289_v61 = vmul.f32 128.0, %v8210_v50  ;;  %v5680_v62 = vor.u32 %v7433_v56, %v5677_v58  ;;  %v5611_v0 = vld [vmem:[#allocation10 + $0x300] sm:$0xf]  ;;  %vm293_vm0 = vweird.f32 %v8210_v50  ;;  %s5147_s22 = sshll.u32 %s8332_s8, 4  ;;  %s5148_s22 = int_to_ptr.hbm [resolvable:$true] %s5147_s22 }
  0x33   :  { %v5684_v63 = vor.u32 %v7442_v60, %v5683_v59  ;;  %v7305_v1 = vld [vmem:[#allocation7 + $0x4] sm:$0xf]  ;;  %v5165_v2 = vld [vmem:[#allocation7 + $0x8] sm:$0xf0]  ;;  %v7425_v3 = vld [vmem:[#allocation10 + $0x33c] sm:$0xf0] }
  0x34   :  { %258 = vmatpush.bf16.msra.mxu0 %v5196_v11  ;;  %1138 = vmatpush.bf16.msra.mxu2 %v5676_v57  ;;  %v7417_v4 = vld [vmem:[#allocation10 + $0x304] sm:$0xf]  ;;  %v7434_v7 = vld [vmem:[#allocation10 + $0x38c] sm:$0xf]  ;;  %v5612_v8 = vor.u32 %v7425_v3, %v5611_v0  ;;  %v5619_v10 = vld [vmem:[#allocation10 + $0x308] sm:$0xf]  ;;  %v5168_v22 = vor.u32 %v7305_v1, %v5165_v2 }
  0x35   :  { %v5613_v5 = vld [vmem:[#allocation10 + $0x340] sm:$0xf0]  ;;  %1151 = vmatpush.bf16.msra.mxu3 %v5680_v62  ;;  %v7426_v11 = vld [vmem:[#allocation10 + $0x344] sm:$0xf0]  ;;  %v5685_v12 = vld [vmem:[#allocation10 + $0x3c8] sm:$0xf0] }
  0x36   :  { %270 = vmatpush.bf16.msra.mxu1 %v5208_v40  ;;  %v5616_v9 = vor.u32 %v7417_v4, %v5613_v5  ;;  %v5620_v13 = vor.u32 %v7426_v11, %v5619_v10  ;;  %v7409_v15 = vld [vmem:[#allocation10 + $0x2bc] sm:$0xf0]  ;;  %v7401_v16 = vld [vmem:[#allocation10 + $0x284] sm:$0xf]  ;;  %v5555_v18 = vld [vmem:[#allocation10 + $0x288] sm:$0xf]  ;;  %v5688_v28 = vor.u32 %v7434_v7, %v5685_v12 }
  0x37   :  { %v290_v21 = vsub.f32 1.0, %v289_v61  ;;  %v5483_v26 = vld [vmem:[#allocation10 + $0x200] sm:$0xf]  ;;  %v7418_v29 = vld [vmem:[#allocation10 + $0x30c] sm:$0xf] }
  0x38   :  { %259 = vmatpush.bf16.msra.mxu0 %v5188_v14  ;;  %v5547_v14 = vld [vmem:[#allocation10 + $0x280] sm:$0xf]  ;;  %1139 = vmatpush.bf16.msra.mxu2 %v5612_v8  ;;  %v7385_v31 = vld [vmem:[#allocation10 + $0x204] sm:$0xf]  ;;  %v5557_v48 = vld [vmem:[#allocation10 + $0x2c8] sm:$0xf0] }
  0x39   :  { %v5548_v19 = vor.u32 %v7409_v15, %v5547_v14  ;;  %1152 = vmatpush.bf16.msra.mxu3 %v5616_v9  ;;  %v7393_v27 = vld [vmem:[#allocation10 + $0x23c] sm:$0xf0]  ;;  %v291_v42 = vmul.f32 %v8210_v50, %v290_v21  ;;  %v7369_v46 = vld [vmem:[#allocation10 + $0x184] sm:$0xf]  ;;  %v5427_v49 = vld [vmem:[#allocation10 + $0x188] sm:$0xf] }
  0x3a   :  { %271 = vmatpush.bf16.msra.mxu1 %v5200_v44  ;;  %v5484_v38 = vor.u32 %v7393_v27, %v5483_v26  ;;  %v5419_v40 = vld [vmem:[#allocation10 + $0x180] sm:$0xf]  ;;  %v7402_v44 = vld [vmem:[#allocation10 + $0x28c] sm:$0xf]  ;;  %v7378_v51 = vld [vmem:[#allocation10 + $0x1c4] sm:$0xf0] }
  0x3b   :  { %v7377_v41 = vld [vmem:[#allocation10 + $0x1bc] sm:$0xf0]  ;;  %v292_v56 = vadd.f32 %v8210_v50, %v291_v42  ;;  %v5560_v57 = vor.u32 %v7402_v44, %v5557_v48  ;;  %v7386_v58 = vld [vmem:[#allocation10 + $0x20c] sm:$0xf]  ;;  %v5428_v59 = vor.u32 %v7378_v51, %v5427_v49  ;;  %v7353_v60 = vld [vmem:[#allocation10 + $0x104] sm:$0xf] }
  0x3c   :  { %260 = vmatpush.bf16.msra.mxu0 %v5180_v17  ;;  %v5549_v17 = vld [vmem:[#allocation10 + $0x2c0] sm:$0xf0]  ;;  %1140 = vmatpush.bf16.msra.mxu2 %v5548_v19  ;;  %v5420_v52 = vor.u32 %v7377_v41, %v5419_v40  ;;  %v5355_v54 = vld [vmem:[#allocation10 + $0x100] sm:$0xf]  ;;  %v5493_v62 = vld [vmem:[#allocation10 + $0x248] sm:$0xf0] }
  0x3d   :  { %v7361_v55 = vld [vmem:[#allocation10 + $0x13c] sm:$0xf0]  ;;  %v5357_v61 = vld [vmem:[#allocation10 + $0x140] sm:$0xf0]  ;;  %v8218_v4 = vsel %vm293_vm0, %v8210_v50, %v292_v56  ;;  %v5496_v5 = vor.u32 %v7386_v58, %v5493_v62  ;;  %v5429_v10 = vld [vmem:[#allocation10 + $0x1c8] sm:$0xf0] }
  0x3e   :  { %272 = vmatpush.bf16.msra.mxu1 %v5192_v47  ;;  %v5421_v47 = vld [vmem:[#allocation10 + $0x1c0] sm:$0xf0]  ;;  %v5356_v0 = vor.u32 %v7361_v55, %v5355_v54  ;;  %v5360_v1 = vor.u32 %v7353_v60, %v5357_v61  ;;  %v5291_v2 = vld [vmem:[#allocation10 + $0x80] sm:$0xf]  ;;  %v5299_v11 = vld [vmem:[#allocation10 + $0x88] sm:$0xf] }
  0x3f   :  { %v7345_v3 = vld [vmem:[#allocation10 + $0xbc] sm:$0xf0]  ;;  %v7337_v8 = vld [vmem:[#allocation10 + $0x84] sm:$0xf]  ;;  %v7346_v12 = vld [vmem:[#allocation10 + $0xc4] sm:$0xf0] }
  0x40   :  { %261 = vmatpush.bf16.msra.mxu0 %v5172_v20  ;;  %v7410_v20 = vld [vmem:[#allocation10 + $0x2c4] sm:$0xf0]  ;;  %1141 = vmatpush.bf16.msra.mxu2 %v5484_v38  ;;  %v5293_v9 = vld [vmem:[#allocation10 + $0xc0] sm:$0xf0]  ;;  %v5292_v14 = vor.u32 %v7345_v3, %v5291_v2  ;;  %v7354_v19 = vld [vmem:[#allocation10 + $0x10c] sm:$0xf] }
  0x41   :  { %v5556_v30 = vor.u32 %v7410_v20, %v5555_v18  ;;  %v5365_v20 = vld [vmem:[#allocation10 + $0x148] sm:$0xf0]  ;;  %v5691_v40 = vld [vmem:[#allocation10 + $0x390] sm:$0xf]  ;;  %v5693_v44 = vld [vmem:[#allocation10 + $0x3d0] sm:$0xf0] }
  0x42   :  { %273 = vmatpush.bf16.msra.mxu1 %v5184_v53  ;;  %v5424_v53 = vor.u32 %v7369_v46, %v5421_v47  ;;  %v5301_v26 = vld [vmem:[#allocation10 + $0xc8] sm:$0xf0]  ;;  %v7443_v42 = vld [vmem:[#allocation10 + $0x3cc] sm:$0xf0]  ;;  %v5699_v47 = vld [vmem:[#allocation10 + $0x398] sm:$0xf] }
  0x43   :  { %v7322_v38 = vld [vmem:[#allocation10 + $0xc] sm:$0xf]  ;;  %v7444_v48 = vld [vmem:[#allocation10 + $0x3d4] sm:$0xf0]  ;;  %v7436_v49 = vld [vmem:[#allocation10 + $0x39c] sm:$0xf] }
  0x44   :  { %262 = vmatpush.bf16.msra.mxu0 %v5164_v23  ;;  %v5552_v23 = vor.u32 %v7401_v16, %v5549_v17  ;;  %1142 = vmatpush.bf16.msra.mxu2 %v5420_v52  ;;  %v5296_v16 = vor.u32 %v7337_v8, %v5293_v9  ;;  %v5300_v17 = vor.u32 %v7346_v12, %v5299_v11  ;;  %v5701_v52 = vld [vmem:[#allocation10 + $0x3d8] sm:$0xf0]  ;;  %v7427_v54 = vld [vmem:[#allocation10 + $0x34c] sm:$0xf0]  ;;  %v5629_v58 = vld [vmem:[#allocation10 + $0x350] sm:$0xf0] }
  0x45   :  { %v5700_v51 = vor.u32 %v7444_v48, %v5699_v47  ;;  %v5704_v55 = vor.u32 %v7436_v49, %v5701_v52  ;;  %v7428_v61 = vld [vmem:[#allocation10 + $0x354] sm:$0xf0]  ;;  %v7420_v62 = vld [vmem:[#allocation10 + $0x31c] sm:$0xf]  ;;  %v7411_v2 = vld [vmem:[#allocation10 + $0x2cc] sm:$0xf0] }
  0x46   :  { %274 = vmatpush.bf16.msra.mxu1 %v5176_v6  ;;  %1153 = vmatpush.bf16.msra.mxu3 %v5552_v23  ;;  %v7370_v6 = vld [vmem:[#allocation10 + $0x18c] sm:$0xf]  ;;  %v7403_v3 = vld [vmem:[#allocation10 + $0x294] sm:$0xf]  ;;  %v7412_v8 = vld [vmem:[#allocation10 + $0x2d4] sm:$0xf0] }
  0x47   :  { %263 = vmatmul.bf16.vlgmr.msra.gmra.mxu0 %v8200_v25  ;;  %v5432_v50 = vor.u32 %v7370_v6, %v5429_v10  ;;  %v7338_v23 = vld [vmem:[#allocation10 + $0x8c] sm:$0xf]  ;;  %v5565_v6 = vld [vmem:[#allocation10 + $0x2d0] sm:$0xf0]  ;;  %v7404_v11 = vld [vmem:[#allocation10 + $0x29c] sm:$0xf] }
  0x48   :  { %1164 = vmatpush.bf16.msrb.mxu0 %v5684_v63  ;;  %v5363_v63 = vld [vmem:[#allocation10 + $0x108] sm:$0xf]  ;;  %1143 = vmatpush.bf16.msra.mxu2 %v5356_v0  ;;  %v5304_v27 = vor.u32 %v7338_v23, %v5301_v26  ;;  %v5568_v9 = vor.u32 %v7403_v3, %v5565_v6  ;;  %v5573_v12 = vld [vmem:[#allocation10 + $0x2d8] sm:$0xf0]  ;;  %v7364_v47 = vld [vmem:[#allocation10 + $0x154] sm:$0xf0] }
  0x49   :  { %v7388_v23 = vld [vmem:[#allocation10 + $0x21c] sm:$0xf]  ;;  %v7331_v6 = vld [vmem:[#allocation10 + $0x4c] sm:$0xf0] }
  0x4a   :  { %275 = vmatpush.bf16.msra.mxu1 %v5168_v22  ;;  %v5368_v22 = vor.u32 %v7354_v19, %v5365_v20  ;;  %v5507_v19 = vld [vmem:[#allocation10 + $0x218] sm:$0xf]  ;;  %v5509_v26 = vld [vmem:[#allocation10 + $0x258] sm:$0xf0] }
  0x4b   :  { %v7396_v20 = vld [vmem:[#allocation10 + $0x254] sm:$0xf0]  ;;  %v5381_v52 = vld [vmem:[#allocation10 + $0x158] sm:$0xf0] }
  0x4c   :  { %1165 = vmatpush.bf16.msrb.mxu0 %v5620_v13  ;;  %1144 = vmatpush.bf16.msra.mxu2 %v5292_v14  ;;  %v5499_v14 = vld [vmem:[#allocation10 + $0x210] sm:$0xf] }
  0x4d   :  { %276 = vmatmul.bf16.vlgmr.msra.gmra.mxu1 %v8200_v25  ;;  %v7362_v25 = vld [vmem:[#allocation10 + $0x144] sm:$0xf0] }
  0x4e   :  { %1177 = vmatpush.bf16.msrb.mxu1 %v5688_v28  ;;  %v5364_v7 = vor.u32 %v7362_v25, %v5363_v63  ;;  %v5227_v28 = vld [vmem:[#allocation10] sm:$0xf]  ;;  %v5637_v63 = vld [vmem:[#allocation10 + $0x358] sm:$0xf0] }
  0x4f   :  { %v5640_v0 = vor.u32 %v7420_v62, %v5637_v63  ;;  %v7340_v63 = vld [vmem:[#allocation10 + $0x9c] sm:$0xf] }
  0x50   :  { %1166 = vmatpush.bf16.msrb.mxu0 %v5556_v30 }
  0xc4   :  { %v264_v34 = vpop.f32.mrf.mxu0 }
  0xc5   :  { %v282_v35 = vadd.f32 %v281_v33, %v264_v34  ;;  %v5485_v33 = vld [vmem:[#allocation10 + $0x240] sm:$0xf0]  ;;  %v5621_v34 = vld [vmem:[#allocation10 + $0x348] sm:$0xf0] }
  0xc6   :  { %v5488_v39 = vor.u32 %v7385_v31, %v5485_v33  ;;  %v5624_v43 = vor.u32 %v7418_v29, %v5621_v34  ;;  %v7329_v29 = vld [vmem:[#allocation10 + $0x3c] sm:$0xf0]  ;;  %v5229_v31 = vld [vmem:[#allocation10 + $0x40] sm:$0xf0]  ;;  %v5235_v33 = vld [vmem:[#allocation10 + $0x8] sm:$0xf] }
  0xc7   :  { %v8207_v36 = vadd.f32 %v282_v35, %v8196_v24  ;;  %v5491_v35 = vld [vmem:[#allocation10 + $0x208] sm:$0xf]  ;;  %v5228_v30 = vor.u32 %v7329_v29, %v5227_v28  ;;  %v5435_v28 = vld [vmem:[#allocation10 + $0x190] sm:$0xf] }
  0xc8   :  { %1154 = vmatpush.bf16.msra.mxu3 %v5488_v39  ;;  %1178 = vmatpush.bf16.msrb.mxu1 %v5624_v43  ;;  %v7330_v34 = vld [vmem:[#allocation10 + $0x44] sm:$0xf0]  ;;  %v5237_v39 = vld [vmem:[#allocation10 + $0x48] sm:$0xf0]  ;;  %v7435_v43 = vld [vmem:[#allocation10 + $0x394] sm:$0xf] }
  0xc9   :  { %286 = vadd.xlane.f32.xlu0 %v8207_v36  ;;  %1145 = vmatpush.bf16.msra.mxu2 %v5228_v30  ;;  %v5240_v41 = vor.u32 %v7322_v38, %v5237_v39  ;;  %v5696_v46 = vor.u32 %v7435_v43, %v5693_v44  ;;  %v7379_v29 = vld [vmem:[#allocation10 + $0x1cc] sm:$0xf0]  ;;  %v7372_v38 = vld [vmem:[#allocation10 + $0x19c] sm:$0xf]  ;;  %v7355_v43 = vld [vmem:[#allocation10 + $0x114] sm:$0xf] }
  0xca   :  { %v5436_v30 = vor.u32 %v7379_v29, %v5435_v28  ;;  %v5445_v39 = vld [vmem:[#allocation10 + $0x1d8] sm:$0xf0]  ;;  %v277_v3 = vpop.f32.mrf.mxu1 }
  0xcc   :  { %v266_v37 = vpop.f32.mrf.mxu0  ;;  %1155 = vmatpush.bf16.msra.mxu3 %v5424_v53  ;;  %1179 = vmatpush.bf16.msrb.mxu1 %v5560_v57  ;;  %v5627_v53 = vld [vmem:[#allocation10 + $0x310] sm:$0xf]  ;;  %v7419_v57 = vld [vmem:[#allocation10 + $0x314] sm:$0xf] }
  0xcd   :  { %v7394_v37 = vld [vmem:[#allocation10 + $0x244] sm:$0xf0]  ;;  %v5628_v56 = vor.u32 %v7427_v54, %v5627_v53  ;;  %v5632_v60 = vor.u32 %v7419_v57, %v5629_v58  ;;  %v5307_v54 = vld [vmem:[#allocation10 + $0x90] sm:$0xf]  ;;  %v5309_v58 = vld [vmem:[#allocation10 + $0xd0] sm:$0xf0] }
  0xce   :  { %v5492_v45 = vor.u32 %v7394_v37, %v5491_v35  ;;  %v5236_v37 = vor.u32 %v7330_v34, %v5235_v33  ;;  %v5443_v33 = vld [vmem:[#allocation10 + $0x198] sm:$0xf] }
  0xcf   :  { %v7380_v34 = vld [vmem:[#allocation10 + $0x1d4] sm:$0xf0] }
  0xd0   :  { %1167 = vmatpush.bf16.msrb.mxu0 %v5492_v45  ;;  %1156 = vmatpush.bf16.msra.mxu3 %v5360_v1  ;;  %v5692_v45 = vor.u32 %v7443_v42, %v5691_v40  ;;  %v5563_v1 = vld [vmem:[#allocation10 + $0x290] sm:$0xf]  ;;  %v5448_v40 = vor.u32 %v7372_v38, %v5445_v39  ;;  %v7437_v38 = vld [vmem:[#allocation10 + $0x3a4] sm:$0xf] }
  0xd1   :  { %1180 = vmatpush.bf16.msrb.mxu1 %v5496_v5  ;;  %v5564_v5 = vor.u32 %v7411_v2, %v5563_v1  ;;  %v7363_v42 = vld [vmem:[#allocation10 + $0x14c] sm:$0xf0]  ;;  %v5709_v39 = vld [vmem:[#allocation10 + $0x3e0] sm:$0xf0] }
  0xd2   :  { %1190 = vmatpush.bf16.msrb.mxu2 %v5692_v45  ;;  %v5373_v45 = vld [vmem:[#allocation10 + $0x150] sm:$0xf0] }
  0xd3   :  { %v5376_v48 = vor.u32 %v7355_v43, %v5373_v45  ;;  %v7438_v43 = vld [vmem:[#allocation10 + $0x3ac] sm:$0xf] }
  0xd4   :  { %1168 = vmatpush.bf16.msrb.mxu0 %v5428_v59  ;;  %1157 = vmatpush.bf16.msra.mxu3 %v5296_v16  ;;  %v5635_v59 = vld [vmem:[#allocation10 + $0x318] sm:$0xf]  ;;  %v7387_v16 = vld [vmem:[#allocation10 + $0x214] sm:$0xf] }
  0xd5   :  { %1181 = vmatpush.bf16.msrb.mxu1 %v5432_v50  ;;  %v5636_v25 = vor.u32 %v7428_v61, %v5635_v59  ;;  %v5315_v59 = vld [vmem:[#allocation10 + $0x98] sm:$0xf] }
  0xd6   :  { %1191 = vmatpush.bf16.msrb.mxu2 %v5628_v56  ;;  %v7339_v56 = vld [vmem:[#allocation10 + $0x94] sm:$0xf] }
  0xd7   :  { %v5312_v61 = vor.u32 %v7339_v56, %v5309_v58  ;;  %v5653_v56 = vld [vmem:[#allocation10 + $0x368] sm:$0xf0] }
  0xd8   :  { %1169 = vmatpush.bf16.msrb.mxu0 %v5364_v7  ;;  %v5571_v7 = vld [vmem:[#allocation10 + $0x298] sm:$0xf] }
  0xd9   :  { %1182 = vmatpush.bf16.msrb.mxu1 %v5368_v22  ;;  %v5572_v10 = vor.u32 %v7412_v8, %v5571_v7  ;;  %v5508_v22 = vor.u32 %v7396_v20, %v5507_v19  ;;  %v7323_v7 = vld [vmem:[#allocation10 + $0x14] sm:$0xf] }
  0xda   :  { %1192 = vmatpush.bf16.msrb.mxu2 %v5564_v5  ;;  %v5243_v5 = vld [vmem:[#allocation10 + $0x10] sm:$0xf] }
  0xdb   :  { %v5244_v8 = vor.u32 %v7331_v6, %v5243_v5 }
  0xdc   :  { %1170 = vmatpush.bf16.msrb.mxu0 %v5300_v17  ;;  %v5501_v17 = vld [vmem:[#allocation10 + $0x250] sm:$0xf0] }
  0xdd   :  { %1183 = vmatpush.bf16.msrb.mxu1 %v5304_v27  ;;  %v5512_v27 = vor.u32 %v7388_v23, %v5509_v26 }
  0xe0   :  { %1171 = vmatpush.bf16.msrb.mxu0 %v5236_v37  ;;  %v5444_v37 = vor.u32 %v7380_v34, %v5443_v33 }
  0xe1   :  { %1184 = vmatpush.bf16.msrb.mxu1 %v5240_v41  ;;  %v5371_v41 = vld [vmem:[#allocation10 + $0x110] sm:$0xf] }
  0xe2   :  { %v5372_v44 = vor.u32 %v7363_v42, %v5371_v41  ;;  %v7446_v42 = vld [vmem:[#allocation10 + $0x3e4] sm:$0xf0] }
  0xe4   :  { %1216 = vmatpush.bf16.msra.mxu0 %v5700_v51  ;;  %v7356_v51 = vld [vmem:[#allocation10 + $0x11c] sm:$0xf] }
  0xe5   :  { %1229 = vmatpush.bf16.msra.mxu1 %v5704_v55  ;;  %v5384_v53 = vor.u32 %v7356_v51, %v5381_v52  ;;  %v7347_v55 = vld [vmem:[#allocation10 + $0xcc] sm:$0xf0]  ;;  %v7421_v51 = vld [vmem:[#allocation10 + $0x324] sm:$0xf] }
  0xe6   :  { %v5308_v57 = vor.u32 %v7347_v55, %v5307_v54  ;;  %v5645_v52 = vld [vmem:[#allocation10 + $0x360] sm:$0xf0]  ;;  %v7430_v54 = vld [vmem:[#allocation10 + $0x364] sm:$0xf0]  ;;  %v7422_v55 = vld [vmem:[#allocation10 + $0x32c] sm:$0xf] }
  0xe7   :  { %v5648_v58 = vor.u32 %v7421_v51, %v5645_v52  ;;  %v7341_v51 = vld [vmem:[#allocation10 + $0xa4] sm:$0xf] }
  0xe8   :  { %1217 = vmatpush.bf16.msra.mxu0 %v5636_v25  ;;  %v5317_v25 = vld [vmem:[#allocation10 + $0xd8] sm:$0xf0]  ;;  %v5325_v52 = vld [vmem:[#allocation10 + $0xe0] sm:$0xf0] }
  0xe9   :  { %1230 = vmatpush.bf16.msra.mxu1 %v5640_v0  ;;  %v152_v0 = vld [vmem:[#allocation13 + $0x8] sm:$0xff]  ;;  %v5320_v1 = vor.u32 %v7340_v63, %v5317_v25  ;;  %v7405_v63 = vld [vmem:[#allocation10 + $0x2a4] sm:$0xf] }
  0xea   :  { %v283_v2 = vperm.slane %v152_v0, 0  ;;  %v5581_v25 = vld [vmem:[#allocation10 + $0x2e0] sm:$0xf0]  ;;  %v5587_v0 = vld [vmem:[#allocation10 + $0x2a8] sm:$0xf] }
  0xeb   :  { %v5584_v6 = vor.u32 %v7405_v63, %v5581_v25 }
  0xec   :  { %1218 = vmatpush.bf16.msra.mxu0 %v5572_v10  ;;  %v5251_v10 = vld [vmem:[#allocation10 + $0x18] sm:$0xf] }
  0xf0   :  { %1219 = vmatpush.bf16.msra.mxu0 %v5508_v22  ;;  %v279_v22 = vpop.f32.mrf.mxu1 }
  0xf4   :  { %1220 = vmatpush.bf16.msra.mxu0 %v5444_v37  ;;  %v7445_v37 = vld [vmem:[#allocation10 + $0x3dc] sm:$0xf0] }
 0x13c   :  { %v287_v13 = vpop.xlane.xlu0 %286 }
 0x13d   :  { %v295_v15 = vmul.f32 %v8218_v4, %v287_v13  ;;  %v5576_v13 = vor.u32 %v7404_v11, %v5573_v12  ;;  %v7332_v11 = vld [vmem:[#allocation10 + $0x54] sm:$0xf0]  ;;  %v284_v12 = vadd.f32 %v283_v2, %v277_v3  ;;  %v7406_v2 = vld [vmem:[#allocation10 + $0x2ac] sm:$0xf] }
 0x13e   :  { %v5589_v3 = vld [vmem:[#allocation10 + $0x2e8] sm:$0xf0] }
 0x13f   :  { %v8222_v18 = vsub.f32 %v8207_v36, %v295_v15  ;;  %v7321_v36 = vld [vmem:[#allocation10 + $0x4] sm:$0xf]  ;;  %v7395_v15 = vld [vmem:[#allocation10 + $0x24c] sm:$0xf0]  ;;  %1231 = vmatpush.bf16.msra.mxu1 %v5576_v13  ;;  %v8228_v20 = vadd.f32 %v284_v12, %v8196_v24  ;;  %v315_v24 = vperm.slane %v8203_v32, 3 }
 0x140   :  { %v5232_v35 = vor.u32 %v7321_v36, %v5229_v31  ;;  %v5500_v50 = vor.u32 %v7395_v15, %v5499_v14  ;;  %v7371_v36 = vld [vmem:[#allocation10 + $0x194] sm:$0xf]  ;;  %v5252_v14 = vor.u32 %v7332_v11, %v5251_v10  ;;  %v7324_v15 = vld [vmem:[#allocation10 + $0x1c] sm:$0xf]  ;;  %v5592_v10 = vor.u32 %v7406_v2, %v5589_v3  ;;  %v7389_v11 = vld [vmem:[#allocation10 + $0x224] sm:$0xf] }
 0x141   :  { %v297_v21 = vmul.f32 %v8222_v18, %v8222_v18  ;;  %v5437_v31 = vld [vmem:[#allocation10 + $0x1d0] sm:$0xf0]  ;;  %v5517_v12 = vld [vmem:[#allocation10 + $0x260] sm:$0xf0]  ;;  %v7326_v2 = vld [vmem:[#allocation10 + $0x2c] sm:$0xf] }
 0x142   :  { %1158 = vmatpush.bf16.msra.mxu3 %v5232_v35  ;;  %1193 = vmatpush.bf16.msrb.mxu2 %v5500_v50  ;;  %v5440_v35 = vor.u32 %v7371_v36, %v5437_v31  ;;  %v5269_v3 = vld [vmem:[#allocation10 + $0x68] sm:$0xf0] }
 0x143   :  { %298 = vadd.xlane.f32.xlu0 %v297_v21  ;;  %v5504_v21 = vor.u32 %v7387_v16, %v5501_v17  ;;  %1232 = vmatpush.bf16.msra.mxu1 %v5512_v27  ;;  %v5253_v16 = vld [vmem:[#allocation10 + $0x58] sm:$0xf0] }
 0x144   :  { %v5256_v50 = vor.u32 %v7324_v15, %v5253_v16  ;;  %v7390_v15 = vld [vmem:[#allocation10 + $0x22c] sm:$0xf] }
 0x145   :  { %v5525_v16 = vld [vmem:[#allocation10 + $0x268] sm:$0xf0] }
 0x146   :  { %1203 = vmatpush.bf16.msrb.mxu3 %v5696_v46  ;;  %1194 = vmatpush.bf16.msrb.mxu2 %v5436_v30  ;;  %v5379_v46 = vld [vmem:[#allocation10 + $0x118] sm:$0xf]  ;;  %v313_v30 = vperm.slane %v8203_v32, 2  ;;  %v5643_v32 = vld [vmem:[#allocation10 + $0x320] sm:$0xf] }
 0x147   :  { %v5380_v49 = vor.u32 %v7364_v47, %v5379_v46  ;;  %1233 = vmatpush.bf16.msra.mxu1 %v5448_v40  ;;  %v5715_v40 = vld [vmem:[#allocation10 + $0x3a8] sm:$0xf]  ;;  %v5712_v47 = vor.u32 %v7437_v38, %v5709_v39  ;;  %v7357_v38 = vld [vmem:[#allocation10 + $0x124] sm:$0xf] }
 0x148   :  { %v5389_v39 = vld [vmem:[#allocation10 + $0x160] sm:$0xf0] }
 0x149   :  { %1221 = vmatpush.bf16.msra.mxu0 %v5380_v49 }
 0x14a   :  { %1204 = vmatpush.bf16.msrb.mxu3 %v5632_v60  ;;  %1195 = vmatpush.bf16.msrb.mxu2 %v5372_v44  ;;  %v7348_v60 = vld [vmem:[#allocation10 + $0xd4] sm:$0xf0]  ;;  %v5717_v44 = vld [vmem:[#allocation10 + $0x3e8] sm:$0xf0] }
 0x14b   :  { %v5316_v62 = vor.u32 %v7348_v60, %v5315_v59  ;;  %1234 = vmatpush.bf16.msra.mxu1 %v5384_v53  ;;  %2661 = vadd.xlane.f32.xlu0 %v8228_v20  ;;  %v5720_v49 = vor.u32 %v7438_v43, %v5717_v44  ;;  %v5651_v53 = vld [vmem:[#allocation10 + $0x328] sm:$0xf]  ;;  %v5579_v59 = vld [vmem:[#allocation10 + $0x2a0] sm:$0xf]  ;;  %v7358_v43 = vld [vmem:[#allocation10 + $0x12c] sm:$0xf] }
 0x14c   :  { %v7413_v60 = vld [vmem:[#allocation10 + $0x2dc] sm:$0xf0]  ;;  %v5397_v44 = vld [vmem:[#allocation10 + $0x168] sm:$0xf0] }
 0x14d   :  { %1222 = vmatpush.bf16.msra.mxu0 %v5316_v62  ;;  %v5656_v62 = vor.u32 %v7422_v55, %v5653_v56  ;;  %v5580_v5 = vor.u32 %v7413_v60, %v5579_v59  ;;  %v7342_v55 = vld [vmem:[#allocation10 + $0xac] sm:$0xf]  ;;  %v5328_v59 = vor.u32 %v7341_v51, %v5325_v52  ;;  %v7333_v60 = vld [vmem:[#allocation10 + $0x5c] sm:$0xf0]  ;;  %v7391_v51 = vld [vmem:[#allocation10 + $0x234] sm:$0xf] }
 0x14e   :  { %1205 = vmatpush.bf16.msrb.mxu3 %v5568_v9  ;;  %1196 = vmatpush.bf16.msrb.mxu2 %v5308_v57  ;;  %v5245_v9 = vld [vmem:[#allocation10 + $0x50] sm:$0xf0]  ;;  %v5333_v56 = vld [vmem:[#allocation10 + $0xe8] sm:$0xf0] }
 0x14f   :  { %v5248_v13 = vor.u32 %v7323_v7, %v5245_v9  ;;  %1235 = vmatpush.bf16.msra.mxu1 %v5320_v1  ;;  %v7414_v1 = vld [vmem:[#allocation10 + $0x2e4] sm:$0xf0]  ;;  %v5515_v7 = vld [vmem:[#allocation10 + $0x220] sm:$0xf]  ;;  %v5336_v25 = vor.u32 %v7342_v55, %v5333_v56  ;;  %v5533_v52 = vld [vmem:[#allocation10 + $0x270] sm:$0xf0] }
 0x150   :  { %v5588_v9 = vor.u32 %v7414_v1, %v5587_v0  ;;  %v5267_v0 = vld [vmem:[#allocation10 + $0x28] sm:$0xf]  ;;  %v7392_v55 = vld [vmem:[#allocation10 + $0x23c] sm:$0xf] }
 0x151   :  { %1223 = vmatpush.bf16.msra.mxu0 %v5252_v14  ;;  %v7398_v14 = vld [vmem:[#allocation10 + $0x264] sm:$0xf0]  ;;  %v5541_v56 = vld [vmem:[#allocation10 + $0x278] sm:$0xf0] }
 0x152   :  { %1206 = vmatpush.bf16.msrb.mxu3 %v5504_v21  ;;  %1197 = vmatpush.bf16.msrb.mxu2 %v5244_v8  ;;  %v7397_v8 = vld [vmem:[#allocation10 + $0x25c] sm:$0xf0]  ;;  %v7334_v1 = vld [vmem:[#allocation10 + $0x64] sm:$0xf0] }
 0x153   :  { %1236 = vmatpush.bf16.msra.mxu1 %v5256_v50  ;;  %v5516_v50 = vor.u32 %v7397_v8, %v5515_v7  ;;  %v7439_v7 = vld [vmem:[#allocation10 + $0x3b4] sm:$0xf] }
 0x154   :  { %v5725_v8 = vld [vmem:[#allocation10 + $0x3f0] sm:$0xf0] }
 0x156   :  { %1207 = vmatpush.bf16.msrb.mxu3 %v5440_v35  ;;  %v5707_v35 = vld [vmem:[#allocation10 + $0x3a0] sm:$0xf] }
 0x157   :  { %v5708_v46 = vor.u32 %v7445_v37, %v5707_v35 }
 0x15a   :  { %1208 = vmatpush.bf16.msrb.mxu3 %v5376_v48  ;;  %v7429_v48 = vld [vmem:[#allocation10 + $0x35c] sm:$0xf0] }
 0x15b   :  { %v5644_v57 = vor.u32 %v7429_v48, %v5643_v32  ;;  %v5323_v32 = vld [vmem:[#allocation10 + $0xa0] sm:$0xf] }
 0x15c   :  { %v7349_v48 = vld [vmem:[#allocation10 + $0xdc] sm:$0xf0] }
 0x15e   :  { %1209 = vmatpush.bf16.msrb.mxu3 %v5312_v61  ;;  %v5652_v61 = vor.u32 %v7430_v54, %v5651_v53  ;;  %v5331_v53 = vld [vmem:[#allocation10 + $0xa8] sm:$0xf] }
 0x15f   :  { %v7350_v54 = vld [vmem:[#allocation10 + $0xe4] sm:$0xf0] }
 0x160   :  { %v5332_v63 = vor.u32 %v7350_v54, %v5331_v53  ;;  %v5539_v53 = vld [vmem:[#allocation10 + $0x238] sm:$0xf] }
 0x161   :  { %v7400_v54 = vld [vmem:[#allocation10 + $0x274] sm:$0xf0] }
 0x162   :  { %1210 = vmatpush.bf16.msrb.mxu3 %v5248_v13  ;;  %v5523_v13 = vld [vmem:[#allocation10 + $0x228] sm:$0xf] }
 0x163   :  { %v5524_v22 = vor.u32 %v7398_v14, %v5523_v13  ;;  %v7440_v13 = vld [vmem:[#allocation10 + $0x3bc] sm:$0xf] }
 0x164   :  { %v5733_v14 = vld [vmem:[#allocation10 + $0x3f8] sm:$0xf0] }
 0x1b6   :  { %v299_v17 = vpop.xlane.xlu0 %298 }
 0x1b7   :  { %v300_v19 = vmul.f32 %v299_v17, %v8218_v4  ;;  %v5520_v17 = vor.u32 %v7389_v11, %v5517_v12  ;;  %v7448_v12 = vld [vmem:[#allocation10 + $0x3f4] sm:$0xf0] }
 0x1b9   :  { %v301_v21 = vadd.f32 1e-05, %v300_v19  ;;  %v5451_v19 = vld [vmem:[#allocation10 + $0x1a0] sm:$0xf] }
 0x1bb   :  { %7858 = vrsqrt.f32 %v301_v21  ;;  %vm308_vm2 = vweird.f32 %v301_v21 }
 0x1c1   :  { %v7859_v23 = vpop.eup %7858 }
 0x1c2   :  { %v303_v26 = vmul.f32 %v7859_v23, %v301_v21  ;;  %vm309_vm1 = vweird.f32 %v7859_v23  ;;  %v7381_v21 = vld [vmem:[#allocation10 + $0x1dc] sm:$0xf0] }
 0x1c3   :  { %vm310_vm3 = vmor %vm308_vm2, %vm309_vm1 }
 0x1c4   :  { %v304_v27 = vmul.f32 %v7859_v23, %v303_v26  ;;  %v7373_v26 = vld [vmem:[#allocation10 + $0x1a4] sm:$0xf] }
 0x1c6   :  { %v305_v28 = vmul.f32 0.5, %v304_v27  ;;  %v5453_v27 = vld [vmem:[#allocation10 + $0x1e0] sm:$0xf0] }
 0x1c8   :  { %v306_v29 = vsub.f32 1.5, %v305_v28  ;;  %v5459_v28 = vld [vmem:[#allocation10 + $0x1a8] sm:$0xf] }
 0x1ca   :  { %v307_v36 = vmul.f32 %v7859_v23, %v306_v29  ;;  %v7382_v29 = vld [vmem:[#allocation10 + $0x1e4] sm:$0xf0] }
 0x1cb   :  { %v5460_v35 = vor.u32 %v7382_v29, %v5459_v28  ;;  %v5667_v28 = vld [vmem:[#allocation10 + $0x338] sm:$0xf] }
 0x1cc   :  { %v311_v31 = vsel %vm310_vm3, %v7859_v23, %v307_v36  ;;  %v5528_v23 = vor.u32 %v7390_v15, %v5525_v16  ;;  %v7374_v36 = vld [vmem:[#allocation10 + $0x1ac] sm:$0xf]  ;;  %v5268_v15 = vor.u32 %v7334_v1, %v5267_v0  ;;  %v5272_v16 = vor.u32 %v7326_v2, %v5269_v3  ;;  %v7432_v29 = vld [vmem:[#allocation10 + $0x374] sm:$0xf0]  ;;  %v7376_v2 = vld [vmem:[#allocation10 + $0x1bc] sm:$0xf] }
 0x1cd   :  { %v312_v33 = vmul.f32 %v311_v31, %v8222_v18  ;;  %v5716_v18 = vor.u32 %v7446_v42, %v5715_v40  ;;  %v5452_v31 = vor.u32 %v7381_v21, %v5451_v19  ;;  %v5395_v40 = vld [vmem:[#allocation10 + $0x128] sm:$0xf]  ;;  %v5659_v19 = vld [vmem:[#allocation10 + $0x330] sm:$0xf]  ;;  %v5475_v0 = vld [vmem:[#allocation10 + $0x1b8] sm:$0xf] }
 0x1ce   :  { %v7366_v42 = vld [vmem:[#allocation10 + $0x164] sm:$0xf0]  ;;  %v7431_v21 = vld [vmem:[#allocation10 + $0x36c] sm:$0xf0]  ;;  %v7384_v1 = vld [vmem:[#allocation10 + $0x1f4] sm:$0xf0] }
 0x1cf   :  { %v314_v34 = vmul.f32 %v313_v30, %v312_v33  ;;  %v5461_v30 = vld [vmem:[#allocation10 + $0x1e8] sm:$0xf0]  ;;  %v5387_v33 = vld [vmem:[#allocation10 + $0x120] sm:$0xf]  ;;  %v5477_v3 = vld [vmem:[#allocation10 + $0x1f8] sm:$0xf0] }
 0x1d0   :  { %v5464_v37 = vor.u32 %v7374_v36, %v5461_v30  ;;  %v7424_v36 = vld [vmem:[#allocation10 + $0x33c] sm:$0xf] }
 0x1d1   :  { %v8234_v41 = vadd.f32 %v315_v24, %v314_v34  ;;  %v5456_v24 = vor.u32 %v7373_v26, %v5453_v27  ;;  %v7365_v34 = vld [vmem:[#allocation10 + $0x15c] sm:$0xf0]  ;;  %v7423_v26 = vld [vmem:[#allocation10 + $0x334] sm:$0xf]  ;;  %v5669_v30 = vld [vmem:[#allocation10 + $0x378] sm:$0xf0] }
 0x1d2   :  { %v5661_v27 = vld [vmem:[#allocation10 + $0x370] sm:$0xf0] }
 0x1d3   :  { %v8238_v45 = vpack.c.bf16 %v8234_v41, %v8234_v41 }
 0x1d5   :  { %1146 = vmatmul.bf16.vlgmr.msra.gmra.mxu2 %v8238_v45  ;;  %1159 = vmatmul.bf16.vlgmr.msra.gmra.mxu3 %v8238_v45 }
 0x1d6   :  { %1172 = vmatmul.bf16.vlgmr.msrb.gmra.mxu0 %v8238_v45  ;;  %1185 = vmatmul.bf16.vlgmr.msrb.gmra.mxu1 %v8238_v45 }
 0x1d7   :  { %1242 = vmatpush.bf16.msra.mxu2 %v5708_v46  ;;  %1255 = vmatpush.bf16.msra.mxu3 %v5712_v47  ;;  %v5388_v46 = vor.u32 %v7365_v34, %v5387_v33  ;;  %v5392_v47 = vor.u32 %v7357_v38, %v5389_v39  ;;  %v5595_v33 = vld [vmem:[#allocation10 + $0x2b0] sm:$0xf]  ;;  %v7407_v38 = vld [vmem:[#allocation10 + $0x2b4] sm:$0xf] }
 0x1d8   :  { %1268 = vmatpush.bf16.msrb.mxu0 %v5716_v18  ;;  %1281 = vmatpush.bf16.msrb.mxu1 %v5720_v49  ;;  %v5396_v18 = vor.u32 %v7366_v42, %v5395_v40  ;;  %v5400_v49 = vor.u32 %v7358_v43, %v5397_v44  ;;  %v7415_v34 = vld [vmem:[#allocation10 + $0x2ec] sm:$0xf0]  ;;  %v5597_v39 = vld [vmem:[#allocation10 + $0x2f0] sm:$0xf0]  ;;  %v5603_v40 = vld [vmem:[#allocation10 + $0x2b8] sm:$0xf] }
 0x1d9   :  { %v7416_v42 = vld [vmem:[#allocation10 + $0x2f4] sm:$0xf0]  ;;  %v7408_v43 = vld [vmem:[#allocation10 + $0x2bc] sm:$0xf] }
 0x1da   :  { %v5605_v44 = vld [vmem:[#allocation10 + $0x2f8] sm:$0xf0] }
 0x1db   :  { %1243 = vmatpush.bf16.msra.mxu2 %v5644_v57  ;;  %1256 = vmatpush.bf16.msra.mxu3 %v5648_v58  ;;  %v5259_v57 = vld [vmem:[#allocation10 + $0x20] sm:$0xf]  ;;  %v5324_v58 = vor.u32 %v7349_v48, %v5323_v32  ;;  %v5531_v32 = vld [vmem:[#allocation10 + $0x230] sm:$0xf] }
 0x1dc   :  { %1269 = vmatpush.bf16.msrb.mxu0 %v5652_v61  ;;  %1282 = vmatpush.bf16.msrb.mxu1 %v5656_v62  ;;  %v7325_v61 = vld [vmem:[#allocation10 + $0x24] sm:$0xf]  ;;  %v7399_v48 = vld [vmem:[#allocation10 + $0x26c] sm:$0xf0] }
 0x1dd   :  { %v5261_v62 = vld [vmem:[#allocation10 + $0x60] sm:$0xf0] }
 0x1de   :  { %v5264_v11 = vor.u32 %v7325_v61, %v5261_v62  ;;  %v5540_v61 = vor.u32 %v7400_v54, %v5539_v53  ;;  %v5544_v62 = vor.u32 %v7392_v55, %v5541_v56  ;;  %v7471_v53 = vld [vmem:[#allocation11 + $0xb0] sm:$0xff] }
 0x1df   :  { %1244 = vmatpush.bf16.msra.mxu2 %v5580_v5  ;;  %1257 = vmatpush.bf16.msra.mxu3 %v5584_v6  ;;  %v5723_v5 = vld [vmem:[#allocation10 + $0x3b0] sm:$0xf] }
 0x1e0   :  { %1270 = vmatpush.bf16.msrb.mxu0 %v5588_v9  ;;  %1283 = vmatpush.bf16.msrb.mxu1 %v5592_v10  ;;  %v7447_v6 = vld [vmem:[#allocation10 + $0x3ec] sm:$0xf0]  ;;  %v5731_v9 = vld [vmem:[#allocation10 + $0x3b8] sm:$0xf]  ;;  %v5260_v10 = vor.u32 %v7333_v60, %v5259_v57  ;;  %v5532_v57 = vor.u32 %v7399_v48, %v5531_v32 }
 0x1e1   :  { %v7383_v60 = vld [vmem:[#allocation10 + $0x1ec] sm:$0xf0] }
 0x1e2   :  { %v7479_v54 = vld [vmem:[#allocation11 + $0xf0] sm:$0xff] }
 0x1e3   :  { %1245 = vmatpush.bf16.msra.mxu2 %v5516_v50  ;;  %1258 = vmatpush.bf16.msra.mxu3 %v5520_v17  ;;  %v5724_v50 = vor.u32 %v7447_v6, %v5723_v5  ;;  %v5728_v17 = vor.u32 %v7439_v7, %v5725_v8  ;;  %v5403_v7 = vld [vmem:[#allocation10 + $0x130] sm:$0xf] }
 0x1e4   :  { %1271 = vmatpush.bf16.msrb.mxu0 %v5524_v22  ;;  %1284 = vmatpush.bf16.msrb.mxu1 %v5528_v23  ;;  %v5732_v22 = vor.u32 %v7448_v12, %v5731_v9  ;;  %v5736_v23 = vor.u32 %v7440_v13, %v5733_v14  ;;  %v7367_v8 = vld [vmem:[#allocation10 + $0x16c] sm:$0xf0]  ;;  %v5476_v9 = vor.u32 %v7384_v1, %v5475_v0  ;;  %v5405_v12 = vld [vmem:[#allocation10 + $0x170] sm:$0xf0]  ;;  %v5411_v13 = vld [vmem:[#allocation10 + $0x138] sm:$0xf] }
 0x1e5   :  { %1198 = vmatmul.bf16.vlgmr.msrb.gmra.mxu2 %v8238_v45  ;;  %1211 = vmatmul.bf16.vlgmr.msrb.gmra.mxu3 %v8238_v45  ;;  %v7368_v14 = vld [vmem:[#allocation10 + $0x174] sm:$0xf0]  ;;  %v7455_v55 = vld [vmem:[#allocation11 + $0x30] sm:$0xff] }
 0x1e6   :  { %1224 = vmatmul.bf16.vlgmr.msra.gmra.mxu0 %v8238_v45  ;;  %1237 = vmatmul.bf16.vlgmr.msra.gmra.mxu1 %v8238_v45  ;;  %v7463_v56 = vld [vmem:[#allocation11 + $0x70] sm:$0xff]  ;;  %v7476_v0 = vld [vmem:[#allocation11 + $0xd8] sm:$0xff] }
 0x1e7   :  { %1246 = vmatpush.bf16.msra.mxu2 %v5452_v31  ;;  %1259 = vmatpush.bf16.msra.mxu3 %v5456_v24  ;;  %v5660_v31 = vor.u32 %v7431_v21, %v5659_v19  ;;  %v5664_v24 = vor.u32 %v7423_v26, %v5661_v27  ;;  %v5339_v19 = vld [vmem:[#allocation10 + $0xb0] sm:$0xf]  ;;  %v7343_v26 = vld [vmem:[#allocation10 + $0xb4] sm:$0xf]  ;;  %v7452_v1 = vld [vmem:[#allocation11 + $0x18] sm:$0xff] }
 0x1e8   :  { %1272 = vmatpush.bf16.msrb.mxu0 %v5460_v35  ;;  %1285 = vmatpush.bf16.msrb.mxu1 %v5464_v37  ;;  %v5668_v35 = vor.u32 %v7432_v29, %v5667_v28  ;;  %v5672_v37 = vor.u32 %v7424_v36, %v5669_v30  ;;  %v7351_v21 = vld [vmem:[#allocation10 + $0xec] sm:$0xf0]  ;;  %v5341_v27 = vld [vmem:[#allocation10 + $0xf0] sm:$0xf0]  ;;  %v5347_v28 = vld [vmem:[#allocation10 + $0xb8] sm:$0xf] }
 0x1e9   :  { %v7352_v29 = vld [vmem:[#allocation10 + $0xf4] sm:$0xf0]  ;;  %v7344_v36 = vld [vmem:[#allocation10 + $0xbc] sm:$0xf] }
 0x1ea   :  { %v5349_v30 = vld [vmem:[#allocation10 + $0xf8] sm:$0xf0] }
 0x1eb   :  { %1247 = vmatpush.bf16.msra.mxu2 %v5388_v46  ;;  %1260 = vmatpush.bf16.msra.mxu3 %v5392_v47  ;;  %v5596_v46 = vor.u32 %v7415_v34, %v5595_v33  ;;  %v5600_v47 = vor.u32 %v7407_v38, %v5597_v39  ;;  %v5275_v33 = vld [vmem:[#allocation10 + $0x30] sm:$0xf]  ;;  %v7327_v38 = vld [vmem:[#allocation10 + $0x34] sm:$0xf] }
 0x1ec   :  { %1273 = vmatpush.bf16.msrb.mxu0 %v5396_v18  ;;  %1286 = vmatpush.bf16.msrb.mxu1 %v5400_v49  ;;  %v5604_v18 = vor.u32 %v7416_v42, %v5603_v40  ;;  %v5608_v49 = vor.u32 %v7408_v43, %v5605_v44  ;;  %v7335_v34 = vld [vmem:[#allocation10 + $0x6c] sm:$0xf0]  ;;  %v5277_v39 = vld [vmem:[#allocation10 + $0x70] sm:$0xf0]  ;;  %v5283_v40 = vld [vmem:[#allocation10 + $0x38] sm:$0xf] }
 0x1ed   :  { %v7336_v42 = vld [vmem:[#allocation10 + $0x74] sm:$0xf0]  ;;  %v7328_v43 = vld [vmem:[#allocation10 + $0x3c] sm:$0xf] }
 0x1ee   :  { %v5285_v44 = vld [vmem:[#allocation10 + $0x78] sm:$0xf0]  ;;  %v5284_v32 = vor.u32 %v7336_v42, %v5283_v40  ;;  %v7507_v40 = vld [vmem:[#allocation11 + $0x1d0] sm:$0xff] }
 0x1ef   :  { %1248 = vmatpush.bf16.msra.mxu2 %v5324_v58  ;;  %1261 = vmatpush.bf16.msra.mxu3 %v5328_v59  ;;  %v5536_v58 = vor.u32 %v7391_v51, %v5533_v52  ;;  %v5467_v59 = vld [vmem:[#allocation10 + $0x1b0] sm:$0xf]  ;;  %v5288_v48 = vor.u32 %v7328_v43, %v5285_v44  ;;  %v7456_v51 = vld [vmem:[#allocation11 + $0x38] sm:$0xff]  ;;  %v7498_v44 = vld [vmem:[#allocation11 + $0x188] sm:$0xff] }
 0x1f0   :  { %1274 = vmatpush.bf16.msrb.mxu0 %v5332_v63  ;;  %1287 = vmatpush.bf16.msrb.mxu1 %v5336_v25  ;;  %v7375_v63 = vld [vmem:[#allocation10 + $0x1b4] sm:$0xf]  ;;  %v5468_v5 = vor.u32 %v7383_v60, %v5467_v59  ;;  %v7464_v52 = vld [vmem:[#allocation11 + $0x78] sm:$0xff]  ;;  %v7454_v59 = vld [vmem:[#allocation11 + $0x28] sm:$0xff] }
 0x1f1   :  { %v5469_v25 = vld [vmem:[#allocation10 + $0x1f0] sm:$0xf0]  ;;  %v7462_v60 = vld [vmem:[#allocation11 + $0x68] sm:$0xff] }
 0x1f2   :  { %v5472_v6 = vor.u32 %v7375_v63, %v5469_v25  ;;  %v7453_v63 = vld [vmem:[#allocation11 + $0x20] sm:$0xff]  ;;  %v7468_v25 = vld [vmem:[#allocation11 + $0x98] sm:$0xff]  ;;  %v7483_v42 = vld [vmem:[#allocation11 + $0x110] sm:$0xff] }
 0x1f3   :  { %1249 = vmatpush.bf16.msra.mxu2 %v5260_v10  ;;  %1262 = vmatpush.bf16.msra.mxu3 %v5264_v11  ;;  %v5480_v10 = vor.u32 %v7376_v2, %v5477_v3  ;;  %v7359_v11 = vld [vmem:[#allocation10 + $0x134] sm:$0xf]  ;;  %v7460_v2 = vld [vmem:[#allocation11 + $0x58] sm:$0xff] }
 0x1f4   :  { %1275 = vmatpush.bf16.msrb.mxu0 %v5268_v15  ;;  %1288 = vmatpush.bf16.msrb.mxu1 %v5272_v16  ;;  %v7360_v15 = vld [vmem:[#allocation10 + $0x13c] sm:$0xf]  ;;  %v7467_v3 = vld [vmem:[#allocation11 + $0x90] sm:$0xff] }
 0x1f5   :  { %v5413_v16 = vld [vmem:[#allocation10 + $0x178] sm:$0xf0]  ;;  %v7491_v43 = vld [vmem:[#allocation11 + $0x150] sm:$0xff] }
 0x1f6   :  { %1250 = vmatmul.bf16.vlgmr.msra.gmra.mxu2 %v8238_v45  ;;  %1263 = vmatmul.bf16.vlgmr.msra.gmra.mxu3 %v8238_v45 }
 0x1f7   :  { %1294 = vmatpush.bf16.msrb.mxu2 %v5724_v50  ;;  %1307 = vmatpush.bf16.msrb.mxu3 %v5728_v17  ;;  %v5404_v50 = vor.u32 %v7367_v8, %v5403_v7  ;;  %v5408_v17 = vor.u32 %v7359_v11, %v5405_v12  ;;  %v7459_v7 = vld [vmem:[#allocation11 + $0x50] sm:$0xff]  ;;  %v7466_v8 = vld [vmem:[#allocation11 + $0x88] sm:$0xff]  ;;  %v7465_v12 = vld [vmem:[#allocation11 + $0x80] sm:$0xff] }
 0x1f8   :  { %1320 = vmatpush.bf16.msra.mxu0 %v5732_v22  ;;  %1333 = vmatpush.bf16.msra.mxu1 %v5736_v23  ;;  %v5412_v22 = vor.u32 %v7368_v14, %v5411_v13  ;;  %v5416_v23 = vor.u32 %v7360_v15, %v5413_v16  ;;  %v7458_v11 = vld [vmem:[#allocation11 + $0x48] sm:$0xff]  ;;  %v7473_v13 = vld [vmem:[#allocation11 + $0xc0] sm:$0xff]  ;;  %v7504_v14 = vld [vmem:[#allocation11 + $0x1b8] sm:$0xff] }
 0x1f9   :  { %1276 = vmatmul.bf16.vlgmr.msrb.gmra.mxu0 %v8238_v45  ;;  %1289 = vmatmul.bf16.vlgmr.msrb.gmra.mxu1 %v8238_v45  ;;  %v7512_v15 = vld [vmem:[#allocation11 + $0x1f8] sm:$0xff]  ;;  %v7449_v16 = vld [vmem:[#allocation11] sm:$0xff] }
 0x1fb   :  { %1295 = vmatpush.bf16.msrb.mxu2 %v5660_v31  ;;  %1308 = vmatpush.bf16.msrb.mxu3 %v5664_v24  ;;  %v5340_v31 = vor.u32 %v7351_v21, %v5339_v19  ;;  %v5344_v24 = vor.u32 %v7343_v26, %v5341_v27  ;;  %v7496_v19 = vld [vmem:[#allocation11 + $0x178] sm:$0xff]  ;;  %v7503_v21 = vld [vmem:[#allocation11 + $0x1b0] sm:$0xff]  ;;  %v7502_v27 = vld [vmem:[#allocation11 + $0x1a8] sm:$0xff] }
 0x1fc   :  { %1321 = vmatpush.bf16.msra.mxu0 %v5668_v35  ;;  %1334 = vmatpush.bf16.msra.mxu1 %v5672_v37  ;;  %v5348_v35 = vor.u32 %v7352_v29, %v5347_v28  ;;  %v5352_v37 = vor.u32 %v7344_v36, %v5349_v30  ;;  %v7495_v26 = vld [vmem:[#allocation11 + $0x170] sm:$0xff]  ;;  %v7510_v28 = vld [vmem:[#allocation11 + $0x1e8] sm:$0xff]  ;;  %v7501_v30 = vld [vmem:[#allocation11 + $0x1a0] sm:$0xff] }
 0x1fd   :  { %v7486_v29 = vld [vmem:[#allocation11 + $0x128] sm:$0xff] }
 0x1fe   :  { %v7494_v36 = vld [vmem:[#allocation11 + $0x168] sm:$0xff] }
 0x1ff   :  { %1296 = vmatpush.bf16.msrb.mxu2 %v5596_v46  ;;  %1309 = vmatpush.bf16.msrb.mxu3 %v5600_v47  ;;  %v5276_v46 = vor.u32 %v7335_v34, %v5275_v33  ;;  %v5280_v47 = vor.u32 %v7327_v38, %v5277_v39  ;;  %v7493_v33 = vld [vmem:[#allocation11 + $0x160] sm:$0xff]  ;;  %v7500_v34 = vld [vmem:[#allocation11 + $0x198] sm:$0xff]  ;;  %v7499_v39 = vld [vmem:[#allocation11 + $0x190] sm:$0xff] }
 0x200   :  { %1322 = vmatpush.bf16.msra.mxu0 %v5604_v18  ;;  %1335 = vmatpush.bf16.msra.mxu1 %v5608_v49  ;;  %v7472_v18 = vld [vmem:[#allocation11 + $0xb8] sm:$0xff] }
 0x201   :  { %v7480_v49 = vld [vmem:[#allocation11 + $0xf8] sm:$0xff] }
 0x202   :  { %v7492_v38 = vld [vmem:[#allocation11 + $0x158] sm:$0xff] }
 0x203   :  { %1297 = vmatpush.bf16.msrb.mxu2 %v5532_v57  ;;  %1310 = vmatpush.bf16.msrb.mxu3 %v5536_v58  ;;  %v7470_v57 = vld [vmem:[#allocation11 + $0xa8] sm:$0xff] }
 0x204   :  { %1323 = vmatpush.bf16.msra.mxu0 %v5540_v61  ;;  %1336 = vmatpush.bf16.msra.mxu1 %v5544_v62  ;;  %v7478_v58 = vld [vmem:[#allocation11 + $0xe8] sm:$0xff]  ;;  %v7469_v61 = vld [vmem:[#allocation11 + $0xa0] sm:$0xff] }
 0x205   :  { %v7477_v62 = vld [vmem:[#allocation11 + $0xe0] sm:$0xff] }
 0x207   :  { %1298 = vmatpush.bf16.msrb.mxu2 %v5468_v5  ;;  %1311 = vmatpush.bf16.msrb.mxu3 %v5472_v6  ;;  %v7475_v5 = vld [vmem:[#allocation11 + $0xd0] sm:$0xff] }
 0x208   :  { %1324 = vmatpush.bf16.msra.mxu0 %v5476_v9  ;;  %1337 = vmatpush.bf16.msra.mxu1 %v5480_v10  ;;  %v7451_v6 = vld [vmem:[#allocation11 + $0x10] sm:$0xff]  ;;  %v7474_v9 = vld [vmem:[#allocation11 + $0xc8] sm:$0xff] }
 0x209   :  { %v7450_v10 = vld [vmem:[#allocation11 + $0x8] sm:$0xff] }
 0x20b   :  { %1299 = vmatpush.bf16.msrb.mxu2 %v5404_v50  ;;  %1312 = vmatpush.bf16.msrb.mxu3 %v5408_v17  ;;  %v7457_v50 = vld [vmem:[#allocation11 + $0x40] sm:$0xff]  ;;  %v7488_v17 = vld [vmem:[#allocation11 + $0x138] sm:$0xff] }
 0x20c   :  { %1325 = vmatpush.bf16.msra.mxu0 %v5412_v22  ;;  %1338 = vmatpush.bf16.msra.mxu1 %v5416_v23  ;;  %v7511_v22 = vld [vmem:[#allocation11 + $0x1f0] sm:$0xff] }
 0x20d   :  { %v7487_v23 = vld [vmem:[#allocation11 + $0x130] sm:$0xff] }
 0x20f   :  { %1300 = vmatpush.bf16.msrb.mxu2 %v5340_v31  ;;  %1313 = vmatpush.bf16.msrb.mxu3 %v5344_v24  ;;  %v7509_v31 = vld [vmem:[#allocation11 + $0x1e0] sm:$0xff] }
 0x210   :  { %1326 = vmatpush.bf16.msra.mxu0 %v5348_v35  ;;  %1339 = vmatpush.bf16.msra.mxu1 %v5352_v37  ;;  %v7485_v24 = vld [vmem:[#allocation11 + $0x120] sm:$0xff]  ;;  %v7508_v35 = vld [vmem:[#allocation11 + $0x1d8] sm:$0xff] }
 0x211   :  { %v7484_v37 = vld [vmem:[#allocation11 + $0x118] sm:$0xff] }
 0x213   :  { %1301 = vmatpush.bf16.msrb.mxu2 %v5276_v46  ;;  %1314 = vmatpush.bf16.msrb.mxu3 %v5280_v47  ;;  %v7506_v46 = vld [vmem:[#allocation11 + $0x1c8] sm:$0xff] }
 0x214   :  { %1327 = vmatpush.bf16.msra.mxu0 %v5284_v32  ;;  %1340 = vmatpush.bf16.msra.mxu1 %v5288_v48  ;;  %v7482_v47 = vld [vmem:[#allocation11 + $0x108] sm:$0xff]  ;;  %v7497_v48 = vld [vmem:[#allocation11 + $0x180] sm:$0xff] }
 0x215   :  { %v7490_v32 = vld [vmem:[#allocation11 + $0x148] sm:$0xff] }
 0x216   :  { %1302 = vmatmul.bf16.vlgmr.msrb.gmra.mxu2 %v8238_v45  ;;  %1315 = vmatmul.bf16.vlgmr.msrb.gmra.mxu3 %v8238_v45 }
 0x217   :  { %1328 = vmatmul.bf16.vlgmr.msra.gmra.mxu0 %v8238_v45  ;;  %1341 = vmatmul.bf16.vlgmr.msra.gmra.mxu1 %v8238_v45  ;;  %v7461_v45 = vld [vmem:[#allocation11 + $0x60] sm:$0xff] }
 0x218   :  { %2429 = vmatpush.bf16.msrb.mxu0 %v7472_v18  ;;  %2442 = vmatpush.bf16.msrb.mxu1 %v7480_v49  ;;  %v7505_v18 = vld [vmem:[#allocation11 + $0x1c0] sm:$0xff]  ;;  %v154_v49 = vld [vmem:[#allocation14] sm:$0xff] }
 0x219   :  { %2403 = vmatpush.bf16.msra.mxu2 %v7456_v51  ;;  %2416 = vmatpush.bf16.msra.mxu3 %v7464_v52  ;;  %v7481_v51 = vld [vmem:[#allocation11 + $0x100] sm:$0xff] }
 0x21a   :  { %v7489_v52 = vld [vmem:[#allocation11 + $0x140] sm:$0xff] }
 0x21c   :  { %2430 = vmatpush.bf16.msrb.mxu0 %v7471_v53  ;;  %2443 = vmatpush.bf16.msrb.mxu1 %v7479_v54  ;;  %v452_v53 = vperm.slane %v154_v49, 4  ;;  %v453_v54 = vperm.slane %v154_v49, 6 }
 0x21d   :  { %2404 = vmatpush.bf16.msra.mxu2 %v7455_v55  ;;  %2417 = vmatpush.bf16.msra.mxu3 %v7463_v56 }
 0x21e   :  { %v484_v55 = vperm.slane %v452_v53, 0  ;;  %v485_v56 = vperm.slane %v453_v54, 0 }
 0x220   :  { %2431 = vmatpush.bf16.msrb.mxu0 %v7470_v57  ;;  %2444 = vmatpush.bf16.msrb.mxu1 %v7478_v58  ;;  %v450_v57 = vperm.slane %v154_v49, 0  ;;  %v451_v58 = vperm.slane %v154_v49, 2  ;;  %v7540_v49 = vld [vmem:[#allocation11 + $0x2d8] sm:$0xff] }
 0x221   :  { %2405 = vmatpush.bf16.msra.mxu2 %v7454_v59  ;;  %2418 = vmatpush.bf16.msra.mxu3 %v7462_v60 }
 0x224   :  { %2432 = vmatpush.bf16.msrb.mxu0 %v7469_v61  ;;  %2445 = vmatpush.bf16.msrb.mxu1 %v7477_v62 }
 0x225   :  { %2406 = vmatpush.bf16.msra.mxu2 %v7453_v63  ;;  %2419 = vmatpush.bf16.msra.mxu3 %v7461_v45  ;;  %v482_v63 = vperm.slane %v450_v57, 0  ;;  %v483_v45 = vperm.slane %v451_v58, 0  ;;  %v7517_v57 = vld [vmem:[#allocation11 + $0x220] sm:$0xff] }
 0x226   :  { %v7525_v58 = vld [vmem:[#allocation11 + $0x260] sm:$0xff] }
 0x228   :  { %2433 = vmatpush.bf16.msrb.mxu0 %v7468_v25  ;;  %2446 = vmatpush.bf16.msrb.mxu1 %v7476_v0 }
 0x229   :  { %2407 = vmatpush.bf16.msra.mxu2 %v7452_v1  ;;  %2420 = vmatpush.bf16.msra.mxu3 %v7460_v2  ;;  %v7536_v1 = vld [vmem:[#allocation11 + $0x2b8] sm:$0xff] }
 0x22a   :  { %v7544_v2 = vld [vmem:[#allocation11 + $0x2f8] sm:$0xff] }
 0x22c   :  { %2434 = vmatpush.bf16.msrb.mxu0 %v7467_v3  ;;  %2447 = vmatpush.bf16.msrb.mxu1 %v7475_v5 }
 0x22d   :  { %2408 = vmatpush.bf16.msra.mxu2 %v7451_v6  ;;  %2421 = vmatpush.bf16.msra.mxu3 %v7459_v7 }
 0x230   :  { %2435 = vmatpush.bf16.msrb.mxu0 %v7466_v8  ;;  %2448 = vmatpush.bf16.msrb.mxu1 %v7474_v9 }
 0x231   :  { %2409 = vmatpush.bf16.msra.mxu2 %v7450_v10  ;;  %2422 = vmatpush.bf16.msra.mxu3 %v7458_v11  ;;  %v155_v10 = vld [vmem:[#allocation14 + $0x8] sm:$0xff] }
 0x234   :  { %2436 = vmatpush.bf16.msrb.mxu0 %v7465_v12  ;;  %2449 = vmatpush.bf16.msrb.mxu1 %v7473_v13 }
 0x235   :  { %2410 = vmatpush.bf16.msra.mxu2 %v7449_v16  ;;  %2423 = vmatpush.bf16.msra.mxu3 %v7457_v50  ;;  %v7543_v16 = vld [vmem:[#allocation11 + $0x2f0] sm:$0xff]  ;;  %v456_v50 = vperm.slane %v155_v10, 4 }
 0x238   :  { %2481 = vmatpush.bf16.msra.mxu0 %v7504_v14  ;;  %2494 = vmatpush.bf16.msra.mxu1 %v7512_v15  ;;  %v7535_v15 = vld [vmem:[#allocation11 + $0x2b0] sm:$0xff] }
 0x239   :  { %2455 = vmatpush.bf16.msrb.mxu2 %v7488_v17  ;;  %2468 = vmatpush.bf16.msrb.mxu3 %v7496_v19  ;;  %v457_v17 = vperm.slane %v155_v10, 6 }
 0x23c   :  { %2482 = vmatpush.bf16.msra.mxu0 %v7503_v21  ;;  %2495 = vmatpush.bf16.msra.mxu1 %v7511_v22  ;;  %v7520_v22 = vld [vmem:[#allocation11 + $0x238] sm:$0xff] }
 0x23d   :  { %2456 = vmatpush.bf16.msrb.mxu2 %v7487_v23  ;;  %2469 = vmatpush.bf16.msrb.mxu3 %v7495_v26  ;;  %v7528_v23 = vld [vmem:[#allocation11 + $0x278] sm:$0xff]  ;;  %v7534_v26 = vld [vmem:[#allocation11 + $0x2a8] sm:$0xff] }
 0x240   :  { %2483 = vmatpush.bf16.msra.mxu0 %v7502_v27  ;;  %2496 = vmatpush.bf16.msra.mxu1 %v7510_v28  ;;  %v7542_v27 = vld [vmem:[#allocation11 + $0x2e8] sm:$0xff] }
 0x241   :  { %2457 = vmatpush.bf16.msrb.mxu2 %v7486_v29  ;;  %2470 = vmatpush.bf16.msrb.mxu3 %v7494_v36  ;;  %v488_v36 = vperm.slane %v456_v50, 0 }
 0x244   :  { %2484 = vmatpush.bf16.msra.mxu0 %v7501_v30  ;;  %2497 = vmatpush.bf16.msra.mxu1 %v7509_v31  ;;  %v489_v30 = vperm.slane %v457_v17, 0  ;;  %v7519_v31 = vld [vmem:[#allocation11 + $0x230] sm:$0xff] }
 0x245   :  { %2458 = vmatpush.bf16.msrb.mxu2 %v7485_v24  ;;  %2471 = vmatpush.bf16.msrb.mxu3 %v7493_v33  ;;  %v7527_v24 = vld [vmem:[#allocation11 + $0x270] sm:$0xff]  ;;  %v454_v33 = vperm.slane %v155_v10, 0 }
 0x248   :  { %2485 = vmatpush.bf16.msra.mxu0 %v7500_v34  ;;  %2498 = vmatpush.bf16.msra.mxu1 %v7508_v35  ;;  %v455_v34 = vperm.slane %v155_v10, 2 }
 0x249   :  { %2459 = vmatpush.bf16.msrb.mxu2 %v7484_v37  ;;  %2472 = vmatpush.bf16.msrb.mxu3 %v7492_v38  ;;  %v7533_v38 = vld [vmem:[#allocation11 + $0x2a0] sm:$0xff] }
 0x24c   :  { %2486 = vmatpush.bf16.msra.mxu0 %v7499_v39  ;;  %2499 = vmatpush.bf16.msra.mxu1 %v7507_v40  ;;  %v7541_v39 = vld [vmem:[#allocation11 + $0x2e0] sm:$0xff] }
 0x24d   :  { %2460 = vmatpush.bf16.msrb.mxu2 %v7483_v42  ;;  %2473 = vmatpush.bf16.msrb.mxu3 %v7491_v43  ;;  %v7518_v43 = vld [vmem:[#allocation11 + $0x228] sm:$0xff] }
 0x250   :  { %2487 = vmatpush.bf16.msra.mxu0 %v7498_v44  ;;  %2500 = vmatpush.bf16.msra.mxu1 %v7506_v46  ;;  %v7526_v44 = vld [vmem:[#allocation11 + $0x268] sm:$0xff]  ;;  %v486_v46 = vperm.slane %v454_v33, 0  ;;  %v7567_v33 = vld [vmem:[#allocation11 + $0x3b0] sm:$0xff] }
 0x251   :  { %2461 = vmatpush.bf16.msrb.mxu2 %v7482_v47  ;;  %2474 = vmatpush.bf16.msrb.mxu3 %v7490_v32  ;;  %v487_v47 = vperm.slane %v455_v34, 0  ;;  %v7575_v34 = vld [vmem:[#allocation11 + $0x3f0] sm:$0xff] }
 0x253   :  { %v1173_v59 = vpop.f32.mrf.mxu0  ;;  %v1186_v60 = vpop.f32.mrf.mxu1 }
 0x254   :  { %2488 = vmatpush.bf16.msra.mxu0 %v7497_v48  ;;  %2501 = vmatpush.bf16.msra.mxu1 %v7505_v18  ;;  %v1174_v61 = vadd.f32 %v1173_v59, %v484_v55  ;;  %v1187_v62 = vadd.f32 %v1186_v60, %v485_v56  ;;  %v7532_v18 = vld [vmem:[#allocation11 + $0x298] sm:$0xff] }
 0x255   :  { %2462 = vmatpush.bf16.msrb.mxu2 %v7481_v51  ;;  %2475 = vmatpush.bf16.msrb.mxu3 %v7489_v52 }
 0x256   :  { %v1348_v25 = vmax.f32 %v1174_v61, 0.0  ;;  %v1349_v0 = vmax.f32 %v1187_v62, 0.0 }
 0x258   :  { %v1620_v3 = vpack.c.bf16 %v1348_v25, %v1348_v25  ;;  %v1621_v5 = vpack.c.bf16 %v1349_v0, %v1349_v0  ;;  %v1147_v6 = vpop.f32.mrf.mxu2  ;;  %v1160_v7 = vpop.f32.mrf.mxu3  ;;  %v156_v25 = vld [vmem:[#allocation14 + $0x10] sm:$0xff] }
 0x259   :  { %v1148_v8 = vadd.f32 %v1147_v6, %v482_v63  ;;  %v1161_v9 = vadd.f32 %v1160_v7, %v483_v45  ;;  %v7531_v63 = vld [vmem:[#allocation11 + $0x290] sm:$0xff]  ;;  %v461_v6 = vperm.slane %v156_v25, 6  ;;  %v7530_v7 = vld [vmem:[#allocation11 + $0x288] sm:$0xff]  ;;  %v458_v50 = vperm.slane %v156_v25, 0 }
 0x25a   :  { %2437 = vmatmul.bf16.vlgmr.msrb.gmra.mxu0 %v1620_v3  ;;  %2450 = vmatmul.bf16.vlgmr.msrb.gmra.mxu1 %v1621_v5  ;;  %v7539_v45 = vld [vmem:[#allocation11 + $0x2d0] sm:$0xff]  ;;  %v7524_v3 = vld [vmem:[#allocation11 + $0x258] sm:$0xff]  ;;  %v460_v5 = vperm.slane %v156_v25, 4  ;;  %v459_v17 = vperm.slane %v156_v25, 2  ;;  %v7549_v25 = vld [vmem:[#allocation11 + $0x320] sm:$0xff] }
 0x25b   :  { %v1346_v11 = vmax.f32 %v1148_v8, 0.0  ;;  %v1347_v12 = vmax.f32 %v1161_v9, 0.0  ;;  %2533 = vmatpush.bf16.msrb.mxu0 %v7536_v1  ;;  %2546 = vmatpush.bf16.msrb.mxu1 %v7544_v2  ;;  %v1175_v13 = vpop.f32.mrf.mxu0  ;;  %v1188_v14 = vpop.f32.mrf.mxu1  ;;  %v7516_v2 = vld [vmem:[#allocation11 + $0x218] sm:$0xff]  ;;  %v7538_v8 = vld [vmem:[#allocation11 + $0x2c8] sm:$0xff] }
 0x25c   :  { %v492_v13 = vperm.slane %v460_v5, 0  ;;  %v493_v14 = vperm.slane %v461_v6, 0  ;;  %v7548_v5 = vld [vmem:[#allocation11 + $0x318] sm:$0xff] }
 0x25d   :  { %v1618_v19 = vpack.c.bf16 %v1346_v11, %v1346_v11  ;;  %v1619_v21 = vpack.c.bf16 %v1347_v12, %v1347_v12  ;;  %v7515_v11 = vld [vmem:[#allocation11 + $0x210] sm:$0xff]  ;;  %v7556_v6 = vld [vmem:[#allocation11 + $0x358] sm:$0xff] }
 0x25e   :  { %v7523_v12 = vld [vmem:[#allocation11 + $0x250] sm:$0xff] }
 0x25f   :  { %2534 = vmatpush.bf16.msrb.mxu0 %v7535_v15  ;;  %2547 = vmatpush.bf16.msrb.mxu1 %v7543_v16  ;;  %v7529_v15 = vld [vmem:[#allocation11 + $0x280] sm:$0xff] }
 0x260   :  { %2411 = vmatmul.bf16.vlgmr.msra.gmra.mxu2 %v1618_v19  ;;  %2424 = vmatmul.bf16.vlgmr.msra.gmra.mxu3 %v1619_v21  ;;  %v1149_v28 = vpop.f32.mrf.mxu2  ;;  %v1162_v29 = vpop.f32.mrf.mxu3  ;;  %v7537_v16 = vld [vmem:[#allocation11 + $0x2c0] sm:$0xff]  ;;  %v7568_v19 = vld [vmem:[#allocation11 + $0x3b8] sm:$0xff] }
 0x261   :  { %2507 = vmatpush.bf16.msra.mxu2 %v7520_v22  ;;  %2520 = vmatpush.bf16.msra.mxu3 %v7528_v23  ;;  %v7576_v21 = vld [vmem:[#allocation11 + $0x3f8] sm:$0xff] }
 0x263   :  { %2535 = vmatpush.bf16.msrb.mxu0 %v7534_v26  ;;  %2548 = vmatpush.bf16.msrb.mxu1 %v7542_v27  ;;  %v1225_v35 = vpop.f32.mrf.mxu0  ;;  %v1238_v37 = vpop.f32.mrf.mxu1  ;;  %v7514_v26 = vld [vmem:[#allocation11 + $0x208] sm:$0xff] }
 0x264   :  { %v1226_v40 = vadd.f32 %v1225_v35, %v488_v36  ;;  %v1239_v42 = vadd.f32 %v1238_v37, %v489_v30  ;;  %v7522_v27 = vld [vmem:[#allocation11 + $0x248] sm:$0xff]  ;;  %v490_v36 = vperm.slane %v458_v50, 0  ;;  %v491_v30 = vperm.slane %v459_v17, 0  ;;  %v7561_v50 = vld [vmem:[#allocation11 + $0x380] sm:$0xff] }
 0x265   :  { %2508 = vmatpush.bf16.msra.mxu2 %v7519_v31  ;;  %2521 = vmatpush.bf16.msra.mxu3 %v7527_v24  ;;  %v7569_v17 = vld [vmem:[#allocation11 + $0x3c0] sm:$0xff] }
 0x266   :  { %v1352_v32 = vmax.f32 %v1226_v40, 0.0  ;;  %v1353_v48 = vmax.f32 %v1239_v42, 0.0  ;;  %v7513_v40 = vld [vmem:[#allocation11 + $0x200] sm:$0xff] }
 0x267   :  { %2536 = vmatpush.bf16.msrb.mxu0 %v7533_v38  ;;  %2549 = vmatpush.bf16.msrb.mxu1 %v7541_v39  ;;  %v7521_v42 = vld [vmem:[#allocation11 + $0x240] sm:$0xff] }
 0x268   :  { %v1624_v51 = vpack.c.bf16 %v1352_v32, %v1352_v32  ;;  %v1625_v52 = vpack.c.bf16 %v1353_v48, %v1353_v48  ;;  %v1199_v53 = vpop.f32.mrf.mxu2  ;;  %v1212_v54 = vpop.f32.mrf.mxu3 }
 0x269   :  { %2509 = vmatpush.bf16.msra.mxu2 %v7518_v43  ;;  %2522 = vmatpush.bf16.msra.mxu3 %v7526_v44  ;;  %v1200_v55 = vadd.f32 %v1199_v53, %v486_v46  ;;  %v1213_v56 = vadd.f32 %v1212_v54, %v487_v47  ;;  %v7552_v46 = vld [vmem:[#allocation11 + $0x338] sm:$0xff] }
 0x26a   :  { %2489 = vmatmul.bf16.vlgmr.msra.gmra.mxu0 %v1624_v51  ;;  %2502 = vmatmul.bf16.vlgmr.msra.gmra.mxu1 %v1625_v52  ;;  %v7560_v47 = vld [vmem:[#allocation11 + $0x378] sm:$0xff]  ;;  %v7566_v51 = vld [vmem:[#allocation11 + $0x3a8] sm:$0xff] }
 0x26b   :  { %v1350_v59 = vmax.f32 %v1200_v55, 0.0  ;;  %v1351_v60 = vmax.f32 %v1213_v56, 0.0  ;;  %2537 = vmatpush.bf16.msrb.mxu0 %v7532_v18  ;;  %2550 = vmatpush.bf16.msrb.mxu1 %v7540_v49  ;;  %v1227_v61 = vpop.f32.mrf.mxu0  ;;  %v1240_v62 = vpop.f32.mrf.mxu1  ;;  %v7574_v52 = vld [vmem:[#allocation11 + $0x3e8] sm:$0xff]  ;;  %v7551_v55 = vld [vmem:[#allocation11 + $0x330] sm:$0xff] }
 0x26c   :  { %v7559_v56 = vld [vmem:[#allocation11 + $0x370] sm:$0xff]  ;;  %v7550_v61 = vld [vmem:[#allocation11 + $0x328] sm:$0xff] }
 0x26d   :  { %v1622_v0 = vpack.c.bf16 %v1350_v59, %v1350_v59  ;;  %v1623_v1 = vpack.c.bf16 %v1351_v60, %v1351_v60  ;;  %2510 = vmatpush.bf16.msra.mxu2 %v7517_v57  ;;  %2523 = vmatpush.bf16.msra.mxu3 %v7525_v58  ;;  %v7565_v57 = vld [vmem:[#allocation11 + $0x3a0] sm:$0xff]  ;;  %v7558_v62 = vld [vmem:[#allocation11 + $0x368] sm:$0xff] }
 0x26e   :  { %v7573_v58 = vld [vmem:[#allocation11 + $0x3e0] sm:$0xff] }
 0x26f   :  { %2538 = vmatpush.bf16.msrb.mxu0 %v7531_v63  ;;  %2551 = vmatpush.bf16.msrb.mxu1 %v7539_v45  ;;  %v7564_v63 = vld [vmem:[#allocation11 + $0x398] sm:$0xff] }
 0x270   :  { %2463 = vmatmul.bf16.vlgmr.msrb.gmra.mxu2 %v1622_v0  ;;  %2476 = vmatmul.bf16.vlgmr.msrb.gmra.mxu3 %v1623_v1  ;;  %v1201_v9 = vpop.f32.mrf.mxu2  ;;  %v1214_v10 = vpop.f32.mrf.mxu3  ;;  %v7572_v45 = vld [vmem:[#allocation11 + $0x3d8] sm:$0xff]  ;;  %v7557_v0 = vld [vmem:[#allocation11 + $0x360] sm:$0xff]  ;;  %v157_v1 = vld [vmem:[#allocation14 + $0x18] sm:$0xff] }
 0x271   :  { %2511 = vmatpush.bf16.msra.mxu2 %v7516_v2  ;;  %2524 = vmatpush.bf16.msra.mxu3 %v7524_v3  ;;  %v7563_v2 = vld [vmem:[#allocation11 + $0x390] sm:$0xff]  ;;  %v7562_v9 = vld [vmem:[#allocation11 + $0x388] sm:$0xff] }
 0x272   :  { %v7571_v3 = vld [vmem:[#allocation11 + $0x3d0] sm:$0xff]  ;;  %v7570_v10 = vld [vmem:[#allocation11 + $0x3c8] sm:$0xff] }
 0x273   :  { %2539 = vmatpush.bf16.msrb.mxu0 %v7530_v7  ;;  %2552 = vmatpush.bf16.msrb.mxu1 %v7538_v8  ;;  %v464_v7 = vperm.slane %v157_v1, 4  ;;  %v465_v8 = vperm.slane %v157_v1, 6 }
 0x275   :  { %2512 = vmatpush.bf16.msra.mxu2 %v7515_v11  ;;  %2525 = vmatpush.bf16.msra.mxu3 %v7523_v12  ;;  %v496_v11 = vperm.slane %v464_v7, 0  ;;  %v497_v12 = vperm.slane %v465_v8, 0 }
 0x276   :  { %v1277_v22 = vpop.f32.mrf.mxu0  ;;  %v1290_v23 = vpop.f32.mrf.mxu1 }
 0x277   :  { %v1278_v28 = vadd.f32 %v1277_v22, %v492_v13  ;;  %v1291_v29 = vadd.f32 %v1290_v23, %v493_v14  ;;  %2540 = vmatpush.bf16.msrb.mxu0 %v7529_v15  ;;  %2553 = vmatpush.bf16.msrb.mxu1 %v7537_v16  ;;  %v7547_v13 = vld [vmem:[#allocation11 + $0x310] sm:$0xff]  ;;  %v462_v15 = vperm.slane %v157_v1, 0  ;;  %v463_v16 = vperm.slane %v157_v1, 2 }
 0x278   :  { %v7555_v14 = vld [vmem:[#allocation11 + $0x350] sm:$0xff] }
 0x279   :  { %v1356_v31 = vmax.f32 %v1278_v28, 0.0  ;;  %v1357_v24 = vmax.f32 %v1291_v29, 0.0  ;;  %2513 = vmatpush.bf16.msra.mxu2 %v7514_v26  ;;  %2526 = vmatpush.bf16.msra.mxu3 %v7522_v27  ;;  %v1251_v38 = vpop.f32.mrf.mxu2  ;;  %v1264_v39 = vpop.f32.mrf.mxu3  ;;  %v7546_v26 = vld [vmem:[#allocation11 + $0x308] sm:$0xff]  ;;  %v494_v28 = vperm.slane %v462_v15, 0  ;;  %v495_v29 = vperm.slane %v463_v16, 0 }
 0x27a   :  { %v1252_v43 = vadd.f32 %v1251_v38, %v490_v36  ;;  %v1265_v44 = vadd.f32 %v1264_v39, %v491_v30  ;;  %v7554_v27 = vld [vmem:[#allocation11 + $0x348] sm:$0xff] }
 0x27b   :  { %2585 = vmatpush.bf16.msra.mxu0 %v7568_v19  ;;  %2598 = vmatpush.bf16.msra.mxu1 %v7576_v21  ;;  %v1628_v35 = vpack.c.bf16 %v1356_v31, %v1356_v31  ;;  %v1629_v37 = vpack.c.bf16 %v1357_v24, %v1357_v24 }
 0x27c   :  { %v1354_v32 = vmax.f32 %v1252_v43, 0.0  ;;  %v1355_v48 = vmax.f32 %v1265_v44, 0.0 }
 0x27d   :  { %2541 = vmatmul.bf16.vlgmr.msrb.gmra.mxu0 %v1628_v35  ;;  %2554 = vmatmul.bf16.vlgmr.msrb.gmra.mxu1 %v1629_v37  ;;  %v7545_v35 = vld [vmem:[#allocation11 + $0x300] sm:$0xff] }
 0x27e   :  { %v1279_v18 = vpop.f32.mrf.mxu0  ;;  %v1292_v49 = vpop.f32.mrf.mxu1  ;;  %2514 = vmatpush.bf16.msra.mxu2 %v7513_v40  ;;  %2527 = vmatpush.bf16.msra.mxu3 %v7521_v42  ;;  %v1626_v53 = vpack.c.bf16 %v1354_v32, %v1354_v32  ;;  %v1627_v54 = vpack.c.bf16 %v1355_v48, %v1355_v48  ;;  %v7553_v37 = vld [vmem:[#allocation11 + $0x340] sm:$0xff] }
 0x27f   :  { %2586 = vmatpush.bf16.msra.mxu0 %v7567_v33  ;;  %2599 = vmatpush.bf16.msra.mxu1 %v7575_v34 }
 0x281   :  { %2515 = vmatmul.bf16.vlgmr.msra.gmra.mxu2 %v1626_v53  ;;  %2528 = vmatmul.bf16.vlgmr.msra.gmra.mxu3 %v1627_v54  ;;  %v1253_v59 = vpop.f32.mrf.mxu2  ;;  %v1266_v60 = vpop.f32.mrf.mxu3 }
 0x282   :  { %2559 = vmatpush.bf16.msrb.mxu2 %v7552_v46  ;;  %2572 = vmatpush.bf16.msrb.mxu3 %v7560_v47 }
 0x283   :  { %2587 = vmatpush.bf16.msra.mxu0 %v7566_v51  ;;  %2600 = vmatpush.bf16.msra.mxu1 %v7574_v52 }
 0x286   :  { %2560 = vmatpush.bf16.msrb.mxu2 %v7551_v55  ;;  %2573 = vmatpush.bf16.msrb.mxu3 %v7559_v56 }
 0x287   :  { %2588 = vmatpush.bf16.msra.mxu0 %v7565_v57  ;;  %2601 = vmatpush.bf16.msra.mxu1 %v7573_v58 }
 0x28a   :  { %2561 = vmatpush.bf16.msrb.mxu2 %v7550_v61  ;;  %2574 = vmatpush.bf16.msrb.mxu3 %v7558_v62 }
 0x28b   :  { %2589 = vmatpush.bf16.msra.mxu0 %v7564_v63  ;;  %2602 = vmatpush.bf16.msra.mxu1 %v7572_v45  ;;  %v8256_v63 = vld [vmem:[#allocation13] sm:$0xff] }
 0x28c   :  { %v1634_v45 = vperm.slane %v8256_v63, 1 }
 0x28e   :  { %2562 = vmatpush.bf16.msrb.mxu2 %v7549_v25  ;;  %2575 = vmatpush.bf16.msrb.mxu3 %v7557_v0 }
 0x28f   :  { %2590 = vmatpush.bf16.msra.mxu0 %v7563_v2  ;;  %2603 = vmatpush.bf16.msra.mxu1 %v7571_v3 }
 0x292   :  { %2563 = vmatpush.bf16.msrb.mxu2 %v7548_v5  ;;  %2576 = vmatpush.bf16.msrb.mxu3 %v7556_v6 }
 0x293   :  { %2591 = vmatpush.bf16.msra.mxu0 %v7562_v9  ;;  %2604 = vmatpush.bf16.msra.mxu1 %v7570_v10 }
 0x294   :  { %v1329_v19 = vpop.f32.mrf.mxu0  ;;  %v1342_v21 = vpop.f32.mrf.mxu1 }
 0x295   :  { %v1330_v22 = vadd.f32 %v1329_v19, %v496_v11  ;;  %v1343_v23 = vadd.f32 %v1342_v21, %v497_v12 }
 0x296   :  { %2564 = vmatpush.bf16.msrb.mxu2 %v7547_v13  ;;  %2577 = vmatpush.bf16.msrb.mxu3 %v7555_v14 }
 0x297   :  { %v1360_v36 = vmax.f32 %v1330_v22, 0.0  ;;  %v1361_v30 = vmax.f32 %v1343_v23, 0.0  ;;  %2592 = vmatpush.bf16.msra.mxu0 %v7561_v50  ;;  %2605 = vmatpush.bf16.msra.mxu1 %v7569_v17 }
 0x299   :  { %v1632_v31 = vpack.c.bf16 %v1360_v36, %v1360_v36  ;;  %v1633_v24 = vpack.c.bf16 %v1361_v30, %v1361_v30  ;;  %v1303_v33 = vpop.f32.mrf.mxu2  ;;  %v1316_v34 = vpop.f32.mrf.mxu3 }
 0x29a   :  { %2565 = vmatpush.bf16.msrb.mxu2 %v7546_v26  ;;  %2578 = vmatpush.bf16.msrb.mxu3 %v7554_v27  ;;  %v1304_v38 = vadd.f32 %v1303_v33, %v494_v28  ;;  %v1317_v39 = vadd.f32 %v1316_v34, %v495_v29 }
 0x29b   :  { %2593 = vmatmul.bf16.vlgmr.msra.gmra.mxu0 %v1632_v31  ;;  %2606 = vmatmul.bf16.vlgmr.msra.gmra.mxu1 %v1633_v24 }
 0x29c   :  { %v1358_v40 = vmax.f32 %v1304_v38, 0.0  ;;  %v1359_v42 = vmax.f32 %v1317_v39, 0.0  ;;  %v1331_v43 = vpop.f32.mrf.mxu0  ;;  %v1344_v44 = vpop.f32.mrf.mxu1 }
 0x29e   :  { %2566 = vmatpush.bf16.msrb.mxu2 %v7545_v35  ;;  %2579 = vmatpush.bf16.msrb.mxu3 %v7553_v37  ;;  %v1630_v46 = vpack.c.bf16 %v1358_v40, %v1358_v40  ;;  %v1631_v47 = vpack.c.bf16 %v1359_v42, %v1359_v42  ;;  %v2662_v40 = vpop.xlane.xlu0 %2661 }
 0x29f   :  { %v2663_v43 = vmul.f32 %v2662_v40, %v8218_v4 }
 0x2a1   :  { %2567 = vmatmul.bf16.vlgmr.msrb.gmra.mxu2 %v1630_v46  ;;  %2580 = vmatmul.bf16.vlgmr.msrb.gmra.mxu3 %v1631_v47  ;;  %v1305_v32 = vpop.f32.mrf.mxu2  ;;  %v1318_v48 = vpop.f32.mrf.mxu3  ;;  %v8263_v46 = vsub.f32 %v8228_v20, %v2663_v43  ;;  %v2632_v20 = vperm.slane %v8256_v63, 4 }
 0x2a3   :  { %v2665_v47 = vmul.f32 %v8263_v46, %v8263_v46 }
 0x2d7   :  { %v2438_v18 = vpop.f32.mrf.mxu0  ;;  %v2451_v49 = vpop.f32.mrf.mxu1 }
 0x2df   :  { %v2440_v51 = vpop.f32.mrf.mxu0  ;;  %v2453_v52 = vpop.f32.mrf.mxu1 }
 0x2e3   :  { %v2412_v53 = vpop.f32.mrf.mxu2  ;;  %v2425_v54 = vpop.f32.mrf.mxu3 }
 0x2e4   :  { %v2413_v25 = vadd.f32 %v2412_v53, %v1634_v45 }
 0x2e6   :  { %v2426_v5 = vadd.f32 %v2425_v54, %v2413_v25 }
 0x2e7   :  { %v2490_v55 = vpop.f32.mrf.mxu0  ;;  %v2503_v56 = vpop.f32.mrf.mxu1 }
 0x2e8   :  { %v2439_v6 = vadd.f32 %v2438_v18, %v2426_v5  ;;  %v7579_v5 = vld [vmem:[#allocation8 + $0x10] sm:$0xff] }
 0x2ea   :  { %v2452_v9 = vadd.f32 %v2451_v49, %v2439_v6  ;;  %v7578_v6 = vld [vmem:[#allocation8 + $0x8] sm:$0xff] }
 0x2eb   :  { %v2414_v57 = vpop.f32.mrf.mxu2  ;;  %v2427_v58 = vpop.f32.mrf.mxu3 }
 0x2ec   :  { %v2634_v57 = vperm.slane %v8256_v63, 5 }
 0x2ef   :  { %v2492_v59 = vpop.f32.mrf.mxu0  ;;  %v2505_v60 = vpop.f32.mrf.mxu1 }
 0x2f0   :  { %v7584_v60 = vld [vmem:[#allocation8 + $0x38] sm:$0xff] }
 0x2f1   :  { %2751 = vmatpush.bf16.msra.mxu2 %v7584_v60  ;;  %v7681_v60 = vld [vmem:[#allocation10 + $0x704] sm:$0xf] }
 0x2f3   :  { %v2464_v61 = vpop.f32.mrf.mxu2  ;;  %v2477_v62 = vpop.f32.mrf.mxu3 }
 0x2f4   :  { %v2465_v12 = vadd.f32 %v2464_v61, %v2452_v9 }
 0x2f6   :  { %v2478_v13 = vadd.f32 %v2477_v62, %v2465_v12 }
 0x2f8   :  { %v2491_v16 = vadd.f32 %v2490_v55, %v2478_v13 }
 0x2fa   :  { %v2542_v0 = vpop.f32.mrf.mxu0  ;;  %v2555_v1 = vpop.f32.mrf.mxu1  ;;  %v2504_v50 = vadd.f32 %v2503_v56, %v2491_v16 }
 0x2fb   :  { %v2466_v2 = vpop.f32.mrf.mxu2  ;;  %v2479_v3 = vpop.f32.mrf.mxu3 }
 0x2fc   :  { %v7581_v2 = vld [vmem:[#allocation8 + $0x20] sm:$0xff]  ;;  %v7580_v3 = vld [vmem:[#allocation8 + $0x18] sm:$0xff] }
 0x302   :  { %v2544_v7 = vpop.f32.mrf.mxu0  ;;  %v2557_v8 = vpop.f32.mrf.mxu1 }
 0x303   :  { %v7577_v7 = vld [vmem:[#allocation8] sm:$0xff] }
 0x304   :  { %v2516_v10 = vpop.f32.mrf.mxu2  ;;  %v2529_v11 = vpop.f32.mrf.mxu3 }
 0x305   :  { %v2517_v17 = vadd.f32 %v2516_v10, %v2504_v50  ;;  %v2656_v50 = vperm.slane %v8256_v63, 6 }
 0x307   :  { %v2530_v22 = vadd.f32 %v2529_v11, %v2517_v17 }
 0x309   :  { %v2543_v23 = vadd.f32 %v2542_v0, %v2530_v22  ;;  %v7583_v0 = vld [vmem:[#allocation8 + $0x30] sm:$0xff] }
 0x30a   :  { %2752 = vmatpush.bf16.msra.mxu2 %v7583_v0  ;;  %v7690_v0 = vld [vmem:[#allocation10 + $0x744] sm:$0xf0] }
 0x30b   :  { %v2556_v28 = vadd.f32 %v2555_v1, %v2543_v23  ;;  %v7582_v1 = vld [vmem:[#allocation8 + $0x28] sm:$0xff] }
 0x30c   :  { %v2518_v14 = vpop.f32.mrf.mxu2  ;;  %v2531_v15 = vpop.f32.mrf.mxu3 }
 0x30e   :  { %2753 = vmatpush.bf16.msra.mxu2 %v7582_v1  ;;  %v7682_v1 = vld [vmem:[#allocation10 + $0x70c] sm:$0xf] }
 0x312   :  { %2754 = vmatpush.bf16.msra.mxu2 %v7581_v2 }
 0x316   :  { %2755 = vmatpush.bf16.msra.mxu2 %v7580_v3  ;;  %v6677_v3 = vld [vmem:[#allocation10 + $0x748] sm:$0xf0] }
 0x318   :  { %v2594_v19 = vpop.f32.mrf.mxu0  ;;  %v2607_v21 = vpop.f32.mrf.mxu1 }
 0x31a   :  { %2756 = vmatpush.bf16.msra.mxu2 %v7579_v5  ;;  %v6603_v5 = vld [vmem:[#allocation10 + $0x680] sm:$0xf] }
 0x31e   :  { %2757 = vmatpush.bf16.msra.mxu2 %v7578_v6  ;;  %v7673_v6 = vld [vmem:[#allocation10 + $0x6bc] sm:$0xf0] }
 0x320   :  { %v2596_v26 = vpop.f32.mrf.mxu0  ;;  %v2609_v27 = vpop.f32.mrf.mxu1 }
 0x322   :  { %2758 = vmatpush.bf16.msra.mxu2 %v7577_v7  ;;  %v6680_v7 = vor.u32 %v7682_v1, %v6677_v3 }
 0x324   :  { %v2568_v29 = vpop.f32.mrf.mxu2  ;;  %v2581_v36 = vpop.f32.mrf.mxu3 }
 0x325   :  { %v2569_v30 = vadd.f32 %v2568_v29, %v2556_v28 }
 0x327   :  { %v2582_v31 = vadd.f32 %v2581_v36, %v2569_v30 }
 0x329   :  { %v2595_v24 = vadd.f32 %v2594_v19, %v2582_v31 }
 0x32b   :  { %v2608_v33 = vadd.f32 %v2607_v21, %v2595_v24  ;;  %v2658_v21 = vperm.slane %v8256_v63, 7 }
 0x32c   :  { %v2570_v34 = vpop.f32.mrf.mxu2  ;;  %v2583_v35 = vpop.f32.mrf.mxu3 }
 0x32d   :  { %v2611_v37 = vadd.f32 %v2608_v33, %v8234_v41 }
 0x32f   :  { %2612 = vadd.xlane.f32.xlu1 %v2611_v37 }
 0x3a2   :  { %v2613_v38 = vpop.xlane.xlu1 %2612 }
 0x3a3   :  { %v2614_v39 = vmul.f32 %v2613_v38, %v8218_v4 }
 0x3a5   :  { %v2615_v42 = vsub.f32 %v2611_v37, %v2614_v39  ;;  %v8276_v37 = vld [vmem:[#allocation13 + $0x8] sm:$0xff] }
 0x3a6   :  { %v2681_v38 = vperm.slane %v8276_v37, 3  ;;  %v2702_v39 = vperm.slane %v8276_v37, 1 }
 0x3a7   :  { %v2616_v44 = vmul.f32 %v2615_v42, %v2615_v42 }
 0x3a9   :  { %2617 = vadd.xlane.f32.xlu1 %v2616_v44 }
 0x3b1   :  { %2666 = vadd.xlane.f32.xlu1 %v2665_v47 }
 0x41c   :  { %v2618_v32 = vpop.xlane.xlu1 %2617 }
 0x41d   :  { %v2619_v41 = vmul.f32 %v2618_v32, %v8218_v4 }
 0x41f   :  { %v2620_v48 = vadd.f32 1e-05, %v2619_v41 }
 0x421   :  { %7860 = vrsqrt.f32 %v2620_v48  ;;  %vm2627_vm5 = vweird.f32 %v2620_v48 }
 0x424   :  { %v2667_v27 = vpop.xlane.xlu1 %2666 }
 0x425   :  { %v2668_v28 = vmul.f32 %v2667_v27, %v8218_v4  ;;  %v7650_v27 = vld [vmem:[#allocation10 + $0x60c] sm:$0xf] }
 0x427   :  { %v7861_v18 = vpop.eup %7860  ;;  %v2669_v29 = vadd.f32 1e-05, %v2668_v28  ;;  %v6549_v28 = vld [vmem:[#allocation10 + $0x648] sm:$0xf0] }
 0x428   :  { %v2622_v49 = vmul.f32 %v7861_v18, %v2620_v48  ;;  %vm2628_vm4 = vweird.f32 %v7861_v18  ;;  %v6731_v48 = vld [vmem:[#allocation10 + $0x780] sm:$0xf] }
 0x429   :  { %vm2629_vm6 = vmor %vm2627_vm5, %vm2628_vm4  ;;  %vm2676_vm11 = vweird.f32 %v2669_v29 }
 0x42a   :  { %v2623_v51 = vmul.f32 %v7861_v18, %v2622_v49 }
 0x42c   :  { %v2624_v52 = vmul.f32 0.5, %v2623_v51  ;;  %v6733_v51 = vld [vmem:[#allocation10 + $0x7c0] sm:$0xf0] }
 0x42e   :  { %v2625_v53 = vsub.f32 1.5, %v2624_v52  ;;  %v6739_v52 = vld [vmem:[#allocation10 + $0x788] sm:$0xf] }
 0x430   :  { %v2626_v54 = vmul.f32 %v7861_v18, %v2625_v53  ;;  %v7706_v53 = vld [vmem:[#allocation10 + $0x7c4] sm:$0xf0] }
 0x432   :  { %v2630_v55 = vsel %vm2629_vm6, %v7861_v18, %v2626_v54  ;;  %v7705_v18 = vld [vmem:[#allocation10 + $0x7bc] sm:$0xf0]  ;;  %vm5138_vm6 = vcmask 57344  }
 0x433   :  { %v2631_v56 = vmul.f32 %v2630_v55, %v2615_v42  ;;  %v2683_v42 = vperm.slane %v8276_v37, 4  ;;  %v6732_v49 = vor.u32 %v7705_v18, %v6731_v48  ;;  %v7698_v55 = vld [vmem:[#allocation10 + $0x78c] sm:$0xf]  ;;  %v7617_v48 = vld [vmem:[#allocation10 + $0x504] sm:$0xf] }
 0x435   :  { %v2633_v58 = vmul.f32 %v2632_v20, %v2631_v56  ;;  %v6740_v20 = vor.u32 %v7706_v53, %v6739_v52  ;;  %v6741_v56 = vld [vmem:[#allocation10 + $0x7c8] sm:$0xf0]  ;;  %3607 = vmatpush.bf16.msra.mxu3 %v6732_v49  ;;  %v6419_v49 = vld [vmem:[#allocation10 + $0x508] sm:$0xf] }
 0x436   :  { %v7618_v52 = vld [vmem:[#allocation10 + $0x50c] sm:$0xf] }
 0x437   :  { %v2635_v59 = vadd.f32 %v2634_v57, %v2633_v58  ;;  %v6667_v57 = vld [vmem:[#allocation10 + $0x700] sm:$0xf]  ;;  %v6744_v58 = vor.u32 %v7698_v55, %v6741_v56  ;;  %3633 = vmatpush.bf16.msrb.mxu1 %v6740_v20  ;;  %v6421_v53 = vld [vmem:[#allocation10 + $0x548] sm:$0xf0] }
 0x438   :  { %v6347_v56 = vld [vmem:[#allocation10 + $0x480] sm:$0xf] }
 0x439   :  { %2636 = vadd.xlane.f32.xlu2 %v2635_v59  ;;  %3646 = vmatpush.bf16.msrb.mxu2 %v6744_v58  ;;  %v7601_v58 = vld [vmem:[#allocation10 + $0x484] sm:$0xf] }
 0x43d   :  { %3647 = vmatpush.bf16.msrb.mxu2 %v6680_v7 }
 0x4ac   :  { %v2637_v61 = vpop.xlane.xlu2 %2636 }
 0x4ad   :  { %v2638_v62 = vmul.f32 %v2637_v61, %v8218_v4  ;;  %v6669_v61 = vld [vmem:[#allocation10 + $0x740] sm:$0xf0] }
 0x4af   :  { %v2639_v45 = vsub.f32 %v2635_v59, %v2638_v62  ;;  %v7689_v59 = vld [vmem:[#allocation10 + $0x73c] sm:$0xf0] }
 0x4b0   :  { %v6668_v62 = vor.u32 %v7689_v59, %v6667_v57  ;;  %v7609_v57 = vld [vmem:[#allocation10 + $0x4bc] sm:$0xf0]  ;;  %v6424_v59 = vor.u32 %v7618_v52, %v6421_v53  ;;  %v6621_v52 = vld [vmem:[#allocation10 + $0x6d0] sm:$0xf0]  ;;  %v6627_v53 = vld [vmem:[#allocation10 + $0x698] sm:$0xf] }
 0x4b1   :  { %v2640_v25 = vmul.f32 %v2639_v45, %v2639_v45 }
 0x4b2   :  { %3608 = vmatpush.bf16.msra.mxu3 %v6668_v62  ;;  %v7610_v62 = vld [vmem:[#allocation10 + $0x4c4] sm:$0xf0] }
 0x4b3   :  { %2641 = vadd.xlane.f32.xlu2 %v2640_v25  ;;  %v6675_v25 = vld [vmem:[#allocation10 + $0x708] sm:$0xf] }
 0x4b4   :  { %v6676_v2 = vor.u32 %v7690_v0, %v6675_v25  ;;  %v6357_v25 = vld [vmem:[#allocation10 + $0x4c8] sm:$0xf0]  ;;  %v6348_v0 = vor.u32 %v7609_v57, %v6347_v56  ;;  %v7668_v56 = vld [vmem:[#allocation10 + $0x69c] sm:$0xf] }
 0x4b5   :  { %v6629_v57 = vld [vmem:[#allocation10 + $0x6d8] sm:$0xf0] }
 0x4b6   :  { %3634 = vmatpush.bf16.msrb.mxu1 %v6676_v2 }
 0x526   :  { %v2642_v8 = vpop.xlane.xlu2 %2641 }
 0x527   :  { %v2643_v9 = vmul.f32 %v2642_v8, %v8218_v4  ;;  %v7665_v8 = vld [vmem:[#allocation10 + $0x684] sm:$0xf] }
 0x529   :  { %v2644_v10 = vadd.f32 1e-05, %v2643_v9  ;;  %v6605_v9 = vld [vmem:[#allocation10 + $0x6c0] sm:$0xf0] }
 0x52b   :  { %7862 = vrsqrt.f32 %v2644_v10  ;;  %vm2651_vm8 = vweird.f32 %v2644_v10 }
 0x52c   :  { %7864 = vrsqrt.f32 %v2669_v29 }
 0x531   :  { %v7863_v11 = vpop.eup %7862 }
 0x532   :  { %v2646_v12 = vmul.f32 %v7863_v11, %v2644_v10  ;;  %vm2652_vm7 = vweird.f32 %v7863_v11  ;;  %v7865_v36 = vpop.eup %7864  ;;  %v6611_v10 = vld [vmem:[#allocation10 + $0x688] sm:$0xf] }
 0x533   :  { %vm2653_vm9 = vmor %vm2651_vm8, %vm2652_vm7  ;;  %v2671_v30 = vmul.f32 %v7865_v36, %v2669_v29  ;;  %vm2677_vm10 = vweird.f32 %v7865_v36 }
 0x534   :  { %v2647_v13 = vmul.f32 %v7863_v11, %v2646_v12  ;;  %vm2678_vm12 = vmor %vm2676_vm11, %vm2677_vm10  ;;  %v7674_v12 = vld [vmem:[#allocation10 + $0x6c4] sm:$0xf0] }
 0x535   :  { %v2672_v31 = vmul.f32 %v7865_v36, %v2671_v30 }
 0x536   :  { %v2648_v14 = vmul.f32 0.5, %v2647_v13  ;;  %v7666_v13 = vld [vmem:[#allocation10 + $0x68c] sm:$0xf] }
 0x537   :  { %v2673_v24 = vmul.f32 0.5, %v2672_v31  ;;  %v6475_v31 = vld [vmem:[#allocation10 + $0x580] sm:$0xf] }
 0x538   :  { %v2649_v15 = vsub.f32 1.5, %v2648_v14  ;;  %v6613_v14 = vld [vmem:[#allocation10 + $0x6c8] sm:$0xf0] }
 0x539   :  { %v2674_v33 = vsub.f32 1.5, %v2673_v24  ;;  %v7641_v24 = vld [vmem:[#allocation10 + $0x5bc] sm:$0xf0] }
 0x53a   :  { %v2650_v16 = vmul.f32 %v7863_v11, %v2649_v15  ;;  %v6608_v15 = vor.u32 %v7665_v8, %v6605_v9  ;;  %v6283_v9 = vld [vmem:[#allocation10 + $0x400] sm:$0xf] }
 0x53b   :  { %v2675_v34 = vmul.f32 %v7865_v36, %v2674_v33  ;;  %v7633_v33 = vld [vmem:[#allocation10 + $0x584] sm:$0xf] }
 0x53c   :  { %v2654_v17 = vsel %vm2653_vm9, %v7863_v11, %v2650_v16  ;;  %v6604_v11 = vor.u32 %v7673_v6, %v6603_v5  ;;  %v6612_v16 = vor.u32 %v7674_v12, %v6611_v10  ;;  %v7593_v10 = vld [vmem:[#allocation10 + $0x43c] sm:$0xf0] }
 0x53d   :  { %v2655_v19 = vmul.f32 %v2654_v17, %v2639_v45  ;;  %v2679_v35 = vsel %vm2678_vm12, %v7865_v36, %v2675_v34  ;;  %v6672_v45 = vor.u32 %v7681_v60, %v6669_v61  ;;  %v7657_v17 = vld [vmem:[#allocation10 + $0x63c] sm:$0xf0]  ;;  %v6552_v34 = vor.u32 %v7650_v27, %v6549_v28  ;;  %v6349_v60 = vld [vmem:[#allocation10 + $0x4c0] sm:$0xf0]  ;;  %v6355_v61 = vld [vmem:[#allocation10 + $0x488] sm:$0xf] }
 0x53e   :  { %v2680_v63 = vmul.f32 %v2679_v35, %v8263_v46  ;;  %v7697_v46 = vld [vmem:[#allocation10 + $0x784] sm:$0xf]  ;;  %3609 = vmatpush.bf16.msra.mxu3 %v6604_v11  ;;  %3635 = vmatpush.bf16.msrb.mxu1 %v6612_v16  ;;  %v6352_v1 = vor.u32 %v7601_v58, %v6349_v60  ;;  %v6356_v2 = vor.u32 %v7610_v62, %v6355_v61  ;;  %v7659_v60 = vld [vmem:[#allocation10 + $0x64c] sm:$0xf0]  ;;  %v7651_v61 = vld [vmem:[#allocation10 + $0x614] sm:$0xf] }
 0x53f   :  { %v2657_v22 = vmul.f32 %v2656_v50, %v2655_v19  ;;  %v6736_v54 = vor.u32 %v7697_v46, %v6733_v51  ;;  %v6539_v50 = vld [vmem:[#allocation10 + $0x600] sm:$0xf]  ;;  %v7649_v19 = vld [vmem:[#allocation10 + $0x604] sm:$0xf]  ;;  %v7626_v51 = vld [vmem:[#allocation10 + $0x544] sm:$0xf0]  ;;  %v6284_v12 = vor.u32 %v7593_v10, %v6283_v9  ;;  %v6632_v58 = vor.u32 %v7668_v56, %v6629_v57 }
 0x540   :  { %v2682_v40 = vmul.f32 %v2681_v38, %v2680_v63  ;;  %v6540_v29 = vor.u32 %v7657_v17, %v6539_v50  ;;  %v6477_v35 = vld [vmem:[#allocation10 + $0x5c0] sm:$0xf0]  ;;  %v6483_v63 = vld [vmem:[#allocation10 + $0x588] sm:$0xf]  ;;  %v6420_v55 = vor.u32 %v7626_v51, %v6419_v49  ;;  %v7586_v17 = vld [vmem:[#allocation10 + $0x40c] sm:$0xf] }
 0x541   :  { %v2659_v23 = vadd.f32 %v2658_v21, %v2657_v22  ;;  %3620 = vmatpush.bf16.msrb.mxu0 %v6736_v54  ;;  %v6616_v21 = vor.u32 %v7666_v13, %v6613_v14  ;;  %v6541_v22 = vld [vmem:[#allocation10 + $0x640] sm:$0xf0]  ;;  %v7642_v38 = vld [vmem:[#allocation10 + $0x5c4] sm:$0xf0]  ;;  %v7667_v49 = vld [vmem:[#allocation10 + $0x694] sm:$0xf] }
 0x542   :  { %v2684_v47 = vadd.f32 %v2683_v42, %v2682_v40  ;;  %v6544_v36 = vor.u32 %v7649_v19, %v6541_v22  ;;  %v6485_v40 = vld [vmem:[#allocation10 + $0x5c8] sm:$0xf0]  ;;  %3610 = vmatpush.bf16.msra.mxu3 %v6540_v29  ;;  %v6476_v42 = vor.u32 %v7641_v24, %v6475_v31  ;;  %v6413_v46 = vld [vmem:[#allocation10 + $0x540] sm:$0xf0]  ;;  %v6291_v14 = vld [vmem:[#allocation10 + $0x408] sm:$0xf] }
 0x543   :  { %v2701_v26 = vpack.c.bf16 %v2659_v23, %v2659_v23  ;;  %v6547_v23 = vld [vmem:[#allocation10 + $0x608] sm:$0xf]  ;;  %3648 = vmatpush.bf16.msrb.mxu2 %v6616_v21  ;;  %v6416_v20 = vor.u32 %v7617_v48, %v6413_v46  ;;  %v7585_v11 = vld [vmem:[#allocation10 + $0x404] sm:$0xf]  ;;  %v6293_v19 = vld [vmem:[#allocation10 + $0x448] sm:$0xf0] }
 0x544   :  { %v6285_v13 = vld [vmem:[#allocation10 + $0x440] sm:$0xf0]  ;;  %v6296_v21 = vor.u32 %v7586_v17, %v6293_v19  ;;  %v7707_v22 = vld [vmem:[#allocation10 + $0x7cc] sm:$0xf0]  ;;  %v6755_v29 = vld [vmem:[#allocation10 + $0x798] sm:$0xf] }
 0x545   :  { %2759 = vmatmul.bf16.vlgmr.msra.gmra.mxu2 %v2701_v26  ;;  %3621 = vmatpush.bf16.msrb.mxu0 %v6672_v45  ;;  %v7658_v26 = vld [vmem:[#allocation10 + $0x644] sm:$0xf0]  ;;  %v7602_v45 = vld [vmem:[#allocation10 + $0x48c] sm:$0xf]  ;;  %v6288_v16 = vor.u32 %v7585_v11, %v6285_v13  ;;  %v6757_v24 = vld [vmem:[#allocation10 + $0x7d8] sm:$0xf0] }
 0x546   :  { %v6548_v30 = vor.u32 %v7658_v26, %v6547_v23  ;;  %3611 = vmatpush.bf16.msra.mxu3 %v6476_v42  ;;  %v6360_v5 = vor.u32 %v7602_v45, %v6357_v25  ;;  %v7699_v23 = vld [vmem:[#allocation10 + $0x794] sm:$0xf]  ;;  %v7675_v46 = vld [vmem:[#allocation10 + $0x6cc] sm:$0xf0]  ;;  %v6563_v25 = vld [vmem:[#allocation10 + $0x618] sm:$0xf] }
 0x547   :  { %3649 = vmatpush.bf16.msrb.mxu2 %v6552_v34  ;;  %v6749_v26 = vld [vmem:[#allocation10 + $0x7d0] sm:$0xf0]  ;;  %v7691_v34 = vld [vmem:[#allocation10 + $0x74c] sm:$0xf0]  ;;  %v6499_v13 = vld [vmem:[#allocation10 + $0x598] sm:$0xf] }
 0x548   :  { %3636 = vmatpush.bf16.msrb.mxu1 %v6548_v30  ;;  %v6752_v28 = vor.u32 %v7699_v23, %v6749_v26  ;;  %v7700_v30 = vld [vmem:[#allocation10 + $0x79c] sm:$0xf]  ;;  %v6557_v45 = vld [vmem:[#allocation10 + $0x650] sm:$0xf0]  ;;  %v7643_v9 = vld [vmem:[#allocation10 + $0x5cc] sm:$0xf0] }
 0x549   :  { %3622 = vmatpush.bf16.msrb.mxu0 %v6608_v15  ;;  %v7594_v15 = vld [vmem:[#allocation10 + $0x444] sm:$0xf0]  ;;  %v7635_v10 = vld [vmem:[#allocation10 + $0x594] sm:$0xf]  ;;  %v6501_v17 = vld [vmem:[#allocation10 + $0x5d8] sm:$0xf0] }
 0x54a   :  { %v6292_v50 = vor.u32 %v7594_v15, %v6291_v14  ;;  %v7644_v14 = vld [vmem:[#allocation10 + $0x5d4] sm:$0xf0]  ;;  %v6429_v26 = vld [vmem:[#allocation10 + $0x550] sm:$0xf0]  ;;  %v6309_v56 = vld [vmem:[#allocation10 + $0x458] sm:$0xf0] }
 0x54d   :  { %3623 = vmatpush.bf16.msrb.mxu0 %v6544_v36  ;;  %v7708_v36 = vld [vmem:[#allocation10 + $0x7d4] sm:$0xf0] }
 0x54e   :  { %v6756_v31 = vor.u32 %v7708_v36, %v6755_v29 }
 0x5c8   :  { %v2760_v43 = vpop.f32.mrf.mxu2 }
 0x5c9   :  { %v2761_v44 = vadd.f32 %v2760_v43, %v2702_v39  ;;  %v7634_v39 = vld [vmem:[#allocation10 + $0x58c] sm:$0xf]  ;;  %v6480_v43 = vor.u32 %v7633_v33, %v6477_v35  ;;  %v6683_v33 = vld [vmem:[#allocation10 + $0x710] sm:$0xf]  ;;  %v6760_v35 = vor.u32 %v7700_v30, %v6757_v24  ;;  %v7620_v30 = vld [vmem:[#allocation10 + $0x51c] sm:$0xf] }
 0x5ca   :  { %v6488_v18 = vor.u32 %v7634_v39, %v6485_v40  ;;  %v6685_v39 = vld [vmem:[#allocation10 + $0x750] sm:$0xf0]  ;;  %v6691_v40 = vld [vmem:[#allocation10 + $0x718] sm:$0xf] }
 0x5cb   :  { %v8281_v32 = vadd.f32 %v2761_v44, %v2684_v47  ;;  %v6484_v44 = vor.u32 %v7642_v38, %v6483_v63  ;;  %v6411_v47 = vld [vmem:[#allocation10 + $0x500] sm:$0xf]  ;;  %3624 = vmatpush.bf16.msrb.mxu0 %v6480_v43  ;;  %v6684_v63 = vor.u32 %v7691_v34, %v6683_v33  ;;  %v7683_v38 = vld [vmem:[#allocation10 + $0x714] sm:$0xf]  ;;  %v7692_v43 = vld [vmem:[#allocation10 + $0x754] sm:$0xf0] }
 0x5cc   :  { %3650 = vmatpush.bf16.msrb.mxu2 %v6488_v18  ;;  %v6688_v42 = vor.u32 %v7683_v38, %v6685_v39  ;;  %v6619_v18 = vld [vmem:[#allocation10 + $0x690] sm:$0xf]  ;;  %v6365_v38 = vld [vmem:[#allocation10 + $0x4d0] sm:$0xf0]  ;;  %v6371_v39 = vld [vmem:[#allocation10 + $0x498] sm:$0xf] }
 0x5cd   :  { %2765 = vadd.xlane.f32.xlu2 %v8281_v32  ;;  %3637 = vmatpush.bf16.msrb.mxu1 %v6484_v44  ;;  %v7684_v44 = vld [vmem:[#allocation10 + $0x71c] sm:$0xf]  ;;  %v6620_v51 = vor.u32 %v7675_v46, %v6619_v18  ;;  %v6363_v33 = vld [vmem:[#allocation10 + $0x490] sm:$0xf]  ;;  %v7587_v46 = vld [vmem:[#allocation10 + $0x414] sm:$0xf] }
 0x5ce   :  { %v7611_v34 = vld [vmem:[#allocation10 + $0x4cc] sm:$0xf0] }
 0x5cf   :  { %3625 = vmatpush.bf16.msrb.mxu0 %v6416_v20  ;;  %v6624_v20 = vor.u32 %v7667_v49, %v6621_v52  ;;  %v7595_v18 = vld [vmem:[#allocation10 + $0x44c] sm:$0xf0]  ;;  %v6307_v52 = vld [vmem:[#allocation10 + $0x418] sm:$0xf] }
 0x5d0   :  { %v2762_v41 = vpop.f32.mrf.mxu2  ;;  %3651 = vmatpush.bf16.msrb.mxu2 %v6424_v59  ;;  %v6555_v59 = vld [vmem:[#allocation10 + $0x610] sm:$0xf] }
 0x5d1   :  { %v7625_v41 = vld [vmem:[#allocation10 + $0x53c] sm:$0xf0]  ;;  %3638 = vmatpush.bf16.msrb.mxu1 %v6420_v55  ;;  %v6556_v62 = vor.u32 %v7659_v60, %v6555_v59 }
 0x5d2   :  { %v6412_v54 = vor.u32 %v7625_v41, %v6411_v47  ;;  %v6693_v47 = vld [vmem:[#allocation10 + $0x758] sm:$0xf0]  ;;  %v6692_v41 = vor.u32 %v7692_v43, %v6691_v40  ;;  %v7612_v40 = vld [vmem:[#allocation10 + $0x4d4] sm:$0xf0] }
 0x5d3   :  { %3626 = vmatpush.bf16.msrb.mxu0 %v6352_v1  ;;  %v6696_v48 = vor.u32 %v7684_v44, %v6693_v47  ;;  %v6560_v1 = vor.u32 %v7651_v61, %v6557_v45  ;;  %v6372_v43 = vor.u32 %v7612_v40, %v6371_v39  ;;  %v7604_v44 = vld [vmem:[#allocation10 + $0x49c] sm:$0xf]  ;;  %v6643_v39 = vld [vmem:[#allocation10 + $0x6a8] sm:$0xf] }
 0x5d4   :  { %3612 = vmatpush.bf16.msra.mxu3 %v6412_v54  ;;  %3652 = vmatpush.bf16.msrb.mxu2 %v6360_v5  ;;  %v7676_v54 = vld [vmem:[#allocation10 + $0x6d4] sm:$0xf0]  ;;  %v6565_v5 = vld [vmem:[#allocation10 + $0x658] sm:$0xf0]  ;;  %v7678_v40 = vld [vmem:[#allocation10 + $0x6e4] sm:$0xf0] }
 0x5d5   :  { %3639 = vmatpush.bf16.msrb.mxu1 %v6356_v2  ;;  %v6628_v55 = vor.u32 %v7676_v54, %v6627_v53  ;;  %v6373_v47 = vld [vmem:[#allocation10 + $0x4d8] sm:$0xf0]  ;;  %v7596_v53 = vld [vmem:[#allocation10 + $0x454] sm:$0xf0] }
 0x5d7   :  { %3627 = vmatpush.bf16.msrb.mxu0 %v6288_v16  ;;  %v6500_v16 = vor.u32 %v7644_v14, %v6499_v13  ;;  %v6771_v13 = vld [vmem:[#allocation10 + $0x7a8] sm:$0xf] }
 0x5d8   :  { %3613 = vmatpush.bf16.msra.mxu3 %v6348_v0  ;;  %3653 = vmatpush.bf16.msrb.mxu2 %v6296_v21  ;;  %v7660_v0 = vld [vmem:[#allocation10 + $0x654] sm:$0xf0]  ;;  %v7627_v21 = vld [vmem:[#allocation10 + $0x54c] sm:$0xf0] }
 0x5d9   :  { %3640 = vmatpush.bf16.msrb.mxu1 %v6292_v50  ;;  %v6564_v2 = vor.u32 %v7660_v0, %v6563_v25  ;;  %v7636_v50 = vld [vmem:[#allocation10 + $0x59c] sm:$0xf] }
 0x5da   :  { %v6504_v19 = vor.u32 %v7636_v50, %v6501_v17  ;;  %v6773_v50 = vld [vmem:[#allocation10 + $0x7e8] sm:$0xf0] }
 0x5db   :  { %3672 = vmatpush.bf16.msra.mxu0 %v6752_v28  ;;  %v7628_v28 = vld [vmem:[#allocation10 + $0x554] sm:$0xf0] }
 0x5dc   :  { %3614 = vmatpush.bf16.msra.mxu3 %v6284_v12  ;;  %3698 = vmatpush.bf16.msra.mxu2 %v6760_v35  ;;  %v6493_v12 = vld [vmem:[#allocation10 + $0x5d0] sm:$0xf0] }
 0x5dd   :  { %3685 = vmatpush.bf16.msra.mxu1 %v6756_v31  ;;  %v6496_v15 = vor.u32 %v7635_v10, %v6493_v12  ;;  %v6437_v31 = vld [vmem:[#allocation10 + $0x558] sm:$0xf0]  ;;  %v7603_v35 = vld [vmem:[#allocation10 + $0x494] sm:$0xf]  ;;  %v7709_v10 = vld [vmem:[#allocation10 + $0x7dc] sm:$0xf0] }
 0x5de   :  { %v6440_v24 = vor.u32 %v7620_v30, %v6437_v31  ;;  %v6765_v12 = vld [vmem:[#allocation10 + $0x7e0] sm:$0xf0] }
 0x5df   :  { %3673 = vmatpush.bf16.msra.mxu0 %v6688_v42  ;;  %v6368_v42 = vor.u32 %v7603_v35, %v6365_v38  ;;  %v6637_v38 = vld [vmem:[#allocation10 + $0x6e0] sm:$0xf0] }
 0x5e0   :  { %3699 = vmatpush.bf16.msra.mxu2 %v6696_v48  ;;  %v6299_v48 = vld [vmem:[#allocation10 + $0x410] sm:$0xf] }
 0x5e1   :  { %3686 = vmatpush.bf16.msra.mxu1 %v6692_v41  ;;  %v6376_v41 = vor.u32 %v7604_v44, %v6373_v47  ;;  %v6300_v49 = vor.u32 %v7595_v18, %v6299_v48  ;;  %v7661_v48 = vld [vmem:[#allocation10 + $0x65c] sm:$0xf0]  ;;  %v6644_v18 = vor.u32 %v7678_v40, %v6643_v39  ;;  %v7598_v39 = vld [vmem:[#allocation10 + $0x464] sm:$0xf0]  ;;  %v7590_v40 = vld [vmem:[#allocation10 + $0x42c] sm:$0xf] }
 0x5e3   :  { %3674 = vmatpush.bf16.msra.mxu0 %v6624_v20  ;;  %v6308_v20 = vor.u32 %v7596_v53, %v6307_v52  ;;  %v6579_v52 = vld [vmem:[#allocation10 + $0x628] sm:$0xf] }
 0x5e4   :  { %3700 = vmatpush.bf16.msra.mxu2 %v6632_v58  ;;  %v7662_v53 = vld [vmem:[#allocation10 + $0x664] sm:$0xf0] }
 0x5e5   :  { %3687 = vmatpush.bf16.msra.mxu1 %v6628_v55  ;;  %v7588_v55 = vld [vmem:[#allocation10 + $0x41c] sm:$0xf] }
 0x5e6   :  { %v6312_v57 = vor.u32 %v7588_v55, %v6309_v56 }
 0x5e7   :  { %3675 = vmatpush.bf16.msra.mxu0 %v6560_v1 }
 0x5e9   :  { %3688 = vmatpush.bf16.msra.mxu1 %v6564_v2  ;;  %v2785_v2 = vperm.slane %v8276_v37, 5 }
 0x5eb   :  { %3676 = vmatpush.bf16.msra.mxu0 %v6496_v15  ;;  %v7710_v15 = vld [vmem:[#allocation10 + $0x7e4] sm:$0xf0] }
 0x5ed   :  { %3689 = vmatpush.bf16.msra.mxu1 %v6500_v16  ;;  %v7702_v16 = vld [vmem:[#allocation10 + $0x7ac] sm:$0xf] }
 0x640   :  { %v2766_v3 = vpop.xlane.xlu2 %2765 }
 0x641   :  { %v2767_v6 = vmul.f32 %v2766_v3, %v8218_v4  ;;  %v7652_v3 = vld [vmem:[#allocation10 + $0x61c] sm:$0xf] }
 0x643   :  { %v8286_v7 = vsub.f32 %v8281_v32, %v2767_v6  ;;  %v6747_v32 = vld [vmem:[#allocation10 + $0x790] sm:$0xf]  ;;  %v6568_v6 = vor.u32 %v7652_v3, %v6565_v5  ;;  %v2787_v5 = vperm.slane %v8276_v37, 6  ;;  %v6699_v37 = vld [vmem:[#allocation10 + $0x720] sm:$0xf] }
 0x644   :  { %v6748_v27 = vor.u32 %v7707_v22, %v6747_v32  ;;  %v6427_v32 = vld [vmem:[#allocation10 + $0x510] sm:$0xf]  ;;  %v7619_v22 = vld [vmem:[#allocation10 + $0x514] sm:$0xf] }
 0x645   :  { %v2769_v8 = vmul.f32 %v8286_v7, %v8286_v7  ;;  %3701 = vmatpush.bf16.msra.mxu2 %v6568_v6  ;;  %v6428_v23 = vor.u32 %v7627_v21, %v6427_v32  ;;  %v6432_v29 = vor.u32 %v7619_v22, %v6429_v26  ;;  %v7693_v21 = vld [vmem:[#allocation10 + $0x75c] sm:$0xf0]  ;;  %v6776_v22 = vor.u32 %v7702_v16, %v6773_v50  ;;  %v6701_v26 = vld [vmem:[#allocation10 + $0x760] sm:$0xf0]  ;;  %v6453_v16 = vld [vmem:[#allocation10 + $0x568] sm:$0xf0] }
 0x646   :  { %3659 = vmatpush.bf16.msrb.mxu3 %v6748_v27  ;;  %v6435_v27 = vld [vmem:[#allocation10 + $0x518] sm:$0xf]  ;;  %v6700_v30 = vor.u32 %v7693_v21, %v6699_v37  ;;  %v7613_v37 = vld [vmem:[#allocation10 + $0x4dc] sm:$0xf0] }
 0x647   :  { %2770 = vadd.xlane.f32.xlu0 %v2769_v8  ;;  %v6491_v8 = vld [vmem:[#allocation10 + $0x590] sm:$0xf]  ;;  %v6436_v36 = vor.u32 %v7628_v28, %v6435_v27  ;;  %3677 = vmatpush.bf16.msra.mxu0 %v6432_v29  ;;  %v6707_v27 = vld [vmem:[#allocation10 + $0x728] sm:$0xf]  ;;  %v7686_v29 = vld [vmem:[#allocation10 + $0x72c] sm:$0xf] }
 0x648   :  { %v6492_v11 = vor.u32 %v7643_v9, %v6491_v8  ;;  %v6763_v9 = vld [vmem:[#allocation10 + $0x7a0] sm:$0xf]  ;;  %v7694_v28 = vld [vmem:[#allocation10 + $0x764] sm:$0xf0] }
 0x649   :  { %3702 = vmatpush.bf16.msra.mxu2 %v6504_v19  ;;  %3690 = vmatpush.bf16.msra.mxu1 %v6436_v36  ;;  %v6764_v19 = vor.u32 %v7709_v10, %v6763_v9  ;;  %v6709_v36 = vld [vmem:[#allocation10 + $0x768] sm:$0xf0]  ;;  %v7621_v10 = vld [vmem:[#allocation10 + $0x524] sm:$0xf] }
 0x64a   :  { %3660 = vmatpush.bf16.msrb.mxu3 %v6684_v63  ;;  %v6364_v63 = vor.u32 %v7611_v34, %v6363_v33  ;;  %v7677_v33 = vld [vmem:[#allocation10 + $0x6dc] sm:$0xf0]  ;;  %v6708_v34 = vor.u32 %v7694_v28, %v6707_v27  ;;  %v6712_v35 = vor.u32 %v7686_v29, %v6709_v36  ;;  %v7614_v27 = vld [vmem:[#allocation10 + $0x4e4] sm:$0xf0]  ;;  %v7606_v28 = vld [vmem:[#allocation10 + $0x4ac] sm:$0xf] }
 0x64b   :  { %3678 = vmatpush.bf16.msra.mxu0 %v6368_v42  ;;  %v7670_v42 = vld [vmem:[#allocation10 + $0x6ac] sm:$0xf]  ;;  %v6315_v36 = vld [vmem:[#allocation10 + $0x420] sm:$0xf] }
 0x64c   :  { %v6389_v29 = vld [vmem:[#allocation10 + $0x4e8] sm:$0xf0] }
 0x64d   :  { %3703 = vmatpush.bf16.msra.mxu2 %v6440_v24  ;;  %3691 = vmatpush.bf16.msra.mxu1 %v6372_v43  ;;  %v6635_v24 = vld [vmem:[#allocation10 + $0x6a0] sm:$0xf]  ;;  %v6645_v43 = vld [vmem:[#allocation10 + $0x6e8] sm:$0xf0] }
 0x64e   :  { %3661 = vmatpush.bf16.msrb.mxu3 %v6620_v51  ;;  %v6301_v51 = vld [vmem:[#allocation10 + $0x450] sm:$0xf0]  ;;  %v6636_v44 = vor.u32 %v7677_v33, %v6635_v24  ;;  %v7597_v24 = vld [vmem:[#allocation10 + $0x45c] sm:$0xf0]  ;;  %v7589_v33 = vld [vmem:[#allocation10 + $0x424] sm:$0xf] }
 0x64f   :  { %v6304_v54 = vor.u32 %v7587_v46, %v6301_v51  ;;  %v6648_v46 = vor.u32 %v7670_v42, %v6645_v43  ;;  %v6573_v51 = vld [vmem:[#allocation10 + $0x660] sm:$0xf0]  ;;  %v6325_v42 = vld [vmem:[#allocation10 + $0x468] sm:$0xf0]  ;;  %v6779_v43 = vld [vmem:[#allocation10 + $0x7b0] sm:$0xf] }
 0x651   :  { %3704 = vmatpush.bf16.msra.mxu2 %v6376_v41  ;;  %3679 = vmatpush.bf16.msra.mxu0 %v6304_v54  ;;  %v6571_v41 = vld [vmem:[#allocation10 + $0x620] sm:$0xf]  ;;  %v7654_v54 = vld [vmem:[#allocation10 + $0x62c] sm:$0xf] }
 0x652   :  { %3662 = vmatpush.bf16.msrb.mxu3 %v6556_v62  ;;  %3692 = vmatpush.bf16.msra.mxu1 %v6308_v20  ;;  %v6581_v20 = vld [vmem:[#allocation10 + $0x668] sm:$0xf0]  ;;  %v6572_v55 = vor.u32 %v7661_v48, %v6571_v41  ;;  %v6781_v41 = vld [vmem:[#allocation10 + $0x7f0] sm:$0xf0]  ;;  %v6787_v48 = vld [vmem:[#allocation10 + $0x7b8] sm:$0xf] }
 0x655   :  { %3705 = vmatpush.bf16.msra.mxu2 %v6312_v57  ;;  %v6507_v57 = vld [vmem:[#allocation10 + $0x5a0] sm:$0xf] }
 0x656   :  { %3663 = vmatpush.bf16.msrb.mxu3 %v6492_v11  ;;  %v7701_v11 = vld [vmem:[#allocation10 + $0x7a4] sm:$0xf] }
 0x657   :  { %v6768_v32 = vor.u32 %v7701_v11, %v6765_v12  ;;  %v6445_v11 = vld [vmem:[#allocation10 + $0x560] sm:$0xf0]  ;;  %v6451_v12 = vld [vmem:[#allocation10 + $0x528] sm:$0xf] }
 0x65a   :  { %3664 = vmatpush.bf16.msrb.mxu3 %v6428_v23  ;;  %v7685_v23 = vld [vmem:[#allocation10 + $0x724] sm:$0xf] }
 0x65b   :  { %v6704_v31 = vor.u32 %v7685_v23, %v6701_v26  ;;  %v6381_v23 = vld [vmem:[#allocation10 + $0x4e0] sm:$0xf0]  ;;  %v6387_v26 = vld [vmem:[#allocation10 + $0x4a8] sm:$0xf] }
 0x65e   :  { %3665 = vmatpush.bf16.msrb.mxu3 %v6364_v63  ;;  %v7669_v63 = vld [vmem:[#allocation10 + $0x6a4] sm:$0xf] }
 0x65f   :  { %v6640_v47 = vor.u32 %v7669_v63, %v6637_v38  ;;  %v6392_v63 = vor.u32 %v7606_v28, %v6389_v29  ;;  %v6323_v38 = vld [vmem:[#allocation10 + $0x428] sm:$0xf]  ;;  %v6597_v28 = vld [vmem:[#allocation10 + $0x678] sm:$0xf0] }
 0x662   :  { %3666 = vmatpush.bf16.msrb.mxu3 %v6300_v49  ;;  %v7653_v49 = vld [vmem:[#allocation10 + $0x624] sm:$0xf] }
 0x663   :  { %v6576_v56 = vor.u32 %v7653_v49, %v6573_v51  ;;  %v7712_v49 = vld [vmem:[#allocation10 + $0x7f4] sm:$0xf0]  ;;  %v7704_v51 = vld [vmem:[#allocation10 + $0x7bc] sm:$0xf] }
 0x6ba   :  { %v2771_v58 = vpop.xlane.xlu0 %2770 }
 0x6bb   :  { %v2772_v59 = vmul.f32 %v2771_v58, %v8218_v4  ;;  %v7645_v58 = vld [vmem:[#allocation10 + $0x5dc] sm:$0xf0] }
 0x6bd   :  { %v2773_v60 = vadd.f32 1e-05, %v2772_v59  ;;  %v6580_v59 = vor.u32 %v7662_v53, %v6579_v52  ;;  %v6789_v52 = vld [vmem:[#allocation10 + $0x7f8] sm:$0xf0]  ;;  %v6324_v53 = vor.u32 %v7598_v39, %v6323_v38  ;;  %v7648_v38 = vld [vmem:[#allocation10 + $0x5f4] sm:$0xf0] }
 0x6be   :  { %v7640_v39 = vld [vmem:[#allocation10 + $0x5bc] sm:$0xf] }
 0x6bf   :  { %7866 = vrsqrt.f32 %v2773_v60  ;;  %vm2780_vm14 = vweird.f32 %v2773_v60 }
 0x6c5   :  { %v7867_v61 = vpop.eup %7866 }
 0x6c6   :  { %v2775_v62 = vmul.f32 %v7867_v61, %v2773_v60  ;;  %vm2781_vm13 = vweird.f32 %v7867_v61  ;;  %v6584_v60 = vor.u32 %v7654_v54, %v6581_v20  ;;  %v6328_v54 = vor.u32 %v7590_v40, %v6325_v42  ;;  %v6533_v40 = vld [vmem:[#allocation10 + $0x5f8] sm:$0xf0] }
 0x6c7   :  { %vm2782_vm15 = vmor %vm2780_vm14, %vm2781_vm13 }
 0x6c8   :  { %v2776_v45 = vmul.f32 %v7867_v61, %v2775_v62  ;;  %v6509_v62 = vld [vmem:[#allocation10 + $0x5e0] sm:$0xf0] }
 0x6ca   :  { %v2777_v25 = vmul.f32 0.5, %v2776_v45  ;;  %v6515_v45 = vld [vmem:[#allocation10 + $0x5a8] sm:$0xf] }
 0x6cc   :  { %v2778_v0 = vsub.f32 1.5, %v2777_v25  ;;  %v7646_v25 = vld [vmem:[#allocation10 + $0x5e4] sm:$0xf0] }
 0x6ce   :  { %v2779_v1 = vmul.f32 %v7867_v61, %v2778_v0  ;;  %v7638_v0 = vld [vmem:[#allocation10 + $0x5ac] sm:$0xf] }
 0x6d0   :  { %v2783_v3 = vsel %vm2782_vm15, %v7867_v61, %v2779_v1  ;;  %v7637_v61 = vld [vmem:[#allocation10 + $0x5a4] sm:$0xf]  ;;  %v6517_v1 = vld [vmem:[#allocation10 + $0x5e8] sm:$0xf0] }
 0x6d1   :  { %v2784_v6 = vmul.f32 %v2783_v3, %v8286_v7  ;;  %v6772_v7 = vor.u32 %v7710_v15, %v6771_v13  ;;  %v6512_v3 = vor.u32 %v7637_v61, %v6509_v62  ;;  %v6520_v9 = vor.u32 %v7638_v0, %v6517_v1  ;;  %v7630_v13 = vld [vmem:[#allocation10 + $0x564] sm:$0xf0]  ;;  %v7622_v15 = vld [vmem:[#allocation10 + $0x52c] sm:$0xf]  ;;  %v6717_v61 = vld [vmem:[#allocation10 + $0x770] sm:$0xf0] }
 0x6d2   :  { %v6452_v21 = vor.u32 %v7630_v13, %v6451_v12  ;;  %v6723_v62 = vld [vmem:[#allocation10 + $0x738] sm:$0xf]  ;;  %v6725_v0 = vld [vmem:[#allocation10 + $0x778] sm:$0xf0] }
 0x6d3   :  { %v2786_v8 = vmul.f32 %v2785_v2, %v2784_v6  ;;  %v6508_v2 = vor.u32 %v7645_v58, %v6507_v57  ;;  %v7629_v6 = vld [vmem:[#allocation10 + $0x55c] sm:$0xf0]  ;;  %v7695_v57 = vld [vmem:[#allocation10 + $0x76c] sm:$0xf0]  ;;  %v6788_v58 = vor.u32 %v7712_v49, %v6787_v48  ;;  %v7680_v12 = vld [vmem:[#allocation10 + $0x6f4] sm:$0xf0]  ;;  %v6536_v48 = vor.u32 %v7640_v39, %v6533_v40 }
 0x6d4   :  { %v7672_v13 = vld [vmem:[#allocation10 + $0x6bc] sm:$0xf]  ;;  %v6467_v49 = vld [vmem:[#allocation10 + $0x538] sm:$0xf]  ;;  %v7723_v39 = vld [vmem:[#allocation11 + $0x450] sm:$0xff] }
 0x6d5   :  { %v8294_v14 = vadd.f32 %v2787_v5, %v2786_v8  ;;  %v6443_v5 = vld [vmem:[#allocation10 + $0x520] sm:$0xf]  ;;  %v6516_v8 = vor.u32 %v7646_v25, %v6515_v45  ;;  %v7696_v45 = vld [vmem:[#allocation10 + $0x774] sm:$0xf0]  ;;  %v7688_v25 = vld [vmem:[#allocation10 + $0x73c] sm:$0xf] }
 0x6d6   :  { %v6444_v50 = vor.u32 %v7629_v6, %v6443_v5  ;;  %v7679_v5 = vld [vmem:[#allocation10 + $0x6ec] sm:$0xf0]  ;;  %v6724_v6 = vor.u32 %v7696_v45, %v6723_v62  ;;  %v7616_v62 = vld [vmem:[#allocation10 + $0x4f4] sm:$0xf0]  ;;  %v7608_v45 = vld [vmem:[#allocation10 + $0x4bc] sm:$0xf] }
 0x6d7   :  { %v8298_v17 = vpack.c.bf16 %v8294_v14, %v8294_v14  ;;  %v7731_v40 = vld [vmem:[#allocation11 + $0x490] sm:$0xff] }
 0x6d9   :  { %3615 = vmatmul.bf16.vlgmr.msra.gmra.mxu3 %v8298_v17  ;;  %3628 = vmatmul.bf16.vlgmr.msrb.gmra.mxu0 %v8298_v17 }
 0x6da   :  { %3641 = vmatmul.bf16.vlgmr.msrb.gmra.mxu1 %v8298_v17  ;;  %3654 = vmatmul.bf16.vlgmr.msrb.gmra.mxu2 %v8298_v17 }
 0x6db   :  { %3711 = vmatpush.bf16.msra.mxu3 %v6764_v19  ;;  %3724 = vmatpush.bf16.msrb.mxu0 %v6768_v32  ;;  %v6448_v19 = vor.u32 %v7621_v10, %v6445_v11  ;;  %v6379_v32 = vld [vmem:[#allocation10 + $0x4a0] sm:$0xf]  ;;  %v6653_v10 = vld [vmem:[#allocation10 + $0x6f0] sm:$0xf0]  ;;  %v6659_v11 = vld [vmem:[#allocation10 + $0x6b8] sm:$0xf] }
 0x6dc   :  { %3737 = vmatpush.bf16.msrb.mxu1 %v6772_v7  ;;  %3750 = vmatpush.bf16.msrb.mxu2 %v6776_v22  ;;  %v6456_v7 = vor.u32 %v7622_v15, %v6453_v16  ;;  %v7605_v22 = vld [vmem:[#allocation10 + $0x4a4] sm:$0xf]  ;;  %v6661_v15 = vld [vmem:[#allocation10 + $0x6f8] sm:$0xf0] }
 0x6df   :  { %3712 = vmatpush.bf16.msra.mxu3 %v6700_v30  ;;  %3725 = vmatpush.bf16.msrb.mxu0 %v6704_v31  ;;  %v6380_v30 = vor.u32 %v7613_v37, %v6379_v32  ;;  %v6384_v31 = vor.u32 %v7605_v22, %v6381_v23  ;;  %v7663_v32 = vld [vmem:[#allocation10 + $0x66c] sm:$0xf0]  ;;  %v6660_v37 = vor.u32 %v7680_v12, %v6659_v11  ;;  %v6589_v22 = vld [vmem:[#allocation10 + $0x670] sm:$0xf0]  ;;  %v6595_v23 = vld [vmem:[#allocation10 + $0x638] sm:$0xf] }
 0x6e0   :  { %3738 = vmatpush.bf16.msrb.mxu1 %v6708_v34  ;;  %3751 = vmatpush.bf16.msrb.mxu2 %v6712_v35  ;;  %v6317_v34 = vld [vmem:[#allocation10 + $0x460] sm:$0xf0]  ;;  %v6388_v35 = vor.u32 %v7614_v27, %v6387_v26  ;;  %v7664_v26 = vld [vmem:[#allocation10 + $0x674] sm:$0xf0]  ;;  %v7656_v27 = vld [vmem:[#allocation10 + $0x63c] sm:$0xf] }
 0x6e1   :  { %v7600_v11 = vld [vmem:[#allocation10 + $0x474] sm:$0xf0]  ;;  %v7592_v12 = vld [vmem:[#allocation10 + $0x43c] sm:$0xf] }
 0x6e3   :  { %3713 = vmatpush.bf16.msra.mxu3 %v6636_v44  ;;  %3726 = vmatpush.bf16.msrb.mxu0 %v6640_v47  ;;  %v7711_v44 = vld [vmem:[#allocation10 + $0x7ec] sm:$0xf0]  ;;  %v7703_v47 = vld [vmem:[#allocation10 + $0x7b4] sm:$0xf] }
 0x6e4   :  { %3739 = vmatpush.bf16.msrb.mxu1 %v6644_v18  ;;  %3752 = vmatpush.bf16.msrb.mxu2 %v6648_v46  ;;  %v6316_v18 = vor.u32 %v7597_v24, %v6315_v36  ;;  %v6320_v46 = vor.u32 %v7589_v33, %v6317_v34  ;;  %v6780_v20 = vor.u32 %v7711_v44, %v6779_v43  ;;  %v7639_v34 = vld [vmem:[#allocation10 + $0x5b4] sm:$0xf]  ;;  %v6459_v44 = vld [vmem:[#allocation10 + $0x530] sm:$0xf] }
 0x6e5   :  { %v6596_v24 = vor.u32 %v7664_v26, %v6595_v23  ;;  %v6600_v33 = vor.u32 %v7656_v27, %v6597_v28  ;;  %v7735_v23 = vld [vmem:[#allocation11 + $0x4b0] sm:$0xff]  ;;  %v7726_v28 = vld [vmem:[#allocation11 + $0x468] sm:$0xff] }
 0x6e6   :  { %v7719_v26 = vld [vmem:[#allocation11 + $0x430] sm:$0xff] }
 0x6e7   :  { %3714 = vmatpush.bf16.msra.mxu3 %v6572_v55  ;;  %3727 = vmatpush.bf16.msrb.mxu0 %v6576_v56  ;;  %v6784_v55 = vor.u32 %v7703_v47, %v6781_v41  ;;  %v6715_v56 = vld [vmem:[#allocation10 + $0x730] sm:$0xf] }
 0x6e8   :  { %3740 = vmatpush.bf16.msrb.mxu1 %v6580_v59  ;;  %3753 = vmatpush.bf16.msrb.mxu2 %v6584_v60  ;;  %v6792_v59 = vor.u32 %v7704_v51, %v6789_v52  ;;  %v7687_v60 = vld [vmem:[#allocation10 + $0x734] sm:$0xf]  ;;  %v6716_v1 = vor.u32 %v7695_v57, %v6715_v56  ;;  %v7631_v47 = vld [vmem:[#allocation10 + $0x56c] sm:$0xf0]  ;;  %v7632_v51 = vld [vmem:[#allocation10 + $0x574] sm:$0xf0] }
 0x6e9   :  { %3667 = vmatmul.bf16.vlgmr.msrb.gmra.mxu3 %v8298_v17  ;;  %3680 = vmatmul.bf16.vlgmr.msra.gmra.mxu0 %v8298_v17  ;;  %v7624_v52 = vld [vmem:[#allocation10 + $0x53c] sm:$0xf]  ;;  %v7615_v56 = vld [vmem:[#allocation10 + $0x4ec] sm:$0xf0]  ;;  %v6468_v57 = vor.u32 %v7632_v51, %v6467_v49 }
 0x6ea   :  { %3693 = vmatmul.bf16.vlgmr.msra.gmra.mxu1 %v8298_v17  ;;  %3706 = vmatmul.bf16.vlgmr.msra.gmra.mxu2 %v8298_v17  ;;  %v7743_v27 = vld [vmem:[#allocation11 + $0x4f0] sm:$0xff]  ;;  %v7760_v49 = vld [vmem:[#allocation11 + $0x578] sm:$0xff] }
 0x6eb   :  { %3715 = vmatpush.bf16.msra.mxu3 %v6508_v2  ;;  %3728 = vmatpush.bf16.msrb.mxu0 %v6512_v3  ;;  %v6720_v2 = vor.u32 %v7687_v60, %v6717_v61  ;;  %v6651_v3 = vld [vmem:[#allocation10 + $0x6b0] sm:$0xf]  ;;  %v6397_v60 = vld [vmem:[#allocation10 + $0x4f0] sm:$0xf0]  ;;  %v6403_v61 = vld [vmem:[#allocation10 + $0x4b8] sm:$0xf] }
 0x6ec   :  { %3741 = vmatpush.bf16.msrb.mxu1 %v6516_v8  ;;  %3754 = vmatpush.bf16.msrb.mxu2 %v6520_v9  ;;  %v6728_v8 = vor.u32 %v7688_v25, %v6725_v0  ;;  %v7671_v9 = vld [vmem:[#allocation10 + $0x6b4] sm:$0xf]  ;;  %v6652_v16 = vor.u32 %v7679_v5, %v6651_v3  ;;  %v6405_v25 = vld [vmem:[#allocation10 + $0x4f8] sm:$0xf0]  ;;  %v7599_v3 = vld [vmem:[#allocation10 + $0x46c] sm:$0xf0]  ;;  %v6404_v5 = vor.u32 %v7616_v62, %v6403_v61 }
 0x6ed   :  { %v7768_v51 = vld [vmem:[#allocation11 + $0x5b8] sm:$0xff]  ;;  %v7750_v61 = vld [vmem:[#allocation11 + $0x528] sm:$0xff] }
 0x6ee   :  { %v7774_v62 = vld [vmem:[#allocation11 + $0x5e8] sm:$0xff] }
 0x6ef   :  { %3716 = vmatpush.bf16.msra.mxu3 %v6444_v50  ;;  %3729 = vmatpush.bf16.msrb.mxu0 %v6448_v19  ;;  %v6656_v50 = vor.u32 %v7671_v9, %v6653_v10  ;;  %v6587_v19 = vld [vmem:[#allocation10 + $0x630] sm:$0xf]  ;;  %v6333_v9 = vld [vmem:[#allocation10 + $0x470] sm:$0xf0]  ;;  %v6339_v10 = vld [vmem:[#allocation10 + $0x438] sm:$0xf] }
 0x6f0   :  { %3742 = vmatpush.bf16.msrb.mxu1 %v6452_v21  ;;  %3755 = vmatpush.bf16.msrb.mxu2 %v6456_v7  ;;  %v6664_v21 = vor.u32 %v7672_v13, %v6661_v15  ;;  %v7655_v7 = vld [vmem:[#allocation10 + $0x634] sm:$0xf]  ;;  %v6588_v29 = vor.u32 %v7663_v32, %v6587_v19  ;;  %v6341_v13 = vld [vmem:[#allocation10 + $0x478] sm:$0xf0] }
 0x6f1   :  { %v6592_v36 = vor.u32 %v7655_v7, %v6589_v22  ;;  %v6344_v19 = vor.u32 %v7592_v12, %v6341_v13  ;;  %v7728_v32 = vld [vmem:[#allocation11 + $0x478] sm:$0xff]  ;;  %v7727_v22 = vld [vmem:[#allocation11 + $0x470] sm:$0xff]  ;;  %v7754_v12 = vld [vmem:[#allocation11 + $0x548] sm:$0xff] }
 0x6f2   :  { %v7744_v7 = vld [vmem:[#allocation11 + $0x4f8] sm:$0xff]  ;;  %v7762_v13 = vld [vmem:[#allocation11 + $0x588] sm:$0xff] }
 0x6f3   :  { %3717 = vmatpush.bf16.msra.mxu3 %v6380_v30  ;;  %3730 = vmatpush.bf16.msrb.mxu0 %v6384_v31  ;;  %v6523_v30 = vld [vmem:[#allocation10 + $0x5b0] sm:$0xf] }
 0x6f4   :  { %3743 = vmatpush.bf16.msrb.mxu1 %v6388_v35  ;;  %3756 = vmatpush.bf16.msrb.mxu2 %v6392_v63  ;;  %v7647_v31 = vld [vmem:[#allocation10 + $0x5ec] sm:$0xf0]  ;;  %v6525_v35 = vld [vmem:[#allocation10 + $0x5f0] sm:$0xf0]  ;;  %v6531_v63 = vld [vmem:[#allocation10 + $0x5b8] sm:$0xf] }
 0x6f5   :  { %v6524_v42 = vor.u32 %v7647_v31, %v6523_v30  ;;  %v6528_v43 = vor.u32 %v7639_v34, %v6525_v35  ;;  %v6532_v41 = vor.u32 %v7648_v38, %v6531_v63  ;;  %v7742_v30 = vld [vmem:[#allocation11 + $0x4e8] sm:$0xff]  ;;  %v7725_v31 = vld [vmem:[#allocation11 + $0x460] sm:$0xff]  ;;  %v7724_v34 = vld [vmem:[#allocation11 + $0x458] sm:$0xff] }
 0x6f6   :  { %v7732_v35 = vld [vmem:[#allocation11 + $0x498] sm:$0xff] }
 0x6f7   :  { %3718 = vmatpush.bf16.msra.mxu3 %v6316_v18  ;;  %3731 = vmatpush.bf16.msrb.mxu0 %v6320_v46  ;;  %v7623_v18 = vld [vmem:[#allocation10 + $0x534] sm:$0xf]  ;;  %v7716_v63 = vld [vmem:[#allocation11 + $0x418] sm:$0xff] }
 0x6f8   :  { %3744 = vmatpush.bf16.msrb.mxu1 %v6324_v53  ;;  %3757 = vmatpush.bf16.msrb.mxu2 %v6328_v54  ;;  %v6461_v46 = vld [vmem:[#allocation10 + $0x570] sm:$0xf0]  ;;  %v6469_v53 = vld [vmem:[#allocation10 + $0x578] sm:$0xf0]  ;;  %v6460_v54 = vor.u32 %v7631_v47, %v6459_v44  ;;  %v7722_v44 = vld [vmem:[#allocation11 + $0x448] sm:$0xff] }
 0x6f9   :  { %v7740_v38 = vld [vmem:[#allocation11 + $0x4d8] sm:$0xff]  ;;  %v7730_v47 = vld [vmem:[#allocation11 + $0x488] sm:$0xff] }
 0x6fa   :  { %3719 = vmatmul.bf16.vlgmr.msra.gmra.mxu3 %v8298_v17  ;;  %3732 = vmatmul.bf16.vlgmr.msrb.gmra.mxu0 %v8298_v17 }
 0x6fb   :  { %3763 = vmatpush.bf16.msrb.mxu3 %v6780_v20  ;;  %3776 = vmatpush.bf16.msra.mxu0 %v6784_v55  ;;  %v6464_v20 = vor.u32 %v7623_v18, %v6461_v46  ;;  %v6395_v55 = vld [vmem:[#allocation10 + $0x4b0] sm:$0xf]  ;;  %v7721_v18 = vld [vmem:[#allocation11 + $0x440] sm:$0xff] }
 0x6fc   :  { %3789 = vmatpush.bf16.msra.mxu1 %v6788_v58  ;;  %3802 = vmatpush.bf16.msra.mxu2 %v6792_v59  ;;  %v6472_v58 = vor.u32 %v7624_v52, %v6469_v53  ;;  %v7607_v59 = vld [vmem:[#allocation10 + $0x4b4] sm:$0xf]  ;;  %v6396_v0 = vor.u32 %v7615_v56, %v6395_v55  ;;  %v7729_v46 = vld [vmem:[#allocation11 + $0x480] sm:$0xff] }
 0x6fd   :  { %3745 = vmatmul.bf16.vlgmr.msrb.gmra.mxu1 %v8298_v17  ;;  %3758 = vmatmul.bf16.vlgmr.msrb.gmra.mxu2 %v8298_v17  ;;  %v7713_v52 = vld [vmem:[#allocation11 + $0x400] sm:$0xff]  ;;  %v7759_v55 = vld [vmem:[#allocation11 + $0x570] sm:$0xff] }
 0x6fe   :  { %v7737_v53 = vld [vmem:[#allocation11 + $0x4c0] sm:$0xff]  ;;  %v7767_v56 = vld [vmem:[#allocation11 + $0x5b0] sm:$0xff] }
 0x6ff   :  { %3764 = vmatpush.bf16.msrb.mxu3 %v6716_v1  ;;  %3777 = vmatpush.bf16.msra.mxu0 %v6720_v2  ;;  %v6400_v1 = vor.u32 %v7607_v59, %v6397_v60  ;;  %v6331_v2 = vld [vmem:[#allocation10 + $0x430] sm:$0xf]  ;;  %v7758_v59 = vld [vmem:[#allocation11 + $0x568] sm:$0xff] }
 0x700   :  { %3790 = vmatpush.bf16.msra.mxu1 %v6724_v6  ;;  %3803 = vmatpush.bf16.msra.mxu2 %v6728_v8  ;;  %v6408_v6 = vor.u32 %v7608_v45, %v6405_v25  ;;  %v7591_v8 = vld [vmem:[#allocation10 + $0x434] sm:$0xf]  ;;  %v6332_v15 = vor.u32 %v7599_v3, %v6331_v2  ;;  %v7766_v60 = vld [vmem:[#allocation11 + $0x5a8] sm:$0xff]  ;;  %v7757_v45 = vld [vmem:[#allocation11 + $0x560] sm:$0xff] }
 0x701   :  { %v7765_v25 = vld [vmem:[#allocation11 + $0x5a0] sm:$0xff]  ;;  %v7756_v2 = vld [vmem:[#allocation11 + $0x558] sm:$0xff] }
 0x702   :  { %v7764_v3 = vld [vmem:[#allocation11 + $0x598] sm:$0xff] }
 0x703   :  { %3765 = vmatpush.bf16.msrb.mxu3 %v6652_v16  ;;  %3778 = vmatpush.bf16.msra.mxu0 %v6656_v50  ;;  %v6336_v16 = vor.u32 %v7591_v8, %v6333_v9  ;;  %v6340_v50 = vor.u32 %v7600_v11, %v6339_v10  ;;  %v7755_v8 = vld [vmem:[#allocation11 + $0x550] sm:$0xff] }
 0x704   :  { %3791 = vmatpush.bf16.msra.mxu1 %v6660_v37  ;;  %3804 = vmatpush.bf16.msra.mxu2 %v6664_v21  ;;  %v7736_v37 = vld [vmem:[#allocation11 + $0x4b8] sm:$0xff]  ;;  %v7763_v9 = vld [vmem:[#allocation11 + $0x590] sm:$0xff] }
 0x705   :  { %v7720_v21 = vld [vmem:[#allocation11 + $0x438] sm:$0xff]  ;;  %v7747_v10 = vld [vmem:[#allocation11 + $0x510] sm:$0xff] }
 0x706   :  { %v7771_v11 = vld [vmem:[#allocation11 + $0x5d0] sm:$0xff] }
 0x707   :  { %3766 = vmatpush.bf16.msrb.mxu3 %v6588_v29  ;;  %3779 = vmatpush.bf16.msra.mxu0 %v6592_v36  ;;  %v7734_v29 = vld [vmem:[#allocation11 + $0x4a8] sm:$0xff] }
 0x708   :  { %3792 = vmatpush.bf16.msra.mxu1 %v6596_v24  ;;  %3805 = vmatpush.bf16.msra.mxu2 %v6600_v33  ;;  %v7718_v36 = vld [vmem:[#allocation11 + $0x428] sm:$0xff]  ;;  %v7733_v24 = vld [vmem:[#allocation11 + $0x4a0] sm:$0xff] }
 0x709   :  { %v7717_v33 = vld [vmem:[#allocation11 + $0x420] sm:$0xff] }
 0x70b   :  { %3767 = vmatpush.bf16.msrb.mxu3 %v6524_v42  ;;  %3780 = vmatpush.bf16.msra.mxu0 %v6528_v43  ;;  %v7715_v42 = vld [vmem:[#allocation11 + $0x410] sm:$0xff] }
 0x70c   :  { %3793 = vmatpush.bf16.msra.mxu1 %v6532_v41  ;;  %3806 = vmatpush.bf16.msra.mxu2 %v6536_v48  ;;  %v7739_v43 = vld [vmem:[#allocation11 + $0x4d0] sm:$0xff]  ;;  %v7714_v41 = vld [vmem:[#allocation11 + $0x408] sm:$0xff] }
 0x70d   :  { %v7738_v48 = vld [vmem:[#allocation11 + $0x4c8] sm:$0xff] }
 0x70f   :  { %3768 = vmatpush.bf16.msrb.mxu3 %v6460_v54  ;;  %3781 = vmatpush.bf16.msra.mxu0 %v6464_v20  ;;  %v7752_v54 = vld [vmem:[#allocation11 + $0x538] sm:$0xff] }
 0x710   :  { %3794 = vmatpush.bf16.msra.mxu1 %v6468_v57  ;;  %3807 = vmatpush.bf16.msra.mxu2 %v6472_v58  ;;  %v7776_v20 = vld [vmem:[#allocation11 + $0x5f8] sm:$0xff]  ;;  %v7751_v57 = vld [vmem:[#allocation11 + $0x530] sm:$0xff] }
 0x711   :  { %v7775_v58 = vld [vmem:[#allocation11 + $0x5f0] sm:$0xff] }
 0x713   :  { %3769 = vmatpush.bf16.msrb.mxu3 %v6396_v0  ;;  %3782 = vmatpush.bf16.msra.mxu0 %v6400_v1  ;;  %v7749_v0 = vld [vmem:[#allocation11 + $0x520] sm:$0xff] }
 0x714   :  { %3795 = vmatpush.bf16.msra.mxu1 %v6404_v5  ;;  %3808 = vmatpush.bf16.msra.mxu2 %v6408_v6  ;;  %v7773_v1 = vld [vmem:[#allocation11 + $0x5e0] sm:$0xff]  ;;  %v7748_v5 = vld [vmem:[#allocation11 + $0x518] sm:$0xff] }
 0x715   :  { %v7772_v6 = vld [vmem:[#allocation11 + $0x5d8] sm:$0xff] }
 0x717   :  { %3770 = vmatpush.bf16.msrb.mxu3 %v6332_v15  ;;  %3783 = vmatpush.bf16.msra.mxu0 %v6336_v16  ;;  %v7746_v15 = vld [vmem:[#allocation11 + $0x508] sm:$0xff] }
 0x718   :  { %3796 = vmatpush.bf16.msra.mxu1 %v6340_v50  ;;  %3809 = vmatpush.bf16.msra.mxu2 %v6344_v19  ;;  %v7770_v16 = vld [vmem:[#allocation11 + $0x5c8] sm:$0xff]  ;;  %v7753_v50 = vld [vmem:[#allocation11 + $0x540] sm:$0xff] }
 0x719   :  { %v7761_v19 = vld [vmem:[#allocation11 + $0x580] sm:$0xff] }
 0x71a   :  { %3771 = vmatmul.bf16.vlgmr.msrb.gmra.mxu3 %v8298_v17  ;;  %3784 = vmatmul.bf16.vlgmr.msra.gmra.mxu0 %v8298_v17 }
 0x71b   :  { %4886 = vmatpush.bf16.msrb.mxu0 %v7728_v32  ;;  %3797 = vmatmul.bf16.vlgmr.msra.gmra.mxu1 %v8298_v17  ;;  %v7874_v32 = vld [vmem:[#allocation14] sm:$0xff] }
 0x71c   :  { %4899 = vmatpush.bf16.msrb.mxu1 %v7736_v37  ;;  %3810 = vmatmul.bf16.vlgmr.msra.gmra.mxu2 %v8298_v17  ;;  %v7741_v17 = vld [vmem:[#allocation11 + $0x4e0] sm:$0xff]  ;;  %v2920_v37 = vperm.slane %v7874_v32, 3 }
 0x71d   :  { %4873 = vmatpush.bf16.msra.mxu3 %v7720_v21  ;;  %4912 = vmatpush.bf16.msrb.mxu2 %v7744_v7  ;;  %v7745_v21 = vld [vmem:[#allocation11 + $0x500] sm:$0xff] }
 0x71e   :  { %v7769_v7 = vld [vmem:[#allocation11 + $0x5c0] sm:$0xff] }
 0x71f   :  { %4887 = vmatpush.bf16.msrb.mxu0 %v7727_v22  ;;  %v2921_v22 = vperm.slane %v7874_v32, 5 }
 0x720   :  { %4900 = vmatpush.bf16.msrb.mxu1 %v7735_v23  ;;  %v2952_v23 = vperm.slane %v2920_v37, 1 }
 0x721   :  { %4874 = vmatpush.bf16.msra.mxu3 %v7719_v26  ;;  %4913 = vmatpush.bf16.msrb.mxu2 %v7743_v27  ;;  %v2953_v26 = vperm.slane %v2921_v22, 1  ;;  %v2919_v27 = vperm.slane %v7874_v32, 1 }
 0x723   :  { %4888 = vmatpush.bf16.msrb.mxu0 %v7726_v28 }
 0x724   :  { %4901 = vmatpush.bf16.msrb.mxu1 %v7734_v29  ;;  %v2922_v29 = vperm.slane %v7874_v32, 7  ;;  %v7796_v32 = vld [vmem:[#allocation11 + $0x698] sm:$0xff] }
 0x725   :  { %4875 = vmatpush.bf16.msra.mxu3 %v7718_v36  ;;  %4914 = vmatpush.bf16.msrb.mxu2 %v7742_v30 }
 0x727   :  { %4889 = vmatpush.bf16.msrb.mxu0 %v7725_v31 }
 0x728   :  { %4902 = vmatpush.bf16.msrb.mxu1 %v7733_v24 }
 0x729   :  { %4876 = vmatpush.bf16.msra.mxu3 %v7717_v33  ;;  %4915 = vmatpush.bf16.msrb.mxu2 %v7741_v17  ;;  %v2951_v33 = vperm.slane %v2919_v27, 1 }
 0x72b   :  { %4890 = vmatpush.bf16.msrb.mxu0 %v7724_v34  ;;  %v2954_v34 = vperm.slane %v2922_v29, 1  ;;  %v7787_v29 = vld [vmem:[#allocation11 + $0x650] sm:$0xff] }
 0x72c   :  { %4903 = vmatpush.bf16.msrb.mxu1 %v7732_v35  ;;  %v7792_v35 = vld [vmem:[#allocation11 + $0x678] sm:$0xff] }
 0x72d   :  { %4877 = vmatpush.bf16.msra.mxu3 %v7716_v63  ;;  %4916 = vmatpush.bf16.msrb.mxu2 %v7740_v38  ;;  %v7800_v38 = vld [vmem:[#allocation11 + $0x6b8] sm:$0xff] }
 0x72f   :  { %4891 = vmatpush.bf16.msrb.mxu0 %v7723_v39 }
 0x730   :  { %4904 = vmatpush.bf16.msrb.mxu1 %v7731_v40 }
 0x731   :  { %4878 = vmatpush.bf16.msra.mxu3 %v7715_v42  ;;  %4917 = vmatpush.bf16.msrb.mxu2 %v7739_v43 }
 0x733   :  { %4892 = vmatpush.bf16.msrb.mxu0 %v7722_v44 }
 0x734   :  { %4905 = vmatpush.bf16.msrb.mxu1 %v7730_v47 }
 0x735   :  { %4879 = vmatpush.bf16.msra.mxu3 %v7714_v41  ;;  %4918 = vmatpush.bf16.msrb.mxu2 %v7738_v48  ;;  %v7791_v41 = vld [vmem:[#allocation11 + $0x670] sm:$0xff] }
 0x737   :  { %4893 = vmatpush.bf16.msrb.mxu0 %v7721_v18 }
 0x738   :  { %4906 = vmatpush.bf16.msrb.mxu1 %v7729_v46  ;;  %v7799_v46 = vld [vmem:[#allocation11 + $0x6b0] sm:$0xff] }
 0x739   :  { %4880 = vmatpush.bf16.msra.mxu3 %v7713_v52  ;;  %4919 = vmatpush.bf16.msrb.mxu2 %v7737_v53  ;;  %v7784_v53 = vld [vmem:[#allocation11 + $0x638] sm:$0xff] }
 0x73b   :  { %4938 = vmatpush.bf16.msra.mxu0 %v7760_v49  ;;  %v7875_v49 = vld [vmem:[#allocation14 + $0x8] sm:$0xff] }
 0x73c   :  { %4951 = vmatpush.bf16.msra.mxu1 %v7768_v51  ;;  %v2924_v51 = vperm.slane %v7875_v49, 3 }
 0x73d   :  { %4925 = vmatpush.bf16.msrb.mxu3 %v7752_v54  ;;  %4964 = vmatpush.bf16.msra.mxu2 %v7776_v20  ;;  %v2925_v54 = vperm.slane %v7875_v49, 5 }
 0x73f   :  { %4939 = vmatpush.bf16.msra.mxu0 %v7759_v55  ;;  %v7808_v55 = vld [vmem:[#allocation11 + $0x6f8] sm:$0xff] }
 0x740   :  { %4952 = vmatpush.bf16.msra.mxu1 %v7767_v56 }
 0x741   :  { %4926 = vmatpush.bf16.msrb.mxu3 %v7751_v57  ;;  %4965 = vmatpush.bf16.msra.mxu2 %v7775_v58  ;;  %v7790_v57 = vld [vmem:[#allocation11 + $0x668] sm:$0xff] }
 0x742   :  { %v7798_v58 = vld [vmem:[#allocation11 + $0x6a8] sm:$0xff] }
 0x743   :  { %4940 = vmatpush.bf16.msra.mxu0 %v7758_v59  ;;  %v2956_v59 = vperm.slane %v2924_v51, 1  ;;  %v7824_v51 = vld [vmem:[#allocation11 + $0x778] sm:$0xff] }
 0x744   :  { %4953 = vmatpush.bf16.msra.mxu1 %v7766_v60 }
 0x745   :  { %4927 = vmatpush.bf16.msrb.mxu3 %v7750_v61  ;;  %4966 = vmatpush.bf16.msra.mxu2 %v7774_v62  ;;  %v2957_v61 = vperm.slane %v2925_v54, 1  ;;  %v7783_v62 = vld [vmem:[#allocation11 + $0x630] sm:$0xff]  ;;  %v7832_v54 = vld [vmem:[#allocation11 + $0x7b8] sm:$0xff] }
 0x747   :  { %4941 = vmatpush.bf16.msra.mxu0 %v7757_v45 }
 0x748   :  { %4954 = vmatpush.bf16.msra.mxu1 %v7765_v25  ;;  %v7807_v25 = vld [vmem:[#allocation11 + $0x6f0] sm:$0xff] }
 0x749   :  { %4928 = vmatpush.bf16.msrb.mxu3 %v7749_v0  ;;  %4967 = vmatpush.bf16.msra.mxu2 %v7773_v1  ;;  %v2923_v0 = vperm.slane %v7875_v49, 1 }
 0x74b   :  { %4942 = vmatpush.bf16.msra.mxu0 %v7756_v2  ;;  %v7789_v2 = vld [vmem:[#allocation11 + $0x660] sm:$0xff] }
 0x74c   :  { %4955 = vmatpush.bf16.msra.mxu1 %v7764_v3  ;;  %v2926_v3 = vperm.slane %v7875_v49, 7  ;;  %v7793_v49 = vld [vmem:[#allocation11 + $0x680] sm:$0xff] }
 0x74d   :  { %4929 = vmatpush.bf16.msrb.mxu3 %v7748_v5  ;;  %4968 = vmatpush.bf16.msra.mxu2 %v7772_v6 }
 0x74f   :  { %4943 = vmatpush.bf16.msra.mxu0 %v7755_v8  ;;  %v7797_v8 = vld [vmem:[#allocation11 + $0x6a0] sm:$0xff] }
 0x750   :  { %4956 = vmatpush.bf16.msra.mxu1 %v7763_v9 }
 0x751   :  { %4930 = vmatpush.bf16.msrb.mxu3 %v7747_v10  ;;  %4969 = vmatpush.bf16.msra.mxu2 %v7771_v11  ;;  %v7782_v10 = vld [vmem:[#allocation11 + $0x628] sm:$0xff] }
 0x753   :  { %4944 = vmatpush.bf16.msra.mxu0 %v7754_v12  ;;  %v7806_v12 = vld [vmem:[#allocation11 + $0x6e8] sm:$0xff] }
 0x754   :  { %4957 = vmatpush.bf16.msra.mxu1 %v7762_v13  ;;  %v2955_v13 = vperm.slane %v2923_v0, 1 }
 0x755   :  { %4931 = vmatpush.bf16.msrb.mxu3 %v7746_v15  ;;  %4970 = vmatpush.bf16.msra.mxu2 %v7770_v16  ;;  %v2958_v16 = vperm.slane %v2926_v3, 1 }
 0x756   :  { %v3629_v28 = vpop.f32.mrf.mxu0 }
 0x757   :  { %4945 = vmatpush.bf16.msra.mxu0 %v7753_v50  ;;  %v3630_v36 = vadd.f32 %v3629_v28, %v2952_v23  ;;  %v3642_v30 = vpop.f32.mrf.mxu1  ;;  %v7788_v50 = vld [vmem:[#allocation11 + $0x658] sm:$0xff] }
 0x758   :  { %4958 = vmatpush.bf16.msra.mxu1 %v7761_v19  ;;  %v3643_v31 = vadd.f32 %v3642_v30, %v2953_v26  ;;  %v7805_v26 = vld [vmem:[#allocation11 + $0x6e0] sm:$0xff] }
 0x759   :  { %4932 = vmatpush.bf16.msrb.mxu3 %v7745_v21  ;;  %4971 = vmatpush.bf16.msra.mxu2 %v7769_v7  ;;  %v3816_v24 = vmax.f32 %v3630_v36, 0.0  ;;  %v7781_v7 = vld [vmem:[#allocation11 + $0x620] sm:$0xff] }
 0x75a   :  { %v3817_v17 = vmax.f32 %v3643_v31, 0.0  ;;  %v7795_v31 = vld [vmem:[#allocation11 + $0x690] sm:$0xff] }
 0x75b   :  { %v4089_v63 = vpack.c.bf16 %v3816_v24, %v3816_v24 }
 0x75c   :  { %v4090_v39 = vpack.c.bf16 %v3817_v17, %v3817_v17  ;;  %v3616_v40 = vpop.f32.mrf.mxu3 }
 0x75d   :  { %v3617_v42 = vadd.f32 %v3616_v40, %v2951_v33  ;;  %v3655_v43 = vpop.f32.mrf.mxu2  ;;  %4894 = vmatmul.bf16.vlgmr.msrb.gmra.mxu0 %v4089_v63  ;;  %v7780_v33 = vld [vmem:[#allocation11 + $0x618] sm:$0xff] }
 0x75e   :  { %v3656_v44 = vadd.f32 %v3655_v43, %v2954_v34  ;;  %4907 = vmatmul.bf16.vlgmr.msrb.gmra.mxu1 %v4090_v39  ;;  %4990 = vmatpush.bf16.msrb.mxu0 %v7792_v35  ;;  %v3631_v47 = vpop.f32.mrf.mxu0  ;;  %v7804_v34 = vld [vmem:[#allocation11 + $0x6d8] sm:$0xff]  ;;  %v7876_v35 = vld [vmem:[#allocation14 + $0x10] sm:$0xff] }
 0x75f   :  { %v3815_v48 = vmax.f32 %v3617_v42, 0.0  ;;  %5003 = vmatpush.bf16.msrb.mxu1 %v7800_v38  ;;  %v3644_v18 = vpop.f32.mrf.mxu1  ;;  %v2928_v63 = vperm.slane %v7876_v35, 3  ;;  %v7786_v39 = vld [vmem:[#allocation11 + $0x648] sm:$0xff]  ;;  %v2929_v40 = vperm.slane %v7876_v35, 5 }
 0x760   :  { %v3818_v52 = vmax.f32 %v3656_v44, 0.0  ;;  %v7794_v42 = vld [vmem:[#allocation11 + $0x688] sm:$0xff]  ;;  %v7779_v44 = vld [vmem:[#allocation11 + $0x610] sm:$0xff] }
 0x761   :  { %v4088_v20 = vpack.c.bf16 %v3815_v48, %v3815_v48  ;;  %v7803_v48 = vld [vmem:[#allocation11 + $0x6d0] sm:$0xff]  ;;  %v2961_v18 = vperm.slane %v2929_v40, 1 }
 0x762   :  { %v4091_v56 = vpack.c.bf16 %v3818_v52, %v3818_v52  ;;  %4991 = vmatpush.bf16.msrb.mxu0 %v7791_v41  ;;  %v2960_v41 = vperm.slane %v2928_v63, 1  ;;  %v2927_v52 = vperm.slane %v7876_v35, 1  ;;  %v7877_v63 = vld [vmem:[#allocation14 + $0x18] sm:$0xff] }
 0x763   :  { %5004 = vmatpush.bf16.msrb.mxu1 %v7799_v46  ;;  %4881 = vmatmul.bf16.vlgmr.msra.gmra.mxu3 %v4088_v20  ;;  %v7785_v46 = vld [vmem:[#allocation11 + $0x640] sm:$0xff]  ;;  %v7778_v20 = vld [vmem:[#allocation11 + $0x608] sm:$0xff]  ;;  %v2933_v40 = vperm.slane %v7877_v63, 5 }
 0x764   :  { %4920 = vmatmul.bf16.vlgmr.msrb.gmra.mxu2 %v4091_v56  ;;  %4977 = vmatpush.bf16.msra.mxu3 %v7784_v53  ;;  %v3618_v60 = vpop.f32.mrf.mxu3 }
 0x765   :  { %5016 = vmatpush.bf16.msrb.mxu2 %v7808_v55  ;;  %v3657_v45 = vpop.f32.mrf.mxu2  ;;  %v2930_v55 = vperm.slane %v7876_v35, 7  ;;  %v7812_v35 = vld [vmem:[#allocation11 + $0x718] sm:$0xff] }
 0x766   :  { %4992 = vmatpush.bf16.msrb.mxu0 %v7790_v57  ;;  %v3681_v1 = vpop.f32.mrf.mxu0 }
 0x767   :  { %5005 = vmatpush.bf16.msrb.mxu1 %v7798_v58  ;;  %v3682_v5 = vadd.f32 %v3681_v1, %v2956_v59  ;;  %v3694_v6 = vpop.f32.mrf.mxu1  ;;  %v7802_v58 = vld [vmem:[#allocation11 + $0x6c8] sm:$0xff]  ;;  %v2962_v45 = vperm.slane %v2930_v55, 1  ;;  %v7831_v1 = vld [vmem:[#allocation11 + $0x7b0] sm:$0xff] }
 0x768   :  { %v3695_v9 = vadd.f32 %v3694_v6, %v2957_v61  ;;  %4978 = vmatpush.bf16.msra.mxu3 %v7783_v62  ;;  %v2959_v61 = vperm.slane %v2927_v52, 1  ;;  %v7801_v6 = vld [vmem:[#allocation11 + $0x6c0] sm:$0xff]  ;;  %v2934_v52 = vperm.slane %v7877_v63, 7 }
 0x769   :  { %v3820_v11 = vmax.f32 %v3682_v5, 0.0  ;;  %5017 = vmatpush.bf16.msrb.mxu2 %v7807_v25  ;;  %v7823_v25 = vld [vmem:[#allocation11 + $0x770] sm:$0xff] }
 0x76a   :  { %v3821_v15 = vmax.f32 %v3695_v9, 0.0  ;;  %4993 = vmatpush.bf16.msrb.mxu0 %v7789_v2  ;;  %v7777_v2 = vld [vmem:[#allocation11 + $0x600] sm:$0xff] }
 0x76b   :  { %v4093_v19 = vpack.c.bf16 %v3820_v11, %v3820_v11  ;;  %5006 = vmatpush.bf16.msrb.mxu1 %v7797_v8  ;;  %v7816_v8 = vld [vmem:[#allocation11 + $0x738] sm:$0xff] }
 0x76c   :  { %v4094_v37 = vpack.c.bf16 %v3821_v15, %v3821_v15  ;;  %4979 = vmatpush.bf16.msra.mxu3 %v7782_v10  ;;  %v3668_v21 = vpop.f32.mrf.mxu3  ;;  %v7840_v11 = vld [vmem:[#allocation11 + $0x7f8] sm:$0xff]  ;;  %v7822_v15 = vld [vmem:[#allocation11 + $0x768] sm:$0xff] }
 0x76d   :  { %5018 = vmatpush.bf16.msrb.mxu2 %v7806_v12  ;;  %v3669_v22 = vadd.f32 %v3668_v21, %v2955_v13  ;;  %v3707_v23 = vpop.f32.mrf.mxu2  ;;  %4946 = vmatmul.bf16.vlgmr.msra.gmra.mxu0 %v4093_v19  ;;  %v7830_v19 = vld [vmem:[#allocation11 + $0x7a8] sm:$0xff] }
 0x76e   :  { %v3708_v27 = vadd.f32 %v3707_v23, %v2958_v16  ;;  %4959 = vmatmul.bf16.vlgmr.msra.gmra.mxu1 %v4094_v37  ;;  %4994 = vmatpush.bf16.msrb.mxu0 %v7788_v50  ;;  %v3683_v28 = vpop.f32.mrf.mxu0  ;;  %v7815_v37 = vld [vmem:[#allocation11 + $0x730] sm:$0xff]  ;;  %v7821_v23 = vld [vmem:[#allocation11 + $0x760] sm:$0xff] }
 0x76f   :  { %v3819_v36 = vmax.f32 %v3669_v22, 0.0  ;;  %5007 = vmatpush.bf16.msrb.mxu1 %v7796_v32  ;;  %v3696_v30 = vpop.f32.mrf.mxu1  ;;  %v7814_v28 = vld [vmem:[#allocation11 + $0x728] sm:$0xff] }
 0x770   :  { %v3822_v24 = vmax.f32 %v3708_v27, 0.0  ;;  %4980 = vmatpush.bf16.msra.mxu3 %v7781_v7  ;;  %v7839_v7 = vld [vmem:[#allocation11 + $0x7f0] sm:$0xff]  ;;  %v7820_v30 = vld [vmem:[#allocation11 + $0x758] sm:$0xff] }
 0x771   :  { %v4092_v17 = vpack.c.bf16 %v3819_v36, %v3819_v36  ;;  %5019 = vmatpush.bf16.msrb.mxu2 %v7805_v26  ;;  %v7829_v26 = vld [vmem:[#allocation11 + $0x7a0] sm:$0xff]  ;;  %v7838_v36 = vld [vmem:[#allocation11 + $0x7e8] sm:$0xff] }
 0x772   :  { %v4095_v38 = vpack.c.bf16 %v3822_v24, %v3822_v24  ;;  %4995 = vmatpush.bf16.msrb.mxu0 %v7787_v29  ;;  %v7813_v24 = vld [vmem:[#allocation11 + $0x720] sm:$0xff] }
 0x773   :  { %5008 = vmatpush.bf16.msrb.mxu1 %v7795_v31  ;;  %4933 = vmatmul.bf16.vlgmr.msrb.gmra.mxu3 %v4092_v17  ;;  %v7828_v31 = vld [vmem:[#allocation11 + $0x798] sm:$0xff]  ;;  %v7819_v17 = vld [vmem:[#allocation11 + $0x750] sm:$0xff] }
 0x774   :  { %4972 = vmatmul.bf16.vlgmr.msra.gmra.mxu2 %v4095_v38  ;;  %4981 = vmatpush.bf16.msra.mxu3 %v7780_v33  ;;  %v3670_v43 = vpop.f32.mrf.mxu3  ;;  %v7837_v33 = vld [vmem:[#allocation11 + $0x7e0] sm:$0xff]  ;;  %v2932_v38 = vperm.slane %v7877_v63, 3 }
 0x775   :  { %5020 = vmatpush.bf16.msrb.mxu2 %v7804_v34  ;;  %v3709_v47 = vpop.f32.mrf.mxu2  ;;  %v7827_v34 = vld [vmem:[#allocation11 + $0x790] sm:$0xff]  ;;  %v7826_v43 = vld [vmem:[#allocation11 + $0x788] sm:$0xff] }
 0x776   :  { %4996 = vmatpush.bf16.msrb.mxu0 %v7786_v39  ;;  %v7836_v39 = vld [vmem:[#allocation11 + $0x7d8] sm:$0xff]  ;;  %v7811_v47 = vld [vmem:[#allocation11 + $0x710] sm:$0xff] }
 0x777   :  { %5009 = vmatpush.bf16.msrb.mxu1 %v7794_v42  ;;  %v3733_v53 = vpop.f32.mrf.mxu0  ;;  %v7818_v42 = vld [vmem:[#allocation11 + $0x748] sm:$0xff] }
 0x778   :  { %4982 = vmatpush.bf16.msra.mxu3 %v7779_v44  ;;  %v3734_v56 = vadd.f32 %v3733_v53, %v2960_v41  ;;  %v2964_v44 = vperm.slane %v2932_v38, 1  ;;  %v2965_v41 = vperm.slane %v2933_v40, 1 }
 0x779   :  { %5021 = vmatpush.bf16.msrb.mxu2 %v7803_v48  ;;  %v7835_v48 = vld [vmem:[#allocation11 + $0x7d0] sm:$0xff] }
 0x77a   :  { %v3746_v57 = vpop.f32.mrf.mxu1  ;;  %4997 = vmatpush.bf16.msrb.mxu0 %v7785_v46  ;;  %v3824_v60 = vmax.f32 %v3734_v56, 0.0  ;;  %v2931_v46 = vperm.slane %v7877_v63, 1  ;;  %v7834_v56 = vld [vmem:[#allocation11 + $0x7c8] sm:$0xff] }
 0x77b   :  { %v3747_v59 = vadd.f32 %v3746_v57, %v2961_v18  ;;  %5010 = vmatpush.bf16.msrb.mxu1 %v7793_v49  ;;  %v7817_v18 = vld [vmem:[#allocation11 + $0x740] sm:$0xff] }
 0x77c   :  { %4983 = vmatpush.bf16.msra.mxu3 %v7778_v20  ;;  %v4097_v0 = vpack.c.bf16 %v3824_v60, %v3824_v60  ;;  %v7810_v20 = vld [vmem:[#allocation11 + $0x708] sm:$0xff]  ;;  %v2966_v60 = vperm.slane %v2934_v52, 1 }
 0x77d   :  { %v3825_v62 = vmax.f32 %v3747_v59, 0.0  ;;  %5022 = vmatpush.bf16.msrb.mxu2 %v7802_v58  ;;  %v3720_v5 = vpop.f32.mrf.mxu3  ;;  %v2963_v58 = vperm.slane %v2931_v46, 1 }
 0x77e   :  { %5042 = vmatpush.bf16.msra.mxu0 %v7824_v51  ;;  %v3721_v9 = vadd.f32 %v3720_v5, %v2959_v61  ;;  %v7825_v51 = vld [vmem:[#allocation11 + $0x780] sm:$0xff] }
 0x77f   :  { %5055 = vmatpush.bf16.msra.mxu1 %v7832_v54  ;;  %v4098_v3 = vpack.c.bf16 %v3825_v62, %v3825_v62  ;;  %4998 = vmatmul.bf16.vlgmr.msrb.gmra.mxu0 %v4097_v0  ;;  %v3735_v13 = vpop.f32.mrf.mxu0  ;;  %v7809_v62 = vld [vmem:[#allocation11 + $0x700] sm:$0xff] }
 0x780   :  { %v3759_v10 = vpop.f32.mrf.mxu2  ;;  %v3823_v16 = vmax.f32 %v3721_v9, 0.0  ;;  %4984 = vmatpush.bf16.msra.mxu3 %v7777_v2  ;;  %v7833_v0 = vld [vmem:[#allocation11 + $0x7c0] sm:$0xff] }
 0x781   :  { %v3760_v12 = vadd.f32 %v3759_v10, %v2962_v45  ;;  %5011 = vmatmul.bf16.vlgmr.msrb.gmra.mxu1 %v4098_v3  ;;  %5023 = vmatpush.bf16.msrb.mxu2 %v7801_v6 }
 0x782   :  { %5043 = vmatpush.bf16.msra.mxu0 %v7823_v25  ;;  %v3748_v50 = vpop.f32.mrf.mxu1  ;;  %v4096_v21 = vpack.c.bf16 %v3823_v16, %v3823_v16 }
 0x783   :  { %5056 = vmatpush.bf16.msra.mxu1 %v7831_v1  ;;  %v3826_v32 = vmax.f32 %v3760_v12, 0.0 }
 0x784   :  { %5029 = vmatpush.bf16.msrb.mxu3 %v7816_v8 }
 0x785   :  { %5068 = vmatpush.bf16.msra.mxu2 %v7840_v11  ;;  %v4099_v22 = vpack.c.bf16 %v3826_v32, %v3826_v32  ;;  %4985 = vmatmul.bf16.vlgmr.msra.gmra.mxu3 %v4096_v21  ;;  %v3722_v27 = vpop.f32.mrf.mxu3 }
 0x786   :  { %5044 = vmatpush.bf16.msra.mxu0 %v7822_v15 }
 0x787   :  { %5057 = vmatpush.bf16.msra.mxu1 %v7830_v19  ;;  %5024 = vmatmul.bf16.vlgmr.msrb.gmra.mxu2 %v4099_v22 }
 0x788   :  { %5030 = vmatpush.bf16.msrb.mxu3 %v7815_v37  ;;  %v3761_v29 = vpop.f32.mrf.mxu2 }
 0x789   :  { %5069 = vmatpush.bf16.msra.mxu2 %v7839_v7 }
 0x78a   :  { %5045 = vmatpush.bf16.msra.mxu0 %v7821_v23 }
 0x78b   :  { %5058 = vmatpush.bf16.msra.mxu1 %v7829_v26 }
 0x78c   :  { %5031 = vmatpush.bf16.msrb.mxu3 %v7814_v28 }
 0x78d   :  { %5070 = vmatpush.bf16.msra.mxu2 %v7838_v36  ;;  %v7878_v36 = vld [vmem:[#allocation13 + $0x8] sm:$0xff] }
 0x78e   :  { %5046 = vmatpush.bf16.msra.mxu0 %v7820_v30  ;;  %v4104_v30 = vperm.slane %v7878_v36, 2 }
 0x78f   :  { %5059 = vmatpush.bf16.msra.mxu1 %v7828_v31 }
 0x790   :  { %5032 = vmatpush.bf16.msrb.mxu3 %v7813_v24 }
 0x791   :  { %5071 = vmatpush.bf16.msra.mxu2 %v7837_v33 }
 0x792   :  { %5047 = vmatpush.bf16.msra.mxu0 %v7819_v17 }
 0x793   :  { %5060 = vmatpush.bf16.msra.mxu1 %v7827_v34 }
 0x794   :  { %5033 = vmatpush.bf16.msrb.mxu3 %v7812_v35 }
 0x795   :  { %5072 = vmatpush.bf16.msra.mxu2 %v7836_v39 }
 0x796   :  { %5048 = vmatpush.bf16.msra.mxu0 %v7818_v42 }
 0x797   :  { %v3785_v49 = vpop.f32.mrf.mxu0  ;;  %5061 = vmatpush.bf16.msra.mxu1 %v7826_v43 }
 0x798   :  { %v3786_v53 = vadd.f32 %v3785_v49, %v2964_v44  ;;  %v3798_v54 = vpop.f32.mrf.mxu1  ;;  %5034 = vmatpush.bf16.msrb.mxu3 %v7811_v47 }
 0x799   :  { %v3799_v55 = vadd.f32 %v3798_v54, %v2965_v41  ;;  %5073 = vmatpush.bf16.msra.mxu2 %v7835_v48 }
 0x79a   :  { %v3828_v57 = vmax.f32 %v3786_v53, 0.0  ;;  %5049 = vmatpush.bf16.msra.mxu0 %v7817_v18 }
 0x79b   :  { %v3829_v59 = vmax.f32 %v3799_v55, 0.0  ;;  %5062 = vmatpush.bf16.msra.mxu1 %v7825_v51 }
 0x79c   :  { %v4101_v61 = vpack.c.bf16 %v3828_v57, %v3828_v57  ;;  %5035 = vmatpush.bf16.msrb.mxu3 %v7810_v20 }
 0x79d   :  { %v4102_v45 = vpack.c.bf16 %v3829_v59, %v3829_v59  ;;  %v3772_v25 = vpop.f32.mrf.mxu3  ;;  %5074 = vmatpush.bf16.msra.mxu2 %v7834_v56 }
 0x79e   :  { %v3773_v1 = vadd.f32 %v3772_v25, %v2963_v58  ;;  %5050 = vmatmul.bf16.vlgmr.msra.gmra.mxu0 %v4101_v61 }
 0x79f   :  { %v3811_v2 = vpop.f32.mrf.mxu2  ;;  %5063 = vmatmul.bf16.vlgmr.msra.gmra.mxu1 %v4102_v45  ;;  %v3787_v5 = vpop.f32.mrf.mxu0 }
 0x7a0   :  { %v3812_v3 = vadd.f32 %v3811_v2, %v2966_v60  ;;  %v3827_v6 = vmax.f32 %v3773_v1, 0.0  ;;  %v3800_v8 = vpop.f32.mrf.mxu1  ;;  %5036 = vmatpush.bf16.msrb.mxu3 %v7809_v62 }
 0x7a1   :  { %5075 = vmatpush.bf16.msra.mxu2 %v7833_v0 }
 0x7a2   :  { %v3830_v9 = vmax.f32 %v3812_v3, 0.0  ;;  %v4100_v10 = vpack.c.bf16 %v3827_v6, %v3827_v6 }
 0x7a4   :  { %v4103_v11 = vpack.c.bf16 %v3830_v9, %v3830_v9  ;;  %5037 = vmatmul.bf16.vlgmr.msrb.gmra.mxu3 %v4100_v10 }
 0x7a5   :  { %v3774_v12 = vpop.f32.mrf.mxu3 }
 0x7a6   :  { %5076 = vmatmul.bf16.vlgmr.msra.gmra.mxu2 %v4103_v11 }
 0x7a7   :  { %v3813_v13 = vpop.f32.mrf.mxu2 }
 0x7da   :  { %v4895_v15 = vpop.f32.mrf.mxu0 }
 0x7db   :  { %v4908_v16 = vpop.f32.mrf.mxu1 }
 0x7e2   :  { %v4897_v50 = vpop.f32.mrf.mxu0 }
 0x7e3   :  { %v4910_v19 = vpop.f32.mrf.mxu1  ;;  %v5102_v50 = vperm.slane %v7878_v36, 7 }
 0x7e6   :  { %v4882_v32 = vpop.f32.mrf.mxu3 }
 0x7e7   :  { %v4921_v37 = vpop.f32.mrf.mxu2  ;;  %v4883_v31 = vadd.f32 %v4882_v32, %v4104_v30 }
 0x7e9   :  { %v4896_v35 = vadd.f32 %v4895_v15, %v4883_v31 }
 0x7ea   :  { %v4947_v21 = vpop.f32.mrf.mxu0 }
 0x7eb   :  { %v4960_v7 = vpop.f32.mrf.mxu1  ;;  %v4909_v63 = vadd.f32 %v4908_v16, %v4896_v35 }
 0x7ed   :  { %v4922_v40 = vadd.f32 %v4921_v37, %v4909_v63 }
 0x7ee   :  { %v4884_v22 = vpop.f32.mrf.mxu3 }
 0x7ef   :  { %v4923_v23 = vpop.f32.mrf.mxu2 }
 0x7f2   :  { %v4949_v26 = vpop.f32.mrf.mxu0 }
 0x7f3   :  { %v4962_v27 = vpop.f32.mrf.mxu1 }
 0x7f6   :  { %v4934_v28 = vpop.f32.mrf.mxu3 }
 0x7f7   :  { %v4973_v29 = vpop.f32.mrf.mxu2  ;;  %v4935_v44 = vadd.f32 %v4934_v28, %v4922_v40 }
 0x7f9   :  { %v4948_v47 = vadd.f32 %v4947_v21, %v4935_v44 }
 0x7fb   :  { %v4961_v18 = vadd.f32 %v4960_v7, %v4948_v47 }
 0x7fc   :  { %v4999_v24 = vpop.f32.mrf.mxu0 }
 0x7fd   :  { %v4974_v46 = vadd.f32 %v4973_v29, %v4961_v18 }
 0x7fe   :  { %v5012_v33 = vpop.f32.mrf.mxu1  ;;  %v4936_v17 = vpop.f32.mrf.mxu3 }
 0x7ff   :  { %v4975_v34 = vpop.f32.mrf.mxu2 }
 0x804   :  { %v5001_v38 = vpop.f32.mrf.mxu0 }
 0x806   :  { %v5014_v39 = vpop.f32.mrf.mxu1 }
 0x808   :  { %v4986_v42 = vpop.f32.mrf.mxu3 }
 0x809   :  { %v4987_v49 = vadd.f32 %v4986_v42, %v4974_v46  ;;  %v150_v42 = vld [vmem:[#allocation2] sm:$0xff] }
 0x80a   :  { %v5025_v43 = vpop.f32.mrf.mxu2 }
 0x80b   :  { %v5000_v53 = vadd.f32 %v4999_v24, %v4987_v49 }
 0x80d   :  { %v5013_v54 = vadd.f32 %v5012_v33, %v5000_v53 }
 0x80f   :  { %v5026_v56 = vadd.f32 %v5025_v43, %v5013_v54 }
 0x810   :  { %v4988_v41 = vpop.f32.mrf.mxu3 }
 0x812   :  { %v5027_v48 = vpop.f32.mrf.mxu2 }
 0x81b   :  { %v5051_v51 = vpop.f32.mrf.mxu0 }
 0x81c   :  { %v5064_v52 = vpop.f32.mrf.mxu1 }
 0x823   :  { %v5053_v20 = vpop.f32.mrf.mxu0 }
 0x824   :  { %v5066_v55 = vpop.f32.mrf.mxu1 }
 0x827   :  { %v5038_v57 = vpop.f32.mrf.mxu3 }
 0x828   :  { %v5039_v58 = vadd.f32 %v5038_v57, %v5026_v56 }
 0x829   :  { %v5077_v59 = vpop.f32.mrf.mxu2 }
 0x82a   :  { %v5052_v60 = vadd.f32 %v5051_v51, %v5039_v58 }
 0x82c   :  { %v5065_v61 = vadd.f32 %v5064_v52, %v5052_v60 }
 0x82e   :  { %v5078_v62 = vadd.f32 %v5077_v59, %v5065_v61 }
 0x82f   :  { %v5040_v45 = vpop.f32.mrf.mxu3 }
 0x830   :  { %v5081_v0 = vadd.f32 %v5078_v62, %v8294_v14  ;;  %v153_v14 = vld [vmem:[#allocation13 + $0x10] sm:$0x7] }
 0x831   :  { %v5079_v25 = vpop.f32.mrf.mxu2  ;;  %v5104_v37 = vperm.slane %v153_v14, 0  ;;  %v5126_v35 = vperm.slane %v153_v14, 1  ;;  %v5128_v39 = vperm.slane %v153_v14, 2 }
 0x832   :  { %5082 = vadd.xlane.f32.xlu1 %v5081_v0 }
 0x8a5   :  { %v5083_v1 = vpop.xlane.xlu1 %5082 }
 0x8a6   :  { %v5084_v2 = vmul.f32 %v5083_v1, %v8218_v4 }
 0x8a8   :  { %v5085_v3 = vsub.f32 %v5081_v0, %v5084_v2 }
 0x8aa   :  { %v5086_v5 = vmul.f32 %v5085_v3, %v5085_v3 }
 0x8ac   :  { %5087 = vadd.xlane.f32.xlu2 %v5086_v5 }
 0x91f   :  { %v5088_v6 = vpop.xlane.xlu2 %5087 }
 0x920   :  { %v5089_v8 = vmul.f32 %v5088_v6, %v8218_v4 }
 0x922   :  { %v5090_v9 = vadd.f32 1e-05, %v5089_v8 }
 0x924   :  { %7868 = vrsqrt.f32 %v5090_v9  ;;  %vm5097_vm1 = vweird.f32 %v5090_v9 }
 0x92a   :  { %v7869_v10 = vpop.eup %7868 }
 0x92b   :  { %v5092_v11 = vmul.f32 %v7869_v10, %v5090_v9  ;;  %vm5098_vm0 = vweird.f32 %v7869_v10 }
 0x92c   :  { %vm5099_vm2 = vmor %vm5097_vm1, %vm5098_vm0 }
 0x92d   :  { %v5093_v12 = vmul.f32 %v7869_v10, %v5092_v11 }
 0x92f   :  { %v5094_v13 = vmul.f32 0.5, %v5093_v12 }
 0x931   :  { %v5095_v15 = vsub.f32 1.5, %v5094_v13 }
 0x933   :  { %v5096_v16 = vmul.f32 %v7869_v10, %v5095_v15 }
 0x935   :  { %v5100_v19 = vsel %vm5099_vm2, %v7869_v10, %v5096_v16 }
 0x936   :  { %v5101_v32 = vmul.f32 %v5100_v19, %v5085_v3 }
 0x938   :  { %v5103_v21 = vmul.f32 %v5102_v50, %v5101_v32 }
 0x93a   :  { %v5105_v7 = vadd.f32 %v5104_v37, %v5103_v21 }
 0x93c   :  { %5106 = vadd.xlane.f32.xlu0 %v5105_v7 }
 0x9af   :  { %v5107_v22 = vpop.xlane.xlu0 %5106 }
 0x9b0   :  { %v5108_v23 = vmul.f32 %v5107_v22, %v8218_v4 }
 0x9b2   :  { %v5109_v26 = vsub.f32 %v5105_v7, %v5108_v23 }
 0x9b4   :  { %v5110_v27 = vmul.f32 %v5109_v26, %v5109_v26 }
 0x9b6   :  { %5111 = vadd.xlane.f32.xlu1 %v5110_v27 }
 0xa29   :  { %v5112_v28 = vpop.xlane.xlu1 %5111 }
 0xa2a   :  { %v5113_v29 = vmul.f32 %v5112_v28, %v8218_v4  ;;  %v5134_v4 = vlaneseq }
 0xa2c   :  { %v5114_v30 = vadd.f32 1e-05, %v5113_v29  ;;  %v5135_v47 = vand.u32 127, %v5134_v4 }
 0xa2e   :  { %7870 = vrsqrt.f32 %v5114_v30  ;;  %vm5121_vm4 = vweird.f32 %v5114_v30 }
 0xa34   :  { %v7871_v31 = vpop.eup %7870 }
 0xa35   :  { %v5116_v24 = vmul.f32 %v7871_v31, %v5114_v30  ;;  %vm5122_vm3 = vweird.f32 %v7871_v31 }
 0xa36   :  { %vm5123_vm5 = vmor %vm5121_vm4, %vm5122_vm3 }
 0xa37   :  { %v5117_v36 = vmul.f32 %v7871_v31, %v5116_v24 }
 0xa39   :  { %v5118_v33 = vmul.f32 0.5, %v5117_v36 }
 0xa3b   :  { %v5119_v17 = vsub.f32 1.5, %v5118_v33 }
 0xa3d   :  { %v5120_v34 = vmul.f32 %v7871_v31, %v5119_v17 }
 0xa3f   :  { %v5124_v63 = vsel %vm5123_vm5, %v7871_v31, %v5120_v34 }
 0xa40   :  { %v5125_v38 = vmul.f32 %v5124_v63, %v5109_v26 }
 0xa42   :  { %v5127_v40 = vmul.f32 %v5126_v35, %v5125_v38 }
 0xa44   :  { %v5129_v43 = vadd.f32 %v5128_v39, %v5127_v40 }
 0xa46   :  { %v5130_v44 = vmul.f32 %v5129_v43, %v150_v42 }
 0xa48   :  { %5131 = vadd.xlane.f32.xlu2 %v5130_v44 }
 0xabb   :  { %v5132_v41 = vpop.xlane.xlu2 %5131 }
 0xabc   :  { %v5136_v48 = vperm.slane %v5132_v41, %v5135_v47 }
 0xabe   :  { %5139 = vst.msk [vmem:[#allocation16] sm:$0x1] %vm5138_vm6, %v5136_v48 }
 0xabf   :  { %5150 = dma.vmem_to_hbm [thread:$0]  %s5146_s7, 16, %s5148_s22, [#allocation4]  }
 0xac0   :  { %8105 = dma.done.wait [#allocation4], 16  }
 0xac1   :  { %8106 = vsyncadd [#allocation4], 4294967280 }
 0xac2   :  { %5155 = vsyncpa [#allocation3], 1 }
 0xac3   :  { %5156 = vsyncpa [#allocation6], 1 }
 0xac4   :  { %5157 = vsyncpa [#allocation9], 1 }
 0xac5   :  { %5158 = vsyncpa [#allocation12], 1 }
 0xac6   :  { %5159 = vsyncpa [#allocation15], 1 }
 0xac7   :  { %5160 = vsyncpa [#allocation4], 1 }

</bundles_post_ra>
